<compile_context>
chip_gen: v5e
topology: v5e:2x2
jax: 0.10.0
libtpu: 0.0.40
codegen_flags: <defaults>
</compile_context>

<pallas_src>
import jax
import jax.numpy as jnp
from jax.experimental import pallas as pl
from jax.experimental.pallas import tpu as pltpu

BN_EPS = 1e-5
CPAD = 128            # every channel dimension padded to one 128-lane vreg
S0 = 16               # 4x4 initial spatial positions
FC_COLS = S0 * CPAD   # 2048 fc output columns, ordered (spatial, channel)


def _elu(y):
    # ELU(alpha=1) in f32; exp(min(y,0)) avoids overflow for y > 0.
    return jnp.where(y > 0.0, y, jnp.exp(jnp.minimum(y, 0.0)) - 1.0)


# --------------------------- kernel 1: fc layer ----------------------------- #
def _fc_kernel(z_ref, w_ref, shift_ref, o_ref):
    y = jnp.dot(z_ref[...], w_ref[...], preferred_element_type=jnp.float32)
    y = y + shift_ref[...]
    o_ref[...] = _elu(y).astype(o_ref.dtype)


def _fc_call(z_pad, w_p, shift_p):
    n = z_pad.shape[0]
    return pl.pallas_call(
        _fc_kernel,
        out_shape=jax.ShapeDtypeStruct((n, FC_COLS), jnp.bfloat16),
        grid_spec=pltpu.PrefetchScalarGridSpec(
            num_scalar_prefetch=0,
            grid=(1,),
            in_specs=[
                pl.BlockSpec((n, CPAD), lambda i: (0, 0)),
                pl.BlockSpec((CPAD, FC_COLS), lambda i: (0, 0)),
                pl.BlockSpec((1, FC_COLS), lambda i: (0, 0)),
            ],
            out_specs=pl.BlockSpec((n, FC_COLS), lambda i: (0, 0)),
        ),
        compiler_params=pltpu.CompilerParams(
            dimension_semantics=("arbitrary",),
            vmem_limit_bytes=32 * 1024 * 1024),
    )(z_pad, w_p, shift_p)


# ------------------ kernel 2: fused 4x ConvTranspose2d(2, s=2) -------------- #
def _layer(src_ref, w_ref, shift_ref, dst_ref, m, act, row_chunk=256):
    """One deconv layer: 4 group matmuls [rc,128] x [128,128].

    src holds m "pixels" x 128 channels (bf16).  Output tap g = (kh, kw) is
    written to dst rows [g*m, (g+1)*m): the pixel shuffle is only a row
    re-ordering that later layers / the final unscramble absorb.
    """
    nchunks = max(1, m // row_chunk)
    rc = m // nchunks
    for mb in range(nchunks):
        x = src_ref[mb * rc:(mb + 1) * rc, :]
        for g in range(4):
            y = jnp.dot(x, w_ref[:, g * CPAD:(g + 1) * CPAD],
                        preferred_element_type=jnp.float32)
            y = y + shift_ref[0:1, g * CPAD:(g + 1) * CPAD]
            dst_ref[g * m + mb * rc:g * m + (mb + 1) * rc, :] = (
                act(y).astype(dst_ref.dtype))


def _deconv_kernel(h_ref, w1_ref, s1_ref, w2_ref, s2_ref, w3_ref, s3_ref,
                   w4_ref, s4_ref, o_ref, a1, a2, a3):
    _layer(h_ref, w1_ref, s1_ref, a1, 16, _elu)            # 4x4   -> 8x8
    _layer(a1, w2_ref, s2_ref, a2, 64, _elu)                # 8x8   -> 16x16
    _layer(a2, w3_ref, s3_ref, a3, 256, _elu)               # 16x16 -> 32x32
    _layer(a3, w4_ref, s4_ref, o_ref, 1024, jnp.tanh)       # 32x32 -> 64x64


def _deconv_call(h, params):
    n = h.shape[0] // S0
    wspec = pl.BlockSpec((CPAD, 4 * CPAD), lambda i: (0, 0))
    sspec = pl.BlockSpec((1, 4 * CPAD), lambda i: (0, 0))
    return pl.pallas_call(
        _deconv_kernel,
        out_shape=jax.ShapeDtypeStruct((n * 4096, CPAD), jnp.float32),
        grid_spec=pltpu.PrefetchScalarGridSpec(
            num_scalar_prefetch=0,
            grid=(n,),
            in_specs=[
                pl.BlockSpec((S0, CPAD), lambda i: (i, 0)),
                wspec, sspec, wspec, sspec, wspec, sspec, wspec, sspec,
            ],
            out_specs=pl.BlockSpec((4096, CPAD), lambda i: (i, 0)),
            scratch_shapes=[
                pltpu.VMEM((64, CPAD), jnp.bfloat16),
                pltpu.VMEM((256, CPAD), jnp.bfloat16),
                pltpu.VMEM((1024, CPAD), jnp.bfloat16),
            ],
        ),
        compiler_params=pltpu.CompilerParams(
            dimension_semantics=("parallel",),
            vmem_limit_bytes=32 * 1024 * 1024),
    )(h,
      params["dc1_w"], params["dc1_shift"], params["dc2_w"], params["dc2_shift"],
      params["dc3_w"], params["dc3_shift"], params["dc4_w"], params["dc4_shift"])


# ---------------------------------- forward --------------------------------- #
def generator_forward(params, x, y):
    n = x.shape[0]
    z = jnp.concatenate([x, y], axis=1).astype(jnp.bfloat16)      # [N, nz+lsize]
    z_pad = jnp.pad(z, ((0, 0), (0, CPAD - z.shape[1])))           # single tiny pad
    h = _fc_call(z_pad, params["fc_w"], params["fc_shift"])        # [N, 2048] bf16
    h = h.reshape(n * S0, CPAD)                                    # rows (n, h0, w0)
    o = _deconv_call(h, params)                                    # [N*4096, 128] f32
    # rows decompose as (kh4,kw4, kh3,kw3, kh2,kw2, kh1,kw1, h0,w0); unscramble
    # to NCHW 64x64 on the tiny 3-channel slice.
    o = o.reshape(n, 2, 2, 2, 2, 2, 2, 2, 2, 4, 4, CPAD)[..., :3]
    o = jnp.transpose(o, (0, 11, 9, 7, 5, 3, 1, 10, 8, 6, 4, 2))
    return o.reshape(n, 3, 64, 64)


# --------------------------------- parameters -------------------------------- #
def make_params(key, nz=32, lsize=8, ngf=16):
    """Returns (packed params for the Pallas forward, torch-like params for ref)."""
    assert 8 * ngf <= 128 and nz + lsize <= 128
    c0 = 8 * ngf
    fin = nz + lsize
    fout = S0 * c0

    keys = iter(jax.random.split(key, 32))

    def rnd(shape, scale=0.05):
        return scale * jax.random.normal(next(keys), shape, jnp.float32)

    def bn(c):
        gamma = 1.0 + 0.1 * jax.random.normal(next(keys), (c,), jnp.float32)
        beta = 0.05 * jax.random.normal(next(keys), (c,), jnp.float32)
        mean = 0.05 * jax.random.normal(next(keys), (c,), jnp.float32)
        var = 1.0 + 0.1 * jnp.abs(jax.random.normal(next(keys), (c,), jnp.float32))
        return gamma, beta, mean, var

    packed, tp = {}, {}

    # ----- Linear + BatchNorm1d (eval) -----
    w_lin = rnd((fout, fin))          # torch layout [out_features, in_features]
    b_lin = rnd((fout,))
    g0, be0, m0, v0 = bn(fout)
    tp.update(W_lin=w_lin, b_lin=b_lin, g0=g0, be0=be0, m0=m0, v0=v0)

    scale0 = g0 / jnp.sqrt(v0 + BN_EPS)
    shift0 = (b_lin - m0) * scale0 + be0
    w_eff = (w_lin * scale0[:, None]).T                       # [fin, fout], col = c*16+s
    w_eff = w_eff.reshape(fin, c0, S0).transpose(0, 2, 1)     # [fin, s, c]
    w_eff = jnp.pad(w_eff, ((0, CPAD - fin), (0, 0), (0, CPAD - c0)))
    packed["fc_w"] = w_eff.reshape(CPAD, FC_COLS).astype(jnp.bfloat16)
    sh = jnp.pad(shift0.reshape(c0, S0).T, ((0, 0), (0, CPAD - c0)))
    packed["fc_shift"] = sh.reshape(1, FC_COLS).astype(jnp.float32)

    # ----- four ConvTranspose2d(k=2, s=2) layers (BN on 1..3) -----
    cfg = [(c0, 4 * ngf, True), (4 * ngf, 2 * ngf, True),
           (2 * ngf, ngf, True), (ngf, 3, False)]
    for li, (cin, cout, has_bn) in enumerate(cfg, start=1):
        w = rnd((cin, cout, 2, 2))    # torch ConvTranspose2d layout [Cin,Cout,kH,kW]
        b = rnd((cout,))
        tp[f"Wc{li}"], tp[f"bc{li}"] = w, b
        if has_bn:
            g, be, m, v = bn(cout)
            tp[f"g{li}"], tp[f"be{li}"], tp[f"m{li}"], tp[f"v{li}"] = g, be, m, v
            scale = g / jnp.sqrt(v + BN_EPS)
            shift = (b - m) * scale + be
        else:
            scale = jnp.ones((cout,), jnp.float32)
            shift = b
        w_eff = w * scale[None, :, None, None]                 # fold BN scale
        w_eff = jnp.transpose(w_eff, (0, 2, 3, 1))             # [cin, kh, kw, cout]
        w_eff = jnp.pad(w_eff, ((0, CPAD - cin), (0, 0), (0, 0), (0, CPAD - cout)))
        packed[f"dc{li}_w"] = w_eff.reshape(CPAD, 4 * CPAD).astype(jnp.bfloat16)
        sh = jnp.tile(jnp.pad(shift, (0, CPAD - cout)), 4)
        packed[f"dc{li}_shift"] = sh.reshape(1, 4 * CPAD).astype(jnp.float32)

    return packed, tp


# --------------------------- pure-JAX reference ------------------------------ #
def reference_forward(tp, x, y):
    hp = jax.lax.Precision.HIGHEST
    elu = lambda v: jnp.where(v > 0, v, jnp.expm1(jnp.minimum(v, 0.0)))
    z = jnp.concatenate([x, y], axis=1)
    v = jnp.dot(z, tp["W_lin"].T, precision=hp) + tp["b_lin"]
    v = (v - tp["m0"]) / jnp.sqrt(tp["v0"] + BN_EPS) * tp["g0"] + tp["be0"]
    v = elu(v)
    n = z.shape[0]
    feat = v.reshape(n, -1, 4, 4)
    for li in (1, 2, 3, 4):
        w, b = tp[f"Wc{li}"], tp[f"bc{li}"]
        _, cin, hh, ww = feat.shape
        cout = w.shape[1]
        o = jnp.einsum("nihw,iojk->nohjwk", feat, w, precision=hp)
        o = o.reshape(n, cout, 2 * hh, 2 * ww) + b[None, :, None, None]
        if li < 4:
            g, be = tp[f"g{li}"], tp[f"be{li}"]
            m, vv = tp[f"m{li}"], tp[f"v{li}"]
            o = (o - m[None, :, None, None]) / jnp.sqrt(vv[None, :, None, None] + BN_EPS)
            o = o * g[None, :, None, None] + be[None, :, None, None]
            feat = elu(o)
        else:
            feat = jnp.tanh(o)
    return feat


# ------------------------------------ main ----------------------------------- #
if __name__ == "__main__":
    key = jax.random.PRNGKey(0)
    kp, kx, ky = jax.random.split(key, 3)

    NZ, LSIZE, NGF, BATCH = 32, 8, 16, 2
    packed, tparams = make_params(kp, nz=NZ, lsize=LSIZE, ngf=NGF)
    x = jax.random.normal(kx, (BATCH, NZ), jnp.float32)
    y = jax.random.normal(ky, (BATCH, LSIZE), jnp.float32)

    fwd = jax.jit(generator_forward)
    out = jax.block_until_ready(fwd(packed, x, y))

    assert out.shape == (BATCH, 3, 64, 64), out.shape
    assert out.dtype == jnp.float32
    assert bool(jnp.all(jnp.isfinite(out)))
    assert bool(jnp.all(jnp.abs(out) <= 1.0 + 1e-5))          # tanh range

    ref = reference_forward(tparams, x, y)
    err = float(jnp.max(jnp.abs(out - ref)))
    assert err < 5e-2, f"max abs err vs reference: {err}"

    print("KERNEL_OK")
</pallas_src>

<mosaic_0001>
module attributes {stable_mosaic.version = 11 : i64} {
  func.func @_fc_kernel(%arg0: i32, %arg1: memref<2x128xbf16, #tpu.memory_space<vmem>>, %arg2: memref<128x2048xbf16, #tpu.memory_space<vmem>>, %arg3: memref<1x2048xf32, #tpu.memory_space<vmem>>, %arg4: memref<2x2048xbf16, #tpu.memory_space<vmem>>) attributes {dimension_semantics = [#tpu.dimension_semantics<arbitrary>], iteration_bounds = array<i64: 1>, scalar_prefetch = 0 : i64, scratch_operands = 0 : i64, tpu.core_type = #tpu.core_type<tc>, window_params = [{pipeline_mode = #tpu.pipeline_mode<synchronous>, transform_indices = @transform_0, window_bounds = array<i64: 2, 128>}, {pipeline_mode = #tpu.pipeline_mode<synchronous>, transform_indices = @transform_1, window_bounds = array<i64: 128, 2048>}, {pipeline_mode = #tpu.pipeline_mode<synchronous>, transform_indices = @transform_2, window_bounds = array<i64: 1, 2048>}, {pipeline_mode = #tpu.pipeline_mode<synchronous>, transform_indices = @transform_3, window_bounds = array<i64: 2, 2048>}]} {
    %c0 = arith.constant 0 : index
    %c0_0 = arith.constant 0 : index
    %0 = vector.load %arg1[%c0, %c0_0] : memref<2x128xbf16, #tpu.memory_space<vmem>>, vector<2x128xbf16>
    %c0_1 = arith.constant 0 : index
    %c0_2 = arith.constant 0 : index
    %1 = vector.load %arg2[%c0_1, %c0_2] : memref<128x2048xbf16, #tpu.memory_space<vmem>>, vector<128x2048xbf16>
    %cst = arith.constant dense<0.000000e+00> : vector<2x2048xf32>
    %2 = tpu.matmul %0, %1, %cst {dimension_numbers = #tpu.dot_dimension_numbers<[1], [0], [0], [1], [0, 0, 1, 1], [], []>} : vector<2x128xbf16>, vector<128x2048xbf16>, vector<2x2048xf32> -> vector<2x2048xf32>
    %c0_3 = arith.constant 0 : index
    %c0_4 = arith.constant 0 : index
    %3 = vector.load %arg3[%c0_3, %c0_4] : memref<1x2048xf32, #tpu.memory_space<vmem>>, vector<1x2048xf32>
    %4 = vector.broadcast %3 : vector<1x2048xf32> to vector<2x2048xf32>
    %5 = arith.addf %2, %4 : vector<2x2048xf32>
    %cst_5 = arith.constant 0.000000e+00 : f32
    %6 = vector.broadcast %cst_5 : f32 to vector<2x2048xf32>
    %7 = arith.cmpf ogt, %5, %6 : vector<2x2048xf32>
    %cst_6 = arith.constant 0.000000e+00 : f32
    %8 = vector.broadcast %cst_6 : f32 to vector<2x2048xf32>
    %9 = arith.minimumf %5, %8 : vector<2x2048xf32>
    %10 = math.exp %9 : vector<2x2048xf32>
    %cst_7 = arith.constant 1.000000e+00 : f32
    %11 = vector.broadcast %cst_7 : f32 to vector<2x2048xf32>
    %12 = arith.subf %10, %11 : vector<2x2048xf32>
    %13 = arith.select %7, %5, %12 : vector<2x2048xi1>, vector<2x2048xf32>
    %14 = arith.truncf %13 : vector<2x2048xf32> to vector<2x2048xbf16>
    %c0_8 = arith.constant 0 : index
    %c0_9 = arith.constant 0 : index
    %15 = vector.load %arg4[%c0_8, %c0_9] : memref<2x2048xbf16, #tpu.memory_space<vmem>>, vector<2x2048xbf16>
    tpu.vector_store %arg4[%c0_8, %c0_9], %14 {strides = array<i32>} : memref<2x2048xbf16, #tpu.memory_space<vmem>>, vector<2x2048xbf16>,
    return
  }
  func.func @transform_0(%arg0: i32) -> (i32, i32) {
    %c0_i32 = arith.constant 0 : i32
    %c0_i32_0 = arith.constant 0 : i32
    %c0_i32_1 = arith.constant 0 : i32
    return %c0_i32, %c0_i32_0 : i32, i32
  }
  func.func @transform_1(%arg0: i32) -> (i32, i32) {
    %c0_i32 = arith.constant 0 : i32
    %c0_i32_0 = arith.constant 0 : i32
    %c0_i32_1 = arith.constant 0 : i32
    return %c0_i32, %c0_i32_0 : i32, i32
  }
  func.func @transform_2(%arg0: i32) -> (i32, i32) {
    %c0_i32 = arith.constant 0 : i32
    %c0_i32_0 = arith.constant 0 : i32
    %c0_i32_1 = arith.constant 0 : i32
    return %c0_i32, %c0_i32_0 : i32, i32
  }
  func.func @transform_3(%arg0: i32) -> (i32, i32) {
    %c0_i32 = arith.constant 0 : i32
    %c0_i32_0 = arith.constant 0 : i32
    %c0_i32_1 = arith.constant 0 : i32
    return %c0_i32, %c0_i32_0 : i32, i32
  }
}

module attributes {stable_mosaic.version = 11 : i64} {
  func.func @_deconv_kernel(%arg0: i32, %arg1: memref<16x128xbf16, #tpu.memory_space<vmem>>, %arg2: memref<128x512xbf16, #tpu.memory_space<vmem>>, %arg3: memref<1x512xf32, #tpu.memory_space<vmem>>, %arg4: memref<128x512xbf16, #tpu.memory_space<vmem>>, %arg5: memref<1x512xf32, #tpu.memory_space<vmem>>, %arg6: memref<128x512xbf16, #tpu.memory_space<vmem>>, %arg7: memref<1x512xf32, #tpu.memory_space<vmem>>, %arg8: memref<128x512xbf16, #tpu.memory_space<vmem>>, %arg9: memref<1x512xf32, #tpu.memory_space<vmem>>, %arg10: memref<4096x128xf32, #tpu.memory_space<vmem>>, %arg11: memref<64x128xbf16, #tpu.memory_space<vmem>>, %arg12: memref<256x128xbf16, #tpu.memory_space<vmem>>, %arg13: memref<1024x128xbf16, #tpu.memory_space<vmem>>) attributes {dimension_semantics = [#tpu.dimension_semantics<parallel>], iteration_bounds = array<i64: 2>, scalar_prefetch = 0 : i64, scratch_operands = 3 : i64, tpu.core_type = #tpu.core_type<tc>, window_params = [{transform_indices = @transform_0, window_bounds = array<i64: 16, 128>}, {pipeline_mode = #tpu.pipeline_mode<synchronous>, transform_indices = @transform_1, window_bounds = array<i64: 128, 512>}, {pipeline_mode = #tpu.pipeline_mode<synchronous>, transform_indices = @transform_2, window_bounds = array<i64: 1, 512>}, {pipeline_mode = #tpu.pipeline_mode<synchronous>, transform_indices = @transform_3, window_bounds = array<i64: 128, 512>}, {pipeline_mode = #tpu.pipeline_mode<synchronous>, transform_indices = @transform_4, window_bounds = array<i64: 1, 512>}, {pipeline_mode = #tpu.pipeline_mode<synchronous>, transform_indices = @transform_5, window_bounds = array<i64: 128, 512>}, {pipeline_mode = #tpu.pipeline_mode<synchronous>, transform_indices = @transform_6, window_bounds = array<i64: 1, 512>}, {pipeline_mode = #tpu.pipeline_mode<synchronous>, transform_indices = @transform_7, window_bounds = array<i64: 128, 512>}, {pipeline_mode = #tpu.pipeline_mode<synchronous>, transform_indices = @transform_8, window_bounds = array<i64: 1, 512>}, {transform_indices = @transform_9, window_bounds = array<i64: 4096, 128>}]} {
    %c0 = arith.constant 0 : index
    %c0_0 = arith.constant 0 : index
    %0 = vector.load %arg1[%c0, %c0_0] : memref<16x128xbf16, #tpu.memory_space<vmem>>, vector<16x128xbf16>
    %c0_1 = arith.constant 0 : index
    %c0_2 = arith.constant 0 : index
    %1 = vector.load %arg2[%c0_1, %c0_2] : memref<128x512xbf16, #tpu.memory_space<vmem>>, vector<128x128xbf16>
    %cst = arith.constant dense<0.000000e+00> : vector<16x128xf32>
    %2 = tpu.matmul %0, %1, %cst {dimension_numbers = #tpu.dot_dimension_numbers<[1], [0], [0], [1], [0, 0, 1, 1], [], []>} : vector<16x128xbf16>, vector<128x128xbf16>, vector<16x128xf32> -> vector<16x128xf32>
    %c0_3 = arith.constant 0 : index
    %c0_4 = arith.constant 0 : index
    %3 = vector.load %arg3[%c0_3, %c0_4] : memref<1x512xf32, #tpu.memory_space<vmem>>, vector<1x128xf32>
    %4 = vector.broadcast %3 : vector<1x128xf32> to vector<16x128xf32>
    %5 = arith.addf %2, %4 : vector<16x128xf32>
    %cst_5 = arith.constant 0.000000e+00 : f32
    %6 = vector.broadcast %cst_5 : f32 to vector<16x128xf32>
    %7 = arith.cmpf ogt, %5, %6 : vector<16x128xf32>
    %cst_6 = arith.constant 0.000000e+00 : f32
    %8 = vector.broadcast %cst_6 : f32 to vector<16x128xf32>
    %9 = arith.minimumf %5, %8 : vector<16x128xf32>
    %10 = math.exp %9 : vector<16x128xf32>
    %cst_7 = arith.constant 1.000000e+00 : f32
    %11 = vector.broadcast %cst_7 : f32 to vector<16x128xf32>
    %12 = arith.subf %10, %11 : vector<16x128xf32>
    %13 = arith.select %7, %5, %12 : vector<16x128xi1>, vector<16x128xf32>
    %14 = arith.truncf %13 : vector<16x128xf32> to vector<16x128xbf16>
    %c0_8 = arith.constant 0 : index
    %c0_9 = arith.constant 0 : index
    %15 = vector.load %arg11[%c0_8, %c0_9] : memref<64x128xbf16, #tpu.memory_space<vmem>>, vector<16x128xbf16>
    tpu.vector_store %arg11[%c0_8, %c0_9], %14 {strides = array<i32>} : memref<64x128xbf16, #tpu.memory_space<vmem>>, vector<16x128xbf16>,
    %c0_10 = arith.constant 0 : index
    %c128 = arith.constant 128 : index
    %16 = vector.load %arg2[%c0_10, %c128] : memref<128x512xbf16, #tpu.memory_space<vmem>>, vector<128x128xbf16>
    %cst_11 = arith.constant dense<0.000000e+00> : vector<16x128xf32>
    %17 = tpu.matmul %0, %16, %cst_11 {dimension_numbers = #tpu.dot_dimension_numbers<[1], [0], [0], [1], [0, 0, 1, 1], [], []>} : vector<16x128xbf16>, vector<128x128xbf16>, vector<16x128xf32> -> vector<16x128xf32>
    %c0_12 = arith.constant 0 : index
    %c128_13 = arith.constant 128 : index
    %18 = vector.load %arg3[%c0_12, %c128_13] : memref<1x512xf32, #tpu.memory_space<vmem>>, vector<1x128xf32>
    %19 = vector.broadcast %18 : vector<1x128xf32> to vector<16x128xf32>
    %20 = arith.addf %17, %19 : vector<16x128xf32>
    %cst_14 = arith.constant 0.000000e+00 : f32
    %21 = vector.broadcast %cst_14 : f32 to vector<16x128xf32>
    %22 = arith.cmpf ogt, %20, %21 : vector<16x128xf32>
    %cst_15 = arith.constant 0.000000e+00 : f32
    %23 = vector.broadcast %cst_15 : f32 to vector<16x128xf32>
    %24 = arith.minimumf %20, %23 : vector<16x128xf32>
    %25 = math.exp %24 : vector<16x128xf32>
    %cst_16 = arith.constant 1.000000e+00 : f32
    %26 = vector.broadcast %cst_16 : f32 to vector<16x128xf32>
    %27 = arith.subf %25, %26 : vector<16x128xf32>
    %28 = arith.select %22, %20, %27 : vector<16x128xi1>, vector<16x128xf32>
    %29 = arith.truncf %28 : vector<16x128xf32> to vector<16x128xbf16>
    %c16 = arith.constant 16 : index
    %c0_17 = arith.constant 0 : index
    %30 = vector.load %arg11[%c16, %c0_17] : memref<64x128xbf16, #tpu.memory_space<vmem>>, vector<16x128xbf16>
    tpu.vector_store %arg11[%c16, %c0_17], %29 {strides = array<i32>} : memref<64x128xbf16, #tpu.memory_space<vmem>>, vector<16x128xbf16>,
    %c0_18 = arith.constant 0 : index
    %c256 = arith.constant 256 : index
    %31 = vector.load %arg2[%c0_18, %c256] : memref<128x512xbf16, #tpu.memory_space<vmem>>, vector<128x128xbf16>
    %cst_19 = arith.constant dense<0.000000e+00> : vector<16x128xf32>
    %32 = tpu.matmul %0, %31, %cst_19 {dimension_numbers = #tpu.dot_dimension_numbers<[1], [0], [0], [1], [0, 0, 1, 1], [], []>} : vector<16x128xbf16>, vector<128x128xbf16>, vector<16x128xf32> -> vector<16x128xf32>
    %c0_20 = arith.constant 0 : index
    %c256_21 = arith.constant 256 : index
    %33 = vector.load %arg3[%c0_20, %c256_21] : memref<1x512xf32, #tpu.memory_space<vmem>>, vector<1x128xf32>
    %34 = vector.broadcast %33 : vector<1x128xf32> to vector<16x128xf32>
    %35 = arith.addf %32, %34 : vector<16x128xf32>
    %cst_22 = arith.constant 0.000000e+00 : f32
    %36 = vector.broadcast %cst_22 : f32 to vector<16x128xf32>
    %37 = arith.cmpf ogt, %35, %36 : vector<16x128xf32>
    %cst_23 = arith.constant 0.000000e+00 : f32
    %38 = vector.broadcast %cst_23 : f32 to vector<16x128xf32>
    %39 = arith.minimumf %35, %38 : vector<16x128xf32>
    %40 = math.exp %39 : vector<16x128xf32>
    %cst_24 = arith.constant 1.000000e+00 : f32
    %41 = vector.broadcast %cst_24 : f32 to vector<16x128xf32>
    %42 = arith.subf %40, %41 : vector<16x128xf32>
    %43 = arith.select %37, %35, %42 : vector<16x128xi1>, vector<16x128xf32>
    %44 = arith.truncf %43 : vector<16x128xf32> to vector<16x128xbf16>
    %c32 = arith.constant 32 : index
    %c0_25 = arith.constant 0 : index
    %45 = vector.load %arg11[%c32, %c0_25] : memref<64x128xbf16, #tpu.memory_space<vmem>>, vector<16x128xbf16>
    tpu.vector_store %arg11[%c32, %c0_25], %44 {strides = array<i32>} : memref<64x128xbf16, #tpu.memory_space<vmem>>, vector<16x128xbf16>,
    %c0_26 = arith.constant 0 : index
    %c384 = arith.constant 384 : index
    %46 = vector.load %arg2[%c0_26, %c384] : memref<128x512xbf16, #tpu.memory_space<vmem>>, vector<128x128xbf16>
    %cst_27 = arith.constant dense<0.000000e+00> : vector<16x128xf32>
    %47 = tpu.matmul %0, %46, %cst_27 {dimension_numbers = #tpu.dot_dimension_numbers<[1], [0], [0], [1], [0, 0, 1, 1], [], []>} : vector<16x128xbf16>, vector<128x128xbf16>, vector<16x128xf32> -> vector<16x128xf32>
    %c0_28 = arith.constant 0 : index
    %c384_29 = arith.constant 384 : index
    %48 = vector.load %arg3[%c0_28, %c384_29] : memref<1x512xf32, #tpu.memory_space<vmem>>, vector<1x128xf32>
    %49 = vector.broadcast %48 : vector<1x128xf32> to vector<16x128xf32>
    %50 = arith.addf %47, %49 : vector<16x128xf32>
    %cst_30 = arith.constant 0.000000e+00 : f32
    %51 = vector.broadcast %cst_30 : f32 to vector<16x128xf32>
    %52 = arith.cmpf ogt, %50, %51 : vector<16x128xf32>
    %cst_31 = arith.constant 0.000000e+00 : f32
    %53 = vector.broadcast %cst_31 : f32 to vector<16x128xf32>
    %54 = arith.minimumf %50, %53 : vector<16x128xf32>
    %55 = math.exp %54 : vector<16x128xf32>
    %cst_32 = arith.constant 1.000000e+00 : f32
    %56 = vector.broadcast %cst_32 : f32 to vector<16x128xf32>
    %57 = arith.subf %55, %56 : vector<16x128xf32>
    %58 = arith.select %52, %50, %57 : vector<16x128xi1>, vector<16x128xf32>
    %59 = arith.truncf %58 : vector<16x128xf32> to vector<16x128xbf16>
    %c48 = arith.constant 48 : index
    %c0_33 = arith.constant 0 : index
    %60 = vector.load %arg11[%c48, %c0_33] : memref<64x128xbf16, #tpu.memory_space<vmem>>, vector<16x128xbf16>
    tpu.vector_store %arg11[%c48, %c0_33], %59 {strides = array<i32>} : memref<64x128xbf16, #tpu.memory_space<vmem>>, vector<16x128xbf16>,
    %c0_34 = arith.constant 0 : index
    %c0_35 = arith.constant 0 : index
    %61 = vector.load %arg11[%c0_34, %c0_35] : memref<64x128xbf16, #tpu.memory_space<vmem>>, vector<64x128xbf16>
    %c0_36 = arith.constant 0 : index
    %c0_37 = arith.constant 0 : index
    %62 = vector.load %arg4[%c0_36, %c0_37] : memref<128x512xbf16, #tpu.memory_space<vmem>>, vector<128x128xbf16>
    %cst_38 = arith.constant dense<0.000000e+00> : vector<64x128xf32>
    %63 = tpu.matmul %61, %62, %cst_38 {dimension_numbers = #tpu.dot_dimension_numbers<[1], [0], [0], [1], [0, 0, 1, 1], [], []>} : vector<64x128xbf16>, vector<128x128xbf16>, vector<64x128xf32> -> vector<64x128xf32>
    %c0_39 = arith.constant 0 : index
    %c0_40 = arith.constant 0 : index
    %64 = vector.load %arg5[%c0_39, %c0_40] : memref<1x512xf32, #tpu.memory_space<vmem>>, vector<1x128xf32>
    %65 = vector.broadcast %64 : vector<1x128xf32> to vector<64x128xf32>
    %66 = arith.addf %63, %65 : vector<64x128xf32>
    %cst_41 = arith.constant 0.000000e+00 : f32
    %67 = vector.broadcast %cst_41 : f32 to vector<64x128xf32>
    %68 = arith.cmpf ogt, %66, %67 : vector<64x128xf32>
    %cst_42 = arith.constant 0.000000e+00 : f32
    %69 = vector.broadcast %cst_42 : f32 to vector<64x128xf32>
    %70 = arith.minimumf %66, %69 : vector<64x128xf32>
    %71 = math.exp %70 : vector<64x128xf32>
    %cst_43 = arith.constant 1.000000e+00 : f32
    %72 = vector.broadcast %cst_43 : f32 to vector<64x128xf32>
    %73 = arith.subf %71, %72 : vector<64x128xf32>
    %74 = arith.select %68, %66, %73 : vector<64x128xi1>, vector<64x128xf32>
    %75 = arith.truncf %74 : vector<64x128xf32> to vector<64x128xbf16>
    %c0_44 = arith.constant 0 : index
    %c0_45 = arith.constant 0 : index
    %76 = vector.load %arg12[%c0_44, %c0_45] : memref<256x128xbf16, #tpu.memory_space<vmem>>, vector<64x128xbf16>
    tpu.vector_store %arg12[%c0_44, %c0_45], %75 {strides = array<i32>} : memref<256x128xbf16, #tpu.memory_space<vmem>>, vector<64x128xbf16>,
    %c0_46 = arith.constant 0 : index
    %c128_47 = arith.constant 128 : index
    %77 = vector.load %arg4[%c0_46, %c128_47] : memref<128x512xbf16, #tpu.memory_space<vmem>>, vector<128x128xbf16>
    %cst_48 = arith.constant dense<0.000000e+00> : vector<64x128xf32>
    %78 = tpu.matmul %61, %77, %cst_48 {dimension_numbers = #tpu.dot_dimension_numbers<[1], [0], [0], [1], [0, 0, 1, 1], [], []>} : vector<64x128xbf16>, vector<128x128xbf16>, vector<64x128xf32> -> vector<64x128xf32>
    %c0_49 = arith.constant 0 : index
    %c128_50 = arith.constant 128 : index
    %79 = vector.load %arg5[%c0_49, %c128_50] : memref<1x512xf32, #tpu.memory_space<vmem>>, vector<1x128xf32>
    %80 = vector.broadcast %79 : vector<1x128xf32> to vector<64x128xf32>
    %81 = arith.addf %78, %80 : vector<64x128xf32>
    %cst_51 = arith.constant 0.000000e+00 : f32
    %82 = vector.broadcast %cst_51 : f32 to vector<64x128xf32>
    %83 = arith.cmpf ogt, %81, %82 : vector<64x128xf32>
    %cst_52 = arith.constant 0.000000e+00 : f32
    %84 = vector.broadcast %cst_52 : f32 to vector<64x128xf32>
    %85 = arith.minimumf %81, %84 : vector<64x128xf32>
    %86 = math.exp %85 : vector<64x128xf32>
    %cst_53 = arith.constant 1.000000e+00 : f32
    %87 = vector.broadcast %cst_53 : f32 to vector<64x128xf32>
    %88 = arith.subf %86, %87 : vector<64x128xf32>
    %89 = arith.select %83, %81, %88 : vector<64x128xi1>, vector<64x128xf32>
    %90 = arith.truncf %89 : vector<64x128xf32> to vector<64x128xbf16>
    %c64 = arith.constant 64 : index
    %c0_54 = arith.constant 0 : index
    %91 = vector.load %arg12[%c64, %c0_54] : memref<256x128xbf16, #tpu.memory_space<vmem>>, vector<64x128xbf16>
    tpu.vector_store %arg12[%c64, %c0_54], %90 {strides = array<i32>} : memref<256x128xbf16, #tpu.memory_space<vmem>>, vector<64x128xbf16>,
    %c0_55 = arith.constant 0 : index
    %c256_56 = arith.constant 256 : index
    %92 = vector.load %arg4[%c0_55, %c256_56] : memref<128x512xbf16, #tpu.memory_space<vmem>>, vector<128x128xbf16>
    %cst_57 = arith.constant dense<0.000000e+00> : vector<64x128xf32>
    %93 = tpu.matmul %61, %92, %cst_57 {dimension_numbers = #tpu.dot_dimension_numbers<[1], [0], [0], [1], [0, 0, 1, 1], [], []>} : vector<64x128xbf16>, vector<128x128xbf16>, vector<64x128xf32> -> vector<64x128xf32>
    %c0_58 = arith.constant 0 : index
    %c256_59 = arith.constant 256 : index
    %94 = vector.load %arg5[%c0_58, %c256_59] : memref<1x512xf32, #tpu.memory_space<vmem>>, vector<1x128xf32>
    %95 = vector.broadcast %94 : vector<1x128xf32> to vector<64x128xf32>
    %96 = arith.addf %93, %95 : vector<64x128xf32>
    %cst_60 = arith.constant 0.000000e+00 : f32
    %97 = vector.broadcast %cst_60 : f32 to vector<64x128xf32>
    %98 = arith.cmpf ogt, %96, %97 : vector<64x128xf32>
    %cst_61 = arith.constant 0.000000e+00 : f32
    %99 = vector.broadcast %cst_61 : f32 to vector<64x128xf32>
    %100 = arith.minimumf %96, %99 : vector<64x128xf32>
    %101 = math.exp %100 : vector<64x128xf32>
    %cst_62 = arith.constant 1.000000e+00 : f32
    %102 = vector.broadcast %cst_62 : f32 to vector<64x128xf32>
    %103 = arith.subf %101, %102 : vector<64x128xf32>
    %104 = arith.select %98, %96, %103 : vector<64x128xi1>, vector<64x128xf32>
    %105 = arith.truncf %104 : vector<64x128xf32> to vector<64x128xbf16>
    %c128_63 = arith.constant 128 : index
    %c0_64 = arith.constant 0 : index
    %106 = vector.load %arg12[%c128_63, %c0_64] : memref<256x128xbf16, #tpu.memory_space<vmem>>, vector<64x128xbf16>
    tpu.vector_store %arg12[%c128_63, %c0_64], %105 {strides = array<i32>} : memref<256x128xbf16, #tpu.memory_space<vmem>>, vector<64x128xbf16>,
    %c0_65 = arith.constant 0 : index
    %c384_66 = arith.constant 384 : index
    %107 = vector.load %arg4[%c0_65, %c384_66] : memref<128x512xbf16, #tpu.memory_space<vmem>>, vector<128x128xbf16>
    %cst_67 = arith.constant dense<0.000000e+00> : vector<64x128xf32>
    %108 = tpu.matmul %61, %107, %cst_67 {dimension_numbers = #tpu.dot_dimension_numbers<[1], [0], [0], [1], [0, 0, 1, 1], [], []>} : vector<64x128xbf16>, vector<128x128xbf16>, vector<64x128xf32> -> vector<64x128xf32>
    %c0_68 = arith.constant 0 : index
    %c384_69 = arith.constant 384 : index
    %109 = vector.load %arg5[%c0_68, %c384_69] : memref<1x512xf32, #tpu.memory_space<vmem>>, vector<1x128xf32>
    %110 = vector.broadcast %109 : vector<1x128xf32> to vector<64x128xf32>
    %111 = arith.addf %108, %110 : vector<64x128xf32>
    %cst_70 = arith.constant 0.000000e+00 : f32
    %112 = vector.broadcast %cst_70 : f32 to vector<64x128xf32>
    %113 = arith.cmpf ogt, %111, %112 : vector<64x128xf32>
    %cst_71 = arith.constant 0.000000e+00 : f32
    %114 = vector.broadcast %cst_71 : f32 to vector<64x128xf32>
    %115 = arith.minimumf %111, %114 : vector<64x128xf32>
    %116 = math.exp %115 : vector<64x128xf32>
    %cst_72 = arith.constant 1.000000e+00 : f32
    %117 = vector.broadcast %cst_72 : f32 to vector<64x128xf32>
    %118 = arith.subf %116, %117 : vector<64x128xf32>
    %119 = arith.select %113, %111, %118 : vector<64x128xi1>, vector<64x128xf32>
    %120 = arith.truncf %119 : vector<64x128xf32> to vector<64x128xbf16>
    %c192 = arith.constant 192 : index
    %c0_73 = arith.constant 0 : index
    %121 = vector.load %arg12[%c192, %c0_73] : memref<256x128xbf16, #tpu.memory_space<vmem>>, vector<64x128xbf16>
    tpu.vector_store %arg12[%c192, %c0_73], %120 {strides = array<i32>} : memref<256x128xbf16, #tpu.memory_space<vmem>>, vector<64x128xbf16>,
    %c0_74 = arith.constant 0 : index
    %c0_75 = arith.constant 0 : index
    %122 = vector.load %arg12[%c0_74, %c0_75] : memref<256x128xbf16, #tpu.memory_space<vmem>>, vector<256x128xbf16>
    %c0_76 = arith.constant 0 : index
    %c0_77 = arith.constant 0 : index
    %123 = vector.load %arg6[%c0_76, %c0_77] : memref<128x512xbf16, #tpu.memory_space<vmem>>, vector<128x128xbf16>
    %cst_78 = arith.constant dense<0.000000e+00> : vector<256x128xf32>
    %124 = tpu.matmul %122, %123, %cst_78 {dimension_numbers = #tpu.dot_dimension_numbers<[1], [0], [0], [1], [0, 0, 1, 1], [], []>} : vector<256x128xbf16>, vector<128x128xbf16>, vector<256x128xf32> -> vector<256x128xf32>
    %c0_79 = arith.constant 0 : index
    %c0_80 = arith.constant 0 : index
    %125 = vector.load %arg7[%c0_79, %c0_80] : memref<1x512xf32, #tpu.memory_space<vmem>>, vector<1x128xf32>
    %126 = vector.broadcast %125 : vector<1x128xf32> to vector<256x128xf32>
    %127 = arith.addf %124, %126 : vector<256x128xf32>
    %cst_81 = arith.constant 0.000000e+00 : f32
    %128 = vector.broadcast %cst_81 : f32 to vector<256x128xf32>
    %129 = arith.cmpf ogt, %127, %128 : vector<256x128xf32>
    %cst_82 = arith.constant 0.000000e+00 : f32
    %130 = vector.broadcast %cst_82 : f32 to vector<256x128xf32>
    %131 = arith.minimumf %127, %130 : vector<256x128xf32>
    %132 = math.exp %131 : vector<256x128xf32>
    %cst_83 = arith.constant 1.000000e+00 : f32
    %133 = vector.broadcast %cst_83 : f32 to vector<256x128xf32>
    %134 = arith.subf %132, %133 : vector<256x128xf32>
    %135 = arith.select %129, %127, %134 : vector<256x128xi1>, vector<256x128xf32>
    %136 = arith.truncf %135 : vector<256x128xf32> to vector<256x128xbf16>
    %c0_84 = arith.constant 0 : index
    %c0_85 = arith.constant 0 : index
    %137 = vector.load %arg13[%c0_84, %c0_85] : memref<1024x128xbf16, #tpu.memory_space<vmem>>, vector<256x128xbf16>
    tpu.vector_store %arg13[%c0_84, %c0_85], %136 {strides = array<i32>} : memref<1024x128xbf16, #tpu.memory_space<vmem>>, vector<256x128xbf16>,
    %c0_86 = arith.constant 0 : index
    %c128_87 = arith.constant 128 : index
    %138 = vector.load %arg6[%c0_86, %c128_87] : memref<128x512xbf16, #tpu.memory_space<vmem>>, vector<128x128xbf16>
    %cst_88 = arith.constant dense<0.000000e+00> : vector<256x128xf32>
    %139 = tpu.matmul %122, %138, %cst_88 {dimension_numbers = #tpu.dot_dimension_numbers<[1], [0], [0], [1], [0, 0, 1, 1], [], []>} : vector<256x128xbf16>, vector<128x128xbf16>, vector<256x128xf32> -> vector<256x128xf32>
    %c0_89 = arith.constant 0 : index
    %c128_90 = arith.constant 128 : index
    %140 = vector.load %arg7[%c0_89, %c128_90] : memref<1x512xf32, #tpu.memory_space<vmem>>, vector<1x128xf32>
    %141 = vector.broadcast %140 : vector<1x128xf32> to vector<256x128xf32>
    %142 = arith.addf %139, %141 : vector<256x128xf32>
    %cst_91 = arith.constant 0.000000e+00 : f32
    %143 = vector.broadcast %cst_91 : f32 to vector<256x128xf32>
    %144 = arith.cmpf ogt, %142, %143 : vector<256x128xf32>
    %cst_92 = arith.constant 0.000000e+00 : f32
    %145 = vector.broadcast %cst_92 : f32 to vector<256x128xf32>
    %146 = arith.minimumf %142, %145 : vector<256x128xf32>
    %147 = math.exp %146 : vector<256x128xf32>
    %cst_93 = arith.constant 1.000000e+00 : f32
    %148 = vector.broadcast %cst_93 : f32 to vector<256x128xf32>
    %149 = arith.subf %147, %148 : vector<256x128xf32>
    %150 = arith.select %144, %142, %149 : vector<256x128xi1>, vector<256x128xf32>
    %151 = arith.truncf %150 : vector<256x128xf32> to vector<256x128xbf16>
    %c256_94 = arith.constant 256 : index
    %c0_95 = arith.constant 0 : index
    %152 = vector.load %arg13[%c256_94, %c0_95] : memref<1024x128xbf16, #tpu.memory_space<vmem>>, vector<256x128xbf16>
    tpu.vector_store %arg13[%c256_94, %c0_95], %151 {strides = array<i32>} : memref<1024x128xbf16, #tpu.memory_space<vmem>>, vector<256x128xbf16>,
    %c0_96 = arith.constant 0 : index
    %c256_97 = arith.constant 256 : index
    %153 = vector.load %arg6[%c0_96, %c256_97] : memref<128x512xbf16, #tpu.memory_space<vmem>>, vector<128x128xbf16>
    %cst_98 = arith.constant dense<0.000000e+00> : vector<256x128xf32>
    %154 = tpu.matmul %122, %153, %cst_98 {dimension_numbers = #tpu.dot_dimension_numbers<[1], [0], [0], [1], [0, 0, 1, 1], [], []>} : vector<256x128xbf16>, vector<128x128xbf16>, vector<256x128xf32> -> vector<256x128xf32>
    %c0_99 = arith.constant 0 : index
    %c256_100 = arith.constant 256 : index
    %155 = vector.load %arg7[%c0_99, %c256_100] : memref<1x512xf32, #tpu.memory_space<vmem>>, vector<1x128xf32>
    %156 = vector.broadcast %155 : vector<1x128xf32> to vector<256x128xf32>
    %157 = arith.addf %154, %156 : vector<256x128xf32>
    %cst_101 = arith.constant 0.000000e+00 : f32
    %158 = vector.broadcast %cst_101 : f32 to vector<256x128xf32>
    %159 = arith.cmpf ogt, %157, %158 : vector<256x128xf32>
    %cst_102 = arith.constant 0.000000e+00 : f32
    %160 = vector.broadcast %cst_102 : f32 to vector<256x128xf32>
    %161 = arith.minimumf %157, %160 : vector<256x128xf32>
    %162 = math.exp %161 : vector<256x128xf32>
    %cst_103 = arith.constant 1.000000e+00 : f32
    %163 = vector.broadcast %cst_103 : f32 to vector<256x128xf32>
    %164 = arith.subf %162, %163 : vector<256x128xf32>
    %165 = arith.select %159, %157, %164 : vector<256x128xi1>, vector<256x128xf32>
    %166 = arith.truncf %165 : vector<256x128xf32> to vector<256x128xbf16>
    %c512 = arith.constant 512 : index
    %c0_104 = arith.constant 0 : index
    %167 = vector.load %arg13[%c512, %c0_104] : memref<1024x128xbf16, #tpu.memory_space<vmem>>, vector<256x128xbf16>
    tpu.vector_store %arg13[%c512, %c0_104], %166 {strides = array<i32>} : memref<1024x128xbf16, #tpu.memory_space<vmem>>, vector<256x128xbf16>,
    %c0_105 = arith.constant 0 : index
    %c384_106 = arith.constant 384 : index
    %168 = vector.load %arg6[%c0_105, %c384_106] : memref<128x512xbf16, #tpu.memory_space<vmem>>, vector<128x128xbf16>
    %cst_107 = arith.constant dense<0.000000e+00> : vector<256x128xf32>
    %169 = tpu.matmul %122, %168, %cst_107 {dimension_numbers = #tpu.dot_dimension_numbers<[1], [0], [0], [1], [0, 0, 1, 1], [], []>} : vector<256x128xbf16>, vector<128x128xbf16>, vector<256x128xf32> -> vector<256x128xf32>
    %c0_108 = arith.constant 0 : index
    %c384_109 = arith.constant 384 : index
    %170 = vector.load %arg7[%c0_108, %c384_109] : memref<1x512xf32, #tpu.memory_space<vmem>>, vector<1x128xf32>
    %171 = vector.broadcast %170 : vector<1x128xf32> to vector<256x128xf32>
    %172 = arith.addf %169, %171 : vector<256x128xf32>
    %cst_110 = arith.constant 0.000000e+00 : f32
    %173 = vector.broadcast %cst_110 : f32 to vector<256x128xf32>
    %174 = arith.cmpf ogt, %172, %173 : vector<256x128xf32>
    %cst_111 = arith.constant 0.000000e+00 : f32
    %175 = vector.broadcast %cst_111 : f32 to vector<256x128xf32>
    %176 = arith.minimumf %172, %175 : vector<256x128xf32>
    %177 = math.exp %176 : vector<256x128xf32>
    %cst_112 = arith.constant 1.000000e+00 : f32
    %178 = vector.broadcast %cst_112 : f32 to vector<256x128xf32>
    %179 = arith.subf %177, %178 : vector<256x128xf32>
    %180 = arith.select %174, %172, %179 : vector<256x128xi1>, vector<256x128xf32>
    %181 = arith.truncf %180 : vector<256x128xf32> to vector<256x128xbf16>
    %c768 = arith.constant 768 : index
    %c0_113 = arith.constant 0 : index
    %182 = vector.load %arg13[%c768, %c0_113] : memref<1024x128xbf16, #tpu.memory_space<vmem>>, vector<256x128xbf16>
    tpu.vector_store %arg13[%c768, %c0_113], %181 {strides = array<i32>} : memref<1024x128xbf16, #tpu.memory_space<vmem>>, vector<256x128xbf16>,
    %c0_114 = arith.constant 0 : index
    %c0_115 = arith.constant 0 : index
    %183 = vector.load %arg13[%c0_114, %c0_115] : memref<1024x128xbf16, #tpu.memory_space<vmem>>, vector<256x128xbf16>
    %c0_116 = arith.constant 0 : index
    %c0_117 = arith.constant 0 : index
    %184 = vector.load %arg8[%c0_116, %c0_117] : memref<128x512xbf16, #tpu.memory_space<vmem>>, vector<128x128xbf16>
    %cst_118 = arith.constant dense<0.000000e+00> : vector<256x128xf32>
    %185 = tpu.matmul %183, %184, %cst_118 {dimension_numbers = #tpu.dot_dimension_numbers<[1], [0], [0], [1], [0, 0, 1, 1], [], []>} : vector<256x128xbf16>, vector<128x128xbf16>, vector<256x128xf32> -> vector<256x128xf32>
    %c0_119 = arith.constant 0 : index
    %c0_120 = arith.constant 0 : index
    %186 = vector.load %arg9[%c0_119, %c0_120] : memref<1x512xf32, #tpu.memory_space<vmem>>, vector<1x128xf32>
    %187 = vector.broadcast %186 : vector<1x128xf32> to vector<256x128xf32>
    %188 = arith.addf %185, %187 : vector<256x128xf32>
    %189 = math.tanh %188 : vector<256x128xf32>
    %c0_121 = arith.constant 0 : index
    %c0_122 = arith.constant 0 : index
    %190 = vector.load %arg10[%c0_121, %c0_122] : memref<4096x128xf32, #tpu.memory_space<vmem>>, vector<256x128xf32>
    tpu.vector_store %arg10[%c0_121, %c0_122], %189 {strides = array<i32>} : memref<4096x128xf32, #tpu.memory_space<vmem>>, vector<256x128xf32>,
    %c0_123 = arith.constant 0 : index
    %c128_124 = arith.constant 128 : index
    %191 = vector.load %arg8[%c0_123, %c128_124] : memref<128x512xbf16, #tpu.memory_space<vmem>>, vector<128x128xbf16>
    %cst_125 = arith.constant dense<0.000000e+00> : vector<256x128xf32>
    %192 = tpu.matmul %183, %191, %cst_125 {dimension_numbers = #tpu.dot_dimension_numbers<[1], [0], [0], [1], [0, 0, 1, 1], [], []>} : vector<256x128xbf16>, vector<128x128xbf16>, vector<256x128xf32> -> vector<256x128xf32>
    %c0_126 = arith.constant 0 : index
    %c128_127 = arith.constant 128 : index
    %193 = vector.load %arg9[%c0_126, %c128_127] : memref<1x512xf32, #tpu.memory_space<vmem>>, vector<1x128xf32>
    %194 = vector.broadcast %193 : vector<1x128xf32> to vector<256x128xf32>
    %195 = arith.addf %192, %194 : vector<256x128xf32>
    %196 = math.tanh %195 : vector<256x128xf32>
    %c1024 = arith.constant 1024 : index
    %c0_128 = arith.constant 0 : index
    %197 = vector.load %arg10[%c1024, %c0_128] : memref<4096x128xf32, #tpu.memory_space<vmem>>, vector<256x128xf32>
    tpu.vector_store %arg10[%c1024, %c0_128], %196 {strides = array<i32>} : memref<4096x128xf32, #tpu.memory_space<vmem>>, vector<256x128xf32>,
    %c0_129 = arith.constant 0 : index
    %c256_130 = arith.constant 256 : index
    %198 = vector.load %arg8[%c0_129, %c256_130] : memref<128x512xbf16, #tpu.memory_space<vmem>>, vector<128x128xbf16>
    %cst_131 = arith.constant dense<0.000000e+00> : vector<256x128xf32>
    %199 = tpu.matmul %183, %198, %cst_131 {dimension_numbers = #tpu.dot_dimension_numbers<[1], [0], [0], [1], [0, 0, 1, 1], [], []>} : vector<256x128xbf16>, vector<128x128xbf16>, vector<256x128xf32> -> vector<256x128xf32>
    %c0_132 = arith.constant 0 : index
    %c256_133 = arith.constant 256 : index
    %200 = vector.load %arg9[%c0_132, %c256_133] : memref<1x512xf32, #tpu.memory_space<vmem>>, vector<1x128xf32>
    %201 = vector.broadcast %200 : vector<1x128xf32> to vector<256x128xf32>
    %202 = arith.addf %199, %201 : vector<256x128xf32>
    %203 = math.tanh %202 : vector<256x128xf32>
    %c2048 = arith.constant 2048 : index
    %c0_134 = arith.constant 0 : index
    %204 = vector.load %arg10[%c2048, %c0_134] : memref<4096x128xf32, #tpu.memory_space<vmem>>, vector<256x128xf32>
    tpu.vector_store %arg10[%c2048, %c0_134], %203 {strides = array<i32>} : memref<4096x128xf32, #tpu.memory_space<vmem>>, vector<256x128xf32>,
    %c0_135 = arith.constant 0 : index
    %c384_136 = arith.constant 384 : index
    %205 = vector.load %arg8[%c0_135, %c384_136] : memref<128x512xbf16, #tpu.memory_space<vmem>>, vector<128x128xbf16>
    %cst_137 = arith.constant dense<0.000000e+00> : vector<256x128xf32>
    %206 = tpu.matmul %183, %205, %cst_137 {dimension_numbers = #tpu.dot_dimension_numbers<[1], [0], [0], [1], [0, 0, 1, 1], [], []>} : vector<256x128xbf16>, vector<128x128xbf16>, vector<256x128xf32> -> vector<256x128xf32>
    %c0_138 = arith.constant 0 : index
    %c384_139 = arith.constant 384 : index
    %207 = vector.load %arg9[%c0_138, %c384_139] : memref<1x512xf32, #tpu.memory_space<vmem>>, vector<1x128xf32>
    %208 = vector.broadcast %207 : vector<1x128xf32> to vector<256x128xf32>
    %209 = arith.addf %206, %208 : vector<256x128xf32>
    %210 = math.tanh %209 : vector<256x128xf32>
    %c3072 = arith.constant 3072 : index
    %c0_140 = arith.constant 0 : index
    %211 = vector.load %arg10[%c3072, %c0_140] : memref<4096x128xf32, #tpu.memory_space<vmem>>, vector<256x128xf32>
    tpu.vector_store %arg10[%c3072, %c0_140], %210 {strides = array<i32>} : memref<4096x128xf32, #tpu.memory_space<vmem>>, vector<256x128xf32>,
    %c256_141 = arith.constant 256 : index
    %c0_142 = arith.constant 0 : index
    %212 = vector.load %arg13[%c256_141, %c0_142] : memref<1024x128xbf16, #tpu.memory_space<vmem>>, vector<256x128xbf16>
    %c0_143 = arith.constant 0 : index
    %c0_144 = arith.constant 0 : index
    %213 = vector.load %arg8[%c0_143, %c0_144] : memref<128x512xbf16, #tpu.memory_space<vmem>>, vector<128x128xbf16>
    %cst_145 = arith.constant dense<0.000000e+00> : vector<256x128xf32>
    %214 = tpu.matmul %212, %213, %cst_145 {dimension_numbers = #tpu.dot_dimension_numbers<[1], [0], [0], [1], [0, 0, 1, 1], [], []>} : vector<256x128xbf16>, vector<128x128xbf16>, vector<256x128xf32> -> vector<256x128xf32>
    %c0_146 = arith.constant 0 : index
    %c0_147 = arith.constant 0 : index
    %215 = vector.load %arg9[%c0_146, %c0_147] : memref<1x512xf32, #tpu.memory_space<vmem>>, vector<1x128xf32>
    %216 = vector.broadcast %215 : vector<1x128xf32> to vector<256x128xf32>
    %217 = arith.addf %214, %216 : vector<256x128xf32>
    %218 = math.tanh %217 : vector<256x128xf32>
    %c256_148 = arith.constant 256 : index
    %c0_149 = arith.constant 0 : index
    %219 = vector.load %arg10[%c256_148, %c0_149] : memref<4096x128xf32, #tpu.memory_space<vmem>>, vector<256x128xf32>
    tpu.vector_store %arg10[%c256_148, %c0_149], %218 {strides = array<i32>} : memref<4096x128xf32, #tpu.memory_space<vmem>>, vector<256x128xf32>,
    %c0_150 = arith.constant 0 : index
    %c128_151 = arith.constant 128 : index
    %220 = vector.load %arg8[%c0_150, %c128_151] : memref<128x512xbf16, #tpu.memory_space<vmem>>, vector<128x128xbf16>
    %cst_152 = arith.constant dense<0.000000e+00> : vector<256x128xf32>
    %221 = tpu.matmul %212, %220, %cst_152 {dimension_numbers = #tpu.dot_dimension_numbers<[1], [0], [0], [1], [0, 0, 1, 1], [], []>} : vector<256x128xbf16>, vector<128x128xbf16>, vector<256x128xf32> -> vector<256x128xf32>
    %c0_153 = arith.constant 0 : index
    %c128_154 = arith.constant 128 : index
    %222 = vector.load %arg9[%c0_153, %c128_154] : memref<1x512xf32, #tpu.memory_space<vmem>>, vector<1x128xf32>
    %223 = vector.broadcast %222 : vector<1x128xf32> to vector<256x128xf32>
    %224 = arith.addf %221, %223 : vector<256x128xf32>
    %225 = math.tanh %224 : vector<256x128xf32>
    %c1280 = arith.constant 1280 : index
    %c0_155 = arith.constant 0 : index
    %226 = vector.load %arg10[%c1280, %c0_155] : memref<4096x128xf32, #tpu.memory_space<vmem>>, vector<256x128xf32>
    tpu.vector_store %arg10[%c1280, %c0_155], %225 {strides = array<i32>} : memref<4096x128xf32, #tpu.memory_space<vmem>>, vector<256x128xf32>,
    %c0_156 = arith.constant 0 : index
    %c256_157 = arith.constant 256 : index
    %227 = vector.load %arg8[%c0_156, %c256_157] : memref<128x512xbf16, #tpu.memory_space<vmem>>, vector<128x128xbf16>
    %cst_158 = arith.constant dense<0.000000e+00> : vector<256x128xf32>
    %228 = tpu.matmul %212, %227, %cst_158 {dimension_numbers = #tpu.dot_dimension_numbers<[1], [0], [0], [1], [0, 0, 1, 1], [], []>} : vector<256x128xbf16>, vector<128x128xbf16>, vector<256x128xf32> -> vector<256x128xf32>
    %c0_159 = arith.constant 0 : index
    %c256_160 = arith.constant 256 : index
    %229 = vector.load %arg9[%c0_159, %c256_160] : memref<1x512xf32, #tpu.memory_space<vmem>>, vector<1x128xf32>
    %230 = vector.broadcast %229 : vector<1x128xf32> to vector<256x128xf32>
    %231 = arith.addf %228, %230 : vector<256x128xf32>
    %232 = math.tanh %231 : vector<256x128xf32>
    %c2304 = arith.constant 2304 : index
    %c0_161 = arith.constant 0 : index
    %233 = vector.load %arg10[%c2304, %c0_161] : memref<4096x128xf32, #tpu.memory_space<vmem>>, vector<256x128xf32>
    tpu.vector_store %arg10[%c2304, %c0_161], %232 {strides = array<i32>} : memref<4096x128xf32, #tpu.memory_space<vmem>>, vector<256x128xf32>,
    %c0_162 = arith.constant 0 : index
    %c384_163 = arith.constant 384 : index
    %234 = vector.load %arg8[%c0_162, %c384_163] : memref<128x512xbf16, #tpu.memory_space<vmem>>, vector<128x128xbf16>
    %cst_164 = arith.constant dense<0.000000e+00> : vector<256x128xf32>
    %235 = tpu.matmul %212, %234, %cst_164 {dimension_numbers = #tpu.dot_dimension_numbers<[1], [0], [0], [1], [0, 0, 1, 1], [], []>} : vector<256x128xbf16>, vector<128x128xbf16>, vector<256x128xf32> -> vector<256x128xf32>
    %c0_165 = arith.constant 0 : index
    %c384_166 = arith.constant 384 : index
    %236 = vector.load %arg9[%c0_165, %c384_166] : memref<1x512xf32, #tpu.memory_space<vmem>>, vector<1x128xf32>
    %237 = vector.broadcast %236 : vector<1x128xf32> to vector<256x128xf32>
    %238 = arith.addf %235, %237 : vector<256x128xf32>
    %239 = math.tanh %238 : vector<256x128xf32>
    %c3328 = arith.constant 3328 : index
    %c0_167 = arith.constant 0 : index
    %240 = vector.load %arg10[%c3328, %c0_167] : memref<4096x128xf32, #tpu.memory_space<vmem>>, vector<256x128xf32>
    tpu.vector_store %arg10[%c3328, %c0_167], %239 {strides = array<i32>} : memref<4096x128xf32, #tpu.memory_space<vmem>>, vector<256x128xf32>,
    %c512_168 = arith.constant 512 : index
    %c0_169 = arith.constant 0 : index
    %241 = vector.load %arg13[%c512_168, %c0_169] : memref<1024x128xbf16, #tpu.memory_space<vmem>>, vector<256x128xbf16>
    %c0_170 = arith.constant 0 : index
    %c0_171 = arith.constant 0 : index
    %242 = vector.load %arg8[%c0_170, %c0_171] : memref<128x512xbf16, #tpu.memory_space<vmem>>, vector<128x128xbf16>
    %cst_172 = arith.constant dense<0.000000e+00> : vector<256x128xf32>
    %243 = tpu.matmul %241, %242, %cst_172 {dimension_numbers = #tpu.dot_dimension_numbers<[1], [0], [0], [1], [0, 0, 1, 1], [], []>} : vector<256x128xbf16>, vector<128x128xbf16>, vector<256x128xf32> -> vector<256x128xf32>
    %c0_173 = arith.constant 0 : index
    %c0_174 = arith.constant 0 : index
    %244 = vector.load %arg9[%c0_173, %c0_174] : memref<1x512xf32, #tpu.memory_space<vmem>>, vector<1x128xf32>
    %245 = vector.broadcast %244 : vector<1x128xf32> to vector<256x128xf32>
    %246 = arith.addf %243, %245 : vector<256x128xf32>
    %247 = math.tanh %246 : vector<256x128xf32>
    %c512_175 = arith.constant 512 : index
    %c0_176 = arith.constant 0 : index
    %248 = vector.load %arg10[%c512_175, %c0_176] : memref<4096x128xf32, #tpu.memory_space<vmem>>, vector<256x128xf32>
    tpu.vector_store %arg10[%c512_175, %c0_176], %247 {strides = array<i32>} : memref<4096x128xf32, #tpu.memory_space<vmem>>, vector<256x128xf32>,
    %c0_177 = arith.constant 0 : index
    %c128_178 = arith.constant 128 : index
    %249 = vector.load %arg8[%c0_177, %c128_178] : memref<128x512xbf16, #tpu.memory_space<vmem>>, vector<128x128xbf16>
    %cst_179 = arith.constant dense<0.000000e+00> : vector<256x128xf32>
    %250 = tpu.matmul %241, %249, %cst_179 {dimension_numbers = #tpu.dot_dimension_numbers<[1], [0], [0], [1], [0, 0, 1, 1], [], []>} : vector<256x128xbf16>, vector<128x128xbf16>, vector<256x128xf32> -> vector<256x128xf32>
    %c0_180 = arith.constant 0 : index
    %c128_181 = arith.constant 128 : index
    %251 = vector.load %arg9[%c0_180, %c128_181] : memref<1x512xf32, #tpu.memory_space<vmem>>, vector<1x128xf32>
    %252 = vector.broadcast %251 : vector<1x128xf32> to vector<256x128xf32>
    %253 = arith.addf %250, %252 : vector<256x128xf32>
    %254 = math.tanh %253 : vector<256x128xf32>
    %c1536 = arith.constant 1536 : index
    %c0_182 = arith.constant 0 : index
    %255 = vector.load %arg10[%c1536, %c0_182] : memref<4096x128xf32, #tpu.memory_space<vmem>>, vector<256x128xf32>
    tpu.vector_store %arg10[%c1536, %c0_182], %254 {strides = array<i32>} : memref<4096x128xf32, #tpu.memory_space<vmem>>, vector<256x128xf32>,
    %c0_183 = arith.constant 0 : index
    %c256_184 = arith.constant 256 : index
    %256 = vector.load %arg8[%c0_183, %c256_184] : memref<128x512xbf16, #tpu.memory_space<vmem>>, vector<128x128xbf16>
    %cst_185 = arith.constant dense<0.000000e+00> : vector<256x128xf32>
    %257 = tpu.matmul %241, %256, %cst_185 {dimension_numbers = #tpu.dot_dimension_numbers<[1], [0], [0], [1], [0, 0, 1, 1], [], []>} : vector<256x128xbf16>, vector<128x128xbf16>, vector<256x128xf32> -> vector<256x128xf32>
    %c0_186 = arith.constant 0 : index
    %c256_187 = arith.constant 256 : index
    %258 = vector.load %arg9[%c0_186, %c256_187] : memref<1x512xf32, #tpu.memory_space<vmem>>, vector<1x128xf32>
    %259 = vector.broadcast %258 : vector<1x128xf32> to vector<256x128xf32>
    %260 = arith.addf %257, %259 : vector<256x128xf32>
    %261 = math.tanh %260 : vector<256x128xf32>
    %c2560 = arith.constant 2560 : index
    %c0_188 = arith.constant 0 : index
    %262 = vector.load %arg10[%c2560, %c0_188] : memref<4096x128xf32, #tpu.memory_space<vmem>>, vector<256x128xf32>
    tpu.vector_store %arg10[%c2560, %c0_188], %261 {strides = array<i32>} : memref<4096x128xf32, #tpu.memory_space<vmem>>, vector<256x128xf32>,
    %c0_189 = arith.constant 0 : index
    %c384_190 = arith.constant 384 : index
    %263 = vector.load %arg8[%c0_189, %c384_190] : memref<128x512xbf16, #tpu.memory_space<vmem>>, vector<128x128xbf16>
    %cst_191 = arith.constant dense<0.000000e+00> : vector<256x128xf32>
    %264 = tpu.matmul %241, %263, %cst_191 {dimension_numbers = #tpu.dot_dimension_numbers<[1], [0], [0], [1], [0, 0, 1, 1], [], []>} : vector<256x128xbf16>, vector<128x128xbf16>, vector<256x128xf32> -> vector<256x128xf32>
    %c0_192 = arith.constant 0 : index
    %c384_193 = arith.constant 384 : index
    %265 = vector.load %arg9[%c0_192, %c384_193] : memref<1x512xf32, #tpu.memory_space<vmem>>, vector<1x128xf32>
    %266 = vector.broadcast %265 : vector<1x128xf32> to vector<256x128xf32>
    %267 = arith.addf %264, %266 : vector<256x128xf32>
    %268 = math.tanh %267 : vector<256x128xf32>
    %c3584 = arith.constant 3584 : index
    %c0_194 = arith.constant 0 : index
    %269 = vector.load %arg10[%c3584, %c0_194] : memref<4096x128xf32, #tpu.memory_space<vmem>>, vector<256x128xf32>
    tpu.vector_store %arg10[%c3584, %c0_194], %268 {strides = array<i32>} : memref<4096x128xf32, #tpu.memory_space<vmem>>, vector<256x128xf32>,
    %c768_195 = arith.constant 768 : index
    %c0_196 = arith.constant 0 : index
    %270 = vector.load %arg13[%c768_195, %c0_196] : memref<1024x128xbf16, #tpu.memory_space<vmem>>, vector<256x128xbf16>
    %c0_197 = arith.constant 0 : index
    %c0_198 = arith.constant 0 : index
    %271 = vector.load %arg8[%c0_197, %c0_198] : memref<128x512xbf16, #tpu.memory_space<vmem>>, vector<128x128xbf16>
    %cst_199 = arith.constant dense<0.000000e+00> : vector<256x128xf32>
    %272 = tpu.matmul %270, %271, %cst_199 {dimension_numbers = #tpu.dot_dimension_numbers<[1], [0], [0], [1], [0, 0, 1, 1], [], []>} : vector<256x128xbf16>, vector<128x128xbf16>, vector<256x128xf32> -> vector<256x128xf32>
    %c0_200 = arith.constant 0 : index
    %c0_201 = arith.constant 0 : index
    %273 = vector.load %arg9[%c0_200, %c0_201] : memref<1x512xf32, #tpu.memory_space<vmem>>, vector<1x128xf32>
    %274 = vector.broadcast %273 : vector<1x128xf32> to vector<256x128xf32>
    %275 = arith.addf %272, %274 : vector<256x128xf32>
    %276 = math.tanh %275 : vector<256x128xf32>
    %c768_202 = arith.constant 768 : index
    %c0_203 = arith.constant 0 : index
    %277 = vector.load %arg10[%c768_202, %c0_203] : memref<4096x128xf32, #tpu.memory_space<vmem>>, vector<256x128xf32>
    tpu.vector_store %arg10[%c768_202, %c0_203], %276 {strides = array<i32>} : memref<4096x128xf32, #tpu.memory_space<vmem>>, vector<256x128xf32>,
    %c0_204 = arith.constant 0 : index
    %c128_205 = arith.constant 128 : index
    %278 = vector.load %arg8[%c0_204, %c128_205] : memref<128x512xbf16, #tpu.memory_space<vmem>>, vector<128x128xbf16>
    %cst_206 = arith.constant dense<0.000000e+00> : vector<256x128xf32>
    %279 = tpu.matmul %270, %278, %cst_206 {dimension_numbers = #tpu.dot_dimension_numbers<[1], [0], [0], [1], [0, 0, 1, 1], [], []>} : vector<256x128xbf16>, vector<128x128xbf16>, vector<256x128xf32> -> vector<256x128xf32>
    %c0_207 = arith.constant 0 : index
    %c128_208 = arith.constant 128 : index
    %280 = vector.load %arg9[%c0_207, %c128_208] : memref<1x512xf32, #tpu.memory_space<vmem>>, vector<1x128xf32>
    %281 = vector.broadcast %280 : vector<1x128xf32> to vector<256x128xf32>
    %282 = arith.addf %279, %281 : vector<256x128xf32>
    %283 = math.tanh %282 : vector<256x128xf32>
    %c1792 = arith.constant 1792 : index
    %c0_209 = arith.constant 0 : index
    %284 = vector.load %arg10[%c1792, %c0_209] : memref<4096x128xf32, #tpu.memory_space<vmem>>, vector<256x128xf32>
    tpu.vector_store %arg10[%c1792, %c0_209], %283 {strides = array<i32>} : memref<4096x128xf32, #tpu.memory_space<vmem>>, vector<256x128xf32>,
    %c0_210 = arith.constant 0 : index
    %c256_211 = arith.constant 256 : index
    %285 = vector.load %arg8[%c0_210, %c256_211] : memref<128x512xbf16, #tpu.memory_space<vmem>>, vector<128x128xbf16>
    %cst_212 = arith.constant dense<0.000000e+00> : vector<256x128xf32>
    %286 = tpu.matmul %270, %285, %cst_212 {dimension_numbers = #tpu.dot_dimension_numbers<[1], [0], [0], [1], [0, 0, 1, 1], [], []>} : vector<256x128xbf16>, vector<128x128xbf16>, vector<256x128xf32> -> vector<256x128xf32>
    %c0_213 = arith.constant 0 : index
    %c256_214 = arith.constant 256 : index
    %287 = vector.load %arg9[%c0_213, %c256_214] : memref<1x512xf32, #tpu.memory_space<vmem>>, vector<1x128xf32>
    %288 = vector.broadcast %287 : vector<1x128xf32> to vector<256x128xf32>
    %289 = arith.addf %286, %288 : vector<256x128xf32>
    %290 = math.tanh %289 : vector<256x128xf32>
    %c2816 = arith.constant 2816 : index
    %c0_215 = arith.constant 0 : index
    %291 = vector.load %arg10[%c2816, %c0_215] : memref<4096x128xf32, #tpu.memory_space<vmem>>, vector<256x128xf32>
    tpu.vector_store %arg10[%c2816, %c0_215], %290 {strides = array<i32>} : memref<4096x128xf32, #tpu.memory_space<vmem>>, vector<256x128xf32>,
    %c0_216 = arith.constant 0 : index
    %c384_217 = arith.constant 384 : index
    %292 = vector.load %arg8[%c0_216, %c384_217] : memref<128x512xbf16, #tpu.memory_space<vmem>>, vector<128x128xbf16>
    %cst_218 = arith.constant dense<0.000000e+00> : vector<256x128xf32>
    %293 = tpu.matmul %270, %292, %cst_218 {dimension_numbers = #tpu.dot_dimension_numbers<[1], [0], [0], [1], [0, 0, 1, 1], [], []>} : vector<256x128xbf16>, vector<128x128xbf16>, vector<256x128xf32> -> vector<256x128xf32>
    %c0_219 = arith.constant 0 : index
    %c384_220 = arith.constant 384 : index
    %294 = vector.load %arg9[%c0_219, %c384_220] : memref<1x512xf32, #tpu.memory_space<vmem>>, vector<1x128xf32>
    %295 = vector.broadcast %294 : vector<1x128xf32> to vector<256x128xf32>
    %296 = arith.addf %293, %295 : vector<256x128xf32>
    %297 = math.tanh %296 : vector<256x128xf32>
    %c3840 = arith.constant 3840 : index
    %c0_221 = arith.constant 0 : index
    %298 = vector.load %arg10[%c3840, %c0_221] : memref<4096x128xf32, #tpu.memory_space<vmem>>, vector<256x128xf32>
    tpu.vector_store %arg10[%c3840, %c0_221], %297 {strides = array<i32>} : memref<4096x128xf32, #tpu.memory_space<vmem>>, vector<256x128xf32>,
    return
  }
  func.func @transform_0(%arg0: i32) -> (i32, i32) {
    %c0_i32 = arith.constant 0 : i32
    %c0_i32_0 = arith.constant 0 : i32
    return %arg0, %c0_i32 : i32, i32
  }
  func.func @transform_1(%arg0: i32) -> (i32, i32) {
    %c0_i32 = arith.constant 0 : i32
    %c0_i32_0 = arith.constant 0 : i32
    %c0_i32_1 = arith.constant 0 : i32
    return %c0_i32, %c0_i32_0 : i32, i32
  }
  func.func @transform_2(%arg0: i32) -> (i32, i32) {
    %c0_i32 = arith.constant 0 : i32
    %c0_i32_0 = arith.constant 0 : i32
    %c0_i32_1 = arith.constant 0 : i32
    return %c0_i32, %c0_i32_0 : i32, i32
  }
  func.func @transform_3(%arg0: i32) -> (i32, i32) {
    %c0_i32 = arith.constant 0 : i32
    %c0_i32_0 = arith.constant 0 : i32
    %c0_i32_1 = arith.constant 0 : i32
    return %c0_i32, %c0_i32_0 : i32, i32
  }
  func.func @transform_4(%arg0: i32) -> (i32, i32) {
    %c0_i32 = arith.constant 0 : i32
    %c0_i32_0 = arith.constant 0 : i32
    %c0_i32_1 = arith.constant 0 : i32
    return %c0_i32, %c0_i32_0 : i32, i32
  }
  func.func @transform_5(%arg0: i32) -> (i32, i32) {
    %c0_i32 = arith.constant 0 : i32
    %c0_i32_0 = arith.constant 0 : i32
    %c0_i32_1 = arith.constant 0 : i32
    return %c0_i32, %c0_i32_0 : i32, i32
  }
  func.func @transform_6(%arg0: i32) -> (i32, i32) {
    %c0_i32 = arith.constant 0 : i32
    %c0_i32_0 = arith.constant 0 : i32
    %c0_i32_1 = arith.constant 0 : i32
    return %c0_i32, %c0_i32_0 : i32, i32
  }
  func.func @transform_7(%arg0: i32) -> (i32, i32) {
    %c0_i32 = arith.constant 0 : i32
    %c0_i32_0 = arith.constant 0 : i32
    %c0_i32_1 = arith.constant 0 : i32
    return %c0_i32, %c0_i32_0 : i32, i32
  }
  func.func @transform_8(%arg0: i32) -> (i32, i32) {
    %c0_i32 = arith.constant 0 : i32
    %c0_i32_0 = arith.constant 0 : i32
    %c0_i32_1 = arith.constant 0 : i32
    return %c0_i32, %c0_i32_0 : i32, i32
  }
  func.func @transform_9(%arg0: i32) -> (i32, i32) {
    %c0_i32 = arith.constant 0 : i32
    %c0_i32_0 = arith.constant 0 : i32
    return %arg0, %c0_i32 : i32, i32
  }
}

</mosaic_0001>

<bundles_post_ra>
// kernel: generator_forward.2
= control target key start
LH: loop header
LB: loop body
LE: loop exit
PB: predicated region body
PF: predicated region fallthrough
CT: control target
= control target key end

     0   :  { %8 = vsyncpa [#allocation3], 0  ;;  %s2056_s0 = inlined_call_operand.vmem [shape: bf16[2,128], index: 0, kind: input, shape index: {}]   ;;  %s2057_s1 = inlined_call_operand.hbm [shape: bf16[128,2048], index: 1, kind: input, shape index: {}]   ;;  %s2058_s2 = inlined_call_operand.hbm [shape: f32[1,2048], index: 2, kind: input, shape index: {}]   ;;  %s2059_s3 = inlined_call_operand.vmem [shape: bf16[2,2048], index: 3, kind: output, shape index: {}]  }
   0x1   :  { %s16_s14 = sshll.u32 %s2057_s1, 4  ;;  %s17_s14 = int_to_ptr.hbm [resolvable:$true] %s16_s14 }
   0x2   :  { %9 = vsyncpa [#allocation5], 0  ;;  %s1974_s15 = smov [#allocation2]   ;;  %s30_s19 = sshll.u32 %s2058_s2, 4  ;;  %s31_s19 = int_to_ptr.hbm [resolvable:$true] %s30_s19 }
   0x3   :  { %s18_s16 = sshll.u32 %s1974_s15, 4  ;;  %s1975_s20 = smov 1024   ;;  %s19_s16 = int_to_ptr.vmem [resolvable:$true] %s18_s16 }
   0x4   :  { %s1976_s21 = smov 64   ;;  %s1977_s22 = smov [#allocation4]  }
   0x5   :  { %24 = dma.hbm_to_vmem [thread:$0]  %s17_s14, 16384, %s19_s16, [#allocation3], %s1975_s20, %s1975_s20, %s1976_s21  }
   0x6   :  { %s32_s23 = sshll.u32 %s1977_s22, 4  ;;  %s33_s23 = int_to_ptr.vmem [resolvable:$true] %s32_s23 }
   0x7   :  { %35 = dma.hbm_to_vmem [thread:$0]  %s31_s19, 256, %s33_s23, [#allocation5]  }
   0x8   :  { %1970 = dma.done.wait [#allocation3], 16384  }
   0x9   :  { %1971 = vsyncadd [#allocation3], 4294950912 }
   0xa   :  { %1972 = dma.done.wait [#allocation5], 256  }
   0xb   :  { %1973 = vsyncadd [#allocation5], 4294967040  ;;  %v1680_v0 = vld [vmem:[#allocation2 + $0x380] sm:$0xf]  ;;  %v1870_v2 = vld [vmem:[#allocation2 + $0x384] sm:$0xf] }
   0xc   :  { %v1878_v1 = vld [vmem:[#allocation2 + $0x3bc] sm:$0xf0]  ;;  %v1682_v4 = vld [vmem:[#allocation2 + $0x3c0] sm:$0xf0]  ;;  %v1688_v5 = vld [vmem:[#allocation2 + $0x388] sm:$0xf] }
   0xd   :  { %v1681_v3 = vor.u32 %v1878_v1, %v1680_v0  ;;  %v1879_v6 = vld [vmem:[#allocation2 + $0x3c4] sm:$0xf0]  ;;  %v1685_v7 = vor.u32 %v1870_v2, %v1682_v4  ;;  %v1871_v9 = vld [vmem:[#allocation2 + $0x38c] sm:$0xf]  ;;  %v1616_v11 = vld [vmem:[#allocation2 + $0x300] sm:$0xf] }
   0xe   :  { %v1689_v8 = vor.u32 %v1879_v6, %v1688_v5  ;;  %v1690_v10 = vld [vmem:[#allocation2 + $0x3c8] sm:$0xf0]  ;;  %v1862_v13 = vld [vmem:[#allocation2 + $0x33c] sm:$0xf0]  ;;  %v1854_v14 = vld [vmem:[#allocation2 + $0x304] sm:$0xf] }
   0xf   :  { %849 = vmatpush.bf16.msra.mxu0 %v1681_v3  ;;  %v1693_v12 = vor.u32 %v1871_v9, %v1690_v10  ;;  %v1618_v15 = vld [vmem:[#allocation2 + $0x340] sm:$0xf0]  ;;  %862 = vmatpush.bf16.msra.mxu1 %v1685_v7  ;;  %v1617_v16 = vor.u32 %v1862_v13, %v1616_v11  ;;  %v1624_v18 = vld [vmem:[#allocation2 + $0x308] sm:$0xf]  ;;  %v1855_v20 = vld [vmem:[#allocation2 + $0x30c] sm:$0xf] }
  0x10   :  { %875 = vmatpush.bf16.msra.mxu2 %v1689_v8  ;;  %v1621_v17 = vor.u32 %v1854_v14, %v1618_v15  ;;  %v1863_v19 = vld [vmem:[#allocation2 + $0x344] sm:$0xf0]  ;;  %v1626_v22 = vld [vmem:[#allocation2 + $0x348] sm:$0xf0]  ;;  %v1552_v23 = vld [vmem:[#allocation2 + $0x280] sm:$0xf] }
  0x11   :  { %888 = vmatpush.bf16.msra.mxu3 %v1693_v12  ;;  %v1625_v21 = vor.u32 %v1863_v19, %v1624_v18  ;;  %v1846_v24 = vld [vmem:[#allocation2 + $0x2bc] sm:$0xf0]  ;;  %v1629_v25 = vor.u32 %v1855_v20, %v1626_v22  ;;  %v1838_v26 = vld [vmem:[#allocation2 + $0x284] sm:$0xf]  ;;  %v1560_v28 = vld [vmem:[#allocation2 + $0x288] sm:$0xf] }
  0x12   :  { %v1554_v27 = vld [vmem:[#allocation2 + $0x2c0] sm:$0xf0]  ;;  %v1553_v29 = vor.u32 %v1846_v24, %v1552_v23  ;;  %v1847_v30 = vld [vmem:[#allocation2 + $0x2c4] sm:$0xf0]  ;;  %v1839_v31 = vld [vmem:[#allocation2 + $0x28c] sm:$0xf] }
  0x13   :  { %850 = vmatpush.bf16.msra.mxu0 %v1617_v16  ;;  %v1562_v32 = vld [vmem:[#allocation2 + $0x2c8] sm:$0xf0]  ;;  %863 = vmatpush.bf16.msra.mxu1 %v1621_v17  ;;  %v1557_v33 = vor.u32 %v1838_v26, %v1554_v27  ;;  %v1561_v34 = vor.u32 %v1847_v30, %v1560_v28  ;;  %v1488_v35 = vld [vmem:[#allocation2 + $0x200] sm:$0xf]  ;;  %v1822_v37 = vld [vmem:[#allocation2 + $0x204] sm:$0xf] }
  0x14   :  { %876 = vmatpush.bf16.msra.mxu2 %v1625_v21  ;;  %v1830_v36 = vld [vmem:[#allocation2 + $0x23c] sm:$0xf0]  ;;  %v1565_v38 = vor.u32 %v1839_v31, %v1562_v32  ;;  %v1490_v39 = vld [vmem:[#allocation2 + $0x240] sm:$0xf0]  ;;  %v1496_v40 = vld [vmem:[#allocation2 + $0x208] sm:$0xf] }
  0x15   :  { %889 = vmatpush.bf16.msra.mxu3 %v1629_v25  ;;  %v1831_v41 = vld [vmem:[#allocation2 + $0x244] sm:$0xf0]  ;;  %v1823_v42 = vld [vmem:[#allocation2 + $0x20c] sm:$0xf]  ;;  %v1489_v44 = vor.u32 %v1830_v36, %v1488_v35  ;;  %v1493_v45 = vor.u32 %v1822_v37, %v1490_v39  ;;  %v1424_v47 = vld [vmem:[#allocation2 + $0x180] sm:$0xf] }
  0x16   :  { %v1498_v43 = vld [vmem:[#allocation2 + $0x248] sm:$0xf0]  ;;  %v1497_v46 = vor.u32 %v1831_v41, %v1496_v40  ;;  %v1814_v48 = vld [vmem:[#allocation2 + $0x1bc] sm:$0xf0]  ;;  %v1806_v49 = vld [vmem:[#allocation2 + $0x184] sm:$0xf] }
  0x17   :  { %851 = vmatpush.bf16.msra.mxu0 %v1553_v29  ;;  %864 = vmatpush.bf16.msra.mxu1 %v1557_v33  ;;  %v1501_v50 = vor.u32 %v1823_v42, %v1498_v43  ;;  %v1426_v51 = vld [vmem:[#allocation2 + $0x1c0] sm:$0xf0]  ;;  %v1432_v52 = vld [vmem:[#allocation2 + $0x188] sm:$0xf]  ;;  %v1807_v54 = vld [vmem:[#allocation2 + $0x18c] sm:$0xf]  ;;  %v1425_v56 = vor.u32 %v1814_v48, %v1424_v47 }
  0x18   :  { %877 = vmatpush.bf16.msra.mxu2 %v1561_v34  ;;  %v1815_v53 = vld [vmem:[#allocation2 + $0x1c4] sm:$0xf0]  ;;  %v1434_v55 = vld [vmem:[#allocation2 + $0x1c8] sm:$0xf0]  ;;  %v1429_v57 = vor.u32 %v1806_v49, %v1426_v51  ;;  %v1360_v59 = vld [vmem:[#allocation2 + $0x100] sm:$0xf] }
  0x19   :  { %890 = vmatpush.bf16.msra.mxu3 %v1565_v38  ;;  %v1433_v58 = vor.u32 %v1815_v53, %v1432_v52  ;;  %v1798_v60 = vld [vmem:[#allocation2 + $0x13c] sm:$0xf0]  ;;  %v1790_v61 = vld [vmem:[#allocation2 + $0x104] sm:$0xf]  ;;  %v1437_v62 = vor.u32 %v1807_v54, %v1434_v55  ;;  %v1368_v0 = vld [vmem:[#allocation2 + $0x108] sm:$0xf] }
  0x1a   :  { %v1362_v63 = vld [vmem:[#allocation2 + $0x140] sm:$0xf0]  ;;  %v1799_v1 = vld [vmem:[#allocation2 + $0x144] sm:$0xf0]  ;;  %v1791_v2 = vld [vmem:[#allocation2 + $0x10c] sm:$0xf]  ;;  %v1361_v4 = vor.u32 %v1798_v60, %v1360_v59 }
  0x1b   :  { %852 = vmatpush.bf16.msra.mxu0 %v1489_v44  ;;  %865 = vmatpush.bf16.msra.mxu1 %v1493_v45  ;;  %v1370_v3 = vld [vmem:[#allocation2 + $0x148] sm:$0xf0]  ;;  %v1365_v5 = vor.u32 %v1790_v61, %v1362_v63  ;;  %v1369_v6 = vor.u32 %v1799_v1, %v1368_v0  ;;  %v1296_v7 = vld [vmem:[#allocation2 + $0x80] sm:$0xf]  ;;  %v1774_v9 = vld [vmem:[#allocation2 + $0x84] sm:$0xf] }
  0x1c   :  { %878 = vmatpush.bf16.msra.mxu2 %v1497_v46  ;;  %v1782_v8 = vld [vmem:[#allocation2 + $0xbc] sm:$0xf0]  ;;  %v1373_v10 = vor.u32 %v1791_v2, %v1370_v3  ;;  %v1298_v11 = vld [vmem:[#allocation2 + $0xc0] sm:$0xf0]  ;;  %v1304_v12 = vld [vmem:[#allocation2 + $0x88] sm:$0xf] }
  0x1d   :  { %891 = vmatpush.bf16.msra.mxu3 %v1501_v50  ;;  %v1783_v13 = vld [vmem:[#allocation2 + $0xc4] sm:$0xf0]  ;;  %v1775_v14 = vld [vmem:[#allocation2 + $0x8c] sm:$0xf]  ;;  %v1297_v16 = vor.u32 %v1782_v8, %v1296_v7  ;;  %v1232_v17 = vld [vmem:[#allocation2] sm:$0xf]  ;;  %v1301_v19 = vor.u32 %v1774_v9, %v1298_v11 }
  0x1e   :  { %v1306_v15 = vld [vmem:[#allocation2 + $0xc8] sm:$0xf0]  ;;  %v1766_v18 = vld [vmem:[#allocation2 + $0x3c] sm:$0xf0]  ;;  %v1305_v20 = vor.u32 %v1783_v13, %v1304_v12  ;;  %v1758_v21 = vld [vmem:[#allocation2 + $0x4] sm:$0xf] }
  0x1f   :  { %853 = vmatpush.bf16.msra.mxu0 %v1425_v56  ;;  %866 = vmatpush.bf16.msra.mxu1 %v1429_v57  ;;  %v1234_v22 = vld [vmem:[#allocation2 + $0x40] sm:$0xf0]  ;;  %v1240_v23 = vld [vmem:[#allocation2 + $0x8] sm:$0xf]  ;;  %v1309_v24 = vor.u32 %v1775_v14, %v1306_v15  ;;  %v1759_v26 = vld [vmem:[#allocation2 + $0xc] sm:$0xf]  ;;  %v1233_v31 = vor.u32 %v1766_v18, %v1232_v17 }
  0x20   :  { %879 = vmatpush.bf16.msra.mxu2 %v1433_v58  ;;  %v1767_v25 = vld [vmem:[#allocation2 + $0x44] sm:$0xf0]  ;;  %v1242_v27 = vld [vmem:[#allocation2 + $0x48] sm:$0xf0]  ;;  %v1696_v28 = vld [vmem:[#allocation2 + $0x390] sm:$0xf]  ;;  %v1237_v35 = vor.u32 %v1758_v21, %v1234_v22 }
  0x21   :  { %892 = vmatpush.bf16.msra.mxu3 %v1437_v62  ;;  %v1880_v29 = vld [vmem:[#allocation2 + $0x3cc] sm:$0xf0]  ;;  %v1872_v30 = vld [vmem:[#allocation2 + $0x394] sm:$0xf]  ;;  %v1704_v33 = vld [vmem:[#allocation2 + $0x398] sm:$0xf]  ;;  %v1241_v36 = vor.u32 %v1767_v25, %v1240_v23  ;;  %v1245_v39 = vor.u32 %v1759_v26, %v1242_v27 }
  0x22   :  { %v1698_v32 = vld [vmem:[#allocation2 + $0x3d0] sm:$0xf0]  ;;  %v1881_v34 = vld [vmem:[#allocation2 + $0x3d4] sm:$0xf0]  ;;  %v1873_v37 = vld [vmem:[#allocation2 + $0x39c] sm:$0xf]  ;;  %v1697_v40 = vor.u32 %v1880_v29, %v1696_v28 }
  0x23   :  { %854 = vmatpush.bf16.msra.mxu0 %v1361_v4  ;;  %867 = vmatpush.bf16.msra.mxu1 %v1365_v5  ;;  %v1706_v38 = vld [vmem:[#allocation2 + $0x3d8] sm:$0xf0]  ;;  %v1701_v41 = vor.u32 %v1872_v30, %v1698_v32  ;;  %v1705_v42 = vor.u32 %v1881_v34, %v1704_v33  ;;  %v1632_v43 = vld [vmem:[#allocation2 + $0x310] sm:$0xf]  ;;  %v1856_v45 = vld [vmem:[#allocation2 + $0x314] sm:$0xf] }
  0x24   :  { %880 = vmatpush.bf16.msra.mxu2 %v1369_v6  ;;  %v1864_v44 = vld [vmem:[#allocation2 + $0x34c] sm:$0xf0]  ;;  %v1709_v46 = vor.u32 %v1873_v37, %v1706_v38  ;;  %v1634_v47 = vld [vmem:[#allocation2 + $0x350] sm:$0xf0]  ;;  %v1640_v48 = vld [vmem:[#allocation2 + $0x318] sm:$0xf] }
  0x25   :  { %893 = vmatpush.bf16.msra.mxu3 %v1373_v10  ;;  %v1865_v49 = vld [vmem:[#allocation2 + $0x354] sm:$0xf0]  ;;  %v1857_v50 = vld [vmem:[#allocation2 + $0x31c] sm:$0xf]  ;;  %v2007_v52 = vld [vmem:[%s2056_s0] sm:$0x1]  ;;  %v1633_v53 = vor.u32 %v1864_v44, %v1632_v43  ;;  %v1637_v54 = vor.u32 %v1856_v45, %v1634_v47 }
  0x26   :  { %v1642_v51 = vld [vmem:[#allocation2 + $0x358] sm:$0xf0]  ;;  %v1641_v55 = vor.u32 %v1865_v49, %v1640_v48  ;;  %v1568_v56 = vld [vmem:[#allocation2 + $0x290] sm:$0xf]  ;;  %v1840_v58 = vld [vmem:[#allocation2 + $0x294] sm:$0xf] }
  0x27   :  { %855 = vmatpush.bf16.msra.mxu0 %v1297_v16  ;;  %868 = vmatpush.bf16.msra.mxu1 %v1301_v19  ;;  %v1848_v57 = vld [vmem:[#allocation2 + $0x2cc] sm:$0xf0]  ;;  %v1645_v59 = vor.u32 %v1857_v50, %v1642_v51  ;;  %v1570_v60 = vld [vmem:[#allocation2 + $0x2d0] sm:$0xf0]  ;;  %v1576_v61 = vld [vmem:[#allocation2 + $0x298] sm:$0xf] }
  0x28   :  { %881 = vmatpush.bf16.msra.mxu2 %v1305_v20  ;;  %v1849_v62 = vld [vmem:[#allocation2 + $0x2d4] sm:$0xf0]  ;;  %v1841_v63 = vld [vmem:[#allocation2 + $0x29c] sm:$0xf]  ;;  %v1569_v1 = vor.u32 %v1848_v57, %v1568_v56  ;;  %v1573_v2 = vor.u32 %v1840_v58, %v1570_v60  ;;  %v1504_v4 = vld [vmem:[#allocation2 + $0x210] sm:$0xf] }
  0x29   :  { %894 = vmatpush.bf16.msra.mxu3 %v1309_v24  ;;  %v1578_v0 = vld [vmem:[#allocation2 + $0x2d8] sm:$0xf0]  ;;  %v1577_v3 = vor.u32 %v1849_v62, %v1576_v61  ;;  %v1832_v5 = vld [vmem:[#allocation2 + $0x24c] sm:$0xf0]  ;;  %v1824_v6 = vld [vmem:[#allocation2 + $0x214] sm:$0xf] }
  0x2a   :  { %v1581_v7 = vor.u32 %v1841_v63, %v1578_v0  ;;  %v1506_v8 = vld [vmem:[#allocation2 + $0x250] sm:$0xf0]  ;;  %v1512_v9 = vld [vmem:[#allocation2 + $0x218] sm:$0xf]  ;;  %v1825_v11 = vld [vmem:[#allocation2 + $0x21c] sm:$0xf]  ;;  %v1505_v13 = vor.u32 %v1832_v5, %v1504_v4 }
  0x2b   :  { %856 = vmatpush.bf16.msra.mxu0 %v1233_v31  ;;  %869 = vmatpush.bf16.msra.mxu1 %v1237_v35  ;;  %v1833_v10 = vld [vmem:[#allocation2 + $0x254] sm:$0xf0]  ;;  %v1514_v12 = vld [vmem:[#allocation2 + $0x258] sm:$0xf0]  ;;  %v1509_v14 = vor.u32 %v1824_v6, %v1506_v8  ;;  %v1440_v16 = vld [vmem:[#allocation2 + $0x190] sm:$0xf] }
  0x2c   :  { %882 = vmatpush.bf16.msra.mxu2 %v1241_v36  ;;  %v1513_v15 = vor.u32 %v1833_v10, %v1512_v9  ;;  %v1816_v17 = vld [vmem:[#allocation2 + $0x1cc] sm:$0xf0]  ;;  %v1808_v18 = vld [vmem:[#allocation2 + $0x194] sm:$0xf]  ;;  %v1517_v19 = vor.u32 %v1825_v11, %v1514_v12  ;;  %v1448_v21 = vld [vmem:[#allocation2 + $0x198] sm:$0xf] }
  0x2d   :  { %895 = vmatpush.bf16.msra.mxu3 %v1245_v39  ;;  %v1442_v20 = vld [vmem:[#allocation2 + $0x1d0] sm:$0xf0]  ;;  %v1817_v22 = vld [vmem:[#allocation2 + $0x1d4] sm:$0xf0]  ;;  %v1809_v23 = vld [vmem:[#allocation2 + $0x19c] sm:$0xf]  ;;  %v1441_v25 = vor.u32 %v1816_v17, %v1440_v16 }
  0x2e   :  { %857 = vmatmul.bf16.vlgmr.msra.gmra.mxu0 %v2007_v52  ;;  %870 = vmatmul.bf16.vlgmr.msra.gmra.mxu1 %v2007_v52  ;;  %v1450_v24 = vld [vmem:[#allocation2 + $0x1d8] sm:$0xf0]  ;;  %v1445_v26 = vor.u32 %v1808_v18, %v1442_v20  ;;  %v1449_v27 = vor.u32 %v1817_v22, %v1448_v21  ;;  %v1376_v28 = vld [vmem:[#allocation2 + $0x110] sm:$0xf]  ;;  %v1792_v30 = vld [vmem:[#allocation2 + $0x114] sm:$0xf] }
  0x2f   :  { %901 = vmatpush.bf16.msrb.mxu0 %v1697_v40  ;;  %914 = vmatpush.bf16.msrb.mxu1 %v1701_v41  ;;  %v1800_v29 = vld [vmem:[#allocation2 + $0x14c] sm:$0xf0]  ;;  %v1453_v31 = vor.u32 %v1809_v23, %v1450_v24  ;;  %v1378_v32 = vld [vmem:[#allocation2 + $0x150] sm:$0xf0]  ;;  %v1384_v33 = vld [vmem:[#allocation2 + $0x118] sm:$0xf] }
  0x30   :  { %927 = vmatpush.bf16.msrb.mxu2 %v1705_v42  ;;  %896 = vmatmul.bf16.vlgmr.msra.gmra.mxu3 %v2007_v52  ;;  %v1801_v34 = vld [vmem:[#allocation2 + $0x154] sm:$0xf0]  ;;  %v1793_v35 = vld [vmem:[#allocation2 + $0x11c] sm:$0xf]  ;;  %v1377_v37 = vor.u32 %v1800_v29, %v1376_v28  ;;  %v1381_v38 = vor.u32 %v1792_v30, %v1378_v32  ;;  %v1312_v40 = vld [vmem:[#allocation2 + $0x90] sm:$0xf] }
  0x31   :  { %940 = vmatpush.bf16.msrb.mxu3 %v1709_v46  ;;  %883 = vmatmul.bf16.vlgmr.msra.gmra.mxu2 %v2007_v52  ;;  %v1386_v36 = vld [vmem:[#allocation2 + $0x158] sm:$0xf0]  ;;  %v1385_v39 = vor.u32 %v1801_v34, %v1384_v33  ;;  %v1784_v41 = vld [vmem:[#allocation2 + $0xcc] sm:$0xf0]  ;;  %v1776_v42 = vld [vmem:[#allocation2 + $0x94] sm:$0xf] }
  0x32   :  { %v1389_v43 = vor.u32 %v1793_v35, %v1386_v36  ;;  %v1314_v44 = vld [vmem:[#allocation2 + $0xd0] sm:$0xf0]  ;;  %v1320_v45 = vld [vmem:[#allocation2 + $0x98] sm:$0xf]  ;;  %v1777_v47 = vld [vmem:[#allocation2 + $0x9c] sm:$0xf]  ;;  %v1313_v49 = vor.u32 %v1784_v41, %v1312_v40 }
  0x33   :  { %902 = vmatpush.bf16.msrb.mxu0 %v1633_v53  ;;  %915 = vmatpush.bf16.msrb.mxu1 %v1637_v54  ;;  %v1785_v46 = vld [vmem:[#allocation2 + $0xd4] sm:$0xf0]  ;;  %v1322_v48 = vld [vmem:[#allocation2 + $0xd8] sm:$0xf0]  ;;  %v1248_v50 = vld [vmem:[#allocation2 + $0x10] sm:$0xf]  ;;  %v1317_v53 = vor.u32 %v1776_v42, %v1314_v44 }
  0x34   :  { %928 = vmatpush.bf16.msrb.mxu2 %v1641_v55  ;;  %v1768_v51 = vld [vmem:[#allocation2 + $0x4c] sm:$0xf0]  ;;  %v1321_v54 = vor.u32 %v1785_v46, %v1320_v45  ;;  %v1760_v55 = vld [vmem:[#allocation2 + $0x14] sm:$0xf]  ;;  %v1256_v57 = vld [vmem:[#allocation2 + $0x18] sm:$0xf]  ;;  %v1325_v58 = vor.u32 %v1777_v47, %v1322_v48 }
  0x35   :  { %941 = vmatpush.bf16.msrb.mxu3 %v1645_v59  ;;  %v1250_v56 = vld [vmem:[#allocation2 + $0x50] sm:$0xf0]  ;;  %v1769_v59 = vld [vmem:[#allocation2 + $0x54] sm:$0xf0]  ;;  %v1761_v60 = vld [vmem:[#allocation2 + $0x1c] sm:$0xf] }
  0x36   :  { %v1258_v61 = vld [vmem:[#allocation2 + $0x58] sm:$0xf0]  ;;  %v1712_v62 = vld [vmem:[#allocation2 + $0x3a0] sm:$0xf]  ;;  %v1874_v0 = vld [vmem:[#allocation2 + $0x3a4] sm:$0xf]  ;;  %v1253_v5 = vor.u32 %v1760_v55, %v1250_v56  ;;  %v1257_v6 = vor.u32 %v1769_v59, %v1256_v57 }
  0x37   :  { %903 = vmatpush.bf16.msrb.mxu0 %v1569_v1  ;;  %916 = vmatpush.bf16.msrb.mxu1 %v1573_v2  ;;  %v1882_v63 = vld [vmem:[#allocation2 + $0x3dc] sm:$0xf0]  ;;  %v1249_v1 = vor.u32 %v1768_v51, %v1248_v50  ;;  %v1714_v2 = vld [vmem:[#allocation2 + $0x3e0] sm:$0xf0]  ;;  %v1883_v4 = vld [vmem:[#allocation2 + $0x3e4] sm:$0xf0]  ;;  %v1261_v9 = vor.u32 %v1761_v60, %v1258_v61 }
  0x38   :  { %929 = vmatpush.bf16.msrb.mxu2 %v1577_v3  ;;  %v1720_v3 = vld [vmem:[#allocation2 + $0x3a8] sm:$0xf]  ;;  %v1722_v8 = vld [vmem:[#allocation2 + $0x3e8] sm:$0xf0]  ;;  %v1713_v10 = vor.u32 %v1882_v63, %v1712_v62  ;;  %v1717_v11 = vor.u32 %v1874_v0, %v1714_v2  ;;  %v1650_v17 = vld [vmem:[#allocation2 + $0x360] sm:$0xf0] }
  0x39   :  { %942 = vmatpush.bf16.msrb.mxu3 %v1581_v7  ;;  %v1875_v7 = vld [vmem:[#allocation2 + $0x3ac] sm:$0xf]  ;;  %v1721_v12 = vor.u32 %v1883_v4, %v1720_v3  ;;  %v1656_v18 = vld [vmem:[#allocation2 + $0x328] sm:$0xf]  ;;  %v1586_v29 = vld [vmem:[#allocation2 + $0x2e0] sm:$0xf0] }
  0x3a   :  { %v1725_v16 = vor.u32 %v1875_v7, %v1722_v8  ;;  %v1859_v20 = vld [vmem:[#allocation2 + $0x32c] sm:$0xf]  ;;  %v1592_v30 = vld [vmem:[#allocation2 + $0x2a8] sm:$0xf]  ;;  %v1522_v41 = vld [vmem:[#allocation2 + $0x260] sm:$0xf0] }
  0x3b   :  { %904 = vmatpush.bf16.msrb.mxu0 %v1505_v13  ;;  %917 = vmatpush.bf16.msrb.mxu1 %v1509_v14  ;;  %v1648_v13 = vld [vmem:[#allocation2 + $0x320] sm:$0xf]  ;;  %v1658_v21 = vld [vmem:[#allocation2 + $0x368] sm:$0xf0]  ;;  %v1528_v42 = vld [vmem:[#allocation2 + $0x228] sm:$0xf] }
  0x3c   :  { %930 = vmatpush.bf16.msrb.mxu2 %v1513_v15  ;;  %v1866_v14 = vld [vmem:[#allocation2 + $0x35c] sm:$0xf0]  ;;  %v1858_v15 = vld [vmem:[#allocation2 + $0x324] sm:$0xf]  ;;  %v1661_v28 = vor.u32 %v1859_v20, %v1658_v21  ;;  %v1843_v32 = vld [vmem:[#allocation2 + $0x2ac] sm:$0xf] }
  0x3d   :  { %943 = vmatpush.bf16.msrb.mxu3 %v1517_v19  ;;  %v1867_v19 = vld [vmem:[#allocation2 + $0x364] sm:$0xf0]  ;;  %v1649_v22 = vor.u32 %v1866_v14, %v1648_v13  ;;  %v1653_v23 = vor.u32 %v1858_v15, %v1650_v17  ;;  %v1594_v33 = vld [vmem:[#allocation2 + $0x2e8] sm:$0xf0]  ;;  %v1818_v50 = vld [vmem:[#allocation2 + $0x1dc] sm:$0xf0] }
  0x3e   :  { %v1657_v24 = vor.u32 %v1867_v19, %v1656_v18  ;;  %v1597_v40 = vor.u32 %v1843_v32, %v1594_v33  ;;  %v1827_v44 = vld [vmem:[#allocation2 + $0x22c] sm:$0xf]  ;;  %v1810_v51 = vld [vmem:[#allocation2 + $0x1a4] sm:$0xf]  ;;  %v1464_v55 = vld [vmem:[#allocation2 + $0x1a8] sm:$0xf] }
  0x3f   :  { %905 = vmatpush.bf16.msrb.mxu0 %v1441_v25  ;;  %918 = vmatpush.bf16.msrb.mxu1 %v1445_v26  ;;  %v1584_v25 = vld [vmem:[#allocation2 + $0x2a0] sm:$0xf]  ;;  %v1530_v45 = vld [vmem:[#allocation2 + $0x268] sm:$0xf0]  ;;  %v1819_v56 = vld [vmem:[#allocation2 + $0x1e4] sm:$0xf0] }
  0x40   :  { %931 = vmatpush.bf16.msrb.mxu2 %v1449_v27  ;;  %v1850_v26 = vld [vmem:[#allocation2 + $0x2dc] sm:$0xf0]  ;;  %v1842_v27 = vld [vmem:[#allocation2 + $0x2a4] sm:$0xf]  ;;  %v1811_v57 = vld [vmem:[#allocation2 + $0x1ac] sm:$0xf]  ;;  %v1465_v61 = vor.u32 %v1819_v56, %v1464_v55 }
  0x41   :  { %944 = vmatpush.bf16.msrb.mxu3 %v1453_v31  ;;  %v1851_v31 = vld [vmem:[#allocation2 + $0x2e4] sm:$0xf0]  ;;  %v1585_v34 = vor.u32 %v1850_v26, %v1584_v25  ;;  %v1589_v35 = vor.u32 %v1842_v27, %v1586_v29  ;;  %v1392_v62 = vld [vmem:[#allocation2 + $0x120] sm:$0xf]  ;;  %v1794_v0 = vld [vmem:[#allocation2 + $0x124] sm:$0xf] }
  0x42   :  { %v1593_v36 = vor.u32 %v1851_v31, %v1592_v30  ;;  %v1802_v63 = vld [vmem:[#allocation2 + $0x15c] sm:$0xf0]  ;;  %v1394_v2 = vld [vmem:[#allocation2 + $0x160] sm:$0xf0]  ;;  %v1400_v3 = vld [vmem:[#allocation2 + $0x128] sm:$0xf] }
  0x43   :  { %906 = vmatpush.bf16.msrb.mxu0 %v1377_v37  ;;  %919 = vmatpush.bf16.msrb.mxu1 %v1381_v38  ;;  %v1520_v37 = vld [vmem:[#allocation2 + $0x220] sm:$0xf]  ;;  %v1803_v4 = vld [vmem:[#allocation2 + $0x164] sm:$0xf0]  ;;  %v1393_v7 = vor.u32 %v1802_v63, %v1392_v62  ;;  %v1397_v8 = vor.u32 %v1794_v0, %v1394_v2  ;;  %v1330_v14 = vld [vmem:[#allocation2 + $0xe0] sm:$0xf0] }
  0x44   :  { %932 = vmatpush.bf16.msrb.mxu2 %v1385_v39  ;;  %v1834_v38 = vld [vmem:[#allocation2 + $0x25c] sm:$0xf0]  ;;  %v1826_v39 = vld [vmem:[#allocation2 + $0x224] sm:$0xf]  ;;  %v1336_v15 = vld [vmem:[#allocation2 + $0xa8] sm:$0xf] }
  0x45   :  { %945 = vmatpush.bf16.msrb.mxu3 %v1389_v43  ;;  %v1835_v43 = vld [vmem:[#allocation2 + $0x264] sm:$0xf0]  ;;  %v1521_v46 = vor.u32 %v1834_v38, %v1520_v37  ;;  %v1525_v47 = vor.u32 %v1826_v39, %v1522_v41  ;;  %v1779_v17 = vld [vmem:[#allocation2 + $0xac] sm:$0xf]  ;;  %v1264_v20 = vld [vmem:[#allocation2 + $0x20] sm:$0xf] }
  0x46   :  { %v1529_v48 = vor.u32 %v1835_v43, %v1528_v42  ;;  %v1338_v18 = vld [vmem:[#allocation2 + $0xe8] sm:$0xf0]  ;;  %v1770_v21 = vld [vmem:[#allocation2 + $0x5c] sm:$0xf0]  ;;  %v1266_v25 = vld [vmem:[#allocation2 + $0x60] sm:$0xf0] }
  0x47   :  { %907 = vmatpush.bf16.msrb.mxu0 %v1313_v49  ;;  %920 = vmatpush.bf16.msrb.mxu1 %v1317_v53  ;;  %v1456_v49 = vld [vmem:[#allocation2 + $0x1a0] sm:$0xf]  ;;  %v1533_v53 = vor.u32 %v1827_v44, %v1530_v45  ;;  %v1272_v26 = vld [vmem:[#allocation2 + $0x28] sm:$0xf]  ;;  %v1341_v27 = vor.u32 %v1779_v17, %v1338_v18  ;;  %v1763_v29 = vld [vmem:[#allocation2 + $0x2c] sm:$0xf] }
  0x48   :  { %933 = vmatpush.bf16.msrb.mxu2 %v1321_v54  ;;  %v1458_v54 = vld [vmem:[#allocation2 + $0x1e0] sm:$0xf0]  ;;  %v1457_v59 = vor.u32 %v1818_v50, %v1456_v49  ;;  %v1274_v30 = vld [vmem:[#allocation2 + $0x68] sm:$0xf0]  ;;  %v1728_v31 = vld [vmem:[#allocation2 + $0x3b0] sm:$0xf] }
  0x49   :  { %946 = vmatpush.bf16.msrb.mxu3 %v1325_v58  ;;  %v1466_v58 = vld [vmem:[#allocation2 + $0x1e8] sm:$0xf0]  ;;  %v1461_v60 = vor.u32 %v1810_v51, %v1458_v54  ;;  %v1884_v32 = vld [vmem:[#allocation2 + $0x3ec] sm:$0xf0]  ;;  %v1876_v33 = vld [vmem:[#allocation2 + $0x3b4] sm:$0xf]  ;;  %v1277_v42 = vor.u32 %v1763_v29, %v1274_v30 }
  0x4a   :  { %v1885_v37 = vld [vmem:[#allocation2 + $0x3f4] sm:$0xf0]  ;;  %v1738_v41 = vld [vmem:[#allocation2 + $0x3f8] sm:$0xf0]  ;;  %v1729_v43 = vor.u32 %v1884_v32, %v1728_v31  ;;  %v1666_v50 = vld [vmem:[#allocation2 + $0x370] sm:$0xf0] }
  0x4b   :  { %908 = vmatpush.bf16.msrb.mxu0 %v1249_v1  ;;  %921 = vmatpush.bf16.msrb.mxu1 %v1253_v5  ;;  %v1469_v1 = vor.u32 %v1811_v57, %v1466_v58  ;;  %v1795_v5 = vld [vmem:[#allocation2 + $0x12c] sm:$0xf]  ;;  %v1672_v51 = vld [vmem:[#allocation2 + $0x338] sm:$0xf]  ;;  %v1861_v54 = vld [vmem:[#allocation2 + $0x33c] sm:$0xf] }
  0x4c   :  { %934 = vmatpush.bf16.msrb.mxu2 %v1257_v6  ;;  %v1402_v6 = vld [vmem:[#allocation2 + $0x168] sm:$0xf0]  ;;  %v1674_v55 = vld [vmem:[#allocation2 + $0x378] sm:$0xf0]  ;;  %v1602_v63 = vld [vmem:[#allocation2 + $0x2f0] sm:$0xf0] }
  0x4d   :  { %947 = vmatpush.bf16.msrb.mxu3 %v1261_v9  ;;  %v1401_v9 = vor.u32 %v1803_v4, %v1400_v3  ;;  %v1405_v13 = vor.u32 %v1795_v5, %v1402_v6  ;;  %v1677_v62 = vor.u32 %v1861_v54, %v1674_v55  ;;  %v1608_v0 = vld [vmem:[#allocation2 + $0x2b8] sm:$0xf]  ;;  %v1845_v2 = vld [vmem:[#allocation2 + $0x2bc] sm:$0xf]  ;;  %v1408_v31 = vld [vmem:[#allocation2 + $0x130] sm:$0xf] }
  0x4e   :  { %909 = vmatmul.bf16.vlgmr.msrb.gmra.mxu0 %v2007_v52  ;;  %922 = vmatmul.bf16.vlgmr.msrb.gmra.mxu1 %v2007_v52  ;;  %v1610_v3 = vld [vmem:[#allocation2 + $0x2f8] sm:$0xf0]  ;;  %v1804_v32 = vld [vmem:[#allocation2 + $0x16c] sm:$0xf0]  ;;  %vm1183_vm8 = vcmask 1040384   ;;  %vm1187_vm9 = vcmask 1042434  }
  0x4f   :  { %953 = vmatpush.bf16.msra.mxu0 %v1713_v10  ;;  %966 = vmatpush.bf16.msra.mxu1 %v1717_v11  ;;  %v1328_v10 = vld [vmem:[#allocation2 + $0xa0] sm:$0xf]  ;;  %vm1193_vm10 = vcmask 1044484   ;;  %vm1191_vm11 = vcmask 1041408   ;;  %vm1197_vm12 = vcmask 1046534   ;;  %vm1201_vm13 = vcmask 1045508  }
  0x50   :  { %979 = vmatpush.bf16.msra.mxu2 %v1721_v12  ;;  %948 = vmatmul.bf16.vlgmr.msrb.gmra.mxu3 %v2007_v52  ;;  %v1786_v11 = vld [vmem:[#allocation2 + $0xdc] sm:$0xf0]  ;;  %v1778_v12 = vld [vmem:[#allocation2 + $0xa4] sm:$0xf]  ;;  %vm1203_vm14 = vcmask 1043456  }
  0x51   :  { %992 = vmatpush.bf16.msra.mxu3 %v1725_v16  ;;  %935 = vmatmul.bf16.vlgmr.msrb.gmra.mxu2 %v2007_v52  ;;  %v1787_v16 = vld [vmem:[#allocation2 + $0xe4] sm:$0xf0]  ;;  %v1329_v19 = vor.u32 %v1786_v11, %v1328_v10  ;;  %v1613_v10 = vor.u32 %v1845_v2, %v1610_v3  ;;  %v1538_v11 = vld [vmem:[#allocation2 + $0x270] sm:$0xf0] }
  0x53   :  { %954 = vmatpush.bf16.msra.mxu0 %v1649_v22  ;;  %967 = vmatpush.bf16.msra.mxu1 %v1653_v23  ;;  %v1333_v22 = vor.u32 %v1778_v12, %v1330_v14  ;;  %v1337_v23 = vor.u32 %v1787_v16, %v1336_v15  ;;  %v1544_v12 = vld [vmem:[#allocation2 + $0x238] sm:$0xf]  ;;  %v1829_v14 = vld [vmem:[#allocation2 + $0x23c] sm:$0xf] }
  0x54   :  { %980 = vmatpush.bf16.msra.mxu2 %v1657_v24  ;;  %v1762_v24 = vld [vmem:[#allocation2 + $0x24] sm:$0xf]  ;;  %v1546_v15 = vld [vmem:[#allocation2 + $0x278] sm:$0xf0] }
  0x55   :  { %993 = vmatpush.bf16.msra.mxu3 %v1661_v28  ;;  %v1771_v28 = vld [vmem:[#allocation2 + $0x64] sm:$0xf0]  ;;  %v1269_v38 = vor.u32 %v1762_v24, %v1266_v25  ;;  %v1480_v24 = vld [vmem:[#allocation2 + $0x1b8] sm:$0xf] }
  0x56   :  { %v1273_v39 = vor.u32 %v1771_v28, %v1272_v26  ;;  %v1821_v25 = vld [vmem:[#allocation2 + $0x1f4] sm:$0xf0]  ;;  %v1813_v26 = vld [vmem:[#allocation2 + $0x1bc] sm:$0xf] }
  0x57   :  { %955 = vmatpush.bf16.msra.mxu0 %v1585_v34  ;;  %968 = vmatpush.bf16.msra.mxu1 %v1589_v35  ;;  %v1265_v34 = vor.u32 %v1770_v21, %v1264_v20  ;;  %v1730_v35 = vld [vmem:[#allocation2 + $0x3f0] sm:$0xf0]  ;;  %v1820_v20 = vld [vmem:[#allocation2 + $0x1ec] sm:$0xf0]  ;;  %v1481_v30 = vor.u32 %v1821_v25, %v1480_v24 }
  0x58   :  { %981 = vmatpush.bf16.msra.mxu2 %v1593_v36  ;;  %v1736_v36 = vld [vmem:[#allocation2 + $0x3b8] sm:$0xf]  ;;  %v1733_v44 = vor.u32 %v1876_v33, %v1730_v35  ;;  %v1812_v21 = vld [vmem:[#allocation2 + $0x1b4] sm:$0xf] }
  0x59   :  { %994 = vmatpush.bf16.msra.mxu3 %v1597_v40  ;;  %v1877_v40 = vld [vmem:[#allocation2 + $0x3bc] sm:$0xf]  ;;  %v1737_v45 = vor.u32 %v1885_v37, %v1736_v36  ;;  %v1796_v33 = vld [vmem:[#allocation2 + $0x134] sm:$0xf]  ;;  %v1416_v36 = vld [vmem:[#allocation2 + $0x138] sm:$0xf] }
  0x5a   :  { %v1741_v49 = vor.u32 %v1877_v40, %v1738_v41  ;;  %v1410_v35 = vld [vmem:[#allocation2 + $0x170] sm:$0xf0]  ;;  %v1805_v37 = vld [vmem:[#allocation2 + $0x174] sm:$0xf0]  ;;  %v1409_v40 = vor.u32 %v1804_v32, %v1408_v31 }
  0x5b   :  { %956 = vmatpush.bf16.msra.mxu0 %v1521_v46  ;;  %969 = vmatpush.bf16.msra.mxu1 %v1525_v47  ;;  %v1664_v46 = vld [vmem:[#allocation2 + $0x330] sm:$0xf]  ;;  %v1413_v41 = vor.u32 %v1796_v33, %v1410_v35 }
  0x5c   :  { %982 = vmatpush.bf16.msra.mxu2 %v1529_v48  ;;  %v1868_v47 = vld [vmem:[#allocation2 + $0x36c] sm:$0xf0]  ;;  %v1860_v48 = vld [vmem:[#allocation2 + $0x334] sm:$0xf] }
  0x5d   :  { %995 = vmatpush.bf16.msra.mxu3 %v1533_v53  ;;  %v1869_v53 = vld [vmem:[#allocation2 + $0x374] sm:$0xf0]  ;;  %v1665_v56 = vor.u32 %v1868_v47, %v1664_v46  ;;  %v1669_v57 = vor.u32 %v1860_v48, %v1666_v50  ;;  %v1346_v47 = vld [vmem:[#allocation2 + $0xf0] sm:$0xf0]  ;;  %v1781_v50 = vld [vmem:[#allocation2 + $0xbc] sm:$0xf] }
  0x5e   :  { %v1673_v58 = vor.u32 %v1869_v53, %v1672_v51  ;;  %v1352_v48 = vld [vmem:[#allocation2 + $0xb8] sm:$0xf]  ;;  %v1354_v51 = vld [vmem:[#allocation2 + $0xf8] sm:$0xf0] }
  0x5f   :  { %957 = vmatpush.bf16.msra.mxu0 %v1457_v59  ;;  %970 = vmatpush.bf16.msra.mxu1 %v1461_v60  ;;  %v1600_v59 = vld [vmem:[#allocation2 + $0x2b0] sm:$0xf] }
  0x60   :  { %983 = vmatpush.bf16.msra.mxu2 %v1465_v61  ;;  %v1852_v60 = vld [vmem:[#allocation2 + $0x2ec] sm:$0xf0]  ;;  %v1844_v61 = vld [vmem:[#allocation2 + $0x2b4] sm:$0xf] }
  0x61   :  { %996 = vmatpush.bf16.msra.mxu3 %v1469_v1  ;;  %v1853_v1 = vld [vmem:[#allocation2 + $0x2f4] sm:$0xf0]  ;;  %v1601_v4 = vor.u32 %v1852_v60, %v1600_v59  ;;  %v1605_v5 = vor.u32 %v1844_v61, %v1602_v63  ;;  %v1357_v59 = vor.u32 %v1781_v50, %v1354_v51  ;;  %v1282_v60 = vld [vmem:[#allocation2 + $0x70] sm:$0xf0]  ;;  %v1765_v63 = vld [vmem:[#allocation2 + $0x3c] sm:$0xf] }
  0x62   :  { %v1609_v6 = vor.u32 %v1853_v1, %v1608_v0  ;;  %v1288_v61 = vld [vmem:[#allocation2 + $0x38] sm:$0xf]  ;;  %v1290_v0 = vld [vmem:[#allocation2 + $0x78] sm:$0xf0] }
  0x63   :  { %958 = vmatpush.bf16.msra.mxu0 %v1393_v7  ;;  %971 = vmatpush.bf16.msra.mxu1 %v1397_v8  ;;  %v1536_v7 = vld [vmem:[#allocation2 + $0x230] sm:$0xf] }
  0x64   :  { %984 = vmatpush.bf16.msra.mxu2 %v1401_v9  ;;  %v1836_v8 = vld [vmem:[#allocation2 + $0x26c] sm:$0xf0]  ;;  %v1828_v9 = vld [vmem:[#allocation2 + $0x234] sm:$0xf] }
  0x65   :  { %997 = vmatpush.bf16.msra.mxu3 %v1405_v13  ;;  %v1837_v13 = vld [vmem:[#allocation2 + $0x274] sm:$0xf0]  ;;  %v1537_v16 = vor.u32 %v1836_v8, %v1536_v7  ;;  %v1541_v17 = vor.u32 %v1828_v9, %v1538_v11  ;;  %v173_v9 = vld [vmem:[#allocation4] sm:$0xff] }
  0x66   :  { %v1545_v18 = vor.u32 %v1837_v13, %v1544_v12  ;;  %v177_v12 = vperm.slane %v173_v9, 0  ;;  %v178_v13 = vperm.slane %v173_v9, 1  ;;  %v183_v35 = vperm.slane %v173_v9, 6 }
  0x67   :  { %959 = vmatpush.bf16.msra.mxu0 %v1329_v19  ;;  %972 = vmatpush.bf16.msra.mxu1 %v1333_v22  ;;  %v1472_v19 = vld [vmem:[#allocation2 + $0x1b0] sm:$0xf]  ;;  %v1549_v22 = vor.u32 %v1829_v14, %v1546_v15  ;;  %v179_v14 = vperm.slane %v173_v9, 2 }
  0x68   :  { %985 = vmatpush.bf16.msra.mxu2 %v1337_v23  ;;  %v1474_v23 = vld [vmem:[#allocation2 + $0x1f0] sm:$0xf0]  ;;  %v1473_v28 = vor.u32 %v1820_v20, %v1472_v19 }
  0x69   :  { %998 = vmatpush.bf16.msra.mxu3 %v1341_v27  ;;  %v1482_v27 = vld [vmem:[#allocation2 + $0x1f8] sm:$0xf0]  ;;  %v1477_v29 = vor.u32 %v1812_v21, %v1474_v23 }
  0x6b   :  { %960 = vmatpush.bf16.msra.mxu0 %v1265_v34  ;;  %973 = vmatpush.bf16.msra.mxu1 %v1269_v38  ;;  %v1485_v34 = vor.u32 %v1813_v26, %v1482_v27  ;;  %v1797_v38 = vld [vmem:[#allocation2 + $0x13c] sm:$0xf] }
  0x6c   :  { %986 = vmatpush.bf16.msra.mxu2 %v1273_v39  ;;  %v1418_v39 = vld [vmem:[#allocation2 + $0x178] sm:$0xf0] }
  0x6d   :  { %999 = vmatpush.bf16.msra.mxu3 %v1277_v42  ;;  %v1417_v42 = vor.u32 %v1805_v37, %v1416_v36  ;;  %v1421_v46 = vor.u32 %v1797_v38, %v1418_v39  ;;  %v184_v38 = vperm.slane %v173_v9, 7 }
  0x6e   :  { %961 = vmatmul.bf16.vlgmr.msra.gmra.mxu0 %v2007_v52  ;;  %974 = vmatmul.bf16.vlgmr.msra.gmra.mxu1 %v2007_v52 }
  0x6f   :  { %1005 = vmatpush.bf16.msrb.mxu0 %v1729_v43  ;;  %1018 = vmatpush.bf16.msrb.mxu1 %v1733_v44  ;;  %v1344_v43 = vld [vmem:[#allocation2 + $0xb0] sm:$0xf] }
  0x70   :  { %1031 = vmatpush.bf16.msrb.mxu2 %v1737_v45  ;;  %1000 = vmatmul.bf16.vlgmr.msra.gmra.mxu3 %v2007_v52  ;;  %v1788_v44 = vld [vmem:[#allocation2 + $0xec] sm:$0xf0]  ;;  %v1780_v45 = vld [vmem:[#allocation2 + $0xb4] sm:$0xf] }
  0x71   :  { %1044 = vmatpush.bf16.msrb.mxu3 %v1741_v49  ;;  %987 = vmatmul.bf16.vlgmr.msra.gmra.mxu2 %v2007_v52  ;;  %v1789_v49 = vld [vmem:[#allocation2 + $0xf4] sm:$0xf0]  ;;  %v1345_v53 = vor.u32 %v1788_v44, %v1344_v43  ;;  %v1349_v54 = vor.u32 %v1780_v45, %v1346_v47 }
  0x72   :  { %v1353_v55 = vor.u32 %v1789_v49, %v1352_v48 }
  0x73   :  { %1006 = vmatpush.bf16.msrb.mxu0 %v1665_v56  ;;  %1019 = vmatpush.bf16.msrb.mxu1 %v1669_v57  ;;  %v1280_v56 = vld [vmem:[#allocation2 + $0x30] sm:$0xf] }
  0x74   :  { %1032 = vmatpush.bf16.msrb.mxu2 %v1673_v58  ;;  %v1772_v57 = vld [vmem:[#allocation2 + $0x6c] sm:$0xf0]  ;;  %v1764_v58 = vld [vmem:[#allocation2 + $0x34] sm:$0xf] }
  0x75   :  { %1045 = vmatpush.bf16.msrb.mxu3 %v1677_v62  ;;  %v1773_v62 = vld [vmem:[#allocation2 + $0x74] sm:$0xf0]  ;;  %v1281_v1 = vor.u32 %v1772_v57, %v1280_v56  ;;  %v1285_v2 = vor.u32 %v1764_v58, %v1282_v60 }
  0x76   :  { %v1289_v3 = vor.u32 %v1773_v62, %v1288_v61 }
  0x77   :  { %1007 = vmatpush.bf16.msrb.mxu0 %v1601_v4  ;;  %1020 = vmatpush.bf16.msrb.mxu1 %v1605_v5  ;;  %v1293_v4 = vor.u32 %v1765_v63, %v1290_v0 }
  0x78   :  { %1033 = vmatpush.bf16.msrb.mxu2 %v1609_v6 }
  0x79   :  { %1046 = vmatpush.bf16.msrb.mxu3 %v1613_v10 }
  0x7b   :  { %1008 = vmatpush.bf16.msrb.mxu0 %v1537_v16  ;;  %1021 = vmatpush.bf16.msrb.mxu1 %v1541_v17  ;;  %v180_v16 = vperm.slane %v173_v9, 3 }
  0x7c   :  { %1034 = vmatpush.bf16.msrb.mxu2 %v1545_v18 }
  0x7d   :  { %1047 = vmatpush.bf16.msrb.mxu3 %v1549_v22 }
  0x7f   :  { %1009 = vmatpush.bf16.msrb.mxu0 %v1473_v28  ;;  %1022 = vmatpush.bf16.msrb.mxu1 %v1477_v29  ;;  %v181_v29 = vperm.slane %v173_v9, 4 }
  0x80   :  { %1035 = vmatpush.bf16.msrb.mxu2 %v1481_v30  ;;  %v182_v30 = vperm.slane %v173_v9, 5 }
  0x81   :  { %1048 = vmatpush.bf16.msrb.mxu3 %v1485_v34 }
  0x83   :  { %1010 = vmatpush.bf16.msrb.mxu0 %v1409_v40  ;;  %1023 = vmatpush.bf16.msrb.mxu1 %v1413_v41 }
  0x84   :  { %1036 = vmatpush.bf16.msrb.mxu2 %v1417_v42 }
  0x85   :  { %1049 = vmatpush.bf16.msrb.mxu3 %v1421_v46 }
  0x87   :  { %1011 = vmatpush.bf16.msrb.mxu0 %v1345_v53  ;;  %1024 = vmatpush.bf16.msrb.mxu1 %v1349_v54 }
  0x88   :  { %1037 = vmatpush.bf16.msrb.mxu2 %v1353_v55 }
  0x89   :  { %1050 = vmatpush.bf16.msrb.mxu3 %v1357_v59 }
  0x8b   :  { %1012 = vmatpush.bf16.msrb.mxu0 %v1281_v1  ;;  %1025 = vmatpush.bf16.msrb.mxu1 %v1285_v2 }
  0x8c   :  { %1038 = vmatpush.bf16.msrb.mxu2 %v1289_v3 }
  0x8d   :  { %1051 = vmatpush.bf16.msrb.mxu3 %v1293_v4 }
  0x8e   :  { %1013 = vmatmul.bf16.vlgmr.msrb.gmra.mxu0 %v2007_v52  ;;  %1026 = vmatmul.bf16.vlgmr.msrb.gmra.mxu1 %v2007_v52 }
  0x8f   :  { %1039 = vmatmul.bf16.vlgmr.msrb.gmra.mxu2 %v2007_v52 }
  0x90   :  { %1052 = vmatmul.bf16.vlgmr.msrb.gmra.mxu3 %v2007_v52 }
  0xab   :  { %v858_v5 = vpop.f32.mrf.mxu0  ;;  %v871_v6 = vpop.f32.mrf.mxu1 }
  0xac   :  { %v859_v18 = vadd.f32 %v858_v5, %v177_v12  ;;  %v872_v19 = vadd.f32 %v871_v6, %v178_v13 }
  0xae   :  { %v1073_v22 = vmin.f32 %v859_v18, 0.0  ;;  %v1074_v23 = vmin.f32 %v872_v19, 0.0  ;;  %vm1057_vm0 = vcmp.gt.f32.partialorder %v859_v18, 0.0  ;;  %vm1058_vm1 = vcmp.gt.f32.partialorder %v872_v19, 0.0 }
  0xb0   :  { %v1089_v25 = vmul.f32 1.442695, %v1073_v22  ;;  %v1091_v26 = vmul.f32 1.442695, %v1074_v23 }
  0xb2   :  { %1890 = vpow2.f32 %v1089_v25 }
  0xb3   :  { %v897_v8 = vpop.f32.mrf.mxu3  ;;  %v860_v10 = vpop.f32.mrf.mxu0  ;;  %1892 = vpow2.f32 %v1091_v26 }
  0xb4   :  { %v884_v7 = vpop.f32.mrf.mxu2  ;;  %v873_v11 = vpop.f32.mrf.mxu1  ;;  %v898_v21 = vadd.f32 %v897_v8, %v180_v16 }
  0xb5   :  { %v885_v20 = vadd.f32 %v884_v7, %v179_v14 }
  0xb6   :  { %v1076_v24 = vmin.f32 %v898_v21, 0.0  ;;  %vm1060_vm3 = vcmp.gt.f32.partialorder %v898_v21, 0.0 }
  0xb7   :  { %v1075_v52 = vmin.f32 %v885_v20, 0.0  ;;  %vm1059_vm2 = vcmp.gt.f32.partialorder %v885_v20, 0.0 }
  0xb8   :  { %v1095_v28 = vmul.f32 1.442695, %v1076_v24  ;;  %v1891_v36 = vpop.eup %1890 }
  0xb9   :  { %v1093_v27 = vmul.f32 1.442695, %v1075_v52  ;;  %v1893_v39 = vpop.eup %1892  ;;  %v1742_v49 = vadd.f32 -1.0, %v1891_v36 }
  0xba   :  { %v1743_v50 = vadd.f32 -1.0, %v1893_v39 }
  0xbb   :  { %v899_v17 = vpop.f32.mrf.mxu3  ;;  %1894 = vpow2.f32 %v1093_v27  ;;  %v1137_v60 = vsel %vm1057_vm0, %v859_v18, %v1742_v49 }
  0xbc   :  { %v886_v15 = vpop.f32.mrf.mxu2  ;;  %1896 = vpow2.f32 %v1095_v28  ;;  %v1138_v61 = vsel %vm1058_vm1, %v872_v19, %v1743_v50 }
  0xbd   :  { %v1153_v6 = vpack.c.bf16 %v1138_v61, %v1137_v60 }
  0xbf   :  { %v1169_v14 = vrot.slane %v1153_v6, 3 }
  0xc1   :  { %v1895_v41 = vpop.eup %1894  ;;  %v1186_v23 = vsel %vm1183_vm8, %v1153_v6, %v1169_v14 }
  0xc2   :  { %v1897_v44 = vpop.eup %1896  ;;  %v1744_v54 = vadd.f32 -1.0, %v1895_v41 }
  0xc3   :  { %v1745_v55 = vadd.f32 -1.0, %v1897_v44 }
  0xc4   :  { %v1139_v63 = vsel %vm1059_vm2, %v885_v20, %v1744_v54 }
  0xc5   :  { %v1140_v0 = vsel %vm1060_vm3, %v898_v21, %v1745_v55 }
  0xc6   :  { %v1154_v7 = vpack.c.bf16 %v1140_v0, %v1139_v63 }
  0xc8   :  { %v1170_v15 = vrot.slane %v1154_v7, 6  ;;  %v1171_v17 = vrot.slane %v1154_v7, 1 }
  0xca   :  { %v1190_v52 = vsel %vm1187_vm9, %v1170_v15, %v1171_v17 }
  0xcb   :  { %v910_v31 = vpop.f32.mrf.mxu0  ;;  %v923_v33 = vpop.f32.mrf.mxu1  ;;  %v1192_v28 = vsel %vm1191_vm11, %v1186_v23, %v1190_v52 }
  0xcc   :  { %v911_v32 = vadd.f32 %v910_v31, %v181_v29  ;;  %v924_v34 = vadd.f32 %v923_v33, %v182_v30 }
  0xce   :  { %v1077_v37 = vmin.f32 %v911_v32, 0.0  ;;  %v1078_v40 = vmin.f32 %v924_v34, 0.0  ;;  %vm1061_vm4 = vcmp.gt.f32.partialorder %v911_v32, 0.0  ;;  %vm1062_vm5 = vcmp.gt.f32.partialorder %v924_v34, 0.0 }
  0xd0   :  { %v1097_v42 = vmul.f32 1.442695, %v1077_v37  ;;  %v1099_v45 = vmul.f32 1.442695, %v1078_v40  ;;  %v174_v37 = vld [vmem:[#allocation4 + $0x8] sm:$0xff] }
  0xd1   :  { %v187_v39 = vperm.slane %v174_v37, 2  ;;  %v188_v41 = vperm.slane %v174_v37, 3  ;;  %v190_v55 = vperm.slane %v174_v37, 5 }
  0xd2   :  { %1898 = vpow2.f32 %v1097_v42  ;;  %v185_v42 = vperm.slane %v174_v37, 0 }
  0xd3   :  { %v949_v47 = vpop.f32.mrf.mxu3  ;;  %1900 = vpow2.f32 %v1099_v45  ;;  %v912_v53 = vpop.f32.mrf.mxu0 }
  0xd4   :  { %v936_v43 = vpop.f32.mrf.mxu2  ;;  %v950_v48 = vadd.f32 %v949_v47, %v184_v38  ;;  %v925_v57 = vpop.f32.mrf.mxu1  ;;  %v189_v53 = vperm.slane %v174_v37, 4 }
  0xd5   :  { %v937_v46 = vadd.f32 %v936_v43, %v183_v35  ;;  %v186_v43 = vperm.slane %v174_v37, 1 }
  0xd6   :  { %v1080_v56 = vmin.f32 %v950_v48, 0.0  ;;  %vm1064_vm7 = vcmp.gt.f32.partialorder %v950_v48, 0.0 }
  0xd7   :  { %v1079_v51 = vmin.f32 %v937_v46, 0.0  ;;  %vm1063_vm6 = vcmp.gt.f32.partialorder %v937_v46, 0.0 }
  0xd8   :  { %v1103_v59 = vmul.f32 1.442695, %v1080_v56  ;;  %v1899_v62 = vpop.eup %1898 }
  0xd9   :  { %v1101_v58 = vmul.f32 1.442695, %v1079_v51  ;;  %v1901_v2 = vpop.eup %1900  ;;  %v1746_v3 = vadd.f32 -1.0, %v1899_v62 }
  0xda   :  { %v1747_v5 = vadd.f32 -1.0, %v1901_v2 }
  0xdb   :  { %1902 = vpow2.f32 %v1101_v58  ;;  %v951_v4 = vpop.f32.mrf.mxu3  ;;  %v1141_v8 = vsel %vm1061_vm4, %v911_v32, %v1746_v3  ;;  %v192_v3 = vperm.slane %v174_v37, 7 }
  0xdc   :  { %1904 = vpow2.f32 %v1103_v59  ;;  %v938_v1 = vpop.f32.mrf.mxu2  ;;  %v1142_v9 = vsel %vm1062_vm5, %v924_v34, %v1747_v5 }
  0xdd   :  { %v1155_v11 = vpack.c.bf16 %v1142_v9, %v1141_v8  ;;  %v191_v1 = vperm.slane %v174_v37, 6 }
  0xdf   :  { %v1172_v18 = vrot.slane %v1155_v11, 4  ;;  %v1173_v19 = vrot.slane %v1155_v11, 7 }
  0xe1   :  { %v1903_v10 = vpop.eup %1902  ;;  %v1196_v24 = vsel %vm1193_vm10, %v1172_v18, %v1173_v19 }
  0xe2   :  { %v1905_v12 = vpop.eup %1904  ;;  %v1748_v13 = vadd.f32 -1.0, %v1903_v10 }
  0xe3   :  { %v1749_v16 = vadd.f32 -1.0, %v1905_v12 }
  0xe4   :  { %v1143_v20 = vsel %vm1063_vm6, %v937_v46, %v1748_v13 }
  0xe5   :  { %v1144_v21 = vsel %vm1064_vm7, %v950_v48, %v1749_v16 }
  0xe6   :  { %v1156_v22 = vpack.c.bf16 %v1144_v21, %v1143_v20 }
  0xe8   :  { %v1174_v25 = vrot.slane %v1156_v22, 2  ;;  %v1175_v26 = vrot.slane %v1156_v22, 5 }
  0xea   :  { %v1200_v27 = vsel %vm1197_vm12, %v1174_v25, %v1175_v26 }
  0xeb   :  { %v1202_v29 = vsel %vm1201_vm13, %v1196_v24, %v1200_v27  ;;  %v962_v31 = vpop.f32.mrf.mxu0  ;;  %v975_v32 = vpop.f32.mrf.mxu1 }
  0xec   :  { %v1204_v30 = vsel %vm1203_vm14, %v1192_v28, %v1202_v29  ;;  %v2036_v46 = vadd.f32 %v962_v31, %v185_v42  ;;  %v2038_v47 = vadd.f32 %v975_v32, %v186_v43 }
  0xed   :  { %1222 = vst [vmem:[%s2059_s3] sm:$0xff] %v1204_v30 }
  0xee   :  { %v1081_v50 = vmin.f32 %v2036_v46, 0.0  ;;  %v1082_v51 = vmin.f32 %v2038_v47, 0.0  ;;  %vm1065_vm1 = vcmp.gt.f32.partialorder %v2036_v46, 0.0  ;;  %vm1066_vm2 = vcmp.gt.f32.partialorder %v2038_v47, 0.0 }
  0xf0   :  { %v1105_v57 = vmul.f32 1.442695, %v1081_v50  ;;  %v1107_v59 = vmul.f32 1.442695, %v1082_v51 }
  0xf3   :  { %v1001_v34 = vpop.f32.mrf.mxu3  ;;  %v964_v35 = vpop.f32.mrf.mxu0 }
  0xf4   :  { %v988_v33 = vpop.f32.mrf.mxu2  ;;  %v977_v36 = vpop.f32.mrf.mxu1  ;;  %v1002_v45 = vadd.f32 %v1001_v34, %v188_v41 }
  0xf5   :  { %v989_v44 = vadd.f32 %v988_v33, %v187_v39 }
  0xf6   :  { %v1084_v49 = vmin.f32 %v1002_v45, 0.0  ;;  %vm1068_vm0 = vcmp.gt.f32.partialorder %v1002_v45, 0.0 }
  0xf7   :  { %v1083_v48 = vmin.f32 %v989_v44, 0.0  ;;  %vm1067_vm15 = vcmp.gt.f32.partialorder %v989_v44, 0.0 }
  0xf8   :  { %v1111_v56 = vmul.f32 1.442695, %v1084_v49 }
  0xf9   :  { %v1109_v54 = vmul.f32 1.442695, %v1083_v48 }
  0xfb   :  { %v1003_v40 = vpop.f32.mrf.mxu3  ;;  %1906 = vpow2.f32 %v1109_v54 }
  0xfc   :  { %v990_v38 = vpop.f32.mrf.mxu2  ;;  %1908 = vpow2.f32 %v1111_v56 }
  0xfd   :  { %1910 = vpow2.f32 %v1105_v57 }
  0xfe   :  { %1912 = vpow2.f32 %v1107_v59 }
 0x101   :  { %v1907_v6 = vpop.eup %1906 }
 0x102   :  { %v1909_v10 = vpop.eup %1908  ;;  %v1752_v17 = vadd.f32 -1.0, %v1907_v6 }
 0x103   :  { %v1911_v13 = vpop.eup %1910  ;;  %v1753_v18 = vadd.f32 -1.0, %v1909_v10 }
 0x104   :  { %v1913_v15 = vpop.eup %1912  ;;  %v1750_v23 = vadd.f32 -1.0, %v1911_v13  ;;  %v1147_v27 = vsel %vm1067_vm15, %v989_v44, %v1752_v17 }
 0x105   :  { %v1751_v52 = vadd.f32 -1.0, %v1913_v15  ;;  %v1148_v28 = vsel %vm1068_vm0, %v1002_v45, %v1753_v18 }
 0x106   :  { %v1145_v30 = vsel %vm1065_vm1, %v2036_v46, %v1750_v23  ;;  %v1158_v34 = vpack.c.bf16 %v1148_v28, %v1147_v27 }
 0x107   :  { %v1146_v31 = vsel %vm1066_vm2, %v2038_v47, %v1751_v52 }
 0x108   :  { %v1157_v37 = vpack.c.bf16 %v1146_v31, %v1145_v30  ;;  %v1177_v41 = vrot.slane %v1158_v34, 6  ;;  %v1178_v42 = vrot.slane %v1158_v34, 1 }
 0x10a   :  { %v1176_v45 = vrot.slane %v1157_v37, 3  ;;  %v1210_v47 = vsel %vm1187_vm9, %v1177_v41, %v1178_v42 }
 0x10b   :  { %v1014_v58 = vpop.f32.mrf.mxu0  ;;  %v1027_v61 = vpop.f32.mrf.mxu1 }
 0x10c   :  { %v1015_v60 = vadd.f32 %v1014_v58, %v189_v53  ;;  %v1028_v62 = vadd.f32 %v1027_v61, %v190_v55  ;;  %v1207_v53 = vsel %vm1183_vm8, %v1157_v37, %v1176_v45 }
 0x10d   :  { %v1211_v56 = vsel %vm1191_vm11, %v1207_v53, %v1210_v47 }
 0x10e   :  { %v1085_v63 = vmin.f32 %v1015_v60, 0.0  ;;  %v1086_v0 = vmin.f32 %v1028_v62, 0.0  ;;  %vm1069_vm3 = vcmp.gt.f32.partialorder %v1015_v60, 0.0  ;;  %vm1070_vm4 = vcmp.gt.f32.partialorder %v1028_v62, 0.0 }
 0x110   :  { %v1113_v2 = vmul.f32 1.442695, %v1085_v63  ;;  %v1115_v4 = vmul.f32 1.442695, %v1086_v0 }
 0x112   :  { %1914 = vpow2.f32 %v1113_v2  ;;  %v1040_v5 = vpop.f32.mrf.mxu2 }
 0x113   :  { %1916 = vpow2.f32 %v1115_v4  ;;  %v1041_v7 = vadd.f32 %v1040_v5, %v191_v1  ;;  %v1053_v8 = vpop.f32.mrf.mxu3  ;;  %v1016_v9 = vpop.f32.mrf.mxu0 }
 0x114   :  { %v1054_v11 = vadd.f32 %v1053_v8, %v192_v3  ;;  %v1029_v12 = vpop.f32.mrf.mxu1 }
 0x115   :  { %v1087_v14 = vmin.f32 %v1041_v7, 0.0  ;;  %vm1071_vm5 = vcmp.gt.f32.partialorder %v1041_v7, 0.0 }
 0x116   :  { %v1088_v16 = vmin.f32 %v1054_v11, 0.0  ;;  %vm1072_vm6 = vcmp.gt.f32.partialorder %v1054_v11, 0.0 }
 0x117   :  { %v1117_v19 = vmul.f32 1.442695, %v1087_v14 }
 0x118   :  { %v1915_v20 = vpop.eup %1914  ;;  %v1119_v21 = vmul.f32 1.442695, %v1088_v16 }
 0x119   :  { %v1917_v22 = vpop.eup %1916  ;;  %v1754_v24 = vadd.f32 -1.0, %v1915_v20  ;;  %1918 = vpow2.f32 %v1117_v19 }
 0x11a   :  { %v1755_v25 = vadd.f32 -1.0, %v1917_v22  ;;  %1920 = vpow2.f32 %v1119_v21  ;;  %v1042_v26 = vpop.f32.mrf.mxu2 }
 0x11b   :  { %v1055_v29 = vpop.f32.mrf.mxu3  ;;  %v1149_v32 = vsel %vm1069_vm3, %v1015_v60, %v1754_v24 }
 0x11c   :  { %v1150_v33 = vsel %vm1070_vm4, %v1028_v62, %v1755_v25 }
 0x11d   :  { %v1159_v38 = vpack.c.bf16 %v1150_v33, %v1149_v32 }
 0x11f   :  { %v1919_v35 = vpop.eup %1918  ;;  %v1179_v48 = vrot.slane %v1159_v38, 4  ;;  %v1180_v46 = vrot.slane %v1159_v38, 7 }
 0x120   :  { %v1921_v36 = vpop.eup %1920  ;;  %v1756_v39 = vadd.f32 -1.0, %v1919_v35 }
 0x121   :  { %v1757_v40 = vadd.f32 -1.0, %v1921_v36  ;;  %v1214_v54 = vsel %vm1193_vm10, %v1179_v48, %v1180_v46 }
 0x122   :  { %v1151_v43 = vsel %vm1071_vm5, %v1041_v7, %v1756_v39 }
 0x123   :  { %v1152_v44 = vsel %vm1072_vm6, %v1054_v11, %v1757_v40 }
 0x124   :  { %v1160_v49 = vpack.c.bf16 %v1152_v44, %v1151_v43 }
 0x126   :  { %v1181_v50 = vrot.slane %v1160_v49, 2  ;;  %v1182_v51 = vrot.slane %v1160_v49, 5 }
 0x128   :  { %v1217_v55 = vsel %vm1197_vm12, %v1181_v50, %v1182_v51 }
 0x129   :  { %v1218_v57 = vsel %vm1201_vm13, %v1214_v54, %v1217_v55 }
 0x12a   :  { %v1219_v58 = vsel %vm1203_vm14, %v1211_v56, %v1218_v57 }
 0x12b   :  { %1223 = vst [vmem:[%s2059_s3 + $0x8] sm:$0xff] %v1219_v58 }
 0x12c   :  { %1228 = vsyncpa [#allocation3], 1 }
 0x12d   :  { %1229 = vsyncpa [#allocation5], 1 }

// kernel: generator_forward.3
= control target key start
LH: loop header
LB: loop body
LE: loop exit
PB: predicated region body
PF: predicated region fallthrough
CT: control target
= control target key end

     0   :  { %14 = vsyncpa [#allocation6], 0  ;;  %s14000_s0 = inlined_call_operand.vmem [shape: bf16[32,128], index: 0, kind: input, shape index: {}]   ;;  %s14001_s1 = inlined_call_operand.hbm [shape: bf16[128,512], index: 1, kind: input, shape index: {}]   ;;  %s14002_s2 = inlined_call_operand.hbm [shape: f32[1,512], index: 2, kind: input, shape index: {}]   ;;  %s14003_s3 = inlined_call_operand.hbm [shape: bf16[128,512], index: 3, kind: input, shape index: {}]   ;;  %s14004_s4 = inlined_call_operand.hbm [shape: f32[1,512], index: 4, kind: input, shape index: {}]   ;;  %s14005_s5 = inlined_call_operand.hbm [shape: bf16[128,512], index: 5, kind: input, shape index: {}]   ;;  %s14006_s6 = inlined_call_operand.hbm [shape: f32[1,512], index: 6, kind: input, shape index: {}]   ;;  %s14007_s7 = inlined_call_operand.hbm [shape: bf16[128,512], index: 7, kind: input, shape index: {}]   ;;  %s14008_s8 = inlined_call_operand.hbm [shape: f32[1,512], index: 8, kind: input, shape index: {}]   ;;  %s14009_s9 = inlined_call_operand.vmem [shape: f32[8192,128], index: 9, kind: output, shape index: {}]  }
   0x1   :  { %15 = vsyncpa [#allocation8], 0 }
   0x2   :  { %16 = vsyncpa [#allocation11], 0 }
   0x3   :  { %17 = vsyncpa [#allocation14], 0 }
   0x4   :  { %18 = vsyncpa [#allocation17], 0  ;;  %s11572_s30 = smov 0  }
   0x5 LB: > { %s275_s12 = sshll.u32 %s14002_s2, 4  ;;  %s11581_s13 = sadd.s32 4294967295, %s11510_s30   ;;  %s11510_s30 = sphi %s11572_s30, %s24_s30   ;;  %s276_s12 = int_to_ptr.hbm [resolvable:$true] %s275_s12 }
   0x6   : > { %p7502_p0 = scmp.ge.s32.totalorder %s11510_s30, 1  ;;  %p249_p1 = scmp.lt.s32.totalorder %s11510_s30, 3 }
   0x7   : > { %p9798_p2 = scmp.eq.s32.totalorder %s11581_s13, 0  ;;  %s11512_s15 = smov [#allocation7]  }
   0x8   : > { %p11586_p3 = pnand %p7502_p0, %p249_p1  ;;  %s277_s16 = sshll.u32 %s11512_s15, 4  ;;  %s278_s16 = int_to_ptr.vmem [resolvable:$true] %s277_s16 }
   0x9   : > { %s301_s19 = sshll.u32 %s14004_s4, 4  ;;  %s327_s22 = sshll.u32 %s14006_s6, 4  ;;  %s302_s19 = int_to_ptr.hbm [resolvable:$true] %s301_s19  ;;  %s328_s22 = int_to_ptr.hbm [resolvable:$true] %s327_s22 }
   0xa   : > { %p9773_p4 = pneg %p11586_p3  ;;  %s11513_s24 = smov [#allocation10]  }
   0xb   : > { %s303_s25 = sshll.u32 %s11513_s24, 4  ;;  %s11514_s26 = smov [#allocation13]   ;;  %s304_s25 = int_to_ptr.vmem [resolvable:$true] %s303_s25 }
   0xc   : > { %p11600_p5 = pnand %p9798_p2, %p9773_p4  ;;  %s329_s27 = sshll.u32 %s11514_s26, 4  ;;  %s330_s27 = int_to_ptr.vmem [resolvable:$true] %s329_s27 }
   0xd   : > { %s260_s10 = sshll.u32 %s14001_s1, 4  ;;  %s11515_s11 = smov [#allocation5]   ;;  %s261_s10 = int_to_ptr.hbm [resolvable:$true] %s260_s10 }
   0xe   : > { %9779 = dma.hbm_to_vmem [thread:$0]  (!%p11600_p5), %s276_s12, 64, %s278_s16, [#allocation8]  }
   0xf   : > { %9785 = dma.hbm_to_vmem [thread:$0]  (!%p11600_p5), %s302_s19, 64, %s304_s25, [#allocation11]  }
  0x10   : > { %9791 = dma.hbm_to_vmem [thread:$0]  (!%p11600_p5), %s328_s22, 64, %s330_s27, [#allocation14]  }
  0x11   : > { %s262_s15 = sshll.u32 %s11515_s11, 4  ;;  %s286_s12 = sshll.u32 %s14003_s3, 4  ;;  %s263_s15 = int_to_ptr.vmem [resolvable:$true] %s262_s15  ;;  %s287_s12 = int_to_ptr.hbm [resolvable:$true] %s286_s12 }
  0x12   : > { %s11516_s16 = smov 256   ;;  %s11517_s19 = smov 16  }
  0x13   : > { %9776 = dma.hbm_to_vmem [thread:$0]  (!%p11600_p5), %s261_s10, 4096, %s263_s15, [#allocation6], %s11516_s16, %s11516_s16, %s11517_s19  }
  0x14   : > { %s11518_s20 = smov [#allocation9]   ;;  %s312_s22 = sshll.u32 %s14005_s5, 4  ;;  %s313_s22 = int_to_ptr.hbm [resolvable:$true] %s312_s22 }
  0x15   : > { %s288_s21 = sshll.u32 %s11518_s20, 4  ;;  %s338_s28 = sshll.u32 %s14007_s7, 4  ;;  %s289_s21 = int_to_ptr.vmem [resolvable:$true] %s288_s21  ;;  %s339_s28 = int_to_ptr.hbm [resolvable:$true] %s338_s28 }
  0x16   : > { %9782 = dma.hbm_to_vmem [thread:$0]  (!%p11600_p5), %s287_s12, 4096, %s289_s21, [#allocation8], %s11516_s16, %s11516_s16, %s11517_s19  }
  0x17   : > { %s11519_s29 = smov [#allocation12]   ;;  %s11520_s10 = smov [#allocation15]  }
  0x18   : > { %s314_s11 = sshll.u32 %s11519_s29, 4  ;;  %s340_s15 = sshll.u32 %s11520_s10, 4  ;;  %s315_s11 = int_to_ptr.vmem [resolvable:$true] %s314_s11  ;;  %s341_s15 = int_to_ptr.vmem [resolvable:$true] %s340_s15 }
  0x19   : > { %9788 = dma.hbm_to_vmem [thread:$0]  (!%p11600_p5), %s313_s22, 4096, %s315_s11, [#allocation11], %s11516_s16, %s11516_s16, %s11517_s19  }
  0x1a   : > { %s353_s20 = sshll.u32 %s14008_s8, 4  ;;  %s11521_s12 = smov [#allocation16]   ;;  %s354_s20 = int_to_ptr.hbm [resolvable:$true] %s353_s20 }
  0x1b   : > { %9794 = dma.hbm_to_vmem [thread:$0]  (!%p11600_p5), %s339_s28, 4096, %s341_s15, [#allocation14], %s11516_s16, %s11516_s16, %s11517_s19  }
  0x1c   : > { %s355_s21 = sshll.u32 %s11521_s12, 4  ;;  %377 = sbr.rel (%p11586_p3) target bundleno = 1812 (0x714), region = 56  ;;  %s356_s21 = int_to_ptr.vmem [resolvable:$true] %s355_s21 }
  0x1d   : > { %9797 = dma.hbm_to_vmem [thread:$0]  (!%p11600_p5), %s354_s20, 64, %s356_s21, [#allocation17]  }
  0x21   : > { %11489 = dma.done.wait (%p9798_p2), [#allocation6], 4096  }
  0x22   : > { %11491 = vsyncadd (%p9798_p2), [#allocation6], 4294963200 }
  0x23   : > { %11493 = dma.done.wait (%p9798_p2), [#allocation8], 4160  }
  0x24   : > { %11495 = vsyncadd (%p9798_p2), [#allocation8], 4294963136 }
  0x25   : > { %11497 = dma.done.wait (%p9798_p2), [#allocation11], 4160  }
  0x26   : > { %11499 = vsyncadd (%p9798_p2), [#allocation11], 4294963136 }
  0x27   : > { %11501 = dma.done.wait (%p9798_p2), [#allocation14], 4160  }
  0x28   : > { %11503 = vsyncadd (%p9798_p2), [#allocation14], 4294963136 }
  0x29   : > { %11505 = dma.done.wait (%p9798_p2), [#allocation17], 64  }
  0x2a   : > { %11507 = vsyncadd (%p9798_p2), [#allocation17], 4294967232  ;;  %v7559_v0 = vld [vmem:[#allocation5 + $0xe0] sm:$0xf]  ;;  %v8939_v1 = vld [vmem:[#allocation5 + $0xec] sm:$0xf0] }
  0x2b   : > { %v7593_v2 = vld [vmem:[#allocation5 + $0xe4] sm:$0xf]  ;;  %v7560_v3 = vor.u32 %v8939_v1, %v7559_v0  ;;  %v8947_v4 = vld [vmem:[#allocation5 + $0xf0] sm:$0xf0]  ;;  %v7555_v5 = vld [vmem:[#allocation5 + $0xc0] sm:$0xf] }
  0x2c   : > { %v8938_v6 = vld [vmem:[#allocation5 + $0xcc] sm:$0xf0]  ;;  %v7594_v7 = vor.u32 %v8947_v4, %v7593_v2  ;;  %v7589_v8 = vld [vmem:[#allocation5 + $0xc4] sm:$0xf]  ;;  %v8946_v9 = vld [vmem:[#allocation5 + $0xd0] sm:$0xf0] }
  0x2d   : > { %v7627_v10 = vld [vmem:[#allocation5 + $0xe8] sm:$0xf]  ;;  %537 = vmatpush.bf16.msra.mxu0 %v7560_v3  ;;  %v7556_v11 = vor.u32 %v8938_v6, %v7555_v5  ;;  %v8955_v12 = vld [vmem:[#allocation5 + $0xf4] sm:$0xf0]  ;;  %v7590_v13 = vor.u32 %v8946_v9, %v7589_v8  ;;  %v7551_v15 = vld [vmem:[#allocation5 + $0xa0] sm:$0xf] }
  0x2e   : > { %635 = vmatpush.bf16.msra.mxu1 %v7594_v7  ;;  %v7628_v14 = vor.u32 %v8955_v12, %v7627_v10  ;;  %v8937_v16 = vld [vmem:[#allocation5 + $0xac] sm:$0xf0]  ;;  %v7623_v17 = vld [vmem:[#allocation5 + $0xc8] sm:$0xf]  ;;  %v7585_v18 = vld [vmem:[#allocation5 + $0xa4] sm:$0xf] }
  0x2f   : > { %v8945_v19 = vld [vmem:[#allocation5 + $0xb0] sm:$0xf0]  ;;  %v8954_v20 = vld [vmem:[#allocation5 + $0xd4] sm:$0xf0]  ;;  %v7552_v22 = vor.u32 %v8937_v16, %v7551_v15  ;;  %v7619_v23 = vld [vmem:[#allocation5 + $0xa8] sm:$0xf] }
  0x30   : > { %733 = vmatpush.bf16.msra.mxu2 %v7628_v14  ;;  %v7624_v21 = vor.u32 %v8954_v20, %v7623_v17  ;;  %v8953_v24 = vld [vmem:[#allocation5 + $0xb4] sm:$0xf0]  ;;  %s7521_s14 = sshll.u32 %s11581_s13, 1  ;;  %v7586_v25 = vor.u32 %v8945_v19, %v7585_v18  ;;  %v7547_v26 = vld [vmem:[#allocation5 + $0x80] sm:$0xf]  ;;  %s7523_s22 = sshll.u32 %s11581_s13, 9 }
  0x31   : > { %538 = vmatpush.bf16.msra.mxu0 %v7556_v11  ;;  %v8936_v27 = vld [vmem:[#allocation5 + $0x8c] sm:$0xf0]  ;;  %v7581_v28 = vld [vmem:[#allocation5 + $0x84] sm:$0xf]  ;;  %v8944_v29 = vld [vmem:[#allocation5 + $0x90] sm:$0xf0]  ;;  %v7620_v30 = vor.u32 %v8953_v24, %v7619_v23 }
  0x32   : > { %636 = vmatpush.bf16.msra.mxu1 %v7590_v13  ;;  %v7615_v31 = vld [vmem:[#allocation5 + $0x88] sm:$0xf]  ;;  %p11658_p6 = scmp.lt.s32.totalorder %s7521_s14, 3  ;;  %v7548_v32 = vor.u32 %v8936_v27, %v7547_v26  ;;  %v8952_v33 = vld [vmem:[#allocation5 + $0x94] sm:$0xf0]  ;;  %v7582_v36 = vor.u32 %v8944_v29, %v7581_v28  ;;  %p12850_p7 = scmp.lt.s32.totalorder %s7523_s22, 1023 }
  0x33   : > { %v7661_v34 = vld [vmem:[#allocation5 + $0xec] sm:$0xf]  ;;  %v8963_v35 = vld [vmem:[#allocation5 + $0xf8] sm:$0xf0]  ;;  %v7543_v37 = vld [vmem:[#allocation5 + $0x60] sm:$0xf]  ;;  %v7616_v42 = vor.u32 %v8952_v33, %v7615_v31 }
  0x34   : > { %734 = vmatpush.bf16.msra.mxu2 %v7624_v21  ;;  %v8935_v38 = vld [vmem:[#allocation5 + $0x6c] sm:$0xf0]  ;;  %v7662_v39 = vor.u32 %v8963_v35, %v7661_v34  ;;  %v7577_v40 = vld [vmem:[#allocation5 + $0x64] sm:$0xf]  ;;  %v8943_v41 = vld [vmem:[#allocation5 + $0x70] sm:$0xf0] }
  0x35   : > { %539 = vmatpush.bf16.msra.mxu0 %v7552_v22  ;;  %v7657_v43 = vld [vmem:[#allocation5 + $0xcc] sm:$0xf]  ;;  %v8962_v44 = vld [vmem:[#allocation5 + $0xd8] sm:$0xf0]  ;;  %s14015_s14 = smov (!%p11658_p6, %s7521_s14), 3  ;;  %v7544_v45 = vor.u32 %v8935_v38, %v7543_v37  ;;  %v7578_v49 = vor.u32 %v8943_v41, %v7577_v40  ;;  %s14017_s22 = smov (!%p12850_p7, %s7523_s22), 1023 }
  0x36   : > { %637 = vmatpush.bf16.msra.mxu1 %v7586_v25  ;;  %831 = vmatpush.bf16.msra.mxu3 %v7662_v39  ;;  %v7611_v46 = vld [vmem:[#allocation5 + $0x68] sm:$0xf]  ;;  %v8951_v47 = vld [vmem:[#allocation5 + $0x74] sm:$0xf0]  ;;  %v7658_v48 = vor.u32 %v8962_v44, %v7657_v43  ;;  %v7539_v50 = vld [vmem:[#allocation5 + $0x40] sm:$0xf] }
  0x37   : > { %v8934_v51 = vld [vmem:[#allocation5 + $0x4c] sm:$0xf0]  ;;  %v7653_v52 = vld [vmem:[#allocation5 + $0xac] sm:$0xf]  ;;  %v7573_v53 = vld [vmem:[#allocation5 + $0x44] sm:$0xf]  ;;  %v7612_v56 = vor.u32 %v8951_v47, %v7611_v46 }
  0x38   : > { %735 = vmatpush.bf16.msra.mxu2 %v7620_v30  ;;  %v8942_v54 = vld [vmem:[#allocation5 + $0x50] sm:$0xf0]  ;;  %v8961_v55 = vld [vmem:[#allocation5 + $0xb8] sm:$0xf0]  ;;  %v7535_v57 = vld [vmem:[#allocation5 + $0x20] sm:$0xf]  ;;  %v7540_v60 = vor.u32 %v8934_v51, %v7539_v50 }
  0x39   : > { %540 = vmatpush.bf16.msra.mxu0 %v7548_v32  ;;  %v7607_v58 = vld [vmem:[#allocation5 + $0x48] sm:$0xf]  ;;  %v7654_v59 = vor.u32 %v8961_v55, %v7653_v52  ;;  %s7522_s16 = sshll.u32 %s14015_s14, 2  ;;  %v8950_v61 = vld [vmem:[#allocation5 + $0x54] sm:$0xf0]  ;;  %v7574_v0 = vor.u32 %v8942_v54, %v7573_v53  ;;  %s7524_s13 = sshll.u32 %s14017_s22, 3 }
  0x3a   : > { %638 = vmatpush.bf16.msra.mxu1 %v7582_v36  ;;  %832 = vmatpush.bf16.msra.mxu3 %v7658_v48  ;;  %v7649_v62 = vld [vmem:[#allocation5 + $0x8c] sm:$0xf]  ;;  %v8960_v63 = vld [vmem:[#allocation5 + $0x98] sm:$0xf0]  ;;  %v8933_v1 = vld [vmem:[#allocation5 + $0x2c] sm:$0xf0]  ;;  %v7608_v7 = vor.u32 %v8950_v61, %v7607_v58  ;;  %s453_s25 = scalar_lea.vmem %s14000_s0, %s7522_s16  ;;  %s12905_s29 = scalar_lea.vmem %s14009_s9, %s7524_s13 }
  0x3b   : > { %v7569_v2 = vld [vmem:[#allocation5 + $0x24] sm:$0xf]  ;;  %v8941_v3 = vld [vmem:[#allocation5 + $0x30] sm:$0xf0]  ;;  %v7603_v4 = vld [vmem:[#allocation5 + $0x28] sm:$0xf]  ;;  %v7650_v10 = vor.u32 %v8960_v63, %v7649_v62  ;;  %v7536_v12 = vor.u32 %v8933_v1, %v7535_v57 }
  0x3c   : > { %736 = vmatpush.bf16.msra.mxu2 %v7616_v42  ;;  %v8949_v5 = vld [vmem:[#allocation5 + $0x34] sm:$0xf0]  ;;  %v7645_v6 = vld [vmem:[#allocation5 + $0x6c] sm:$0xf]  ;;  %v7531_v8 = vld [vmem:[#allocation5] sm:$0xf]  ;;  %v7570_v15 = vor.u32 %v8941_v3, %v7569_v2 }
  0x3d   : > { %541 = vmatpush.bf16.msra.mxu0 %v7544_v45  ;;  %v8932_v9 = vld [vmem:[#allocation5 + $0xc] sm:$0xf0]  ;;  %v8959_v11 = vld [vmem:[#allocation5 + $0x78] sm:$0xf0]  ;;  %v7565_v13 = vld [vmem:[#allocation5 + $0x4] sm:$0xf]  ;;  %v7604_v18 = vor.u32 %v8949_v5, %v7603_v4 }
  0x3e   : > { %639 = vmatpush.bf16.msra.mxu1 %v7578_v49  ;;  %833 = vmatpush.bf16.msra.mxu3 %v7654_v59  ;;  %v8940_v14 = vld [vmem:[#allocation5 + $0x10] sm:$0xf0]  ;;  %v7599_v16 = vld [vmem:[#allocation5 + $0x8] sm:$0xf]  ;;  %v8948_v17 = vld [vmem:[#allocation5 + $0x14] sm:$0xf0]  ;;  %v7646_v19 = vor.u32 %v8959_v11, %v7645_v6  ;;  %v7532_v22 = vor.u32 %v8932_v9, %v7531_v8 }
  0x3f   : > { %v7641_v20 = vld [vmem:[#allocation5 + $0x4c] sm:$0xf]  ;;  %v8958_v21 = vld [vmem:[#allocation5 + $0x58] sm:$0xf0]  ;;  %v7566_v23 = vor.u32 %v8940_v14, %v7565_v13  ;;  %v8931_v24 = vld [vmem:[%s453_s25] sm:$0xff]  ;;  %v7600_v25 = vor.u32 %v8948_v17, %v7599_v16 }
  0x40   : > { %737 = vmatpush.bf16.msra.mxu2 %v7612_v56  ;;  %v7642_v26 = vor.u32 %v8958_v21, %v7641_v20  ;;  %v7637_v27 = vld [vmem:[#allocation5 + $0x2c] sm:$0xf]  ;;  %v8957_v28 = vld [vmem:[#allocation5 + $0x38] sm:$0xf0]  ;;  %v7711_v33 = vld [vmem:[#allocation9 + $0xe0] sm:$0xf] }
  0x41   : > { %542 = vmatpush.bf16.msra.mxu0 %v7540_v60  ;;  %v7638_v29 = vor.u32 %v8957_v28, %v7637_v27  ;;  %v7633_v30 = vld [vmem:[#allocation5 + $0xc] sm:$0xf]  ;;  %v8956_v31 = vld [vmem:[#allocation5 + $0x18] sm:$0xf0]  ;;  %v8975_v34 = vld [vmem:[#allocation9 + $0xec] sm:$0xf0] }
  0x42   : > { %640 = vmatpush.bf16.msra.mxu1 %v7574_v0  ;;  %834 = vmatpush.bf16.msra.mxu3 %v7650_v10  ;;  %v7634_v32 = vor.u32 %v8956_v31, %v7633_v30  ;;  %v7712_v35 = vor.u32 %v8975_v34, %v7711_v33  ;;  %v7751_v36 = vld [vmem:[#allocation9 + $0xe4] sm:$0xf]  ;;  %v8983_v37 = vld [vmem:[#allocation9 + $0xf0] sm:$0xf0]  ;;  %v7791_v38 = vld [vmem:[#allocation9 + $0xe8] sm:$0xf] }
  0x43   : > { %v7752_v39 = vor.u32 %v8983_v37, %v7751_v36  ;;  %v8991_v40 = vld [vmem:[#allocation9 + $0xf4] sm:$0xf0]  ;;  %v7831_v41 = vld [vmem:[#allocation9 + $0xec] sm:$0xf]  ;;  %v8999_v42 = vld [vmem:[#allocation9 + $0xf8] sm:$0xf0] }
  0x44   : > { %738 = vmatpush.bf16.msra.mxu2 %v7608_v7  ;;  %v7792_v43 = vor.u32 %v8991_v40, %v7791_v38  ;;  %v7832_v44 = vor.u32 %v8999_v42, %v7831_v41  ;;  %v7707_v45 = vld [vmem:[#allocation9 + $0xc0] sm:$0xf]  ;;  %v8974_v46 = vld [vmem:[#allocation9 + $0xcc] sm:$0xf0]  ;;  %v7747_v47 = vld [vmem:[#allocation9 + $0xc4] sm:$0xf] }
  0x45   : > { %543 = vmatpush.bf16.msra.mxu0 %v7536_v12  ;;  %v7708_v48 = vor.u32 %v8974_v46, %v7707_v45  ;;  %v8982_v49 = vld [vmem:[#allocation9 + $0xd0] sm:$0xf0]  ;;  %v7787_v50 = vld [vmem:[#allocation9 + $0xc8] sm:$0xf]  ;;  %v8990_v51 = vld [vmem:[#allocation9 + $0xd4] sm:$0xf0] }
  0x46   : > { %641 = vmatpush.bf16.msra.mxu1 %v7570_v15  ;;  %835 = vmatpush.bf16.msra.mxu3 %v7646_v19  ;;  %v7748_v52 = vor.u32 %v8982_v49, %v7747_v47  ;;  %v7788_v53 = vor.u32 %v8990_v51, %v7787_v50  ;;  %v7827_v54 = vld [vmem:[#allocation9 + $0xcc] sm:$0xf]  ;;  %v8998_v55 = vld [vmem:[#allocation9 + $0xd8] sm:$0xf0]  ;;  %v7703_v57 = vld [vmem:[#allocation9 + $0xa0] sm:$0xf] }
  0x47   : > { %v7828_v56 = vor.u32 %v8998_v55, %v7827_v54  ;;  %v8973_v58 = vld [vmem:[#allocation9 + $0xac] sm:$0xf0]  ;;  %v7743_v59 = vld [vmem:[#allocation9 + $0xa4] sm:$0xf]  ;;  %v8981_v61 = vld [vmem:[#allocation9 + $0xb0] sm:$0xf0] }
  0x48   : > { %739 = vmatpush.bf16.msra.mxu2 %v7604_v18  ;;  %v7704_v60 = vor.u32 %v8973_v58, %v7703_v57  ;;  %v7783_v62 = vld [vmem:[#allocation9 + $0xa8] sm:$0xf]  ;;  %v8989_v63 = vld [vmem:[#allocation9 + $0xb4] sm:$0xf0]  ;;  %v7744_v0 = vor.u32 %v8981_v61, %v7743_v59  ;;  %v7823_v2 = vld [vmem:[#allocation9 + $0xac] sm:$0xf] }
  0x49   : > { %544 = vmatpush.bf16.msra.mxu0 %v7532_v22  ;;  %v7784_v1 = vor.u32 %v8989_v63, %v7783_v62  ;;  %v8997_v3 = vld [vmem:[#allocation9 + $0xb8] sm:$0xf0]  ;;  %v7699_v5 = vld [vmem:[#allocation9 + $0x80] sm:$0xf]  ;;  %v8972_v6 = vld [vmem:[#allocation9 + $0x8c] sm:$0xf0] }
  0x4a   : > { %642 = vmatpush.bf16.msra.mxu1 %v7566_v23  ;;  %836 = vmatpush.bf16.msra.mxu3 %v7642_v26  ;;  %v7824_v4 = vor.u32 %v8997_v3, %v7823_v2  ;;  %v7739_v7 = vld [vmem:[#allocation9 + $0x84] sm:$0xf]  ;;  %v7700_v8 = vor.u32 %v8972_v6, %v7699_v5  ;;  %v8980_v9 = vld [vmem:[#allocation9 + $0x90] sm:$0xf0]  ;;  %v7779_v10 = vld [vmem:[#allocation9 + $0x88] sm:$0xf] }
  0x4b   : > { %v8988_v11 = vld [vmem:[#allocation9 + $0x94] sm:$0xf0]  ;;  %v7740_v12 = vor.u32 %v8980_v9, %v7739_v7  ;;  %v7819_v14 = vld [vmem:[#allocation9 + $0x8c] sm:$0xf]  ;;  %v8996_v15 = vld [vmem:[#allocation9 + $0x98] sm:$0xf0] }
  0x4c   : > { %545 = vmatmul.bf16.vlgmr.msra.gmra.mxu0 %v8931_v24  ;;  %740 = vmatpush.bf16.msra.mxu2 %v7600_v25  ;;  %v7780_v13 = vor.u32 %v8988_v11, %v7779_v10  ;;  %v7820_v16 = vor.u32 %v8996_v15, %v7819_v14  ;;  %v7695_v17 = vld [vmem:[#allocation9 + $0x60] sm:$0xf]  ;;  %v8971_v18 = vld [vmem:[#allocation9 + $0x6c] sm:$0xf0]  ;;  %v7735_v20 = vld [vmem:[#allocation9 + $0x64] sm:$0xf] }
  0x4d   : > { %643 = vmatmul.bf16.vlgmr.msra.gmra.mxu1 %v8931_v24  ;;  %961 = vmatpush.bf16.msrb.mxu0 %v7712_v35  ;;  %v7696_v19 = vor.u32 %v8971_v18, %v7695_v17  ;;  %v8979_v21 = vld [vmem:[#allocation9 + $0x70] sm:$0xf0]  ;;  %v7775_v22 = vld [vmem:[#allocation9 + $0x68] sm:$0xf]  ;;  %v7815_v25 = vld [vmem:[#allocation9 + $0x6c] sm:$0xf] }
  0x4e   : > { %837 = vmatpush.bf16.msra.mxu3 %v7638_v29  ;;  %1122 = vmatpush.bf16.msrb.mxu1 %v7752_v39  ;;  %v7736_v23 = vor.u32 %v8979_v21, %v7735_v20  ;;  %v8995_v26 = vld [vmem:[#allocation9 + $0x78] sm:$0xf0]  ;;  %v7691_v29 = vld [vmem:[#allocation9 + $0x40] sm:$0xf]  ;;  %v8970_v30 = vld [vmem:[#allocation9 + $0x4c] sm:$0xf0] }
  0x4f   : > { %741 = vmatmul.bf16.vlgmr.msra.gmra.mxu2 %v8931_v24  ;;  %v7816_v28 = vor.u32 %v8995_v26, %v7815_v25  ;;  %v7731_v31 = vld [vmem:[#allocation9 + $0x44] sm:$0xf]  ;;  %v8978_v33 = vld [vmem:[#allocation9 + $0x50] sm:$0xf0]  ;;  %v7771_v34 = vld [vmem:[#allocation9 + $0x48] sm:$0xf] }
  0x50   : > { %1283 = vmatpush.bf16.msrb.mxu2 %v7792_v43  ;;  %v8986_v35 = vld [vmem:[#allocation9 + $0x54] sm:$0xf0]  ;;  %v7732_v36 = vor.u32 %v8978_v33, %v7731_v31  ;;  %v7811_v38 = vld [vmem:[#allocation9 + $0x4c] sm:$0xf]  ;;  %v8994_v39 = vld [vmem:[#allocation9 + $0x58] sm:$0xf0] }
  0x51   : > { %962 = vmatpush.bf16.msrb.mxu0 %v7708_v48  ;;  %v7772_v37 = vor.u32 %v8986_v35, %v7771_v34  ;;  %v7812_v40 = vor.u32 %v8994_v39, %v7811_v38  ;;  %v7687_v41 = vld [vmem:[#allocation9 + $0x20] sm:$0xf]  ;;  %v8969_v42 = vld [vmem:[#allocation9 + $0x2c] sm:$0xf0]  ;;  %v7727_v43 = vld [vmem:[#allocation9 + $0x24] sm:$0xf] }
  0x52   : > { %838 = vmatpush.bf16.msra.mxu3 %v7634_v32  ;;  %1123 = vmatpush.bf16.msrb.mxu1 %v7748_v52  ;;  %v7692_v32 = vor.u32 %v8970_v30, %v7691_v29  ;;  %v8977_v45 = vld [vmem:[#allocation9 + $0x30] sm:$0xf0]  ;;  %v7767_v46 = vld [vmem:[#allocation9 + $0x28] sm:$0xf]  ;;  %v8985_v47 = vld [vmem:[#allocation9 + $0x34] sm:$0xf0] }
  0x53   : > { %v9832_v48 = vld [vmem:[#allocation7] ss:$0 sm:$0xff]  ;;  %v7728_v49 = vor.u32 %v8977_v45, %v7727_v43  ;;  %v7768_v50 = vor.u32 %v8985_v47, %v7767_v46  ;;  %v7807_v51 = vld [vmem:[#allocation9 + $0x2c] sm:$0xf]  ;;  %v7683_v55 = vld [vmem:[#allocation9] sm:$0xf] }
  0x54   : > { %1284 = vmatpush.bf16.msrb.mxu2 %v7788_v53  ;;  %v8993_v52 = vld [vmem:[#allocation9 + $0x38] sm:$0xf0]  ;;  %v7723_v57 = vld [vmem:[#allocation9 + $0x4] sm:$0xf]  ;;  %v7763_v61 = vld [vmem:[#allocation9 + $0x8] sm:$0xf] }
  0x55   : > { %839 = vmatmul.bf16.vlgmr.msra.gmra.mxu3 %v8931_v24  ;;  %963 = vmatpush.bf16.msrb.mxu0 %v7704_v60  ;;  %v8987_v24 = vld [vmem:[#allocation9 + $0x74] sm:$0xf0]  ;;  %v9833_v53 = vld [vmem:[#allocation7 + $0x1] ss:$0 sm:$0xff]  ;;  %v7808_v54 = vor.u32 %v8993_v52, %v7807_v51  ;;  %v8976_v60 = vld [vmem:[#allocation9 + $0x10] sm:$0xf0] }
  0x56   : > { %1444 = vmatpush.bf16.msrb.mxu3 %v7832_v44  ;;  %1124 = vmatpush.bf16.msrb.mxu1 %v7744_v0  ;;  %v7776_v27 = vor.u32 %v8987_v24, %v7775_v22  ;;  %v7688_v44 = vor.u32 %v8969_v42, %v7687_v41  ;;  %v8984_v62 = vld [vmem:[#allocation9 + $0x14] sm:$0xf0]  ;;  %v7803_v3 = vld [vmem:[#allocation9 + $0xc] sm:$0xf]  ;;  %v9834_v9 = vld [vmem:[#allocation7 + $0x2] ss:$0 sm:$0xff] }
  0x57   : > { %v7764_v2 = vor.u32 %v8984_v62, %v7763_v61  ;;  %v9835_v24 = vld [vmem:[#allocation7 + $0x3] ss:$0 sm:$0xff] }
  0x58   : > { %1285 = vmatpush.bf16.msrb.mxu2 %v7784_v1  ;;  %v7724_v1 = vor.u32 %v8976_v60, %v7723_v57 }
  0x59   : > { %964 = vmatpush.bf16.msrb.mxu0 %v7700_v8 }
  0x5a   : > { %1445 = vmatpush.bf16.msrb.mxu3 %v7828_v56  ;;  %1125 = vmatpush.bf16.msrb.mxu1 %v7740_v12  ;;  %v8968_v56 = vld [vmem:[#allocation9 + $0xc] sm:$0xf0] }
  0x5b   : > { %v7684_v59 = vor.u32 %v8968_v56, %v7683_v55 }
  0x5c   : > { %1286 = vmatpush.bf16.msrb.mxu2 %v7780_v13 }
  0x5d   : > { %965 = vmatpush.bf16.msrb.mxu0 %v7696_v19 }
  0x5e   : > { %1446 = vmatpush.bf16.msrb.mxu3 %v7824_v4  ;;  %1126 = vmatpush.bf16.msrb.mxu1 %v7736_v23  ;;  %v8992_v4 = vld [vmem:[#allocation9 + $0x18] sm:$0xf0] }
  0x5f   : > { %v7804_v6 = vor.u32 %v8992_v4, %v7803_v3  ;;  %v8063_v3 = vld [vmem:[#allocation12 + $0xe8] sm:$0xf]  ;;  %v9039_v4 = vld [vmem:[#allocation12 + $0xf4] sm:$0xf0] }
  0x60   : > { %1287 = vmatpush.bf16.msrb.mxu2 %v7776_v27 }
  0x61   : > { %966 = vmatpush.bf16.msrb.mxu0 %v7692_v32 }
  0x62   : > { %1447 = vmatpush.bf16.msrb.mxu3 %v7820_v16  ;;  %1127 = vmatpush.bf16.msrb.mxu1 %v7732_v36 }
  0x64   : > { %1288 = vmatpush.bf16.msrb.mxu2 %v7772_v37 }
  0x65   : > { %967 = vmatpush.bf16.msrb.mxu0 %v7688_v44 }
  0x66   : > { %1448 = vmatpush.bf16.msrb.mxu3 %v7816_v28  ;;  %1128 = vmatpush.bf16.msrb.mxu1 %v7728_v49 }
  0x68   : > { %1289 = vmatpush.bf16.msrb.mxu2 %v7768_v50 }
  0x69   : > { %968 = vmatpush.bf16.msrb.mxu0 %v7684_v59 }
  0x6a   : > { %1449 = vmatpush.bf16.msrb.mxu3 %v7812_v40  ;;  %1129 = vmatpush.bf16.msrb.mxu1 %v7724_v1 }
  0x6c   : > { %1290 = vmatpush.bf16.msrb.mxu2 %v7764_v2 }
  0x6e   : > { %1450 = vmatpush.bf16.msrb.mxu3 %v7808_v54 }
  0x72   : > { %1451 = vmatpush.bf16.msrb.mxu3 %v7804_v6  ;;  %v8064_v6 = vor.u32 %v9039_v4, %v8063_v3  ;;  %v8107_v3 = vld [vmem:[#allocation12 + $0x4c] sm:$0xf] }
  0x74   : > { %2559 = vmatpush.bf16.msra.mxu2 %v8064_v6  ;;  %v7915_v6 = vld [vmem:[#allocation12 + $0x40] sm:$0xf] }
  0xc9   : > { %v546_v58 = vpop.f32.mrf.mxu0 }
  0xca   : > { %v547_v63 = vadd.f32 %v9832_v48, %v546_v58  ;;  %v644_v0 = vpop.f32.mrf.mxu1 }
  0xcb   : > { %v645_v5 = vadd.f32 %v9833_v53, %v644_v0 }
  0xcc   : > { %v553_v7 = vmin.f32 %v547_v63, 0.0  ;;  %vm551_vm1 = vcmp.gt.f32.partialorder %v547_v63, 0.0 }
  0xcd   : > { %v651_v8 = vmin.f32 %v645_v5, 0.0  ;;  %vm649_vm0 = vcmp.gt.f32.partialorder %v645_v5, 0.0 }
  0xce   : > { %v555_v10 = vmul.f32 1.442695, %v553_v7  ;;  %v9047_v7 = vld [vmem:[#allocation12 + $0xf8] sm:$0xf0] }
  0xcf   : > { %v653_v11 = vmul.f32 1.442695, %v651_v8  ;;  %v7935_v8 = vld [vmem:[#allocation12 + $0xe0] sm:$0xf] }
  0xd0   : > { %9860 = vpow2.f32 %v555_v10 }
  0xd1   : > { %v548_v12 = vpop.f32.mrf.mxu0  ;;  %9862 = vpow2.f32 %v653_v11 }
  0xd2   : > { %v549_v13 = vadd.f32 %v9832_v48, %v548_v12  ;;  %v646_v14 = vpop.f32.mrf.mxu1  ;;  %v742_v15 = vpop.f32.mrf.mxu2  ;;  %v7999_v12 = vld [vmem:[#allocation12 + $0xe4] sm:$0xf] }
  0xd3   : > { %v647_v16 = vadd.f32 %v9833_v53, %v646_v14  ;;  %v743_v17 = vadd.f32 %v9834_v9, %v742_v15  ;;  %v8059_v14 = vld [vmem:[#allocation12 + $0xc8] sm:$0xf] }
  0xd4   : > { %v554_v18 = vmin.f32 %v549_v13, 0.0  ;;  %vm552_vm2 = vcmp.gt.f32.partialorder %v549_v13, 0.0 }
  0xd5   : > { %v652_v19 = vmin.f32 %v647_v16, 0.0  ;;  %v749_v20 = vmin.f32 %v743_v17, 0.0  ;;  %vm650_vm3 = vcmp.gt.f32.partialorder %v647_v16, 0.0  ;;  %vm747_vm4 = vcmp.gt.f32.partialorder %v743_v17, 0.0 }
  0xd6   : > { %v557_v21 = vmul.f32 1.442695, %v554_v18  ;;  %v9861_v25 = vpop.eup %9860  ;;  %v9046_v18 = vld [vmem:[#allocation12 + $0xd8] sm:$0xf0] }
  0xd7   : > { %v655_v22 = vmul.f32 1.442695, %v652_v19  ;;  %v751_v23 = vmul.f32 1.442695, %v749_v20  ;;  %v9863_v27 = vpop.eup %9862  ;;  %v7561_v31 = vadd.f32 -1.0, %v9861_v25 }
  0xd8   : > { %9864 = vpow2.f32 %v557_v21  ;;  %v840_v29 = vpop.f32.mrf.mxu3  ;;  %v7595_v34 = vadd.f32 -1.0, %v9863_v27  ;;  %v7931_v21 = vld [vmem:[#allocation12 + $0xc0] sm:$0xf]  ;;  %v9030_v25 = vld [vmem:[#allocation12 + $0xd0] sm:$0xf0] }
  0xd9   : > { %9866 = vpow2.f32 %v655_v22  ;;  %v841_v30 = vadd.f32 %v9835_v24, %v840_v29  ;;  %v561_v42 = vsel %vm551_vm1, %v547_v63, %v7561_v31  ;;  %v9022_v22 = vld [vmem:[#allocation12 + $0xcc] sm:$0xf0]  ;;  %v9037_v27 = vld [vmem:[#allocation12 + $0xb4] sm:$0xf0]  ;;  %v8119_v29 = vld [vmem:[#allocation12 + $0xac] sm:$0xf] }
  0xda   : > { %v744_v26 = vpop.f32.mrf.mxu2  ;;  %9868 = vpow2.f32 %v751_v23  ;;  %v659_v44 = vsel %vm649_vm0, %v645_v5, %v7595_v34  ;;  %v8127_v5 = vld [vmem:[#allocation12 + $0xec] sm:$0xf]  ;;  %v7995_v23 = vld [vmem:[#allocation12 + $0xc4] sm:$0xf]  ;;  %v7927_v31 = vld [vmem:[#allocation12 + $0xa0] sm:$0xf] }
  0xdb   : > { %v745_v28 = vadd.f32 %v9834_v9, %v744_v26  ;;  %v847_v35 = vmin.f32 %v841_v30, 0.0  ;;  %vm845_vm6 = vcmp.gt.f32.partialorder %v841_v30, 0.0  ;;  %v9023_v9 = vld [vmem:[#allocation12 + $0xec] sm:$0xf0]  ;;  %v8128_v10 = vor.u32 %v9047_v7, %v8127_v5  ;;  %v8055_v26 = vld [vmem:[#allocation12 + $0xa8] sm:$0xf] }
  0xdc   : > { %v7936_v11 = vor.u32 %v9023_v9, %v7935_v8  ;;  %v7991_v34 = vld [vmem:[#allocation12 + $0xa4] sm:$0xf]  ;;  %v9042_v5 = vld [vmem:[#allocation12 + $0x58] sm:$0xf0]  ;;  %v9018_v7 = vld [vmem:[#allocation12 + $0x4c] sm:$0xf0] }
  0xdd   : > { %v750_v32 = vmin.f32 %v745_v28, 0.0  ;;  %v849_v40 = vmul.f32 1.442695, %v847_v35  ;;  %vm748_vm5 = vcmp.gt.f32.partialorder %v745_v28, 0.0  ;;  %2972 = vmatpush.bf16.msra.mxu3 %v8128_v10  ;;  %v9029_v35 = vld [vmem:[#allocation12 + $0xb0] sm:$0xf0]  ;;  %v8108_v8 = vor.u32 %v9042_v5, %v8107_v3 }
  0xde   : > { %v9865_v33 = vpop.eup %9864  ;;  %1733 = vmatpush.bf16.msra.mxu0 %v7936_v11  ;;  %v7916_v9 = vor.u32 %v9018_v7, %v7915_v6  ;;  %v7979_v10 = vld [vmem:[#allocation12 + $0x44] sm:$0xf]  ;;  %v9026_v11 = vld [vmem:[#allocation12 + $0x50] sm:$0xf0] }
  0xdf   : > { %v9867_v36 = vpop.eup %9866  ;;  %v7562_v37 = vadd.f32 -1.0, %v9865_v33  ;;  %v753_v38 = vmul.f32 1.442695, %v750_v32  ;;  %v8056_v32 = vor.u32 %v9037_v27, %v8055_v26  ;;  %v9021_v33 = vld [vmem:[#allocation12 + $0xac] sm:$0xf0] }
  0xe0   : > { %v7596_v39 = vadd.f32 -1.0, %v9867_v36  ;;  %v9869_v41 = vpop.eup %9868  ;;  %v842_v48 = vpop.f32.mrf.mxu3 }
  0xe1   : > { %v562_v43 = vsel %vm552_vm2, %v549_v13, %v7562_v37  ;;  %9870 = vpow2.f32 %v753_v38  ;;  %v7629_v49 = vadd.f32 -1.0, %v9869_v41  ;;  %v843_v50 = vadd.f32 %v9835_v24, %v842_v48  ;;  %v9031_v13 = vld [vmem:[#allocation12 + $0xf0] sm:$0xf0]  ;;  %v8115_v41 = vld [vmem:[#allocation12 + $0x8c] sm:$0xf] }
  0xe2   : > { %v9243_v45 = vpack.c.bf16 %v562_v43, %v561_v42  ;;  %v660_v46 = vsel %vm650_vm3, %v647_v16, %v7596_v39  ;;  %9872 = vpow2.f32 %v849_v40  ;;  %v8000_v15 = vor.u32 %v9031_v13, %v7999_v12  ;;  %v9038_v16 = vld [vmem:[#allocation12 + $0xd4] sm:$0xf0]  ;;  %v8051_v39 = vld [vmem:[#allocation12 + $0x88] sm:$0xf]  ;;  %v9044_v42 = vld [vmem:[#allocation12 + $0x98] sm:$0xf0] }
  0xe3   : > { %v9248_v47 = vpack.c.bf16 %v660_v46, %v659_v44  ;;  %v848_v51 = vmin.f32 %v843_v50, 0.0  ;;  %v757_v53 = vsel %vm747_vm4, %v743_v17, %v7629_v49  ;;  %vm846_vm7 = vcmp.gt.f32.partialorder %v843_v50, 0.0  ;;  %v8123_v17 = vld [vmem:[#allocation12 + $0xcc] sm:$0xf]  ;;  %v9036_v40 = vld [vmem:[#allocation12 + $0x94] sm:$0xf0] }
  0xe4   : > { %9244 = vst [vmem:[#allocation2 + $0x10] sm:$0xff] %v9243_v45   ;;  %v8060_v19 = vor.u32 %v9038_v16, %v8059_v14  ;;  %v8124_v20 = vor.u32 %v9046_v18, %v8123_v17  ;;  %2146 = vmatpush.bf16.msra.mxu1 %v8000_v15  ;;  %v7932_v24 = vor.u32 %v9022_v22, %v7931_v21  ;;  %v9020_v48 = vld [vmem:[#allocation12 + $0x8c] sm:$0xf0]  ;;  %v7987_v49 = vld [vmem:[#allocation12 + $0x84] sm:$0xf] }
  0xe5   : > { %9660 = vst [vmem:[#allocation2] sm:$0xff] %v9248_v47   ;;  %v851_v55 = vmul.f32 1.442695, %v848_v51  ;;  %v7928_v37 = vor.u32 %v9021_v33, %v7927_v31  ;;  %v7992_v38 = vor.u32 %v9029_v35, %v7991_v34  ;;  %v8052_v44 = vor.u32 %v9036_v40, %v8051_v39  ;;  %v7923_v47 = vld [vmem:[#allocation12 + $0x80] sm:$0xf] }
  0xe6   : > { %2560 = vmatpush.bf16.msra.mxu2 %v8060_v19  ;;  %2973 = vmatpush.bf16.msra.mxu3 %v8124_v20  ;;  %v8116_v45 = vor.u32 %v9044_v42, %v8115_v41  ;;  %v9028_v51 = vld [vmem:[#allocation12 + $0x90] sm:$0xf0]  ;;  %v7980_v12 = vor.u32 %v9026_v11, %v7979_v10  ;;  %v8039_v13 = vld [vmem:[#allocation12 + $0x28] sm:$0xf]  ;;  %v9033_v14 = vld [vmem:[#allocation12 + $0x34] sm:$0xf0] }
  0xe7   : > { %v9871_v52 = vpop.eup %9870  ;;  %9874 = vpow2.f32 %v851_v55  ;;  %1734 = vmatpush.bf16.msra.mxu0 %v7932_v24  ;;  %v8111_v55 = vld [vmem:[#allocation12 + $0x6c] sm:$0xf]  ;;  %v11670_v16 = vld [vmem:[#allocation10] ss:$0 sm:$0xff]  ;;  %v11672_v17 = vld [vmem:[#allocation10 + $0x1] ss:$0 sm:$0xff]  ;;  %v8040_v18 = vor.u32 %v9033_v14, %v8039_v13 }
  0xe8   : > { %v7630_v54 = vadd.f32 -1.0, %v9871_v52  ;;  %v9873_v56 = vpop.eup %9872  ;;  %v7988_v52 = vor.u32 %v9028_v51, %v7987_v49  ;;  %v8103_v15 = vld [vmem:[#allocation12 + $0x2c] sm:$0xf]  ;;  %v9041_v19 = vld [vmem:[#allocation12 + $0x38] sm:$0xf0] }
  0xe9   : > { %v7663_v60 = vadd.f32 -1.0, %v9873_v56  ;;  %v8104_v20 = vor.u32 %v9041_v19, %v8103_v15  ;;  %v7911_v21 = vld [vmem:[#allocation12 + $0x20] sm:$0xf]  ;;  %v9017_v22 = vld [vmem:[#allocation12 + $0x2c] sm:$0xf0] }
  0xea   : > { %v758_v57 = vsel %vm748_vm5, %v745_v28, %v7630_v54  ;;  %v7996_v28 = vor.u32 %v9030_v25, %v7995_v23  ;;  %2561 = vmatpush.bf16.msra.mxu2 %v8056_v32  ;;  %v9035_v54 = vld [vmem:[#allocation12 + $0x74] sm:$0xf0]  ;;  %v7975_v23 = vld [vmem:[#allocation12 + $0x24] sm:$0xf]  ;;  %v7912_v24 = vor.u32 %v9017_v22, %v7911_v21  ;;  %v9025_v25 = vld [vmem:[#allocation12 + $0x30] sm:$0xf0] }
  0xeb   : > { %v9253_v58 = vpack.c.bf16 %v758_v57, %v757_v53  ;;  %v8964_v59 = vld [vmem:[#allocation2 + $0x10] sm:$0xff]  ;;  %v855_v62 = vsel %vm845_vm6, %v841_v30, %v7663_v60  ;;  %v9045_v30 = vld [vmem:[#allocation12 + $0xb8] sm:$0xf0]  ;;  %1735 = vmatpush.bf16.msra.mxu0 %v7928_v37  ;;  %v9019_v60 = vld [vmem:[#allocation12 + $0x6c] sm:$0xf0] }
  0xec   : > { %969 = vmatmul.bf16.vlgmr.msrb.gmra.mxu0 %v8964_v59  ;;  %1130 = vmatmul.bf16.vlgmr.msrb.gmra.mxu1 %v8964_v59  ;;  %v8965_v2 = vld [vmem:[#allocation2] sm:$0xff]  ;;  %v8120_v36 = vor.u32 %v9045_v30, %v8119_v29  ;;  %v8047_v53 = vld [vmem:[#allocation12 + $0x68] sm:$0xf]  ;;  %v8099_v34 = vld [vmem:[#allocation12 + $0xc] sm:$0xf] }
  0xed   : > { %9661 = vst [vmem:[#allocation2 + $0x18] sm:$0xff] %v9253_v58   ;;  %1291 = vmatmul.bf16.vlgmr.msrb.gmra.mxu2 %v8964_v59  ;;  %1452 = vmatmul.bf16.vlgmr.msrb.gmra.mxu3 %v8964_v59  ;;  %v9875_v61 = vpop.eup %9874  ;;  %v8048_v56 = vor.u32 %v9035_v54, %v8047_v53  ;;  %v9043_v57 = vld [vmem:[#allocation12 + $0x78] sm:$0xf0]  ;;  %v7919_v59 = vld [vmem:[#allocation12 + $0x60] sm:$0xf] }
  0xee   : > { %v7664_v63 = vadd.f32 -1.0, %v9875_v61  ;;  %2147 = vmatpush.bf16.msra.mxu1 %v7996_v28  ;;  %2974 = vmatpush.bf16.msra.mxu3 %v8120_v36  ;;  %v8112_v58 = vor.u32 %v9043_v57, %v8111_v55  ;;  %v7983_v61 = vld [vmem:[#allocation12 + $0x64] sm:$0xf]  ;;  %v7976_v28 = vor.u32 %v9025_v25, %v7975_v23  ;;  %v11680_v31 = vld [vmem:[#allocation10 + $0x2] ss:$0 sm:$0xff] }
  0xef   : > { %2562 = vmatpush.bf16.msra.mxu2 %v8052_v44  ;;  %v8035_v32 = vld [vmem:[#allocation12 + $0x8] sm:$0xf]  ;;  %v9032_v33 = vld [vmem:[#allocation12 + $0x14] sm:$0xf0]  ;;  %v11684_v37 = vld [vmem:[#allocation10 + $0x3] ss:$0 sm:$0xff] }
  0xf0   : > { %v856_v0 = vsel %vm846_vm7, %v843_v50, %v7664_v63  ;;  %v7924_v50 = vor.u32 %v9020_v48, %v7923_v47  ;;  %v9027_v63 = vld [vmem:[#allocation12 + $0x70] sm:$0xf0]  ;;  %v8036_v39 = vor.u32 %v9032_v33, %v8035_v32  ;;  %v7907_v41 = vld [vmem:[#allocation12] sm:$0xf]  ;;  %v9016_v42 = vld [vmem:[#allocation12 + $0xc] sm:$0xf0] }
  0xf1   : > { %v9258_v1 = vpack.c.bf16 %v856_v0, %v855_v62  ;;  %v7920_v62 = vor.u32 %v9019_v60, %v7919_v59  ;;  %v7984_v0 = vor.u32 %v9027_v63, %v7983_v61  ;;  %v7908_v44 = vor.u32 %v9016_v42, %v7907_v41  ;;  %v8319_v19 = vld [vmem:[#allocation15 + $0xe8] sm:$0xf] }
  0xf2   : > { %2148 = vmatpush.bf16.msra.mxu1 %v7992_v38  ;;  %2975 = vmatpush.bf16.msra.mxu3 %v8116_v45  ;;  %v9040_v38 = vld [vmem:[#allocation12 + $0x18] sm:$0xf0]  ;;  %v9024_v45 = vld [vmem:[#allocation12 + $0x10] sm:$0xf0] }
  0xf3   : > { %9662 = vst [vmem:[#allocation2 + $0x8] sm:$0xff] %v9258_v1   ;;  %1736 = vmatpush.bf16.msra.mxu0 %v7924_v50  ;;  %2563 = vmatpush.bf16.msra.mxu2 %v8048_v56  ;;  %v8043_v1 = vld [vmem:[#allocation12 + $0x48] sm:$0xf]  ;;  %v8100_v40 = vor.u32 %v9040_v38, %v8099_v34 }
  0xf4   : > { %v8966_v43 = vld [vmem:[#allocation2 + $0x18] sm:$0xff] }
  0xf6   : > { %2149 = vmatpush.bf16.msra.mxu1 %v7988_v52  ;;  %2976 = vmatpush.bf16.msra.mxu3 %v8112_v58 }
  0xf7   : > { %1737 = vmatpush.bf16.msra.mxu0 %v7920_v62 }
  0xfa   : > { %v8967_v46 = vld [vmem:[#allocation2 + $0x8] sm:$0xff]  ;;  %2150 = vmatpush.bf16.msra.mxu1 %v7984_v0  ;;  %2977 = vmatpush.bf16.msra.mxu3 %v8108_v8 }
  0xfb   : > { %1738 = vmatpush.bf16.msra.mxu0 %v7916_v9 }
  0xfc   : > { %974 = vmatmul.bf16.gmra.mxu0 %v8965_v2  ;;  %1135 = vmatmul.bf16.gmra.mxu1 %v8965_v2 }
  0xfd   : > { %1296 = vmatmul.bf16.gmra.mxu2 %v8965_v2  ;;  %1457 = vmatmul.bf16.gmra.mxu3 %v8965_v2  ;;  %v9034_v2 = vld [vmem:[#allocation12 + $0x54] sm:$0xf0] }
  0xfe   : > { %v8044_v4 = vor.u32 %v9034_v2, %v8043_v1  ;;  %2151 = vmatpush.bf16.msra.mxu1 %v7980_v12  ;;  %2978 = vmatpush.bf16.msra.mxu3 %v8104_v20 }
  0xff   : > { %1739 = vmatpush.bf16.msra.mxu0 %v7912_v24  ;;  %v9087_v24 = vld [vmem:[#allocation15 + $0xf4] sm:$0xf0] }
 0x100   : > { %2564 = vmatpush.bf16.msra.mxu2 %v8044_v4  ;;  %v8320_v33 = vor.u32 %v9087_v24, %v8319_v19 }
 0x102   : > { %2152 = vmatpush.bf16.msra.mxu1 %v7976_v28  ;;  %2979 = vmatpush.bf16.msra.mxu3 %v8100_v40 }
 0x103   : > { %1740 = vmatpush.bf16.msra.mxu0 %v7908_v44 }
 0x104   : > { %2565 = vmatpush.bf16.msra.mxu2 %v8040_v18 }
 0x108   : > { %2566 = vmatpush.bf16.msra.mxu2 %v8036_v39 }
 0x10c   : > { %979 = vmatmul.bf16.gmra.mxu0 %v8966_v43  ;;  %1140 = vmatmul.bf16.gmra.mxu1 %v8966_v43 }
 0x10d   : > { %1301 = vmatmul.bf16.gmra.mxu2 %v8966_v43  ;;  %1462 = vmatmul.bf16.gmra.mxu3 %v8966_v43  ;;  %v7971_v43 = vld [vmem:[#allocation12 + $0x4] sm:$0xf] }
 0x10e   : > { %v7972_v47 = vor.u32 %v9024_v45, %v7971_v43  ;;  %3955 = vmatpush.bf16.msrb.mxu2 %v8320_v33  ;;  %v9095_v45 = vld [vmem:[#allocation15 + $0xf8] sm:$0xf0] }
 0x110   : > { %2153 = vmatpush.bf16.msra.mxu1 %v7972_v47 }
 0x11c   : > { %984 = vmatmul.bf16.gmra.mxu0 %v8967_v46  ;;  %1145 = vmatmul.bf16.gmra.mxu1 %v8967_v46 }
 0x11d   : > { %1306 = vmatmul.bf16.gmra.mxu2 %v8967_v46  ;;  %1467 = vmatmul.bf16.gmra.mxu3 %v8967_v46 }
 0x169   : > { %v970_v26 = vpop.f32.mrf.mxu0  ;;  %v1131_v27 = vpop.f32.mrf.mxu1 }
 0x16a   : > { %v11675_v29 = vadd.f32 %v11670_v16, %v970_v26  ;;  %v11678_v30 = vadd.f32 %v11672_v17, %v1131_v27 }
 0x16c   : > { %v998_v35 = vmin.f32 %v11675_v29, 0.0  ;;  %v1159_v36 = vmin.f32 %v11678_v30, 0.0  ;;  %vm990_vm8 = vcmp.gt.f32.partialorder %v11675_v29, 0.0  ;;  %vm1151_vm9 = vcmp.gt.f32.partialorder %v11678_v30, 0.0 }
 0x16e   : > { %v1006_v46 = vmul.f32 1.442695, %v998_v35  ;;  %v1167_v50 = vmul.f32 1.442695, %v1159_v36 }
 0x170   : > { %v1292_v48 = vpop.f32.mrf.mxu2  ;;  %v1453_v49 = vpop.f32.mrf.mxu3  ;;  %9876 = vpow2.f32 %v1006_v46 }
 0x171   : > { %v11687_v51 = vadd.f32 %v11680_v31, %v1292_v48  ;;  %v11690_v52 = vadd.f32 %v11684_v37, %v1453_v49  ;;  %v972_v53 = vpop.f32.mrf.mxu0  ;;  %v1133_v54 = vpop.f32.mrf.mxu1  ;;  %9878 = vpow2.f32 %v1167_v50 }
 0x172   : > { %v973_v55 = vadd.f32 %v11670_v16, %v972_v53  ;;  %v11694_v56 = vadd.f32 %v11672_v17, %v1133_v54 }
 0x173   : > { %v1320_v57 = vmin.f32 %v11687_v51, 0.0  ;;  %v1481_v58 = vmin.f32 %v11690_v52, 0.0  ;;  %vm1312_vm10 = vcmp.gt.f32.partialorder %v11687_v51, 0.0  ;;  %vm1473_vm13 = vcmp.gt.f32.partialorder %v11690_v52, 0.0 }
 0x174   : > { %v999_v59 = vmin.f32 %v973_v55, 0.0  ;;  %v1160_v60 = vmin.f32 %v11694_v56, 0.0  ;;  %vm991_vm11 = vcmp.gt.f32.partialorder %v973_v55, 0.0  ;;  %vm1152_vm12 = vcmp.gt.f32.partialorder %v11694_v56, 0.0 }
 0x175   : > { %v1328_v61 = vmul.f32 1.442695, %v1320_v57  ;;  %v1489_v0 = vmul.f32 1.442695, %v1481_v58 }
 0x176   : > { %v1008_v62 = vmul.f32 1.442695, %v999_v59  ;;  %v1169_v63 = vmul.f32 1.442695, %v1160_v60  ;;  %v9877_v3 = vpop.eup %9876 }
 0x177   : > { %9880 = vpow2.f32 %v1328_v61  ;;  %v9879_v9 = vpop.eup %9878  ;;  %v7713_v13 = vadd.f32 -1.0, %v9877_v3 }
 0x178   : > { %v1294_v1 = vpop.f32.mrf.mxu2  ;;  %v1455_v2 = vpop.f32.mrf.mxu3  ;;  %9882 = vpow2.f32 %v1008_v62  ;;  %v7753_v21 = vadd.f32 -1.0, %v9879_v9 }
 0x179   : > { %v11700_v4 = vadd.f32 %v11680_v31, %v1294_v1  ;;  %v11703_v5 = vadd.f32 %v11684_v37, %v1455_v2  ;;  %v975_v6 = vpop.f32.mrf.mxu0  ;;  %v1136_v7 = vpop.f32.mrf.mxu1  ;;  %9884 = vpow2.f32 %v1169_v63  ;;  %v1030_v35 = vsel %vm990_vm8, %v11675_v29, %v7713_v13  ;;  %v8351_v29 = vld [vmem:[#allocation15 + $0xec] sm:$0xf] }
 0x17a   : > { %v11706_v8 = vadd.f32 %v11670_v16, %v975_v6  ;;  %9886 = vpow2.f32 %v1489_v0  ;;  %v11711_v12 = vadd.f32 %v11672_v17, %v1136_v7  ;;  %v1191_v41 = vsel %vm1151_vm9, %v11678_v30, %v7753_v21 }
 0x17b   : > { %v1321_v10 = vmin.f32 %v11700_v4, 0.0  ;;  %v1482_v11 = vmin.f32 %v11703_v5, 0.0  ;;  %v8352_v59 = vor.u32 %v9095_v45, %v8351_v29  ;;  %vm1313_vm14 = vcmp.gt.f32.partialorder %v11700_v4, 0.0 }
 0x17c   : > { %v1000_v14 = vmin.f32 %v11706_v8, 0.0  ;;  %v1161_v23 = vmin.f32 %v11711_v12, 0.0  ;;  %vm1474_vm15 = vcmp.gt.f32.partialorder %v11703_v5, 0.0  ;;  %vm992_vm0 = vcmp.gt.f32.partialorder %v11706_v8, 0.0 }
 0x17d   : > { %v1330_v15 = vmul.f32 1.442695, %v1321_v10  ;;  %v1491_v18 = vmul.f32 1.442695, %v1482_v11  ;;  %v9881_v20 = vpop.eup %9880  ;;  %4176 = vmatpush.bf16.msrb.mxu3 %v8352_v59  ;;  %vm1153_vm1 = vcmp.gt.f32.partialorder %v11711_v12, 0.0 }
 0x17e   : > { %v9883_v22 = vpop.eup %9882  ;;  %v1010_v27 = vmul.f32 1.442695, %v1000_v14  ;;  %v1171_v48 = vmul.f32 1.442695, %v1161_v23  ;;  %v7793_v50 = vadd.f32 -1.0, %v9881_v20 }
 0x17f   : > { %9888 = vpow2.f32 %v1330_v15  ;;  %v9885_v25 = vpop.eup %9884  ;;  %v7714_v26 = vadd.f32 -1.0, %v9883_v22  ;;  %v8255_v15 = vld [vmem:[#allocation15 + $0xe0] sm:$0xf]  ;;  %v8287_v22 = vld [vmem:[#allocation15 + $0xe4] sm:$0xf] }
 0x180   : > { %9890 = vpow2.f32 %v1491_v18  ;;  %v1297_v28 = vpop.f32.mrf.mxu2  ;;  %v1458_v32 = vpop.f32.mrf.mxu3  ;;  %v7754_v36 = vadd.f32 -1.0, %v9885_v25  ;;  %v1352_v0 = vsel %vm1312_vm10, %v11687_v51, %v7793_v50  ;;  %v9071_v18 = vld [vmem:[#allocation15 + $0xec] sm:$0xf0] }
 0x181   : > { %v9887_v34 = vpop.eup %9886  ;;  %v11723_v38 = vadd.f32 %v11680_v31, %v1297_v28  ;;  %v977_v39 = vpop.f32.mrf.mxu0  ;;  %v1031_v42 = vsel %vm991_vm11, %v973_v55, %v7714_v26  ;;  %v11730_v43 = vadd.f32 %v11684_v37, %v1458_v32  ;;  %9892 = vpow2.f32 %v1010_v27  ;;  %v9079_v26 = vld [vmem:[#allocation15 + $0xf0] sm:$0xf0] }
 0x182   : > { %v1138_v40 = vpop.f32.mrf.mxu1  ;;  %v11733_v44 = vadd.f32 %v11670_v16, %v977_v39  ;;  %v9263_v46 = vpack.c.bf16 %v1031_v42, %v1030_v35  ;;  %v1192_v47 = vsel %vm1152_vm12, %v11694_v56, %v7754_v36  ;;  %v7833_v53 = vadd.f32 -1.0, %v9887_v34 }
 0x183   : > { %v1322_v49 = vmin.f32 %v11723_v38, 0.0  ;;  %v9283_v30 = vpack.c.bf16 %v1192_v47, %v1191_v41  ;;  %v1483_v55 = vmin.f32 %v11730_v43, 0.0  ;;  %v11740_v58 = vadd.f32 %v11672_v17, %v1138_v40 }
 0x184   : > { %9264 = vst [vmem:[#allocation3] sm:$0xff] %v9263_v46   ;;  %v1001_v57 = vmin.f32 %v11733_v44, 0.0  ;;  %9894 = vpow2.f32 %v1171_v48  ;;  %v1513_v1 = vsel %vm1473_vm13, %v11690_v52, %v7833_v53  ;;  %v8256_v25 = vor.u32 %v9071_v18, %v8255_v15 }
 0x185   : > { %v9889_v54 = vpop.eup %9888  ;;  %9666 = vst [vmem:[#allocation3 + $0x20] sm:$0xff] %v9283_v30   ;;  %v1332_v62 = vmul.f32 1.442695, %v1322_v49  ;;  %v1162_v3 = vmin.f32 %v11740_v58, 0.0  ;;  %v1493_v11 = vmul.f32 1.442695, %v1483_v55  ;;  %v8288_v40 = vor.u32 %v9079_v26, %v8287_v22 }
 0x186   : > { %v9891_v60 = vpop.eup %9890  ;;  %v7794_v56 = vadd.f32 -1.0, %v9889_v54  ;;  %v1012_v63 = vmul.f32 1.442695, %v1001_v57  ;;  %vm1314_vm2 = vcmp.gt.f32.partialorder %v11723_v38, 0.0  ;;  %3513 = vmatpush.bf16.msrb.mxu0 %v8256_v25  ;;  %vm993_vm3 = vcmp.gt.f32.partialorder %v11733_v44, 0.0 }
 0x187   : > { %v7834_v61 = vadd.f32 -1.0, %v9891_v60  ;;  %v9893_v19 = vpop.eup %9892  ;;  %v1173_v51 = vmul.f32 1.442695, %v1162_v3  ;;  %3734 = vmatpush.bf16.msrb.mxu1 %v8288_v40  ;;  %vm1154_vm4 = vcmp.gt.f32.partialorder %v11740_v58, 0.0  ;;  %vm1475_vm5 = vcmp.gt.f32.partialorder %v11730_v43, 0.0 }
 0x188   : > { %v1353_v2 = vsel %vm1313_vm14, %v11700_v4, %v7794_v56  ;;  %v1299_v6 = vpop.f32.mrf.mxu2  ;;  %v1460_v7 = vpop.f32.mrf.mxu3  ;;  %9896 = vpow2.f32 %v1012_v63  ;;  %v7715_v33 = vadd.f32 -1.0, %v9893_v19 }
 0x189   : > { %v9303_v9 = vpack.c.bf16 %v1353_v2, %v1352_v0  ;;  %v1514_v10 = vsel %vm1474_vm15, %v11703_v5, %v7834_v61  ;;  %v980_v13 = vpop.f32.mrf.mxu0  ;;  %v11753_v52 = vadd.f32 %v11680_v31, %v1299_v6  ;;  %9898 = vpow2.f32 %v1332_v62 }
 0x18a   : > { %v1141_v14 = vpop.f32.mrf.mxu1  ;;  %v9323_v20 = vpack.c.bf16 %v1514_v10, %v1513_v1  ;;  %v11756_v4 = vadd.f32 %v11684_v37, %v1460_v7  ;;  %v11759_v21 = vadd.f32 %v11670_v16, %v980_v13  ;;  %9900 = vpow2.f32 %v1173_v51  ;;  %v9895_v27 = vpop.eup %9894 }
 0x18b   : > { %9670 = vst [vmem:[#allocation3 + $0x40] sm:$0xff] %v9303_v9   ;;  %v11762_v5 = vadd.f32 %v11672_v17, %v1141_v14  ;;  %v1323_v23 = vmin.f32 %v11753_v52, 0.0  ;;  %v9000_v24 = vld [vmem:[#allocation3] sm:$0xff]  ;;  %9902 = vpow2.f32 %v1493_v11  ;;  %v7755_v41 = vadd.f32 -1.0, %v9895_v27 }
 0x18c   : > { %9674 = vst [vmem:[#allocation3 + $0x60] sm:$0xff] %v9323_v20   ;;  %v1484_v28 = vmin.f32 %v11756_v4, 0.0  ;;  %v1002_v32 = vmin.f32 %v11759_v21, 0.0  ;;  %1741 = vmatmul.bf16.vlgmr.msra.gmra.mxu0 %v9000_v24  ;;  %2154 = vmatmul.bf16.vlgmr.msra.gmra.mxu1 %v9000_v24  ;;  %v1032_v54 = vsel %vm992_vm0, %v11706_v8, %v7715_v33  ;;  %vm1315_vm6 = vcmp.gt.f32.partialorder %v11753_v52, 0.0 }
 0x18d   : > { %v1334_v34 = vmul.f32 1.442695, %v1323_v23  ;;  %v1163_v39 = vmin.f32 %v11762_v5, 0.0  ;;  %2567 = vmatmul.bf16.vlgmr.msra.gmra.mxu2 %v9000_v24  ;;  %2980 = vmatmul.bf16.vlgmr.msra.gmra.mxu3 %v9000_v24  ;;  %v1193_v63 = vsel %vm1153_vm1, %v11711_v12, %v7755_v41  ;;  %vm1476_vm7 = vcmp.gt.f32.partialorder %v11756_v4, 0.0 }
 0x18e   : > { %v9897_v35 = vpop.eup %9896  ;;  %v1495_v36 = vmul.f32 1.442695, %v1484_v28  ;;  %v1014_v29 = vmul.f32 1.442695, %v1002_v32  ;;  %vm994_vm8 = vcmp.gt.f32.partialorder %v11759_v21, 0.0  ;;  %vm1155_vm9 = vcmp.gt.f32.partialorder %v11762_v5, 0.0 }
 0x18f   : > { %v7716_v42 = vadd.f32 -1.0, %v9897_v35  ;;  %9904 = vpow2.f32 %v1334_v34  ;;  %v9899_v47 = vpop.eup %9898  ;;  %v1175_v62 = vmul.f32 1.442695, %v1163_v39 }
 0x190   : > { %v1302_v45 = vpop.f32.mrf.mxu2  ;;  %v1463_v46 = vpop.f32.mrf.mxu3  ;;  %9906 = vpow2.f32 %v1495_v36  ;;  %v7795_v0 = vadd.f32 -1.0, %v9899_v47 }
 0x191   : > { %v11773_v48 = vadd.f32 %v11680_v31, %v1302_v45  ;;  %v11776_v49 = vadd.f32 %v11684_v37, %v1463_v46  ;;  %v982_v50 = vpop.f32.mrf.mxu0  ;;  %v9901_v30 = vpop.eup %9900  ;;  %v1033_v55 = vsel %vm993_vm3, %v11733_v44, %v7716_v42  ;;  %9908 = vpow2.f32 %v1014_v29 }
 0x192   : > { %v1143_v53 = vpop.f32.mrf.mxu1  ;;  %v11783_v57 = vadd.f32 %v11670_v16, %v982_v50  ;;  %v9903_v60 = vpop.eup %9902  ;;  %v9268_v56 = vpack.c.bf16 %v1033_v55, %v1032_v54  ;;  %v7756_v61 = vadd.f32 -1.0, %v9901_v30  ;;  %9910 = vpow2.f32 %v1175_v62 }
 0x193   : > { %v11786_v59 = vadd.f32 %v11672_v17, %v1143_v53  ;;  %v1324_v8 = vmin.f32 %v11773_v48, 0.0  ;;  %v1485_v44 = vmin.f32 %v11776_v49, 0.0  ;;  %v7835_v7 = vadd.f32 -1.0, %v9903_v60 }
 0x194   : > { %9663 = vst [vmem:[#allocation3 + $0x38] sm:$0xff] %v9268_v56   ;;  %v1194_v1 = vsel %vm1154_vm4, %v11740_v58, %v7756_v61  ;;  %v1003_v2 = vmin.f32 %v11783_v57, 0.0  ;;  %v1354_v20 = vsel %vm1314_vm2, %v11723_v38, %v7795_v0  ;;  %vm1316_vm10 = vcmp.gt.f32.partialorder %v11773_v48, 0.0 }
 0x195   : > { %v1164_v3 = vmin.f32 %v11786_v59, 0.0  ;;  %v9905_v6 = vpop.eup %9904  ;;  %v9288_v9 = vpack.c.bf16 %v1194_v1, %v1193_v63  ;;  %v1336_v10 = vmul.f32 1.442695, %v1324_v8  ;;  %v1497_v15 = vmul.f32 1.442695, %v1485_v44 }
 0x196   : > { %v9907_v12 = vpop.eup %9906  ;;  %v7796_v11 = vadd.f32 -1.0, %v9905_v6  ;;  %v1016_v13 = vmul.f32 1.442695, %v1003_v2  ;;  %v1515_v26 = vsel %vm1475_vm5, %v11730_v43, %v7835_v7  ;;  %vm995_vm11 = vcmp.gt.f32.partialorder %v11783_v57, 0.0  ;;  %v8315_v1 = vld [vmem:[#allocation15 + $0xc8] sm:$0xf] }
 0x197   : > { %v1177_v14 = vmul.f32 1.442695, %v1164_v3  ;;  %9667 = vst [vmem:[#allocation3 + $0x8] sm:$0xff] %v9288_v9   ;;  %v7836_v58 = vadd.f32 -1.0, %v9907_v12  ;;  %9912 = vpow2.f32 %v1336_v10  ;;  %v9909_v25 = vpop.eup %9908  ;;  %vm1156_vm12 = vcmp.gt.f32.partialorder %v11786_v59, 0.0 }
 0x198   : > { %v1304_v18 = vpop.f32.mrf.mxu2  ;;  %v1465_v19 = vpop.f32.mrf.mxu3  ;;  %v1355_v51 = vsel %vm1315_vm6, %v11753_v52, %v7796_v11  ;;  %9914 = vpow2.f32 %v1016_v13  ;;  %v7717_v43 = vadd.f32 -1.0, %v9909_v25  ;;  %vm1477_vm13 = vcmp.gt.f32.partialorder %v11776_v49, 0.0  ;;  %v9086_v2 = vld [vmem:[#allocation15 + $0xd4] sm:$0xf0]  ;;  %v8347_v9 = vld [vmem:[#allocation15 + $0xcc] sm:$0xf] }
 0x199   : > { %v11805_v22 = vadd.f32 %v11680_v31, %v1304_v18  ;;  %v985_v23 = vpop.f32.mrf.mxu0  ;;  %v9308_v27 = vpack.c.bf16 %v1355_v51, %v1354_v20  ;;  %v1516_v28 = vsel %vm1476_vm7, %v11756_v4, %v7836_v58  ;;  %9916 = vpow2.f32 %v1177_v14  ;;  %v9911_v35 = vpop.eup %9910  ;;  %v9094_v10 = vld [vmem:[#allocation15 + $0xd8] sm:$0xf0]  ;;  %v8251_v13 = vld [vmem:[#allocation15 + $0xc0] sm:$0xf]  ;;  %v9070_v14 = vld [vmem:[#allocation15 + $0xcc] sm:$0xf0] }
 0x19a   : > { %v1146_v24 = vpop.f32.mrf.mxu1  ;;  %v9328_v32 = vpack.c.bf16 %v1516_v28, %v1515_v26  ;;  %9918 = vpow2.f32 %v1497_v15  ;;  %v11813_v52 = vadd.f32 %v11684_v37, %v1465_v19  ;;  %v11816_v33 = vadd.f32 %v11670_v16, %v985_v23 }
 0x19b   : > { %9671 = vst [vmem:[#allocation3 + $0x30] sm:$0xff] %v9308_v27   ;;  %v1325_v38 = vmin.f32 %v11805_v22, 0.0  ;;  %v9001_v34 = vld [vmem:[#allocation3 + $0x38] sm:$0xff]  ;;  %v11819_v36 = vadd.f32 %v11672_v17, %v1146_v24  ;;  %v7757_v45 = vadd.f32 -1.0, %v9911_v35  ;;  %v1034_v30 = vsel %vm994_vm8, %v11759_v21, %v7717_v43 }
 0x19c   : > { %9675 = vst [vmem:[#allocation3 + $0x48] sm:$0xff] %v9328_v32   ;;  %v1486_v39 = vmin.f32 %v11813_v52, 0.0  ;;  %1746 = vmatmul.bf16.gmra.mxu0 %v9001_v34  ;;  %2159 = vmatmul.bf16.gmra.mxu1 %v9001_v34  ;;  %v1004_v41 = vmin.f32 %v11816_v33, 0.0  ;;  %vm1317_vm14 = vcmp.gt.f32.partialorder %v11805_v22, 0.0  ;;  %v8316_v18 = vor.u32 %v9086_v2, %v8315_v1  ;;  %v9093_v2 = vld [vmem:[#allocation15 + $0xb8] sm:$0xf0] }
 0x19d   : > { %v1338_v4 = vmul.f32 1.442695, %v1325_v38  ;;  %v9913_v40 = vpop.eup %9912  ;;  %v1165_v42 = vmin.f32 %v11819_v36, 0.0  ;;  %2572 = vmatmul.bf16.gmra.mxu2 %v9001_v34  ;;  %2985 = vmatmul.bf16.gmra.mxu3 %v9001_v34  ;;  %v1195_v3 = vsel %vm1155_vm9, %v11762_v5, %v7757_v45  ;;  %v8348_v51 = vor.u32 %v9094_v10, %v8347_v9  ;;  %v9069_v10 = vld [vmem:[#allocation15 + $0xac] sm:$0xf0] }
 0x19e   : > { %v9915_v29 = vpop.eup %9914  ;;  %v1499_v46 = vmul.f32 1.442695, %v1486_v39  ;;  %v1018_v55 = vmul.f32 1.442695, %v1004_v41  ;;  %v7797_v6 = vadd.f32 -1.0, %v9913_v40  ;;  %vm1478_vm15 = vcmp.gt.f32.partialorder %v11813_v52, 0.0  ;;  %3956 = vmatpush.bf16.msrb.mxu2 %v8316_v18 }
 0x19f   : > { %9920 = vpow2.f32 %v1338_v4  ;;  %v9917_v53 = vpop.eup %9916  ;;  %v7718_v54 = vadd.f32 -1.0, %v9915_v29  ;;  %v1179_v62 = vmul.f32 1.442695, %v1165_v42  ;;  %v8252_v27 = vor.u32 %v9070_v14, %v8251_v13  ;;  %4177 = vmatpush.bf16.msrb.mxu3 %v8348_v51  ;;  %v8283_v4 = vld [vmem:[#allocation15 + $0xc4] sm:$0xf] }
 0x1a0   : > { %v1307_v47 = vpop.f32.mrf.mxu2  ;;  %v1468_v50 = vpop.f32.mrf.mxu3  ;;  %v7758_v61 = vadd.f32 -1.0, %v9917_v53  ;;  %9922 = vpow2.f32 %v1499_v46  ;;  %v9078_v39 = vld [vmem:[#allocation15 + $0xd0] sm:$0xf0]  ;;  %vm996_vm0 = vcmp.gt.f32.partialorder %v11816_v33, 0.0  ;;  %vm1157_vm1 = vcmp.gt.f32.partialorder %v11819_v36, 0.0 }
 0x1a1   : > { %v987_v60 = vpop.f32.mrf.mxu0  ;;  %v9919_v56 = vpop.eup %9918  ;;  %v11832_v63 = vadd.f32 %v11680_v31, %v1307_v47  ;;  %v1035_v8 = vsel %vm995_vm11, %v11783_v57, %v7718_v54  ;;  %v11839_v21 = vadd.f32 %v11684_v37, %v1468_v50  ;;  %9924 = vpow2.f32 %v1018_v55  ;;  %3514 = vmatpush.bf16.msrb.mxu0 %v8252_v27  ;;  %v8311_v55 = vld [vmem:[#allocation15 + $0xa8] sm:$0xf] }
 0x1a2   : > { %v11842_v44 = vadd.f32 %v11670_v16, %v987_v60  ;;  %v1148_v0 = vpop.f32.mrf.mxu1  ;;  %v9273_v7 = vpack.c.bf16 %v1035_v8, %v1034_v30  ;;  %v1196_v57 = vsel %vm1156_vm12, %v11786_v59, %v7758_v61  ;;  %v7837_v12 = vadd.f32 -1.0, %v9919_v56  ;;  %v9085_v61 = vld [vmem:[#allocation15 + $0xb4] sm:$0xf0]  ;;  %v8307_v27 = vld [vmem:[#allocation15 + $0x88] sm:$0xf] }
 0x1a3   : > { %v9293_v11 = vpack.c.bf16 %v1196_v57, %v1195_v3  ;;  %v1326_v16 = vmin.f32 %v11832_v63, 0.0  ;;  %9926 = vpow2.f32 %v1179_v62  ;;  %v11853_v15 = vadd.f32 %v11672_v17, %v1148_v0  ;;  %v8343_v62 = vld [vmem:[#allocation15 + $0xac] sm:$0xf]  ;;  %v8247_v3 = vld [vmem:[#allocation15 + $0xa0] sm:$0xf] }
 0x1a4   : > { %9664 = vst [vmem:[#allocation3 + $0x78] sm:$0xff] %v9273_v7   ;;  %v1005_v5 = vmin.f32 %v11842_v44, 0.0  ;;  %v1487_v20 = vmin.f32 %v11839_v21, 0.0  ;;  %v1356_v17 = vsel %vm1316_vm10, %v11773_v48, %v7797_v6  ;;  %v1517_v48 = vsel %vm1477_vm13, %v11776_v49, %v7837_v12  ;;  %v8279_v12 = vld [vmem:[#allocation15 + $0xa4] sm:$0xf] }
 0x1a5   : > { %v9921_v58 = vpop.eup %9920  ;;  %9668 = vst [vmem:[#allocation3 + $0x70] sm:$0xff] %v9293_v11   ;;  %v1340_v19 = vmul.f32 1.442695, %v1326_v16  ;;  %v1166_v25 = vmin.f32 %v11853_v15, 0.0  ;;  %v8284_v47 = vor.u32 %v9078_v39, %v8283_v4  ;;  %vm997_vm2 = vcmp.gt.f32.partialorder %v11842_v44, 0.0 }
 0x1a6   : > { %v7798_v59 = vadd.f32 -1.0, %v9921_v58  ;;  %v9923_v23 = vpop.eup %9922  ;;  %v1020_v24 = vmul.f32 1.442695, %v1005_v5  ;;  %v1501_v41 = vmul.f32 1.442695, %v1487_v20  ;;  %vm1158_vm3 = vcmp.gt.f32.partialorder %v11853_v15, 0.0 }
 0x1a7   : > { %v7838_v32 = vadd.f32 -1.0, %v9923_v23  ;;  %9928 = vpow2.f32 %v1340_v19  ;;  %v1181_v35 = vmul.f32 1.442695, %v1166_v25  ;;  %v9925_v40 = vpop.eup %9924  ;;  %3735 = vmatpush.bf16.msrb.mxu1 %v8284_v47  ;;  %v8312_v1 = vor.u32 %v9085_v61, %v8311_v55  ;;  %v9077_v11 = vld [vmem:[#allocation15 + $0xb0] sm:$0xf0] }
 0x1a8   : > { %v1309_v26 = vpop.f32.mrf.mxu2  ;;  %v1357_v28 = vsel %vm1317_vm14, %v11805_v22, %v7798_v59  ;;  %v1470_v43 = vpop.f32.mrf.mxu3  ;;  %9930 = vpow2.f32 %v1020_v24  ;;  %v7719_v53 = vadd.f32 -1.0, %v9925_v40  ;;  %v8344_v9 = vor.u32 %v9093_v2, %v8343_v62  ;;  %v8275_v4 = vld [vmem:[#allocation15 + $0x84] sm:$0xf]  ;;  %v9076_v39 = vld [vmem:[#allocation15 + $0x90] sm:$0xf0] }
 0x1a9   : > { %v11865_v38 = vadd.f32 %v11680_v31, %v1309_v26  ;;  %v9313_v34 = vpack.c.bf16 %v1357_v28, %v1356_v17  ;;  %v1518_v22 = vsel %vm1478_vm15, %v11813_v52, %v7838_v32  ;;  %v9927_v31 = vpop.eup %9926  ;;  %9932 = vpow2.f32 %v1181_v35  ;;  %3957 = vmatpush.bf16.msrb.mxu2 %v8312_v1  ;;  %v9084_v17 = vld [vmem:[#allocation15 + $0x94] sm:$0xf0]  ;;  %v8339_v28 = vld [vmem:[#allocation15 + $0x8c] sm:$0xf]  ;;  %v11914_v2 = vld [vmem:[#allocation13 + $0x2] ss:$0 sm:$0xff] }
 0x1aa   : > { %v9333_v42 = vpack.c.bf16 %v1518_v22, %v1517_v48  ;;  %v11875_v45 = vadd.f32 %v11684_v37, %v1470_v43  ;;  %9934 = vpow2.f32 %v1501_v41  ;;  %v7759_v30 = vadd.f32 -1.0, %v9927_v31  ;;  %4178 = vmatpush.bf16.msrb.mxu3 %v8344_v9  ;;  %v9005_v48 = vld [vmem:[#allocation3 + $0x8] sm:$0xff]  ;;  %v8303_v41 = vld [vmem:[#allocation15 + $0x68] sm:$0xf]  ;;  %v9083_v31 = vld [vmem:[#allocation15 + $0x74] sm:$0xf0] }
 0x1ab   : > { %9672 = vst [vmem:[#allocation3 + $0x68] sm:$0xff] %v9313_v34   ;;  %v1327_v29 = vmin.f32 %v11865_v38, 0.0  ;;  %v9002_v46 = vld [vmem:[#allocation3 + $0x78] sm:$0xff]  ;;  %v1036_v6 = vsel %vm996_vm0, %v11816_v33, %v7719_v53  ;;  %v8248_v33 = vor.u32 %v9069_v10, %v8247_v3  ;;  %v8280_v58 = vor.u32 %v9077_v11, %v8279_v12  ;;  %v11916_v3 = vld [vmem:[#allocation13 + $0x3] ss:$0 sm:$0xff] }
 0x1ac   : > { %9676 = vst [vmem:[#allocation3 + $0x18] sm:$0xff] %v9333_v42   ;;  %v1488_v49 = vmin.f32 %v11875_v45, 0.0  ;;  %1751 = vmatmul.bf16.gmra.mxu0 %v9002_v46  ;;  %2164 = vmatmul.bf16.gmra.mxu1 %v9002_v46  ;;  %v1197_v7 = vsel %vm1157_vm1, %v11819_v36, %v7759_v30  ;;  %vm1318_vm4 = vcmp.gt.f32.partialorder %v11832_v63, 0.0  ;;  %vm1319_vm5 = vcmp.gt.f32.partialorder %v11865_v38, 0.0  ;;  %v9068_v34 = vld [vmem:[#allocation15 + $0x8c] sm:$0xf0] }
 0x1ad   : > { %v1342_v50 = vmul.f32 1.442695, %v1327_v29  ;;  %v9929_v52 = vpop.eup %9928  ;;  %2577 = vmatmul.bf16.gmra.mxu2 %v9002_v46  ;;  %2990 = vmatmul.bf16.gmra.mxu3 %v9002_v46  ;;  %vm1479_vm6 = vcmp.gt.f32.partialorder %v11839_v21, 0.0  ;;  %vm1480_vm7 = vcmp.gt.f32.partialorder %v11875_v45, 0.0  ;;  %v8308_v32 = vor.u32 %v9084_v17, %v8307_v27  ;;  %v9006_v22 = vld [vmem:[#allocation3 + $0x70] sm:$0xff] }
 0x1ae   : > { %v9931_v54 = vpop.eup %9930  ;;  %v1503_v37 = vmul.f32 1.442695, %v1488_v49  ;;  %v7799_v8 = vadd.f32 -1.0, %v9929_v52  ;;  %3515 = vmatpush.bf16.msrb.mxu0 %v8248_v33  ;;  %3736 = vmatpush.bf16.msrb.mxu1 %v8280_v58  ;;  %v8276_v40 = vor.u32 %v9076_v39, %v8275_v4  ;;  %v8335_v42 = vld [vmem:[#allocation15 + $0x6c] sm:$0xf]  ;;  %v8304_v29 = vor.u32 %v9083_v31, %v8303_v41 }
 0x1af   : > { %9936 = vpow2.f32 %v1342_v50  ;;  %v9933_v60 = vpop.eup %9932  ;;  %v7720_v56 = vadd.f32 -1.0, %v9931_v54  ;;  %3958 = vmatpush.bf16.msrb.mxu2 %v8308_v32  ;;  %v11902_v50 = vld [vmem:[#allocation13] ss:$0 sm:$0xff]  ;;  %v11904_v49 = vld [vmem:[#allocation13 + $0x1] ss:$0 sm:$0xff] }
 0x1b0   : > { %v7760_v0 = vadd.f32 -1.0, %v9933_v60  ;;  %9938 = vpow2.f32 %v1503_v37  ;;  %v9935_v16 = vpop.eup %9934  ;;  %v1358_v19 = vsel %vm1318_vm4, %v11832_v63, %v7799_v8  ;;  %v9004_v63 = vld [vmem:[#allocation3 + $0x20] sm:$0xff]  ;;  %v8239_v52 = vld [vmem:[#allocation15 + $0x60] sm:$0xf]  ;;  %v9067_v53 = vld [vmem:[#allocation15 + $0x6c] sm:$0xf0] }
 0x1b1   : > { %v1037_v57 = vsel %vm997_vm2, %v11842_v44, %v7720_v56  ;;  %v7839_v44 = vadd.f32 -1.0, %v9935_v16  ;;  %v8271_v30 = vld [vmem:[#allocation15 + $0x64] sm:$0xf]  ;;  %v8240_v54 = vor.u32 %v9067_v53, %v8239_v52  ;;  %v9075_v37 = vld [vmem:[#allocation15 + $0x70] sm:$0xf0] }
 0x1b2   : > { %v9278_v13 = vpack.c.bf16 %v1037_v57, %v1036_v6  ;;  %v1198_v14 = vsel %vm1158_vm3, %v11853_v15, %v7760_v0  ;;  %3737 = vmatpush.bf16.msrb.mxu1 %v8276_v40  ;;  %v8272_v55 = vor.u32 %v9075_v37, %v8271_v30  ;;  %v9008_v0 = vld [vmem:[#allocation3 + $0x40] sm:$0xff]  ;;  %v8299_v4 = vld [vmem:[#allocation15 + $0x48] sm:$0xf] }
 0x1b3   : > { %v9298_v18 = vpack.c.bf16 %v1198_v14, %v1197_v7  ;;  %v1519_v23 = vsel %vm1479_vm6, %v11839_v21, %v7839_v44  ;;  %v9092_v21 = vld [vmem:[#allocation15 + $0x98] sm:$0xf0]  ;;  %3959 = vmatpush.bf16.msrb.mxu2 %v8304_v29  ;;  %v9082_v41 = vld [vmem:[#allocation15 + $0x54] sm:$0xf0] }
 0x1b4   : > { %9665 = vst [vmem:[#allocation3 + $0x58] sm:$0xff] %v9278_v13   ;;  %v8340_v35 = vor.u32 %v9092_v21, %v8339_v28 }
 0x1b5   : > { %v9937_v5 = vpop.eup %9936  ;;  %9669 = vst [vmem:[#allocation3 + $0x10] sm:$0xff] %v9298_v18  }
 0x1b6   : > { %v7800_v36 = vadd.f32 -1.0, %v9937_v5  ;;  %v9939_v59 = vpop.eup %9938  ;;  %4179 = vmatpush.bf16.msrb.mxu3 %v8340_v35  ;;  %3738 = vmatpush.bf16.msrb.mxu1 %v8272_v55 }
 0x1b7   : > { %v7840_v51 = vadd.f32 -1.0, %v9939_v59 }
 0x1b8   : > { %v1359_v15 = vsel %vm1319_vm5, %v11865_v38, %v7800_v36  ;;  %v8243_v38 = vld [vmem:[#allocation15 + $0x80] sm:$0xf] }
 0x1b9   : > { %v9318_v20 = vpack.c.bf16 %v1359_v15, %v1358_v19  ;;  %v1520_v24 = vsel %vm1480_vm7, %v11875_v45, %v7840_v51  ;;  %v8244_v43 = vor.u32 %v9068_v34, %v8243_v38  ;;  %v9091_v45 = vld [vmem:[#allocation15 + $0x78] sm:$0xf0]  ;;  %v9009_v34 = vld [vmem:[#allocation3 + $0x30] sm:$0xff] }
 0x1ba   : > { %v9338_v25 = vpack.c.bf16 %v1520_v24, %v1519_v23  ;;  %v8336_v47 = vor.u32 %v9091_v45, %v8335_v42 }
 0x1bb   : > { %9673 = vst [vmem:[#allocation3 + $0x28] sm:$0xff] %v9318_v20   ;;  %v9003_v26 = vld [vmem:[#allocation3 + $0x58] sm:$0xff]  ;;  %3516 = vmatpush.bf16.msrb.mxu0 %v8244_v43 }
 0x1bc   : > { %9677 = vst [vmem:[#allocation3 + $0x50] sm:$0xff] %v9338_v25   ;;  %1756 = vmatmul.bf16.gmra.mxu0 %v9003_v26  ;;  %2169 = vmatmul.bf16.gmra.mxu1 %v9003_v26  ;;  %v9007_v46 = vld [vmem:[#allocation3 + $0x10] sm:$0xff] }
 0x1bd   : > { %2582 = vmatmul.bf16.gmra.mxu2 %v9003_v26  ;;  %2995 = vmatmul.bf16.gmra.mxu3 %v9003_v26 }
 0x1be   : > { %4180 = vmatpush.bf16.msrb.mxu3 %v8336_v47  ;;  %v8300_v47 = vor.u32 %v9082_v41, %v8299_v4 }
 0x1bf   : > { %3517 = vmatpush.bf16.msrb.mxu0 %v8240_v54 }
 0x1c0   : > { %3960 = vmatpush.bf16.msrb.mxu2 %v8300_v47 }
 0x1cc   : > { %1761 = vmatmul.bf16.gmra.mxu0 %v9004_v63  ;;  %2174 = vmatmul.bf16.gmra.mxu1 %v9004_v63 }
 0x1cd   : > { %2587 = vmatmul.bf16.gmra.mxu2 %v9004_v63  ;;  %3000 = vmatmul.bf16.gmra.mxu3 %v9004_v63 }
 0x1dc   : > { %1766 = vmatmul.bf16.gmra.mxu0 %v9005_v48  ;;  %2179 = vmatmul.bf16.gmra.mxu1 %v9005_v48 }
 0x1dd   : > { %2592 = vmatmul.bf16.gmra.mxu2 %v9005_v48  ;;  %3005 = vmatmul.bf16.gmra.mxu3 %v9005_v48 }
 0x1ec   : > { %1771 = vmatmul.bf16.gmra.mxu0 %v9006_v22  ;;  %2184 = vmatmul.bf16.gmra.mxu1 %v9006_v22 }
 0x1ed   : > { %2597 = vmatmul.bf16.gmra.mxu2 %v9006_v22  ;;  %3010 = vmatmul.bf16.gmra.mxu3 %v9006_v22 }
 0x1fc   : > { %1776 = vmatmul.bf16.gmra.mxu0 %v9007_v46  ;;  %2189 = vmatmul.bf16.gmra.mxu1 %v9007_v46 }
 0x1fd   : > { %2602 = vmatmul.bf16.gmra.mxu2 %v9007_v46  ;;  %3015 = vmatmul.bf16.gmra.mxu3 %v9007_v46 }
 0x209   : > { %v1742_v60 = vpop.f32.mrf.mxu0  ;;  %v2155_v56 = vpop.f32.mrf.mxu1 }
 0x20a   : > { %v11907_v61 = vadd.f32 %v11902_v50, %v1742_v60  ;;  %v11910_v62 = vadd.f32 %v11904_v49, %v2155_v56 }
 0x20c   : > { %v1854_v8 = vmin.f32 %v11907_v61, 0.0  ;;  %v2267_v1 = vmin.f32 %v11910_v62, 0.0  ;;  %1781 = vmatmul.bf16.gmra.mxu0 %v9008_v0  ;;  %2194 = vmatmul.bf16.gmra.mxu1 %v9008_v0  ;;  %vm1822_vm8 = vcmp.gt.f32.partialorder %v11907_v61, 0.0  ;;  %vm2235_vm9 = vcmp.gt.f32.partialorder %v11910_v62, 0.0 }
 0x20d   : > { %2607 = vmatmul.bf16.gmra.mxu2 %v9008_v0  ;;  %3020 = vmatmul.bf16.gmra.mxu3 %v9008_v0  ;;  %v8331_v0 = vld [vmem:[#allocation15 + $0x4c] sm:$0xf] }
 0x20e   : > { %v1886_v6 = vmul.f32 1.442695, %v1854_v8  ;;  %v2299_v9 = vmul.f32 1.442695, %v2267_v1  ;;  %v9090_v1 = vld [vmem:[#allocation15 + $0x58] sm:$0xf0] }
 0x210   : > { %v2568_v7 = vpop.f32.mrf.mxu2  ;;  %v2981_v57 = vpop.f32.mrf.mxu3  ;;  %9940 = vpow2.f32 %v1886_v6 }
 0x211   : > { %v11919_v10 = vadd.f32 %v11914_v2, %v2568_v7  ;;  %v11922_v12 = vadd.f32 %v11916_v3, %v2981_v57  ;;  %v1744_v11 = vpop.f32.mrf.mxu0  ;;  %v2157_v16 = vpop.f32.mrf.mxu1  ;;  %9942 = vpow2.f32 %v2299_v9 }
 0x212   : > { %v11925_v13 = vadd.f32 %v11902_v50, %v1744_v11  ;;  %v11928_v14 = vadd.f32 %v11904_v49, %v2157_v16 }
 0x213   : > { %v2680_v33 = vmin.f32 %v11919_v10, 0.0  ;;  %v3093_v58 = vmin.f32 %v11922_v12, 0.0  ;;  %vm2648_vm10 = vcmp.gt.f32.partialorder %v11919_v10, 0.0  ;;  %vm3061_vm13 = vcmp.gt.f32.partialorder %v11922_v12, 0.0 }
 0x214   : > { %v1855_v5 = vmin.f32 %v11925_v13, 0.0  ;;  %v2268_v18 = vmin.f32 %v11928_v14, 0.0  ;;  %vm1823_vm11 = vcmp.gt.f32.partialorder %v11925_v13, 0.0  ;;  %vm2236_vm12 = vcmp.gt.f32.partialorder %v11928_v14, 0.0 }
 0x215   : > { %v2712_v36 = vmul.f32 1.442695, %v2680_v33  ;;  %v3125_v19 = vmul.f32 1.442695, %v3093_v58 }
 0x216   : > { %v1888_v44 = vmul.f32 1.442695, %v1855_v5  ;;  %v2301_v59 = vmul.f32 1.442695, %v2268_v18  ;;  %v9941_v51 = vpop.eup %9940  ;;  %v8332_v18 = vor.u32 %v9090_v1, %v8331_v0 }
 0x217   : > { %9944 = vpow2.f32 %v2712_v36  ;;  %v9943_v27 = vpop.eup %9942  ;;  %v7937_v21 = vadd.f32 -1.0, %v9941_v51 }
 0x218   : > { %v2570_v15 = vpop.f32.mrf.mxu2  ;;  %v2983_v20 = vpop.f32.mrf.mxu3  ;;  %9946 = vpow2.f32 %v1888_v44  ;;  %v8001_v40 = vadd.f32 -1.0, %v9943_v27  ;;  %4181 = vmatpush.bf16.msrb.mxu3 %v8332_v18 }
 0x219   : > { %v11935_v23 = vadd.f32 %v11914_v2, %v2570_v15  ;;  %v11938_v24 = vadd.f32 %v11916_v3, %v2983_v20  ;;  %v1747_v25 = vpop.f32.mrf.mxu0  ;;  %v2160_v26 = vpop.f32.mrf.mxu1  ;;  %9948 = vpow2.f32 %v2301_v59  ;;  %v1982_v53 = vsel %vm1822_vm8, %v11907_v61, %v7937_v21 }
 0x21a   : > { %v11941_v63 = vadd.f32 %v11902_v50, %v1747_v25  ;;  %9950 = vpow2.f32 %v3125_v19  ;;  %v11946_v32 = vadd.f32 %v11904_v49, %v2160_v26  ;;  %v2395_v60 = vsel %vm2235_vm9, %v11910_v62, %v8001_v40 }
 0x21b   : > { %v2681_v17 = vmin.f32 %v11935_v23, 0.0  ;;  %v3094_v28 = vmin.f32 %v11938_v24, 0.0  ;;  %vm2649_vm14 = vcmp.gt.f32.partialorder %v11935_v23, 0.0  ;;  %vm3062_vm15 = vcmp.gt.f32.partialorder %v11938_v24, 0.0 }
 0x21c   : > { %v1856_v38 = vmin.f32 %v11941_v63, 0.0  ;;  %1786 = vmatmul.bf16.gmra.mxu0 %v9009_v34  ;;  %2199 = vmatmul.bf16.gmra.mxu1 %v9009_v34  ;;  %v2269_v22 = vmin.f32 %v11946_v32, 0.0  ;;  %vm1824_vm0 = vcmp.gt.f32.partialorder %v11941_v63, 0.0  ;;  %vm2237_vm1 = vcmp.gt.f32.partialorder %v11946_v32, 0.0 }
 0x21d   : > { %v2714_v35 = vmul.f32 1.442695, %v2681_v17  ;;  %v3127_v43 = vmul.f32 1.442695, %v3094_v28  ;;  %v9945_v39 = vpop.eup %9944  ;;  %2612 = vmatmul.bf16.gmra.mxu2 %v9009_v34  ;;  %3025 = vmatmul.bf16.gmra.mxu3 %v9009_v34  ;;  %v9066_v34 = vld [vmem:[#allocation15 + $0x4c] sm:$0xf0] }
 0x21e   : > { %v9947_v48 = vpop.eup %9946  ;;  %v1890_v29 = vmul.f32 1.442695, %v1856_v38  ;;  %v2303_v57 = vmul.f32 1.442695, %v2269_v22  ;;  %v8065_v62 = vadd.f32 -1.0, %v9945_v39 }
 0x21f   : > { %9952 = vpow2.f32 %v2714_v35  ;;  %v9949_v31 = vpop.eup %9948  ;;  %v7938_v42 = vadd.f32 -1.0, %v9947_v48  ;;  %v8235_v38 = vld [vmem:[#allocation15 + $0x40] sm:$0xf] }
 0x220   : > { %9954 = vpow2.f32 %v3127_v43  ;;  %v2573_v45 = vpop.f32.mrf.mxu2  ;;  %v2986_v46 = vpop.f32.mrf.mxu3  ;;  %v8002_v30 = vadd.f32 -1.0, %v9949_v31  ;;  %v2808_v15 = vsel %vm2648_vm10, %v11919_v10, %v8065_v62  ;;  %v9010_v48 = vld [vmem:[#allocation3 + $0x68] sm:$0xff]  ;;  %v8236_v41 = vor.u32 %v9066_v34, %v8235_v38  ;;  %v8267_v31 = vld [vmem:[#allocation15 + $0x44] sm:$0xf] }
 0x221   : > { %v9951_v52 = vpop.eup %9950  ;;  %v11959_v54 = vadd.f32 %v11914_v2, %v2573_v45  ;;  %v1749_v37 = vpop.f32.mrf.mxu0  ;;  %v1983_v56 = vsel %vm1823_vm11, %v11925_v13, %v7938_v42  ;;  %v11968_v8 = vadd.f32 %v11916_v3, %v2986_v46  ;;  %9956 = vpow2.f32 %v1890_v29  ;;  %v9074_v42 = vld [vmem:[#allocation15 + $0x50] sm:$0xf0] }
 0x222   : > { %v2162_v55 = vpop.f32.mrf.mxu1  ;;  %v11971_v61 = vadd.f32 %v11902_v50, %v1749_v37  ;;  %v9343_v6 = vpack.c.bf16 %v1983_v56, %v1982_v53  ;;  %v2396_v7 = vsel %vm2236_vm12, %v11928_v14, %v8002_v30  ;;  %v8129_v11 = vadd.f32 -1.0, %v9951_v52  ;;  %3518 = vmatpush.bf16.msrb.mxu0 %v8236_v41 }
 0x223   : > { %v2682_v9 = vmin.f32 %v11959_v54, 0.0  ;;  %v9423_v16 = vpack.c.bf16 %v2396_v7, %v2395_v60  ;;  %v3095_v33 = vmin.f32 %v11968_v8, 0.0  ;;  %v11978_v5 = vadd.f32 %v11904_v49, %v2162_v55 }
 0x224   : > { %9344 = vst [vmem:[#allocation4 + $0x188] sm:$0xff] %v9343_v6   ;;  %v1857_v58 = vmin.f32 %v11971_v61, 0.0  ;;  %9958 = vpow2.f32 %v2303_v57  ;;  %v3221_v20 = vsel %vm3061_vm13, %v11922_v12, %v8129_v11  ;;  %v8268_v55 = vor.u32 %v9074_v42, %v8267_v31 }
 0x225   : > { %v9953_v13 = vpop.eup %9952  ;;  %9693 = vst [vmem:[#allocation4 + $0x148] sm:$0xff] %v9423_v16   ;;  %v2716_v59 = vmul.f32 1.442695, %v2682_v9  ;;  %v2270_v25 = vmin.f32 %v11978_v5, 0.0  ;;  %v3129_v21 = vmul.f32 1.442695, %v3095_v33 }
 0x226   : > { %v9955_v36 = vpop.eup %9954  ;;  %v8066_v14 = vadd.f32 -1.0, %v9953_v13  ;;  %v1892_v19 = vmul.f32 1.442695, %v1857_v58  ;;  %vm1825_vm2 = vcmp.gt.f32.partialorder %v11971_v61, 0.0  ;;  %vm2238_vm3 = vcmp.gt.f32.partialorder %v11978_v5, 0.0  ;;  %3739 = vmatpush.bf16.msrb.mxu1 %v8268_v55 }
 0x227   : > { %v8130_v44 = vadd.f32 -1.0, %v9955_v36  ;;  %v9957_v35 = vpop.eup %9956  ;;  %v2305_v4 = vmul.f32 1.442695, %v2270_v25  ;;  %vm2650_vm4 = vcmp.gt.f32.partialorder %v11959_v54, 0.0  ;;  %vm3063_vm5 = vcmp.gt.f32.partialorder %v11968_v8, 0.0 }
 0x228   : > { %v2809_v51 = vsel %vm2649_vm14, %v11935_v23, %v8066_v14  ;;  %v2575_v26 = vpop.f32.mrf.mxu2  ;;  %v2988_v27 = vpop.f32.mrf.mxu3  ;;  %9960 = vpow2.f32 %v1892_v19  ;;  %v7939_v47 = vadd.f32 -1.0, %v9957_v35 }
 0x229   : > { %v9503_v17 = vpack.c.bf16 %v2809_v51, %v2808_v15  ;;  %v3222_v28 = vsel %vm3062_vm15, %v11938_v24, %v8130_v44  ;;  %v11991_v10 = vadd.f32 %v11914_v2, %v2575_v26  ;;  %v1752_v12 = vpop.f32.mrf.mxu0  ;;  %9962 = vpow2.f32 %v2716_v59 }
 0x22a   : > { %v9583_v43 = vpack.c.bf16 %v3222_v28, %v3221_v20  ;;  %v2165_v39 = vpop.f32.mrf.mxu1  ;;  %v11994_v23 = vadd.f32 %v11916_v3, %v2988_v27  ;;  %v11997_v40 = vadd.f32 %v11902_v50, %v1752_v12  ;;  %9964 = vpow2.f32 %v2305_v4  ;;  %v9959_v29 = vpop.eup %9958 }
 0x22b   : > { %9709 = vst [vmem:[#allocation4 + $0xf8] sm:$0xff] %v9503_v17   ;;  %v12000_v24 = vadd.f32 %v11904_v49, %v2165_v39  ;;  %v2683_v22 = vmin.f32 %v11991_v10, 0.0  ;;  %9966 = vpow2.f32 %v3129_v21  ;;  %v8003_v60 = vadd.f32 -1.0, %v9959_v29 }
 0x22c   : > { %9725 = vst [vmem:[#allocation4 + $0x1c8] sm:$0xff] %v9583_v43   ;;  %v3096_v45 = vmin.f32 %v11994_v23, 0.0  ;;  %v1858_v46 = vmin.f32 %v11997_v40, 0.0  ;;  %1791 = vmatmul.bf16.gmra.mxu0 %v9010_v48  ;;  %2204 = vmatmul.bf16.gmra.mxu1 %v9010_v48  ;;  %v1984_v9 = vsel %vm1824_vm0, %v11941_v63, %v7939_v47  ;;  %vm2651_vm6 = vcmp.gt.f32.partialorder %v11991_v10, 0.0 }
 0x22d   : > { %v2718_v52 = vmul.f32 1.442695, %v2683_v22  ;;  %v2271_v37 = vmin.f32 %v12000_v24, 0.0  ;;  %2617 = vmatmul.bf16.gmra.mxu2 %v9010_v48  ;;  %3030 = vmatmul.bf16.gmra.mxu3 %v9010_v48  ;;  %v2397_v63 = vsel %vm2237_vm1, %v11946_v32, %v8003_v60  ;;  %vm3064_vm7 = vcmp.gt.f32.partialorder %v11994_v23, 0.0 }
 0x22e   : > { %v9961_v53 = vpop.eup %9960  ;;  %v3131_v30 = vmul.f32 1.442695, %v3096_v45  ;;  %v1894_v0 = vmul.f32 1.442695, %v1858_v46  ;;  %vm1826_vm8 = vcmp.gt.f32.partialorder %v11997_v40, 0.0  ;;  %vm2239_vm9 = vcmp.gt.f32.partialorder %v12000_v24, 0.0 }
 0x22f   : > { %v7940_v56 = vadd.f32 -1.0, %v9961_v53  ;;  %9968 = vpow2.f32 %v2718_v52  ;;  %v9963_v1 = vpop.eup %9962  ;;  %v2307_v14 = vmul.f32 1.442695, %v2271_v37 }
 0x230   : > { %9970 = vpow2.f32 %v3131_v30  ;;  %v2578_v6 = vpop.f32.mrf.mxu2  ;;  %v2991_v7 = vpop.f32.mrf.mxu3 }
 0x231   : > { %v9965_v57 = vpop.eup %9964  ;;  %v1985_v62 = vsel %vm1825_vm2, %v11971_v61, %v7940_v56  ;;  %v12015_v11 = vadd.f32 %v11914_v2, %v2578_v6  ;;  %v12018_v16 = vadd.f32 %v11916_v3, %v2991_v7  ;;  %v1754_v13 = vpop.f32.mrf.mxu0  ;;  %v8067_v61 = vadd.f32 -1.0, %v9963_v1 }
 0x232   : > { %v2167_v33 = vpop.f32.mrf.mxu1  ;;  %v9967_v58 = vpop.eup %9966  ;;  %v9348_v18 = vpack.c.bf16 %v1985_v62, %v1984_v9  ;;  %v8004_v36 = vadd.f32 -1.0, %v9965_v57  ;;  %v12021_v44 = vadd.f32 %v11902_v50, %v1754_v13  ;;  %9972 = vpow2.f32 %v1894_v0 }
 0x233   : > { %v2684_v59 = vmin.f32 %v12015_v11, 0.0  ;;  %v3097_v15 = vmin.f32 %v12018_v16, 0.0  ;;  %v12033_v51 = vadd.f32 %v11904_v49, %v2167_v33  ;;  %v8131_v32 = vadd.f32 -1.0, %v9967_v58 }
 0x234   : > { %9678 = vst [vmem:[#allocation4 + $0x48] sm:$0xff] %v9348_v18   ;;  %v2398_v19 = vsel %vm2238_vm3, %v11978_v5, %v8004_v36  ;;  %v1859_v20 = vmin.f32 %v12021_v44, 0.0  ;;  %9974 = vpow2.f32 %v2307_v14  ;;  %v2810_v34 = vsel %vm2650_vm4, %v11959_v54, %v8067_v61 }
 0x235   : > { %v9969_v25 = vpop.eup %9968  ;;  %v9428_v26 = vpack.c.bf16 %v2398_v19, %v2397_v63  ;;  %v2272_v5 = vmin.f32 %v12033_v51, 0.0  ;;  %v2720_v38 = vmul.f32 1.442695, %v2684_v59  ;;  %v3133_v43 = vmul.f32 1.442695, %v3097_v15 }
 0x236   : > { %v9971_v27 = vpop.eup %9970  ;;  %v8068_v17 = vadd.f32 -1.0, %v9969_v25  ;;  %v1896_v28 = vmul.f32 1.442695, %v1859_v20  ;;  %v3223_v22 = vsel %vm3063_vm5, %v11968_v8, %v8131_v32  ;;  %v9011_v8 = vld [vmem:[#allocation3 + $0x28] sm:$0xff]  ;;  %vm2652_vm10 = vcmp.gt.f32.partialorder %v12015_v11, 0.0 }
 0x237   : > { %9694 = vst [vmem:[#allocation4 + $0x1c0] sm:$0xff] %v9428_v26   ;;  %v8132_v21 = vadd.f32 -1.0, %v9971_v27  ;;  %v2309_v4 = vmul.f32 1.442695, %v2272_v5  ;;  %vm3065_vm11 = vcmp.gt.f32.partialorder %v12018_v16, 0.0  ;;  %vm1827_vm12 = vcmp.gt.f32.partialorder %v12021_v44, 0.0 }
 0x238   : > { %v2811_v35 = vsel %vm2651_vm6, %v11991_v10, %v8068_v17  ;;  %v2580_v12 = vpop.f32.mrf.mxu2  ;;  %v2993_v39 = vpop.f32.mrf.mxu3  ;;  %9976 = vpow2.f32 %v1896_v28  ;;  %vm2240_vm13 = vcmp.gt.f32.partialorder %v12033_v51, 0.0  ;;  %v8295_v19 = vld [vmem:[#allocation15 + $0x28] sm:$0xf]  ;;  %v8327_v32 = vld [vmem:[#allocation15 + $0x2c] sm:$0xf] }
 0x239   : > { %v9973_v48 = vpop.eup %9972  ;;  %v9508_v41 = vpack.c.bf16 %v2811_v35, %v2810_v34  ;;  %v3224_v31 = vsel %vm3064_vm7, %v11994_v23, %v8132_v21  ;;  %9978 = vpow2.f32 %v2309_v4  ;;  %v12047_v29 = vadd.f32 %v11914_v2, %v2580_v12  ;;  %v1757_v54 = vpop.f32.mrf.mxu0  ;;  %v9089_v26 = vld [vmem:[#allocation15 + $0x38] sm:$0xf0] }
 0x23a   : > { %v9588_v42 = vpack.c.bf16 %v3224_v31, %v3223_v22  ;;  %v2170_v10 = vpop.f32.mrf.mxu1  ;;  %9980 = vpow2.f32 %v2720_v38  ;;  %v12050_v45 = vadd.f32 %v11916_v3, %v2993_v39  ;;  %v12053_v46 = vadd.f32 %v11902_v50, %v1757_v54  ;;  %v9975_v47 = vpop.eup %9974  ;;  %v8231_v31 = vld [vmem:[#allocation15 + $0x20] sm:$0xf] }
 0x23b   : > { %9710 = vst [vmem:[#allocation4 + $0x10] sm:$0xff] %v9508_v41   ;;  %9982 = vpow2.f32 %v3133_v43  ;;  %v2685_v23 = vmin.f32 %v12047_v29, 0.0  ;;  %v12057_v52 = vadd.f32 %v11904_v49, %v2170_v10  ;;  %v7941_v53 = vadd.f32 -1.0, %v9973_v48 }
 0x23c   : > { %9726 = vst [vmem:[#allocation4 + $0x40] sm:$0xff] %v9588_v42   ;;  %v3098_v30 = vmin.f32 %v12050_v45, 0.0  ;;  %1796 = vmatmul.bf16.gmra.mxu0 %v9011_v8  ;;  %2209 = vmatmul.bf16.gmra.mxu1 %v9011_v8  ;;  %v1860_v55 = vmin.f32 %v12053_v46, 0.0  ;;  %v8005_v56 = vadd.f32 -1.0, %v9975_v47  ;;  %vm2653_vm14 = vcmp.gt.f32.partialorder %v12047_v29, 0.0 }
 0x23d   : > { %v2722_v37 = vmul.f32 1.442695, %v2685_v23  ;;  %2622 = vmatmul.bf16.gmra.mxu2 %v9011_v8  ;;  %3035 = vmatmul.bf16.gmra.mxu3 %v9011_v8  ;;  %v2273_v7 = vmin.f32 %v12057_v52, 0.0  ;;  %v1986_v9 = vsel %vm1826_vm8, %v11997_v40, %v7941_v53  ;;  %v8328_v43 = vor.u32 %v9089_v26, %v8327_v32  ;;  %v9065_v42 = vld [vmem:[#allocation15 + $0x2c] sm:$0xf0] }
 0x23e   : > { %v9977_v60 = vpop.eup %9976  ;;  %v3135_v0 = vmul.f32 1.442695, %v3098_v30  ;;  %v1898_v36 = vmul.f32 1.442695, %v1860_v55  ;;  %v2399_v40 = vsel %vm2239_vm9, %v12000_v24, %v8005_v56  ;;  %vm3066_vm15 = vcmp.gt.f32.partialorder %v12050_v45, 0.0 }
 0x23f   : > { %v9979_v1 = vpop.eup %9978  ;;  %v7942_v6 = vadd.f32 -1.0, %v9977_v60  ;;  %9984 = vpow2.f32 %v2722_v37  ;;  %v2311_v17 = vmul.f32 1.442695, %v2273_v7  ;;  %4182 = vmatpush.bf16.msrb.mxu3 %v8328_v43  ;;  %v8232_v53 = vor.u32 %v9065_v42, %v8231_v31  ;;  %v8263_v56 = vld [vmem:[#allocation15 + $0x24] sm:$0xf] }
 0x240   : > { %v9981_v57 = vpop.eup %9980  ;;  %v8006_v62 = vadd.f32 -1.0, %v9979_v1  ;;  %9986 = vpow2.f32 %v3135_v0  ;;  %v2583_v13 = vpop.f32.mrf.mxu2  ;;  %v9073_v0 = vld [vmem:[#allocation15 + $0x30] sm:$0xf0]  ;;  %vm1828_vm0 = vcmp.gt.f32.partialorder %v12053_v46, 0.0  ;;  %vm2241_vm1 = vcmp.gt.f32.partialorder %v12057_v52, 0.0 }
 0x241   : > { %v2996_v33 = vpop.f32.mrf.mxu3  ;;  %v9983_v58 = vpop.eup %9982  ;;  %v1987_v18 = vsel %vm1827_vm12, %v12021_v44, %v7942_v6  ;;  %v12071_v14 = vadd.f32 %v11914_v2, %v2583_v13  ;;  %v9081_v44 = vld [vmem:[#allocation15 + $0x34] sm:$0xf0]  ;;  %v8069_v5 = vadd.f32 -1.0, %v9981_v57  ;;  %9988 = vpow2.f32 %v1898_v36  ;;  %3519 = vmatpush.bf16.msrb.mxu0 %v8232_v53 }
 0x242   : > { %v12074_v63 = vadd.f32 %v11916_v3, %v2996_v33  ;;  %v1759_v61 = vpop.f32.mrf.mxu0  ;;  %v2172_v59 = vpop.f32.mrf.mxu1  ;;  %v9353_v15 = vpack.c.bf16 %v1987_v18, %v1986_v9  ;;  %v2400_v20 = vsel %vm2240_vm13, %v12033_v51, %v8006_v62  ;;  %v8133_v21 = vadd.f32 -1.0, %v9983_v58 }
 0x243   : > { %v12081_v25 = vadd.f32 %v11902_v50, %v1759_v61  ;;  %v9433_v27 = vpack.c.bf16 %v2400_v20, %v2399_v40  ;;  %v2686_v28 = vmin.f32 %v12071_v14, 0.0  ;;  %v12087_v38 = vadd.f32 %v11904_v49, %v2172_v59 }
 0x244   : > { %9679 = vst [vmem:[#allocation4 + $0x110] sm:$0xff] %v9353_v15   ;;  %v3099_v34 = vmin.f32 %v12074_v63, 0.0  ;;  %v8296_v35 = vor.u32 %v9081_v44, %v8295_v19  ;;  %9990 = vpow2.f32 %v2311_v17  ;;  %v2812_v54 = vsel %vm2652_vm10, %v12015_v11, %v8069_v5 }
 0x245   : > { %v1861_v24 = vmin.f32 %v12081_v25, 0.0  ;;  %v9985_v51 = vpop.eup %9984  ;;  %9695 = vst [vmem:[#allocation4] sm:$0xff] %v9433_v27   ;;  %v2724_v39 = vmul.f32 1.442695, %v2686_v28  ;;  %v2274_v41 = vmin.f32 %v12087_v38, 0.0  ;;  %v3225_v10 = vsel %vm3065_vm11, %v12018_v16, %v8133_v21 }
 0x246   : > { %v9987_v4 = vpop.eup %9986  ;;  %v8070_v12 = vadd.f32 -1.0, %v9985_v51  ;;  %3961 = vmatpush.bf16.msrb.mxu2 %v8296_v35  ;;  %v3137_v55 = vmul.f32 1.442695, %v3099_v34  ;;  %v8264_v13 = vor.u32 %v9073_v0, %v8263_v56  ;;  %vm2654_vm2 = vcmp.gt.f32.partialorder %v12071_v14, 0.0 }
 0x247   : > { %v1900_v48 = vmul.f32 1.442695, %v1861_v24  ;;  %v8134_v22 = vadd.f32 -1.0, %v9987_v4  ;;  %v2313_v16 = vmul.f32 1.442695, %v2274_v41  ;;  %v9989_v7 = vpop.eup %9988  ;;  %vm1829_vm3 = vcmp.gt.f32.partialorder %v12081_v25, 0.0 }
 0x248   : > { %v2813_v8 = vsel %vm2653_vm14, %v12047_v29, %v8070_v12  ;;  %v2585_v47 = vpop.f32.mrf.mxu2  ;;  %v9012_v29 = vld [vmem:[#allocation3 + $0x60] sm:$0xff]  ;;  %v7943_v36 = vadd.f32 -1.0, %v9989_v7  ;;  %3740 = vmatpush.bf16.msrb.mxu1 %v8264_v13  ;;  %vm2242_vm4 = vcmp.gt.f32.partialorder %v12087_v38, 0.0  ;;  %vm3067_vm5 = vcmp.gt.f32.partialorder %v12074_v63, 0.0 }
 0x249   : > { %v2998_v23 = vpop.f32.mrf.mxu3  ;;  %v9513_v30 = vpack.c.bf16 %v2813_v8, %v2812_v54  ;;  %v3226_v37 = vsel %vm3066_vm15, %v12050_v45, %v8134_v22  ;;  %9992 = vpow2.f32 %v1900_v48  ;;  %v12105_v6 = vadd.f32 %v11914_v2, %v2585_v47 }
 0x24a   : > { %v1762_v60 = vpop.f32.mrf.mxu0  ;;  %v2175_v11 = vpop.f32.mrf.mxu1  ;;  %v9593_v1 = vpack.c.bf16 %v3226_v37, %v3225_v10  ;;  %9994 = vpow2.f32 %v2724_v39  ;;  %v12108_v57 = vadd.f32 %v11916_v3, %v2998_v23  ;;  %v1988_v51 = vsel %vm1828_vm0, %v12053_v46, %v7943_v36 }
 0x24b   : > { %9711 = vst [vmem:[#allocation4 + $0x178] sm:$0xff] %v9513_v30   ;;  %v12111_v45 = vadd.f32 %v11902_v50, %v1762_v60  ;;  %v12114_v9 = vadd.f32 %v11904_v49, %v2175_v11  ;;  %9996 = vpow2.f32 %v2313_v16  ;;  %v2687_v62 = vmin.f32 %v12105_v6, 0.0  ;;  %v9991_v33 = vpop.eup %9990 }
 0x24c   : > { %9727 = vst [vmem:[#allocation4 + $0x88] sm:$0xff] %v9593_v1   ;;  %1801 = vmatmul.bf16.gmra.mxu0 %v9012_v29  ;;  %2214 = vmatmul.bf16.gmra.mxu1 %v9012_v29  ;;  %9998 = vpow2.f32 %v3137_v55  ;;  %v3100_v58 = vmin.f32 %v12108_v57, 0.0  ;;  %v8007_v15 = vadd.f32 -1.0, %v9991_v33  ;;  %vm2655_vm6 = vcmp.gt.f32.partialorder %v12105_v6, 0.0  ;;  %v9013_v33 = vld [vmem:[#allocation3 + $0x48] sm:$0xff] }
 0x24d   : > { %v1862_v18 = vmin.f32 %v12111_v45, 0.0  ;;  %2627 = vmatmul.bf16.gmra.mxu2 %v9012_v29  ;;  %3040 = vmatmul.bf16.gmra.mxu3 %v9012_v29  ;;  %v2726_v61 = vmul.f32 1.442695, %v2687_v62  ;;  %v2275_v40 = vmin.f32 %v12114_v9, 0.0  ;;  %vm3068_vm7 = vcmp.gt.f32.partialorder %v12108_v57, 0.0 }
 0x24e   : > { %v3139_v19 = vmul.f32 1.442695, %v3100_v58  ;;  %v2401_v22 = vsel %vm2241_vm1, %v12057_v52, %v8007_v15  ;;  %vm1830_vm8 = vcmp.gt.f32.partialorder %v12111_v45, 0.0  ;;  %vm2243_vm9 = vcmp.gt.f32.partialorder %v12114_v9, 0.0 }
 0x24f   : > { %v9993_v59 = vpop.eup %9992  ;;  %10000 = vpow2.f32 %v2726_v61  ;;  %v1902_v27 = vmul.f32 1.442695, %v1862_v18  ;;  %v2315_v48 = vmul.f32 1.442695, %v2275_v40 }
 0x250   : > { %v7944_v20 = vadd.f32 -1.0, %v9993_v59  ;;  %v2588_v44 = vpop.f32.mrf.mxu2  ;;  %v9995_v26 = vpop.eup %9994  ;;  %10002 = vpow2.f32 %v3139_v19 }
 0x251   : > { %v3001_v32 = vpop.f32.mrf.mxu3  ;;  %v12125_v17 = vadd.f32 %v11914_v2, %v2588_v44  ;;  %v9997_v24 = vpop.eup %9996  ;;  %v8071_v41 = vadd.f32 -1.0, %v9995_v26  ;;  %10004 = vpow2.f32 %v1902_v27 }
 0x252   : > { %v12128_v28 = vadd.f32 %v11916_v3, %v3001_v32  ;;  %v1764_v5 = vpop.f32.mrf.mxu0  ;;  %v2177_v21 = vpop.f32.mrf.mxu1  ;;  %v1989_v34 = vsel %vm1829_vm3, %v12081_v25, %v7944_v20  ;;  %v8008_v39 = vadd.f32 -1.0, %v9997_v24  ;;  %10006 = vpow2.f32 %v2315_v48 }
 0x253   : > { %v12135_v35 = vadd.f32 %v11902_v50, %v1764_v5  ;;  %v12138_v43 = vadd.f32 %v11904_v49, %v2177_v21  ;;  %v9999_v4 = vpop.eup %9998  ;;  %v9358_v12 = vpack.c.bf16 %v1989_v34, %v1988_v51  ;;  %v2688_v46 = vmin.f32 %v12125_v17, 0.0 }
 0x254   : > { %v3101_v25 = vmin.f32 %v12128_v28, 0.0  ;;  %v2402_v31 = vsel %vm2242_vm4, %v12087_v38, %v8008_v39  ;;  %v8135_v8 = vadd.f32 -1.0, %v9999_v4  ;;  %v2814_v56 = vsel %vm2654_vm2, %v12071_v14, %v8071_v41 }
 0x255   : > { %9680 = vst [vmem:[#allocation4 + $0x120] sm:$0xff] %v9358_v12   ;;  %v1863_v42 = vmin.f32 %v12135_v35, 0.0  ;;  %v2276_v54 = vmin.f32 %v12138_v43, 0.0  ;;  %v10001_v10 = vpop.eup %10000  ;;  %v9438_v47 = vpack.c.bf16 %v2402_v31, %v2401_v22  ;;  %v2728_v23 = vmul.f32 1.442695, %v2688_v46 }
 0x256   : > { %v10003_v52 = vpop.eup %10002  ;;  %v8072_v53 = vadd.f32 -1.0, %v10001_v10  ;;  %v3141_v55 = vmul.f32 1.442695, %v3101_v25  ;;  %v3227_v7 = vsel %vm3067_vm5, %v12074_v63, %v8135_v8  ;;  %vm2656_vm10 = vcmp.gt.f32.partialorder %v12125_v17, 0.0 }
 0x257   : > { %v1904_v30 = vmul.f32 1.442695, %v1863_v42  ;;  %v2317_v37 = vmul.f32 1.442695, %v2276_v54  ;;  %9696 = vst [vmem:[#allocation4 + $0x38] sm:$0xff] %v9438_v47   ;;  %v8136_v38 = vadd.f32 -1.0, %v10003_v52  ;;  %10008 = vpow2.f32 %v2728_v23  ;;  %v10005_v58 = vpop.eup %10004 }
 0x258   : > { %v2590_v60 = vpop.f32.mrf.mxu2  ;;  %v2815_v0 = vsel %vm2655_vm6, %v12105_v6, %v8072_v53  ;;  %v10007_v63 = vpop.eup %10006  ;;  %v7945_v61 = vadd.f32 -1.0, %v10005_v58  ;;  %vm1831_vm11 = vcmp.gt.f32.partialorder %v12135_v35, 0.0  ;;  %vm2244_vm12 = vcmp.gt.f32.partialorder %v12138_v43, 0.0  ;;  %v8291_v42 = vld [vmem:[#allocation15 + $0x8] sm:$0xf] }
 0x259   : > { %v3003_v11 = vpop.f32.mrf.mxu3  ;;  %v12157_v1 = vadd.f32 %v11914_v2, %v2590_v60  ;;  %v9518_v62 = vpack.c.bf16 %v2815_v0, %v2814_v56  ;;  %v3228_v13 = vsel %vm3068_vm7, %v12108_v57, %v8136_v38  ;;  %10010 = vpow2.f32 %v1904_v30  ;;  %v9080_v54 = vld [vmem:[#allocation15 + $0x14] sm:$0xf0]  ;;  %v9088_v23 = vld [vmem:[#allocation15 + $0x18] sm:$0xf0] }
 0x25a   : > { %v1767_v16 = vpop.f32.mrf.mxu0  ;;  %v2180_v29 = vpop.f32.mrf.mxu1  ;;  %v9598_v18 = vpack.c.bf16 %v3228_v13, %v3227_v7  ;;  %10012 = vpow2.f32 %v2317_v37  ;;  %v12165_v6 = vadd.f32 %v11916_v3, %v3003_v11  ;;  %v8009_v32 = vadd.f32 -1.0, %v10007_v63 }
 0x25b   : > { %9712 = vst [vmem:[#allocation4 + $0x1f0] sm:$0xff] %v9518_v62   ;;  %10014 = vpow2.f32 %v3141_v55  ;;  %v2689_v14 = vmin.f32 %v12157_v1, 0.0  ;;  %v12168_v36 = vadd.f32 %v11902_v50, %v1767_v16  ;;  %v12171_v57 = vadd.f32 %v11904_v49, %v2180_v29 }
 0x25c   : > { %1806 = vmatmul.bf16.gmra.mxu0 %v9013_v33  ;;  %9728 = vst [vmem:[#allocation4 + $0x180] sm:$0xff] %v9598_v18   ;;  %2219 = vmatmul.bf16.gmra.mxu1 %v9013_v33  ;;  %v3102_v19 = vmin.f32 %v12165_v6, 0.0  ;;  %v1990_v39 = vsel %vm1830_vm8, %v12111_v45, %v7945_v61  ;;  %vm3069_vm13 = vcmp.gt.f32.partialorder %v12128_v28, 0.0  ;;  %v2403_v45 = vsel %vm2243_vm9, %v12114_v9, %v8009_v32 }
 0x25d   : > { %2632 = vmatmul.bf16.gmra.mxu2 %v9013_v33  ;;  %v2730_v59 = vmul.f32 1.442695, %v2689_v14  ;;  %3045 = vmatmul.bf16.gmra.mxu3 %v9013_v33  ;;  %v10009_v40 = vpop.eup %10008  ;;  %v1864_v15 = vmin.f32 %v12168_v36, 0.0  ;;  %v2277_v20 = vmin.f32 %v12171_v57, 0.0  ;;  %v8292_v55 = vor.u32 %v9080_v54, %v8291_v42  ;;  %v9014_v14 = vld [vmem:[#allocation3 + $0x18] sm:$0xff] }
 0x25e   : > { %v3143_v26 = vmul.f32 1.442695, %v3102_v19  ;;  %v8073_v10 = vadd.f32 -1.0, %v10009_v40  ;;  %vm2657_vm14 = vcmp.gt.f32.partialorder %v12157_v1, 0.0  ;;  %vm3070_vm15 = vcmp.gt.f32.partialorder %v12165_v6, 0.0 }
 0x25f   : > { %v10011_v44 = vpop.eup %10010  ;;  %10016 = vpow2.f32 %v2730_v59  ;;  %v1906_v51 = vmul.f32 1.442695, %v1864_v15  ;;  %v2319_v46 = vmul.f32 1.442695, %v2277_v20  ;;  %3962 = vmatpush.bf16.msrb.mxu2 %v8292_v55  ;;  %v8227_v19 = vld [vmem:[#allocation15] sm:$0xf] }
 0x260   : > { %v2593_v27 = vpop.f32.mrf.mxu2  ;;  %v10013_v21 = vpop.eup %10012  ;;  %v7946_v24 = vadd.f32 -1.0, %v10011_v44  ;;  %10018 = vpow2.f32 %v3143_v26  ;;  %v8259_v15 = vld [vmem:[#allocation15 + $0x4] sm:$0xf]  ;;  %v9072_v20 = vld [vmem:[#allocation15 + $0x10] sm:$0xf0]  ;;  %vm1832_vm0 = vcmp.gt.f32.partialorder %v12168_v36, 0.0 }
 0x261   : > { %v3006_v5 = vpop.f32.mrf.mxu3  ;;  %v10015_v12 = vpop.eup %10014  ;;  %v8010_v48 = vadd.f32 -1.0, %v10013_v21  ;;  %v12186_v22 = vadd.f32 %v11914_v2, %v2593_v27  ;;  %10020 = vpow2.f32 %v1906_v51  ;;  %vm2245_vm1 = vcmp.gt.f32.partialorder %v12171_v57, 0.0 }
 0x262   : > { %v1769_v34 = vpop.f32.mrf.mxu0  ;;  %v2182_v4 = vpop.f32.mrf.mxu1  ;;  %v1991_v41 = vsel %vm1831_vm11, %v12135_v35, %v7946_v24  ;;  %v12190_v25 = vadd.f32 %v11916_v3, %v3006_v5  ;;  %v8323_v35 = vld [vmem:[#allocation15 + $0xc] sm:$0xf]  ;;  %v8137_v52 = vadd.f32 -1.0, %v10015_v12  ;;  %10022 = vpow2.f32 %v2319_v46  ;;  %v12227_v5 = vld [vmem:[#allocation13] ss:$0 sm:$0xff] }
 0x263   : > { %v12193_v31 = vadd.f32 %v11902_v50, %v1769_v34  ;;  %v9363_v8 = vpack.c.bf16 %v1991_v41, %v1990_v39  ;;  %v2404_v47 = vsel %vm2244_vm12, %v12138_v43, %v8010_v48  ;;  %v2690_v50 = vmin.f32 %v12186_v22, 0.0 }
 0x264   : > { %v9443_v53 = vpack.c.bf16 %v2404_v47, %v2403_v45  ;;  %v3103_v37 = vmin.f32 %v12190_v25, 0.0  ;;  %v12205_v9 = vadd.f32 %v11904_v49, %v2182_v4  ;;  %v8324_v11 = vor.u32 %v9088_v23, %v8323_v35 }
 0x265   : > { %v10017_v30 = vpop.eup %10016  ;;  %9681 = vst [vmem:[#allocation4 + $0xd0] sm:$0xff] %v9363_v8   ;;  %v1865_v38 = vmin.f32 %v12193_v31, 0.0  ;;  %v2732_v43 = vmul.f32 1.442695, %v2690_v50  ;;  %v2816_v49 = vsel %vm2656_vm10, %v12125_v17, %v8073_v10  ;;  %v3229_v17 = vsel %vm3069_vm13, %v12128_v28, %v8137_v52  ;;  %v12243_v8 = vld [vmem:[#allocation13 + $0x2] ss:$0 sm:$0xff] }
 0x266   : > { %9697 = vst [vmem:[#allocation4 + $0x170] sm:$0xff] %v9443_v53   ;;  %v8074_v60 = vadd.f32 -1.0, %v10017_v30  ;;  %v10019_v56 = vpop.eup %10018  ;;  %v2278_v16 = vmin.f32 %v12205_v9, 0.0  ;;  %4183 = vmatpush.bf16.msrb.mxu3 %v8324_v11  ;;  %v3145_v61 = vmul.f32 1.442695, %v3103_v37  ;;  %vm2658_vm2 = vcmp.gt.f32.partialorder %v12186_v22, 0.0 }
 0x267   : > { %v1908_v0 = vmul.f32 1.442695, %v1865_v38  ;;  %v8138_v13 = vadd.f32 -1.0, %v10019_v56  ;;  %10024 = vpow2.f32 %v2732_v43  ;;  %v10021_v40 = vpop.eup %10020  ;;  %vm1833_vm3 = vcmp.gt.f32.partialorder %v12193_v31, 0.0  ;;  %v12250_v50 = vld [vmem:[#allocation13 + $0x3] ss:$0 sm:$0xff] }
 0x268   : > { %v2595_v29 = vpop.f32.mrf.mxu2  ;;  %v2817_v62 = vsel %vm2657_vm14, %v12157_v1, %v8074_v60  ;;  %v2321_v59 = vmul.f32 1.442695, %v2278_v16  ;;  %v10023_v26 = vpop.eup %10022  ;;  %v7947_v34 = vadd.f32 -1.0, %v10021_v40  ;;  %vm2246_vm4 = vcmp.gt.f32.partialorder %v12205_v9, 0.0 }
 0x269   : > { %v3008_v7 = vpop.f32.mrf.mxu3  ;;  %v12215_v33 = vadd.f32 %v11914_v2, %v2595_v29  ;;  %v9523_v63 = vpack.c.bf16 %v2817_v62, %v2816_v49  ;;  %v3230_v1 = vsel %vm3070_vm15, %v12165_v6, %v8138_v13  ;;  %10026 = vpow2.f32 %v1908_v0  ;;  %v9064_v2 = vld [vmem:[#allocation15 + $0xc] sm:$0xf0]  ;;  %v12232_v6 = vld [vmem:[#allocation13 + $0x1] ss:$0 sm:$0xff] }
 0x26a   : > { %v1772_v58 = vpop.f32.mrf.mxu0  ;;  %v2185_v18 = vpop.f32.mrf.mxu1  ;;  %v9603_v44 = vpack.c.bf16 %v3230_v1, %v3229_v17  ;;  %10028 = vpow2.f32 %v2321_v59  ;;  %v12225_v27 = vadd.f32 %v11916_v3, %v3008_v7  ;;  %v8228_v51 = vor.u32 %v9064_v2, %v8227_v19 }
 0x26b   : > { %9713 = vst [vmem:[#allocation4 + $0x138] sm:$0xff] %v9523_v63   ;;  %v2691_v32 = vmin.f32 %v12215_v33, 0.0  ;;  %v12230_v28 = vadd.f32 %v12227_v5, %v1772_v58  ;;  %v12235_v21 = vadd.f32 %v12232_v6, %v2185_v18  ;;  %v8260_v3 = vor.u32 %v9072_v20, %v8259_v15 }
 0x26c   : > { %1811 = vmatmul.bf16.gmra.mxu0 %v9014_v14  ;;  %2224 = vmatmul.bf16.gmra.mxu1 %v9014_v14  ;;  %9729 = vst [vmem:[#allocation4 + $0x140] sm:$0xff] %v9603_v44   ;;  %10030 = vpow2.f32 %v3145_v61  ;;  %v3104_v4 = vmin.f32 %v12225_v27, 0.0  ;;  %v8011_v48 = vadd.f32 -1.0, %v10023_v26  ;;  %v1992_v37 = vsel %vm1832_vm0, %v12168_v36, %v7947_v34 }
 0x26d   : > { %v2734_v24 = vmul.f32 1.442695, %v2691_v32  ;;  %2637 = vmatmul.bf16.gmra.mxu2 %v9014_v14  ;;  %3050 = vmatmul.bf16.gmra.mxu3 %v9014_v14  ;;  %v1866_v12 = vmin.f32 %v12230_v28, 0.0  ;;  %v10025_v39 = vpop.eup %10024  ;;  %v2279_v41 = vmin.f32 %v12235_v21, 0.0  ;;  %vm3071_vm5 = vcmp.gt.f32.partialorder %v12190_v25, 0.0  ;;  %v9015_v32 = vld [vmem:[#allocation3 + $0x50] sm:$0xff] }
 0x26e   : > { %3520 = vmatpush.bf16.msrb.mxu0 %v8228_v51  ;;  %3741 = vmatpush.bf16.msrb.mxu1 %v8260_v3  ;;  %v3147_v45 = vmul.f32 1.442695, %v3104_v4  ;;  %v2405_v60 = vsel %vm2245_vm1, %v12171_v57, %v8011_v48  ;;  %v8075_v43 = vadd.f32 -1.0, %v10025_v39  ;;  %vm2659_vm6 = vcmp.gt.f32.partialorder %v12215_v33, 0.0 }
 0x26f   : > { %10032 = vpow2.f32 %v2734_v24  ;;  %v10027_v54 = vpop.eup %10026  ;;  %v1910_v10 = vmul.f32 1.442695, %v1866_v12  ;;  %v2323_v55 = vmul.f32 1.442695, %v2279_v41  ;;  %vm3072_vm7 = vcmp.gt.f32.partialorder %v12225_v27, 0.0 }
 0x270   : > { %v2598_v46 = vpop.f32.mrf.mxu2  ;;  %v10029_v52 = vpop.eup %10028  ;;  %v7948_v53 = vadd.f32 -1.0, %v10027_v54  ;;  %10034 = vpow2.f32 %v3147_v45  ;;  %vm1834_vm8 = vcmp.gt.f32.partialorder %v12230_v28, 0.0  ;;  %vm2247_vm9 = vcmp.gt.f32.partialorder %v12235_v21, 0.0 }
 0x271   : > { %v3011_v42 = vpop.f32.mrf.mxu3  ;;  %v12246_v47 = vadd.f32 %v12243_v8, %v2598_v46  ;;  %v8012_v38 = vadd.f32 -1.0, %v10029_v52  ;;  %10036 = vpow2.f32 %v1910_v10 }
 0x272   : > { %v1774_v35 = vpop.f32.mrf.mxu0  ;;  %v2187_v23 = vpop.f32.mrf.mxu1  ;;  %v12253_v30 = vadd.f32 %v12250_v50, %v3011_v42  ;;  %v1993_v11 = vsel %vm1833_vm3, %v12193_v31, %v7948_v53  ;;  %10038 = vpow2.f32 %v2323_v55 }
 0x273   : > { %v2692_v56 = vmin.f32 %v12246_v47, 0.0  ;;  %v10031_v0 = vpop.eup %10030  ;;  %v9368_v16 = vpack.c.bf16 %v1993_v11, %v1992_v37  ;;  %v2406_v29 = vsel %vm2246_vm4, %v12205_v9, %v8012_v38  ;;  %v12266_v13 = vadd.f32 %v12227_v5, %v1774_v35 }
 0x274   : > { %v3105_v7 = vmin.f32 %v12253_v30, 0.0  ;;  %v9448_v49 = vpack.c.bf16 %v2406_v29, %v2405_v60  ;;  %v12269_v57 = vadd.f32 %v12232_v6, %v2187_v23  ;;  %v2818_v9 = vsel %vm2658_vm2, %v12186_v22, %v8075_v43 }
 0x275   : > { %v10033_v36 = vpop.eup %10032  ;;  %v2736_v62 = vmul.f32 1.442695, %v2692_v56  ;;  %9682 = vst [vmem:[#allocation4 + $0x150] sm:$0xff] %v9368_v16   ;;  %v8139_v18 = vadd.f32 -1.0, %v10031_v0  ;;  %v1867_v14 = vmin.f32 %v12266_v13, 0.0  ;;  %vm2660_vm10 = vcmp.gt.f32.partialorder %v12246_v47, 0.0 }
 0x276   : > { %v8076_v31 = vadd.f32 -1.0, %v10033_v36  ;;  %v3149_v58 = vmul.f32 1.442695, %v3105_v7  ;;  %9698 = vst [vmem:[#allocation4 + $0x70] sm:$0xff] %v9448_v49   ;;  %v10035_v59 = vpop.eup %10034  ;;  %v2280_v40 = vmin.f32 %v12269_v57, 0.0  ;;  %vm1835_vm11 = vcmp.gt.f32.partialorder %v12266_v13, 0.0 }
 0x277   : > { %10040 = vpow2.f32 %v2736_v62  ;;  %v8140_v15 = vadd.f32 -1.0, %v10035_v59  ;;  %v1912_v20 = vmul.f32 1.442695, %v1867_v14  ;;  %v10037_v26 = vpop.eup %10036  ;;  %v3231_v51 = vsel %vm3071_vm5, %v12190_v25, %v8139_v18  ;;  %v8511_v18 = vld [vmem:[#allocation15 + $0xe8] sm:$0xf] }
 0x278   : > { %v2600_v63 = vpop.f32.mrf.mxu2  ;;  %v2819_v19 = vsel %vm2659_vm6, %v12215_v33, %v8076_v31  ;;  %10042 = vpow2.f32 %v3149_v58  ;;  %v2325_v33 = vmul.f32 1.442695, %v2280_v40  ;;  %v10039_v34 = vpop.eup %10038  ;;  %vm2248_vm12 = vcmp.gt.f32.partialorder %v12269_v57, 0.0  ;;  %v9135_v14 = vld [vmem:[#allocation15 + $0xf4] sm:$0xf0] }
 0x279   : > { %v3013_v61 = vpop.f32.mrf.mxu3  ;;  %v12280_v17 = vadd.f32 %v12243_v8, %v2600_v63  ;;  %v9528_v22 = vpack.c.bf16 %v2819_v19, %v2818_v9  ;;  %v3232_v3 = vsel %vm3072_vm7, %v12225_v27, %v8140_v15  ;;  %10044 = vpow2.f32 %v1912_v20 }
 0x27a   : > { %v1777_v1 = vpop.f32.mrf.mxu0  ;;  %v2190_v2 = vpop.f32.mrf.mxu1  ;;  %v12283_v44 = vadd.f32 %v12250_v50, %v3013_v61  ;;  %v9608_v4 = vpack.c.bf16 %v3232_v3, %v3231_v51  ;;  %10046 = vpow2.f32 %v2325_v33  ;;  %v7949_v27 = vadd.f32 -1.0, %v10037_v26 }
 0x27b   : > { %v2693_v24 = vmin.f32 %v12280_v17, 0.0  ;;  %9714 = vst [vmem:[#allocation4 + $0x1b0] sm:$0xff] %v9528_v22   ;;  %v12293_v48 = vadd.f32 %v12227_v5, %v1777_v1  ;;  %v12296_v41 = vadd.f32 %v12232_v6, %v2190_v2  ;;  %v8013_v46 = vadd.f32 -1.0, %v10039_v34  ;;  %v9048_v34 = vld [vmem:[#allocation4 + $0x188] sm:$0xff] }
 0x27c   : > { %1816 = vmatmul.bf16.gmra.mxu0 %v9015_v32  ;;  %2229 = vmatmul.bf16.gmra.mxu1 %v9015_v32  ;;  %v3106_v39 = vmin.f32 %v12283_v44, 0.0  ;;  %9730 = vst [vmem:[#allocation4 + $0xa8] sm:$0xff] %v9608_v4   ;;  %vm3073_vm13 = vcmp.gt.f32.partialorder %v12253_v30, 0.0  ;;  %vm2661_vm14 = vcmp.gt.f32.partialorder %v12280_v17, 0.0  ;;  %v1994_v29 = vsel %vm1834_vm8, %v12230_v28, %v7949_v27  ;;  %v8543_v27 = vld [vmem:[#allocation15 + $0xec] sm:$0xf] }
 0x27d   : > { %v2738_v12 = vmul.f32 1.442695, %v2693_v24  ;;  %2642 = vmatmul.bf16.gmra.mxu2 %v9015_v32  ;;  %3055 = vmatmul.bf16.gmra.mxu3 %v9015_v32  ;;  %v10041_v25 = vpop.eup %10040  ;;  %v1868_v54 = vmin.f32 %v12293_v48, 0.0  ;;  %v2281_v23 = vmin.f32 %v12296_v41, 0.0  ;;  %v2407_v7 = vsel %vm2247_vm9, %v12235_v21, %v8013_v46 }
 0x27e   : > { %v3151_v42 = vmul.f32 1.442695, %v3106_v39  ;;  %v10043_v35 = vpop.eup %10042  ;;  %v8077_v11 = vadd.f32 -1.0, %v10041_v25  ;;  %v8512_v20 = vor.u32 %v9135_v14, %v8511_v18  ;;  %vm3074_vm15 = vcmp.gt.f32.partialorder %v12283_v44, 0.0 }
 0x27f   : > { %10048 = vpow2.f32 %v2738_v12  ;;  %v10045_v38 = vpop.eup %10044  ;;  %v1914_v55 = vmul.f32 1.442695, %v1868_v54  ;;  %v2327_v0 = vmul.f32 1.442695, %v2281_v23  ;;  %v8141_v31 = vadd.f32 -1.0, %v10043_v35 }
 0x280   : > { %v2603_v45 = vpop.f32.mrf.mxu2  ;;  %10050 = vpow2.f32 %v3151_v42  ;;  %v10047_v43 = vpop.eup %10046  ;;  %v7950_v56 = vadd.f32 -1.0, %v10045_v38  ;;  %v2820_v59 = vsel %vm2660_vm10, %v12246_v47, %v8077_v11  ;;  %4967 = vmatpush.bf16.msra.mxu2 %v8512_v20  ;;  %vm1836_vm0 = vcmp.gt.f32.partialorder %v12293_v48, 0.0  ;;  %v8447_v35 = vld [vmem:[#allocation15 + $0xe0] sm:$0xf] }
 0x281   : > { %v3016_v10 = vpop.f32.mrf.mxu3  ;;  %v12306_v52 = vadd.f32 %v12243_v8, %v2603_v45  ;;  %v8014_v36 = vadd.f32 -1.0, %v10047_v43  ;;  %10052 = vpow2.f32 %v1914_v55  ;;  %v3233_v12 = vsel %vm3073_vm13, %v12253_v30, %v8141_v31  ;;  %v9143_v45 = vld [vmem:[#allocation15 + $0xf8] sm:$0xf0] }
 0x282   : > { %v1779_v53 = vpop.f32.mrf.mxu0  ;;  %v2192_v37 = vpop.f32.mrf.mxu1  ;;  %v12311_v60 = vadd.f32 %v12250_v50, %v3016_v10  ;;  %v1995_v58 = vsel %vm1835_vm11, %v12266_v13, %v7950_v56  ;;  %10054 = vpow2.f32 %v2327_v0  ;;  %vm2249_vm1 = vcmp.gt.f32.partialorder %v12296_v41, 0.0 }
 0x283   : > { %v2694_v16 = vmin.f32 %v12306_v52, 0.0  ;;  %v12325_v9 = vadd.f32 %v12227_v5, %v1779_v53  ;;  %v9373_v28 = vpack.c.bf16 %v1995_v58, %v1994_v29  ;;  %v2408_v21 = vsel %vm2248_vm12, %v12269_v57, %v8014_v36  ;;  %v8479_v29 = vld [vmem:[#allocation15 + $0xe4] sm:$0xf] }
 0x284   : > { %v3107_v49 = vmin.f32 %v12311_v60, 0.0  ;;  %v9453_v19 = vpack.c.bf16 %v2408_v21, %v2407_v7  ;;  %v12338_v22 = vadd.f32 %v12232_v6, %v2192_v37  ;;  %vm2662_vm3 = vcmp.gt.f32.partialorder %v12306_v52, 0.0  ;;  %v9127_v7 = vld [vmem:[#allocation15 + $0xf0] sm:$0xf0] }
 0x285   : > { %v10049_v62 = vpop.eup %10048  ;;  %v2740_v61 = vmul.f32 1.442695, %v2694_v16  ;;  %v1869_v13 = vmin.f32 %v12325_v9, 0.0  ;;  %9683 = vst [vmem:[#allocation4 + $0x60] sm:$0xff] %v9373_v28   ;;  %vm1837_vm2 = vcmp.gt.f32.partialorder %v12325_v9, 0.0  ;;  %v8544_v11 = vor.u32 %v9143_v45, %v8543_v27 }
 0x286   : > { %v8078_v63 = vadd.f32 -1.0, %v10049_v62  ;;  %v10051_v40 = vpop.eup %10050  ;;  %v3153_v2 = vmul.f32 1.442695, %v3107_v49  ;;  %9699 = vst [vmem:[#allocation4 + $0x8] sm:$0xff] %v9453_v19   ;;  %vm2250_vm4 = vcmp.gt.f32.partialorder %v12338_v22, 0.0  ;;  %vm3075_vm5 = vcmp.gt.f32.partialorder %v12311_v60, 0.0 }
 0x287   : > { %v8142_v47 = vadd.f32 -1.0, %v10051_v40  ;;  %v1916_v26 = vmul.f32 1.442695, %v1869_v13  ;;  %10056 = vpow2.f32 %v2740_v61  ;;  %v10053_v4 = vpop.eup %10052  ;;  %5188 = vmatpush.bf16.msra.mxu3 %v8544_v11  ;;  %v8480_v19 = vor.u32 %v9127_v7, %v8479_v29 }
 0x288   : > { %v2821_v1 = vsel %vm2661_vm14, %v12280_v17, %v8078_v63  ;;  %v2605_v57 = vpop.f32.mrf.mxu2  ;;  %v2282_v17 = vmin.f32 %v12338_v22, 0.0  ;;  %v10055_v10 = vpop.eup %10054  ;;  %v7951_v53 = vadd.f32 -1.0, %v10053_v4 }
 0x289   : > { %v3018_v15 = vpop.f32.mrf.mxu3  ;;  %v9533_v32 = vpack.c.bf16 %v2821_v1, %v2820_v59  ;;  %v12341_v33 = vadd.f32 %v12243_v8, %v2605_v57  ;;  %v3234_v39 = vsel %vm3074_vm15, %v12283_v44, %v8142_v47  ;;  %10058 = vpow2.f32 %v1916_v26  ;;  %v9119_v44 = vld [vmem:[#allocation15 + $0xec] sm:$0xf0]  ;;  %4746 = vmatpush.bf16.msra.mxu1 %v8480_v19 }
 0x28a   : > { %v1782_v24 = vpop.f32.mrf.mxu0  ;;  %v2195_v51 = vpop.f32.mrf.mxu1  ;;  %v12346_v3 = vadd.f32 %v12250_v50, %v3018_v15  ;;  %v9613_v46 = vpack.c.bf16 %v3234_v39, %v3233_v12  ;;  %v2329_v42 = vmul.f32 1.442695, %v2282_v17  ;;  %10060 = vpow2.f32 %v3153_v2 }
 0x28b   : > { %9715 = vst [vmem:[#allocation4 + $0xf0] sm:$0xff] %v9533_v32   ;;  %v12353_v25 = vadd.f32 %v12227_v5, %v1782_v24  ;;  %v2695_v54 = vmin.f32 %v12341_v33, 0.0  ;;  %v12362_v55 = vadd.f32 %v12232_v6, %v2195_v51  ;;  %v8448_v16 = vor.u32 %v9119_v44, %v8447_v35 }
 0x28c   : > { %3521 = vmatmul.bf16.vlgmr.msrb.gmra.mxu0 %v9048_v34  ;;  %v3108_v30 = vmin.f32 %v12346_v3, 0.0  ;;  %3742 = vmatmul.bf16.vlgmr.msrb.gmra.mxu1 %v9048_v34  ;;  %9731 = vst [vmem:[#allocation4 + $0x90] sm:$0xff] %v9613_v46   ;;  %10062 = vpow2.f32 %v2329_v42  ;;  %v8015_v49 = vadd.f32 -1.0, %v10055_v10  ;;  %vm2663_vm6 = vcmp.gt.f32.partialorder %v12341_v33, 0.0 }
 0x28d   : > { %v2742_v23 = vmul.f32 1.442695, %v2695_v54  ;;  %3963 = vmatmul.bf16.vlgmr.msrb.gmra.mxu2 %v9048_v34  ;;  %4184 = vmatmul.bf16.vlgmr.msrb.gmra.mxu3 %v9048_v34  ;;  %v1870_v38 = vmin.f32 %v12353_v25, 0.0  ;;  %v10057_v43 = vpop.eup %10056  ;;  %v2283_v14 = vmin.f32 %v12362_v55, 0.0  ;;  %v1996_v61 = vsel %vm1836_vm0, %v12293_v48, %v7951_v53 }
 0x28e   : > { %v3155_v37 = vmul.f32 1.442695, %v3108_v30  ;;  %4525 = vmatpush.bf16.msra.mxu0 %v8448_v16  ;;  %vm3076_vm7 = vcmp.gt.f32.partialorder %v12346_v3, 0.0  ;;  %v8079_v40 = vadd.f32 -1.0, %v10057_v43  ;;  %v2409_v26 = vsel %vm2249_vm1, %v12296_v41, %v8015_v49 }
 0x28f   : > { %10064 = vpow2.f32 %v2742_v23  ;;  %v10059_v36 = vpop.eup %10058  ;;  %v1918_v62 = vmul.f32 1.442695, %v1870_v38  ;;  %v2331_v2 = vmul.f32 1.442695, %v2283_v14  ;;  %v9049_v38 = vld [vmem:[#allocation4 + $0x48] sm:$0xff]  ;;  %vm1838_vm8 = vcmp.gt.f32.partialorder %v12353_v25, 0.0 }
 0x290   : > { %v2608_v56 = vpop.f32.mrf.mxu2  ;;  %10066 = vpow2.f32 %v3155_v37  ;;  %v7952_v18 = vadd.f32 -1.0, %v10059_v36  ;;  %v10061_v63 = vpop.eup %10060  ;;  %v2822_v41 = vsel %vm2662_vm3, %v12306_v52, %v8079_v40  ;;  %vm2251_vm9 = vcmp.gt.f32.partialorder %v12362_v55, 0.0 }
 0x291   : > { %v3021_v0 = vpop.f32.mrf.mxu3  ;;  %v12370_v28 = vadd.f32 %v12243_v8, %v2608_v56  ;;  %v8143_v24 = vadd.f32 -1.0, %v10061_v63  ;;  %10068 = vpow2.f32 %v1918_v62 }
 0x292   : > { %v1784_v31 = vpop.f32.mrf.mxu0  ;;  %v2197_v58 = vpop.f32.mrf.mxu1  ;;  %v12373_v21 = vadd.f32 %v12250_v50, %v3021_v0  ;;  %v1997_v1 = vsel %vm1837_vm2, %v12325_v9, %v7952_v18  ;;  %10070 = vpow2.f32 %v2331_v2 }
 0x293   : > { %v12380_v59 = vadd.f32 %v12227_v5, %v1784_v31  ;;  %v10063_v13 = vpop.eup %10062  ;;  %v2696_v57 = vmin.f32 %v12370_v28, 0.0  ;;  %v9378_v15 = vpack.c.bf16 %v1997_v1, %v1996_v61  ;;  %v12388_v48 = vadd.f32 %v12232_v6, %v2197_v58 }
 0x294   : > { %v8016_v20 = vadd.f32 -1.0, %v10063_v13  ;;  %v3109_v32 = vmin.f32 %v12373_v21, 0.0  ;;  %v3235_v44 = vsel %vm3075_vm5, %v12311_v60, %v8143_v24  ;;  %vm2664_vm10 = vcmp.gt.f32.partialorder %v12370_v28, 0.0 }
 0x295   : > { %v10065_v47 = vpop.eup %10064  ;;  %v1871_v9 = vmin.f32 %v12380_v59, 0.0  ;;  %9684 = vst [vmem:[#allocation4 + $0x1f8] sm:$0xff] %v9378_v15   ;;  %v2744_v4 = vmul.f32 1.442695, %v2696_v57  ;;  %v2284_v10 = vmin.f32 %v12388_v48, 0.0  ;;  %vm1839_vm11 = vcmp.gt.f32.partialorder %v12380_v59, 0.0 }
 0x296   : > { %v10067_v51 = vpop.eup %10066  ;;  %v2410_v17 = vsel %vm2250_vm4, %v12338_v22, %v8016_v20  ;;  %v8080_v34 = vadd.f32 -1.0, %v10065_v47  ;;  %v3157_v27 = vmul.f32 1.442695, %v3109_v32  ;;  %vm3077_vm12 = vcmp.gt.f32.partialorder %v12373_v21, 0.0  ;;  %v8507_v15 = vld [vmem:[#allocation15 + $0xc8] sm:$0xf] }
 0x297   : > { %v9458_v12 = vpack.c.bf16 %v2410_v17, %v2409_v26  ;;  %v8144_v39 = vadd.f32 -1.0, %v10067_v51  ;;  %v1920_v46 = vmul.f32 1.442695, %v1871_v9  ;;  %v10069_v43 = vpop.eup %10068  ;;  %vm2252_vm13 = vcmp.gt.f32.partialorder %v12388_v48, 0.0  ;;  %v9134_v9 = vld [vmem:[#allocation15 + $0xd4] sm:$0xf0] }
 0x298   : > { %v2610_v42 = vpop.f32.mrf.mxu2  ;;  %v2823_v45 = vsel %vm2663_vm6, %v12341_v33, %v8080_v34  ;;  %v2333_v33 = vmul.f32 1.442695, %v2284_v10  ;;  %v7953_v7 = vadd.f32 -1.0, %v10069_v43 }
 0x299   : > { %v3023_v54 = vpop.f32.mrf.mxu3  ;;  %v12405_v22 = vadd.f32 %v12243_v8, %v2610_v42  ;;  %9700 = vst [vmem:[#allocation4 + $0x160] sm:$0xff] %v9458_v12   ;;  %v9538_v23 = vpack.c.bf16 %v2823_v45, %v2822_v41  ;;  %v3236_v52 = vsel %vm3076_vm7, %v12346_v3, %v8144_v39  ;;  %10072 = vpow2.f32 %v1920_v46  ;;  %v10071_v3 = vpop.eup %10070  ;;  %v8539_v12 = vld [vmem:[#allocation15 + $0xcc] sm:$0xf] }
 0x29a   : > { %v1787_v30 = vpop.f32.mrf.mxu0  ;;  %v2200_v35 = vpop.f32.mrf.mxu1  ;;  %v9618_v53 = vpack.c.bf16 %v3236_v52, %v3235_v44  ;;  %10074 = vpow2.f32 %v2744_v4  ;;  %v12415_v11 = vadd.f32 %v12250_v50, %v3023_v54  ;;  %v8017_v49 = vadd.f32 -1.0, %v10071_v3 }
 0x29b   : > { %v2697_v37 = vmin.f32 %v12405_v22, 0.0  ;;  %9716 = vst [vmem:[#allocation4 + $0xe8] sm:$0xff] %v9538_v23   ;;  %10076 = vpow2.f32 %v3157_v27  ;;  %v12418_v60 = vadd.f32 %v12227_v5, %v1787_v30  ;;  %v12421_v56 = vadd.f32 %v12232_v6, %v2200_v35 }
 0x29c   : > { %9732 = vst [vmem:[#allocation4 + $0x108] sm:$0xff] %v9618_v53   ;;  %10078 = vpow2.f32 %v2333_v33  ;;  %3526 = vmatmul.bf16.gmra.mxu0 %v9049_v38  ;;  %3747 = vmatmul.bf16.gmra.mxu1 %v9049_v38  ;;  %v3110_v16 = vmin.f32 %v12415_v11, 0.0  ;;  %vm2665_vm14 = vcmp.gt.f32.partialorder %v12405_v22, 0.0  ;;  %v1998_v32 = vsel %vm1838_vm8, %v12353_v25, %v7953_v7 }
 0x29d   : > { %v2746_v0 = vmul.f32 1.442695, %v2697_v37  ;;  %v1872_v29 = vmin.f32 %v12418_v60, 0.0  ;;  %3968 = vmatmul.bf16.gmra.mxu2 %v9049_v38  ;;  %4189 = vmatmul.bf16.gmra.mxu3 %v9049_v38  ;;  %v2285_v31 = vmin.f32 %v12421_v56, 0.0  ;;  %v2411_v51 = vsel %vm2251_vm9, %v12362_v55, %v8017_v49 }
 0x29e   : > { %v3159_v62 = vmul.f32 1.442695, %v3110_v16  ;;  %v8508_v41 = vor.u32 %v9134_v9, %v8507_v15  ;;  %vm3078_vm15 = vcmp.gt.f32.partialorder %v12415_v11, 0.0  ;;  %vm1840_vm0 = vcmp.gt.f32.partialorder %v12418_v60, 0.0 }
 0x29f   : > { %10080 = vpow2.f32 %v2746_v0  ;;  %v10073_v36 = vpop.eup %10072  ;;  %v1922_v61 = vmul.f32 1.442695, %v1872_v29  ;;  %v2335_v26 = vmul.f32 1.442695, %v2285_v31  ;;  %v9050_v29 = vld [vmem:[#allocation4 + $0x110] sm:$0xff]  ;;  %vm2253_vm1 = vcmp.gt.f32.partialorder %v12421_v56, 0.0 }
 0x2a0   : > { %v2613_v58 = vpop.f32.mrf.mxu2  ;;  %v10075_v14 = vpop.eup %10074  ;;  %v7954_v63 = vadd.f32 -1.0, %v10073_v36  ;;  %10082 = vpow2.f32 %v3159_v62  ;;  %4968 = vmatpush.bf16.msra.mxu2 %v8508_v41  ;;  %v8443_v31 = vld [vmem:[#allocation15 + $0xc0] sm:$0xf] }
 0x2a1   : > { %v3026_v18 = vpop.f32.mrf.mxu3  ;;  %v12431_v19 = vadd.f32 %v12243_v8, %v2613_v58  ;;  %v10077_v2 = vpop.eup %10076  ;;  %v8081_v17 = vadd.f32 -1.0, %v10075_v14  ;;  %10084 = vpow2.f32 %v1922_v61  ;;  %v9118_v58 = vld [vmem:[#allocation15 + $0xcc] sm:$0xf0] }
 0x2a2   : > { %v12434_v13 = vadd.f32 %v12250_v50, %v3026_v18  ;;  %v1789_v40 = vpop.f32.mrf.mxu0  ;;  %v2202_v1 = vpop.f32.mrf.mxu1  ;;  %v1999_v47 = vsel %vm1839_vm11, %v12380_v59, %v7954_v63  ;;  %v8145_v27 = vadd.f32 -1.0, %v10077_v2  ;;  %v9142_v59 = vld [vmem:[#allocation15 + $0xd8] sm:$0xf0]  ;;  %10086 = vpow2.f32 %v2335_v26 }
 0x2a3   : > { %v12440_v57 = vadd.f32 %v12227_v5, %v1789_v40  ;;  %v10079_v20 = vpop.eup %10078  ;;  %v2698_v24 = vmin.f32 %v12431_v19, 0.0  ;;  %v9383_v34 = vpack.c.bf16 %v1999_v47, %v1998_v32  ;;  %v12458_v55 = vadd.f32 %v12232_v6, %v2202_v1 }
 0x2a4   : > { %v8018_v4 = vadd.f32 -1.0, %v10079_v20  ;;  %v3111_v25 = vmin.f32 %v12434_v13, 0.0  ;;  %v2824_v44 = vsel %vm2664_vm10, %v12370_v28, %v8081_v17  ;;  %v8540_v33 = vor.u32 %v9142_v59, %v8539_v12 }
 0x2a5   : > { %v10081_v39 = vpop.eup %10080  ;;  %v1873_v46 = vmin.f32 %v12440_v57, 0.0  ;;  %9685 = vst [vmem:[#allocation4 + $0x20] sm:$0xff] %v9383_v34   ;;  %v2748_v10 = vmul.f32 1.442695, %v2698_v24  ;;  %v3237_v36 = vsel %vm3077_vm12, %v12373_v21, %v8145_v27  ;;  %vm2666_vm2 = vcmp.gt.f32.partialorder %v12431_v19, 0.0 }
 0x2a6   : > { %v2412_v42 = vsel %vm2252_vm13, %v12388_v48, %v8018_v4  ;;  %v8082_v54 = vadd.f32 -1.0, %v10081_v39  ;;  %v10083_v35 = vpop.eup %10082  ;;  %v2286_v48 = vmin.f32 %v12458_v55, 0.0  ;;  %v3161_v43 = vmul.f32 1.442695, %v3111_v25  ;;  %5189 = vmatpush.bf16.msra.mxu3 %v8540_v33 }
 0x2a7   : > { %v9463_v45 = vpack.c.bf16 %v2412_v42, %v2411_v51  ;;  %v1924_v30 = vmul.f32 1.442695, %v1873_v46  ;;  %v8146_v38 = vadd.f32 -1.0, %v10083_v35  ;;  %v10085_v7 = vpop.eup %10084  ;;  %vm1841_vm3 = vcmp.gt.f32.partialorder %v12440_v57, 0.0  ;;  %v8475_v35 = vld [vmem:[#allocation15 + $0xc4] sm:$0xf] }
 0x2a8   : > { %v2825_v23 = vsel %vm2665_vm14, %v12405_v22, %v8082_v54  ;;  %v2615_v52 = vpop.f32.mrf.mxu2  ;;  %v2337_v28 = vmul.f32 1.442695, %v2286_v48  ;;  %v10087_v14 = vpop.eup %10086  ;;  %v7955_v1 = vadd.f32 -1.0, %v10085_v7  ;;  %vm3079_vm4 = vcmp.gt.f32.partialorder %v12434_v13, 0.0 }
 0x2a9   : > { %v3028_v53 = vpop.f32.mrf.mxu3  ;;  %9701 = vst [vmem:[#allocation4 + $0x30] sm:$0xff] %v9463_v45   ;;  %v9543_v37 = vpack.c.bf16 %v2825_v23, %v2824_v44  ;;  %v12468_v3 = vadd.f32 %v12243_v8, %v2615_v52  ;;  %10088 = vpow2.f32 %v1924_v30  ;;  %v3238_v49 = vsel %vm3078_vm15, %v12415_v11, %v8146_v38  ;;  %v9126_v44 = vld [vmem:[#allocation15 + $0xd0] sm:$0xf0] }
 0x2aa   : > { %v1792_v0 = vpop.f32.mrf.mxu0  ;;  %v2205_v16 = vpop.f32.mrf.mxu1  ;;  %v12472_v22 = vadd.f32 %v12250_v50, %v3028_v53  ;;  %10090 = vpow2.f32 %v2748_v10  ;;  %v9623_v18 = vpack.c.bf16 %v3238_v49, %v3237_v36  ;;  %v8444_v11 = vor.u32 %v9118_v58, %v8443_v31 }
 0x2ab   : > { %9717 = vst [vmem:[#allocation4 + $0x198] sm:$0xff] %v9543_v37   ;;  %v2699_v62 = vmin.f32 %v12468_v3, 0.0  ;;  %10092 = vpow2.f32 %v2337_v28  ;;  %v12481_v40 = vadd.f32 %v12227_v5, %v1792_v0  ;;  %v12486_v21 = vadd.f32 %v12232_v6, %v2205_v16 }
 0x2ac   : > { %10094 = vpow2.f32 %v3161_v43  ;;  %v3112_v61 = vmin.f32 %v12472_v22, 0.0  ;;  %3531 = vmatmul.bf16.gmra.mxu0 %v9050_v29  ;;  %3752 = vmatmul.bf16.gmra.mxu1 %v9050_v29  ;;  %9733 = vst [vmem:[#allocation4 + $0x1a8] sm:$0xff] %v9623_v18   ;;  %v8019_v32 = vadd.f32 -1.0, %v10087_v14  ;;  %vm2254_vm5 = vcmp.gt.f32.partialorder %v12458_v55, 0.0 }
 0x2ad   : > { %v2750_v63 = vmul.f32 1.442695, %v2699_v62  ;;  %3973 = vmatmul.bf16.gmra.mxu2 %v9050_v29  ;;  %4194 = vmatmul.bf16.gmra.mxu3 %v9050_v29  ;;  %v1874_v15 = vmin.f32 %v12481_v40, 0.0  ;;  %v2287_v47 = vmin.f32 %v12486_v21, 0.0  ;;  %vm2667_vm6 = vcmp.gt.f32.partialorder %v12468_v3, 0.0 }
 0x2ae   : > { %v3163_v2 = vmul.f32 1.442695, %v3112_v61  ;;  %4526 = vmatpush.bf16.msra.mxu0 %v8444_v11  ;;  %v2000_v59 = vsel %vm1840_vm0, %v12418_v60, %v7955_v1  ;;  %v2413_v48 = vsel %vm2253_vm1, %v12421_v56, %v8019_v32  ;;  %v8476_v56 = vor.u32 %v9126_v44, %v8475_v35 }
 0x2af   : > { %10096 = vpow2.f32 %v2750_v63  ;;  %v10089_v20 = vpop.eup %10088  ;;  %v1926_v17 = vmul.f32 1.442695, %v1874_v15  ;;  %v2339_v41 = vmul.f32 1.442695, %v2287_v47  ;;  %vm3080_vm7 = vcmp.gt.f32.partialorder %v12472_v22, 0.0 }
 0x2b0   : > { %v2618_v26 = vpop.f32.mrf.mxu2  ;;  %v10091_v9 = vpop.eup %10090  ;;  %v7956_v51 = vadd.f32 -1.0, %v10089_v20  ;;  %10098 = vpow2.f32 %v3163_v2  ;;  %4747 = vmatpush.bf16.msra.mxu1 %v8476_v56  ;;  %vm1842_vm8 = vcmp.gt.f32.partialorder %v12481_v40, 0.0  ;;  %v9051_v2 = vld [vmem:[#allocation4 + $0x120] sm:$0xff]  ;;  %vm2255_vm9 = vcmp.gt.f32.partialorder %v12486_v21, 0.0 }
 0x2b1   : > { %v3031_v24 = vpop.f32.mrf.mxu3  ;;  %v12494_v34 = vadd.f32 %v12243_v8, %v2618_v26  ;;  %v10093_v39 = vpop.eup %10092  ;;  %v8083_v45 = vadd.f32 -1.0, %v10091_v9  ;;  %10100 = vpow2.f32 %v1926_v17  ;;  %v8503_v26 = vld [vmem:[#allocation15 + $0xa8] sm:$0xf] }
 0x2b2   : > { %v1794_v4 = vpop.f32.mrf.mxu0  ;;  %v2207_v12 = vpop.f32.mrf.mxu1  ;;  %v12499_v27 = vadd.f32 %v12250_v50, %v3031_v24  ;;  %v2001_v42 = vsel %vm1841_vm3, %v12440_v57, %v7956_v51  ;;  %v8020_v54 = vadd.f32 -1.0, %v10093_v39  ;;  %10102 = vpow2.f32 %v2339_v41  ;;  %v9133_v24 = vld [vmem:[#allocation15 + $0xb4] sm:$0xf0]  ;;  %v9141_v39 = vld [vmem:[#allocation15 + $0xb8] sm:$0xf0] }
 0x2b3   : > { %v12502_v25 = vadd.f32 %v12227_v5, %v1794_v4  ;;  %v10095_v46 = vpop.eup %10094  ;;  %v9388_v10 = vpack.c.bf16 %v2001_v42, %v2000_v59  ;;  %v2700_v30 = vmin.f32 %v12494_v34, 0.0  ;;  %v12520_v38 = vadd.f32 %v12232_v6, %v2207_v12  ;;  %v8535_v4 = vld [vmem:[#allocation15 + $0xac] sm:$0xf] }
 0x2b4   : > { %v2414_v60 = vsel %vm2254_vm5, %v12458_v55, %v8020_v54  ;;  %v3113_v57 = vmin.f32 %v12499_v27, 0.0  ;;  %v8147_v53 = vadd.f32 -1.0, %v10095_v46  ;;  %v2826_v55 = vsel %vm2666_vm2, %v12431_v19, %v8083_v45 }
 0x2b5   : > { %v10097_v23 = vpop.eup %10096  ;;  %v1875_v52 = vmin.f32 %v12502_v25, 0.0  ;;  %9686 = vst [vmem:[#allocation4 + $0xa0] sm:$0xff] %v9388_v10   ;;  %v9468_v33 = vpack.c.bf16 %v2414_v60, %v2413_v48  ;;  %v2752_v0 = vmul.f32 1.442695, %v2700_v30  ;;  %v2288_v31 = vmin.f32 %v12520_v38, 0.0 }
 0x2b6   : > { %v8084_v37 = vadd.f32 -1.0, %v10097_v23  ;;  %v10099_v43 = vpop.eup %10098  ;;  %v3165_v7 = vmul.f32 1.442695, %v3113_v57  ;;  %v8504_v17 = vor.u32 %v9133_v24, %v8503_v26  ;;  %vm2668_vm10 = vcmp.gt.f32.partialorder %v12494_v34, 0.0  ;;  %v8439_v24 = vld [vmem:[#allocation15 + $0xa0] sm:$0xf] }
 0x2b7   : > { %v1928_v16 = vmul.f32 1.442695, %v1875_v52  ;;  %9702 = vst [vmem:[#allocation4 + $0x18] sm:$0xff] %v9468_v33   ;;  %v8148_v29 = vadd.f32 -1.0, %v10099_v43  ;;  %v10101_v14 = vpop.eup %10100  ;;  %v2341_v1 = vmul.f32 1.442695, %v2288_v31  ;;  %v8536_v45 = vor.u32 %v9141_v39, %v8535_v4 }
 0x2b8   : > { %v2827_v28 = vsel %vm2667_vm6, %v12468_v3, %v8084_v37  ;;  %v2620_v36 = vpop.f32.mrf.mxu2  ;;  %v3239_v3 = vsel %vm3079_vm4, %v12434_v13, %v8147_v53  ;;  %v10103_v20 = vpop.eup %10102  ;;  %vm1843_vm11 = vcmp.gt.f32.partialorder %v12502_v25, 0.0  ;;  %vm2256_vm12 = vcmp.gt.f32.partialorder %v12520_v38, 0.0  ;;  %4969 = vmatpush.bf16.msra.mxu2 %v8504_v17  ;;  %v9125_v17 = vld [vmem:[#allocation15 + $0xb0] sm:$0xf0] }
 0x2b9   : > { %v3033_v49 = vpop.f32.mrf.mxu3  ;;  %v9548_v62 = vpack.c.bf16 %v2827_v28, %v2826_v55  ;;  %v12531_v58 = vadd.f32 %v12243_v8, %v2620_v36  ;;  %v3240_v63 = vsel %vm3080_vm7, %v12472_v22, %v8148_v29  ;;  %10104 = vpow2.f32 %v1928_v16  ;;  %5190 = vmatpush.bf16.msra.mxu3 %v8536_v45 }
 0x2ba   : > { %v1797_v18 = vpop.f32.mrf.mxu0  ;;  %v2210_v19 = vpop.f32.mrf.mxu1  ;;  %v12538_v61 = vadd.f32 %v12250_v50, %v3033_v49  ;;  %v9628_v11 = vpack.c.bf16 %v3240_v63, %v3239_v3  ;;  %10106 = vpow2.f32 %v2752_v0  ;;  %v7957_v22 = vadd.f32 -1.0, %v10101_v14 }
 0x2bb   : > { %9718 = vst [vmem:[#allocation4 + $0xb0] sm:$0xff] %v9548_v62   ;;  %10108 = vpow2.f32 %v3165_v7  ;;  %v2701_v15 = vmin.f32 %v12531_v58, 0.0  ;;  %v12545_v32 = vadd.f32 %v12227_v5, %v1797_v18  ;;  %v12548_v47 = vadd.f32 %v12232_v6, %v2210_v19 }
 0x2bc   : > { %v3114_v13 = vmin.f32 %v12538_v61, 0.0  ;;  %9734 = vst [vmem:[#allocation4 + $0x130] sm:$0xff] %v9628_v11   ;;  %10110 = vpow2.f32 %v2341_v1  ;;  %3536 = vmatmul.bf16.gmra.mxu0 %v9051_v2  ;;  %3757 = vmatmul.bf16.gmra.mxu1 %v9051_v2  ;;  %v8021_v59 = vadd.f32 -1.0, %v10103_v20  ;;  %vm3081_vm13 = vcmp.gt.f32.partialorder %v12499_v27, 0.0 }
 0x2bd   : > { %v2754_v9 = vmul.f32 1.442695, %v2701_v15  ;;  %3978 = vmatmul.bf16.gmra.mxu2 %v9051_v2  ;;  %v1876_v12 = vmin.f32 %v12545_v32, 0.0  ;;  %4199 = vmatmul.bf16.gmra.mxu3 %v9051_v2  ;;  %v2289_v42 = vmin.f32 %v12548_v47, 0.0  ;;  %vm2669_vm14 = vcmp.gt.f32.partialorder %v12531_v58, 0.0 }
 0x2be   : > { %v3167_v51 = vmul.f32 1.442695, %v3114_v13  ;;  %v2002_v60 = vsel %vm1842_vm8, %v12481_v40, %v7957_v22  ;;  %vm3082_vm15 = vcmp.gt.f32.partialorder %v12538_v61, 0.0  ;;  %v2415_v0 = vsel %vm2255_vm9, %v12486_v21, %v8021_v59 }
 0x2bf   : > { %v10105_v46 = vpop.eup %10104  ;;  %10112 = vpow2.f32 %v2754_v9  ;;  %v1930_v35 = vmul.f32 1.442695, %v1876_v12  ;;  %v2343_v57 = vmul.f32 1.442695, %v2289_v42  ;;  %vm1844_vm0 = vcmp.gt.f32.partialorder %v12545_v32, 0.0 }
 0x2c0   : > { %v2623_v54 = vpop.f32.mrf.mxu2  ;;  %v10107_v10 = vpop.eup %10106  ;;  %v7958_v30 = vadd.f32 -1.0, %v10105_v46  ;;  %10114 = vpow2.f32 %v3167_v51  ;;  %v9117_v51 = vld [vmem:[#allocation15 + $0xac] sm:$0xf0]  ;;  %v12612_v46 = vld [vmem:[#allocation13 + $0x1] ss:$0 sm:$0xff]  ;;  %vm2257_vm1 = vcmp.gt.f32.partialorder %v12548_v47, 0.0 }
 0x2c1   : > { %v3036_v41 = vpop.f32.mrf.mxu3  ;;  %v10109_v48 = vpop.eup %10108  ;;  %v12561_v52 = vadd.f32 %v12243_v8, %v2623_v54  ;;  %v8085_v16 = vadd.f32 -1.0, %v10107_v10  ;;  %10116 = vpow2.f32 %v1930_v35 }
 0x2c2   : > { %v1799_v44 = vpop.f32.mrf.mxu0  ;;  %v2212_v23 = vpop.f32.mrf.mxu1  ;;  %v12564_v53 = vadd.f32 %v12250_v50, %v3036_v41  ;;  %v2003_v37 = vsel %vm1843_vm11, %v12502_v25, %v7958_v30  ;;  %v8149_v28 = vadd.f32 -1.0, %v10109_v48  ;;  %10118 = vpow2.f32 %v2343_v57 }
 0x2c3   : > { %v10111_v33 = vpop.eup %10110  ;;  %v12571_v43 = vadd.f32 %v12227_v5, %v1799_v44  ;;  %v12574_v40 = vadd.f32 %v12232_v6, %v2212_v23  ;;  %v9393_v56 = vpack.c.bf16 %v2003_v37, %v2002_v60  ;;  %v2702_v29 = vmin.f32 %v12561_v52, 0.0 }
 0x2c4   : > { %v8022_v55 = vadd.f32 -1.0, %v10111_v33  ;;  %v3115_v25 = vmin.f32 %v12564_v53, 0.0  ;;  %v2828_v19 = vsel %vm2668_vm10, %v12494_v34, %v8085_v16  ;;  %v3241_v34 = vsel %vm3081_vm13, %v12499_v27, %v8149_v28 }
 0x2c5   : > { %v10113_v7 = vpop.eup %10112  ;;  %9687 = vst [vmem:[#allocation4 + $0x28] sm:$0xff] %v9393_v56   ;;  %v1877_v6 = vmin.f32 %v12571_v43, 0.0  ;;  %v2290_v21 = vmin.f32 %v12574_v40, 0.0  ;;  %v2756_v31 = vmul.f32 1.442695, %v2702_v29  ;;  %v8440_v41 = vor.u32 %v9117_v51, %v8439_v24 }
 0x2c6   : > { %v2416_v5 = vsel %vm2256_vm12, %v12520_v38, %v8022_v55  ;;  %v10115_v36 = vpop.eup %10114  ;;  %v8086_v62 = vadd.f32 -1.0, %v10113_v7  ;;  %v3169_v18 = vmul.f32 1.442695, %v3115_v25  ;;  %vm2670_vm2 = vcmp.gt.f32.partialorder %v12561_v52, 0.0  ;;  %v12632_v7 = vld [vmem:[#allocation13 + $0x3] ss:$0 sm:$0xff] }
 0x2c7   : > { %v9473_v49 = vpack.c.bf16 %v2416_v5, %v2415_v0  ;;  %v8150_v14 = vadd.f32 -1.0, %v10115_v36  ;;  %v1932_v3 = vmul.f32 1.442695, %v1877_v6  ;;  %v2345_v63 = vmul.f32 1.442695, %v2290_v21  ;;  %v10117_v9 = vpop.eup %10116  ;;  %4527 = vmatpush.bf16.msra.mxu0 %v8440_v41 }
 0x2c8   : > { %v2625_v11 = vpop.f32.mrf.mxu2  ;;  %v2829_v38 = vsel %vm2669_vm14, %v12531_v58, %v8086_v62  ;;  %10120 = vpow2.f32 %v2756_v31  ;;  %v9052_v58 = vld [vmem:[#allocation4 + $0xd0] sm:$0xff]  ;;  %v10119_v4 = vpop.eup %10118  ;;  %v7959_v42 = vadd.f32 -1.0, %v10117_v9  ;;  %vm3083_vm3 = vcmp.gt.f32.partialorder %v12564_v53, 0.0  ;;  %v12623_v0 = vld [vmem:[#allocation13 + $0x2] ss:$0 sm:$0xff] }
 0x2c9   : > { %v3038_v1 = vpop.f32.mrf.mxu3  ;;  %9703 = vst [vmem:[#allocation4 + $0x80] sm:$0xff] %v9473_v49   ;;  %v12593_v2 = vadd.f32 %v12243_v8, %v2625_v11  ;;  %v9553_v22 = vpack.c.bf16 %v2829_v38, %v2828_v19  ;;  %v3242_v26 = vsel %vm3082_vm15, %v12538_v61, %v8150_v14  ;;  %10122 = vpow2.f32 %v3169_v18  ;;  %v12607_v61 = vld [vmem:[#allocation13] ss:$0 sm:$0xff] }
 0x2ca   : > { %v12596_v15 = vadd.f32 %v12250_v50, %v3038_v1  ;;  %v1802_v13 = vpop.f32.mrf.mxu0  ;;  %v2215_v20 = vpop.f32.mrf.mxu1  ;;  %v9633_v8 = vpack.c.bf16 %v3242_v26, %v3241_v34  ;;  %10124 = vpow2.f32 %v1932_v3  ;;  %v8471_v50 = vld [vmem:[#allocation15 + $0xa4] sm:$0xf]  ;;  %v8023_v30 = vadd.f32 -1.0, %v10119_v4 }
 0x2cb   : > { %9719 = vst [vmem:[#allocation4 + $0x100] sm:$0xff] %v9553_v22   ;;  %10126 = vpow2.f32 %v2345_v63  ;;  %v2703_v12 = vmin.f32 %v12593_v2, 0.0  ;;  %v12610_v39 = vadd.f32 %v12607_v61, %v1802_v13  ;;  %v12615_v59 = vadd.f32 %v12612_v46, %v2215_v20 }
 0x2cc   : > { %9735 = vst [vmem:[#allocation4 + $0x98] sm:$0xff] %v9633_v8   ;;  %v3116_v27 = vmin.f32 %v12596_v15, 0.0  ;;  %3541 = vmatmul.bf16.gmra.mxu0 %v9052_v58  ;;  %3762 = vmatmul.bf16.gmra.mxu1 %v9052_v58  ;;  %v8472_v45 = vor.u32 %v9125_v17, %v8471_v50  ;;  %vm1845_vm4 = vcmp.gt.f32.partialorder %v12571_v43, 0.0  ;;  %v2004_v29 = vsel %vm1844_vm0, %v12545_v32, %v7959_v42  ;;  %v9053_v42 = vld [vmem:[#allocation4 + $0x150] sm:$0xff] }
 0x2cd   : > { %v2758_v54 = vmul.f32 1.442695, %v2703_v12  ;;  %3983 = vmatmul.bf16.gmra.mxu2 %v9052_v58  ;;  %v1878_v44 = vmin.f32 %v12610_v39, 0.0  ;;  %4204 = vmatmul.bf16.gmra.mxu3 %v9052_v58  ;;  %v2291_v48 = vmin.f32 %v12615_v59, 0.0  ;;  %vm2258_vm5 = vcmp.gt.f32.partialorder %v12574_v40, 0.0 }
 0x2ce   : > { %v10121_v10 = vpop.eup %10120  ;;  %v3171_v35 = vmul.f32 1.442695, %v3116_v27  ;;  %4748 = vmatpush.bf16.msra.mxu1 %v8472_v45  ;;  %v2417_v6 = vsel %vm2257_vm1, %v12548_v47, %v8023_v30  ;;  %vm2671_vm6 = vcmp.gt.f32.partialorder %v12593_v2, 0.0  ;;  %vm3084_vm7 = vcmp.gt.f32.partialorder %v12596_v15, 0.0 }
 0x2cf   : > { %v10123_v23 = vpop.eup %10122  ;;  %10128 = vpow2.f32 %v2758_v54  ;;  %v1934_v37 = vmul.f32 1.442695, %v1878_v44  ;;  %v8087_v21 = vadd.f32 -1.0, %v10121_v10  ;;  %v2347_v32 = vmul.f32 1.442695, %v2291_v48 }
 0x2d0   : > { %v2628_v60 = vpop.f32.mrf.mxu2  ;;  %v10125_v33 = vpop.eup %10124  ;;  %10130 = vpow2.f32 %v3171_v35  ;;  %v8151_v36 = vadd.f32 -1.0, %v10123_v23  ;;  %vm1846_vm8 = vcmp.gt.f32.partialorder %v12610_v39, 0.0  ;;  %vm2259_vm9 = vcmp.gt.f32.partialorder %v12615_v59, 0.0  ;;  %v8499_v23 = vld [vmem:[#allocation15 + $0x88] sm:$0xf] }
 0x2d1   : > { %v3041_v57 = vpop.f32.mrf.mxu3  ;;  %v12626_v16 = vadd.f32 %v12623_v0, %v2628_v60  ;;  %v10127_v28 = vpop.eup %10126  ;;  %v7960_v25 = vadd.f32 -1.0, %v10125_v33  ;;  %10132 = vpow2.f32 %v1934_v37  ;;  %v2830_v38 = vsel %vm2670_vm2, %v12561_v52, %v8087_v21  ;;  %v9132_v37 = vld [vmem:[#allocation15 + $0x94] sm:$0xf0] }
 0x2d2   : > { %v1804_v56 = vpop.f32.mrf.mxu0  ;;  %v2217_v55 = vpop.f32.mrf.mxu1  ;;  %v12635_v5 = vadd.f32 %v12632_v7, %v3041_v57  ;;  %v8024_v49 = vadd.f32 -1.0, %v10127_v28  ;;  %v3243_v20 = vsel %vm3083_vm3, %v12564_v53, %v8151_v36  ;;  %10134 = vpow2.f32 %v2347_v32 }
 0x2d3   : > { %v2005_v62 = vsel %vm1845_vm4, %v12571_v43, %v7960_v25  ;;  %v2704_v31 = vmin.f32 %v12626_v16, 0.0  ;;  %v12647_v3 = vadd.f32 %v12607_v61, %v1804_v56  ;;  %v12651_v1 = vadd.f32 %v12612_v46, %v2217_v55 }
 0x2d4   : > { %v9398_v18 = vpack.c.bf16 %v2005_v62, %v2004_v29  ;;  %v2418_v19 = vsel %vm2258_vm5, %v12574_v40, %v8024_v49  ;;  %v3117_v14 = vmin.f32 %v12635_v5, 0.0  ;;  %vm2672_vm10 = vcmp.gt.f32.partialorder %v12626_v16, 0.0 }
 0x2d5   : > { %v10129_v47 = vpop.eup %10128  ;;  %v9478_v63 = vpack.c.bf16 %v2418_v19, %v2417_v6  ;;  %v2760_v11 = vmul.f32 1.442695, %v2704_v31  ;;  %v1879_v13 = vmin.f32 %v12647_v3, 0.0  ;;  %v2292_v22 = vmin.f32 %v12651_v1, 0.0 }
 0x2d6   : > { %v10131_v43 = vpop.eup %10130  ;;  %9688 = vst [vmem:[#allocation4 + $0x128] sm:$0xff] %v9398_v18   ;;  %v8088_v40 = vadd.f32 -1.0, %v10129_v47  ;;  %v3173_v24 = vmul.f32 1.442695, %v3117_v14  ;;  %vm1847_vm11 = vcmp.gt.f32.partialorder %v12647_v3, 0.0  ;;  %vm2260_vm12 = vcmp.gt.f32.partialorder %v12651_v1, 0.0 }
 0x2d7   : > { %9704 = vst [vmem:[#allocation4 + $0x158] sm:$0xff] %v9478_v63   ;;  %v8152_v34 = vadd.f32 -1.0, %v10131_v43  ;;  %v1936_v9 = vmul.f32 1.442695, %v1879_v13  ;;  %v10133_v50 = vpop.eup %10132  ;;  %10136 = vpow2.f32 %v2760_v11  ;;  %v2349_v4 = vmul.f32 1.442695, %v2292_v22 }
 0x2d8   : > { %v2630_v26 = vpop.f32.mrf.mxu2  ;;  %v2831_v52 = vsel %vm2671_vm6, %v12593_v2, %v8088_v40  ;;  %v7961_v10 = vadd.f32 -1.0, %v10133_v50  ;;  %v8500_v6 = vor.u32 %v9132_v37, %v8499_v23  ;;  %vm3085_vm13 = vcmp.gt.f32.partialorder %v12635_v5, 0.0 }
 0x2d9   : > { %v3043_v58 = vpop.f32.mrf.mxu3  ;;  %v12666_v8 = vadd.f32 %v12623_v0, %v2630_v26  ;;  %v9558_v17 = vpack.c.bf16 %v2831_v52, %v2830_v38  ;;  %v3244_v53 = vsel %vm3084_vm7, %v12596_v15, %v8152_v34  ;;  %10138 = vpow2.f32 %v1936_v9  ;;  %v10135_v15 = vpop.eup %10134 }
 0x2da   : > { %v1807_v51 = vpop.f32.mrf.mxu0  ;;  %v2220_v12 = vpop.f32.mrf.mxu1  ;;  %v9638_v27 = vpack.c.bf16 %v3244_v53, %v3243_v20  ;;  %10140 = vpow2.f32 %v2349_v4  ;;  %v12673_v54 = vadd.f32 %v12632_v7, %v3043_v58  ;;  %v8025_v55 = vadd.f32 -1.0, %v10135_v15  ;;  %4970 = vmatpush.bf16.msra.mxu2 %v8500_v6  ;;  %v9140_v20 = vld [vmem:[#allocation15 + $0x98] sm:$0xf0]  ;;  %v9054_v15 = vld [vmem:[#allocation4 + $0x60] sm:$0xff] }
 0x2db   : > { %9720 = vst [vmem:[#allocation4 + $0xe0] sm:$0xff] %v9558_v17   ;;  %v2705_v2 = vmin.f32 %v12666_v8, 0.0  ;;  %v12676_v41 = vadd.f32 %v12607_v61, %v1807_v51  ;;  %v12679_v45 = vadd.f32 %v12612_v46, %v2220_v12  ;;  %10142 = vpow2.f32 %v3173_v24 }
 0x2dc   : > { %9736 = vst [vmem:[#allocation4 + $0x118] sm:$0xff] %v9638_v27   ;;  %3546 = vmatmul.bf16.gmra.mxu0 %v9053_v42  ;;  %v3118_v35 = vmin.f32 %v12673_v54, 0.0  ;;  %3767 = vmatmul.bf16.gmra.mxu1 %v9053_v42  ;;  %v2006_v36 = vsel %vm1846_vm8, %v12610_v39, %v7961_v10  ;;  %vm2673_vm14 = vcmp.gt.f32.partialorder %v12666_v8, 0.0  ;;  %v2419_v43 = vsel %vm2259_vm9, %v12615_v59, %v8025_v55 }
 0x2dd   : > { %v2762_v30 = vmul.f32 1.442695, %v2705_v2  ;;  %3988 = vmatmul.bf16.gmra.mxu2 %v9053_v42  ;;  %v1880_v44 = vmin.f32 %v12676_v41, 0.0  ;;  %4209 = vmatmul.bf16.gmra.mxu3 %v9053_v42  ;;  %v10137_v48 = vpop.eup %10136  ;;  %v2293_v57 = vmin.f32 %v12679_v45, 0.0  ;;  %vm3086_vm15 = vcmp.gt.f32.partialorder %v12673_v54, 0.0 }
 0x2de   : > { %v3175_v60 = vmul.f32 1.442695, %v3118_v35  ;;  %v8089_v32 = vadd.f32 -1.0, %v10137_v48  ;;  %v9116_v48 = vld [vmem:[#allocation15 + $0x8c] sm:$0xf0]  ;;  %vm1848_vm0 = vcmp.gt.f32.partialorder %v12676_v41, 0.0 }
 0x2df   : > { %10144 = vpow2.f32 %v2762_v30  ;;  %v10139_v56 = vpop.eup %10138  ;;  %v1938_v18 = vmul.f32 1.442695, %v1880_v44  ;;  %v2351_v63 = vmul.f32 1.442695, %v2293_v57  ;;  %v8435_v44 = vld [vmem:[#allocation15 + $0x80] sm:$0xf] }
 0x2e0   : > { %v2633_v33 = vpop.f32.mrf.mxu2  ;;  %v10141_v21 = vpop.eup %10140  ;;  %v7962_v49 = vadd.f32 -1.0, %v10139_v56  ;;  %10146 = vpow2.f32 %v3175_v60  ;;  %v8467_v60 = vld [vmem:[#allocation15 + $0x84] sm:$0xf]  ;;  %v9124_v57 = vld [vmem:[#allocation15 + $0x90] sm:$0xf0]  ;;  %v8436_v6 = vor.u32 %v9116_v48, %v8435_v44  ;;  %vm2261_vm1 = vcmp.gt.f32.partialorder %v12679_v45, 0.0 }
 0x2e1   : > { %v12690_v28 = vadd.f32 %v12623_v0, %v2633_v33  ;;  %v3046_v29 = vpop.f32.mrf.mxu3  ;;  %v8026_v31 = vadd.f32 -1.0, %v10141_v21  ;;  %v10143_v14 = vpop.eup %10142  ;;  %10148 = vpow2.f32 %v1938_v18  ;;  %v8468_v21 = vor.u32 %v9124_v57, %v8467_v60 }
 0x2e2   : > { %v1809_v25 = vpop.f32.mrf.mxu0  ;;  %v2222_v62 = vpop.f32.mrf.mxu1  ;;  %v2007_v47 = vsel %vm1847_vm11, %v12647_v3, %v7962_v49  ;;  %v12702_v39 = vadd.f32 %v12632_v7, %v3046_v29  ;;  %v8531_v3 = vld [vmem:[#allocation15 + $0x8c] sm:$0xf]  ;;  %v8153_v52 = vadd.f32 -1.0, %v10143_v14  ;;  %10150 = vpow2.f32 %v2351_v63  ;;  %4528 = vmatpush.bf16.msra.mxu0 %v8436_v6 }
 0x2e3   : > { %v2706_v19 = vmin.f32 %v12690_v28, 0.0  ;;  %v12705_v11 = vadd.f32 %v12607_v61, %v1809_v25  ;;  %v9403_v38 = vpack.c.bf16 %v2007_v47, %v2006_v36  ;;  %v2420_v40 = vsel %vm2260_vm12, %v12651_v1, %v8026_v31  ;;  %4749 = vmatpush.bf16.msra.mxu1 %v8468_v21 }
 0x2e4   : > { %v12714_v13 = vadd.f32 %v12612_v46, %v2222_v62  ;;  %v9483_v22 = vpack.c.bf16 %v2420_v40, %v2419_v43  ;;  %v3119_v58 = vmin.f32 %v12702_v39, 0.0  ;;  %v2832_v1 = vsel %vm2672_vm10, %v12626_v16, %v8089_v32 }
 0x2e5   : > { %v10145_v34 = vpop.eup %10144  ;;  %v2764_v26 = vmul.f32 1.442695, %v2706_v19  ;;  %9689 = vst [vmem:[#allocation4 + $0x1e8] sm:$0xff] %v9403_v38   ;;  %v1881_v24 = vmin.f32 %v12705_v11, 0.0  ;;  %v8532_v17 = vor.u32 %v9140_v20, %v8531_v3  ;;  %v3245_v23 = vsel %vm3085_vm13, %v12635_v5, %v8153_v52 }
 0x2e6   : > { %v8090_v59 = vadd.f32 -1.0, %v10145_v34  ;;  %v10147_v9 = vpop.eup %10146  ;;  %9705 = vst [vmem:[#allocation4 + $0x190] sm:$0xff] %v9483_v22   ;;  %v2294_v51 = vmin.f32 %v12714_v13, 0.0  ;;  %v3177_v16 = vmul.f32 1.442695, %v3119_v58  ;;  %vm2674_vm2 = vcmp.gt.f32.partialorder %v12690_v28, 0.0 }
 0x2e7   : > { %v8154_v4 = vadd.f32 -1.0, %v10147_v9  ;;  %v1940_v12 = vmul.f32 1.442695, %v1881_v24  ;;  %10152 = vpow2.f32 %v2764_v26  ;;  %5191 = vmatpush.bf16.msra.mxu3 %v8532_v17  ;;  %v10149_v56 = vpop.eup %10148  ;;  %vm1849_vm3 = vcmp.gt.f32.partialorder %v12705_v11, 0.0 }
 0x2e8   : > { %v2635_v50 = vpop.f32.mrf.mxu2  ;;  %v2833_v53 = vsel %vm2673_vm14, %v12666_v8, %v8090_v59  ;;  %v2353_v30 = vmul.f32 1.442695, %v2294_v51  ;;  %v7963_v32 = vadd.f32 -1.0, %v10149_v56  ;;  %vm2262_vm4 = vcmp.gt.f32.partialorder %v12714_v13, 0.0 }
 0x2e9   : > { %v12727_v27 = vadd.f32 %v12623_v0, %v2635_v50  ;;  %v3048_v42 = vpop.f32.mrf.mxu3  ;;  %v9563_v10 = vpack.c.bf16 %v2833_v53, %v2832_v1  ;;  %v3246_v8 = vsel %vm3086_vm15, %v12673_v54, %v8154_v4  ;;  %10154 = vpow2.f32 %v1940_v12  ;;  %v10151_v54 = vpop.eup %10150 }
 0x2ea   : > { %v1812_v2 = vpop.f32.mrf.mxu0  ;;  %v2225_v35 = vpop.f32.mrf.mxu1  ;;  %v9643_v33 = vpack.c.bf16 %v3246_v8, %v3245_v23  ;;  %10156 = vpow2.f32 %v2353_v30  ;;  %v12737_v55 = vadd.f32 %v12632_v7, %v3048_v42  ;;  %v8027_v19 = vadd.f32 -1.0, %v10151_v54 }
 0x2eb   : > { %9721 = vst [vmem:[#allocation4 + $0x1e0] sm:$0xff] %v9563_v10   ;;  %v2707_v37 = vmin.f32 %v12727_v27, 0.0  ;;  %v12740_v29 = vadd.f32 %v12607_v61, %v1812_v2  ;;  %v12743_v5 = vadd.f32 %v12612_v46, %v2225_v35  ;;  %10158 = vpow2.f32 %v3177_v16 }
 0x2ec   : > { %3551 = vmatmul.bf16.gmra.mxu0 %v9054_v15  ;;  %9737 = vst [vmem:[#allocation4 + $0x50] sm:$0xff] %v9643_v33   ;;  %3772 = vmatmul.bf16.gmra.mxu1 %v9054_v15  ;;  %v3120_v36 = vmin.f32 %v12737_v55, 0.0  ;;  %v2008_v59 = vsel %vm1848_vm0, %v12676_v41, %v7963_v32  ;;  %v2421_v51 = vsel %vm2261_vm1, %v12679_v45, %v8027_v19  ;;  %vm3087_vm5 = vcmp.gt.f32.partialorder %v12702_v39, 0.0 }
 0x2ed   : > { %v2766_v25 = vmul.f32 1.442695, %v2707_v37  ;;  %3993 = vmatmul.bf16.gmra.mxu2 %v9054_v15  ;;  %v1882_v49 = vmin.f32 %v12740_v29, 0.0  ;;  %4214 = vmatmul.bf16.gmra.mxu3 %v9054_v15  ;;  %v10153_v62 = vpop.eup %10152  ;;  %v2295_v31 = vmin.f32 %v12743_v5, 0.0  ;;  %vm2675_vm6 = vcmp.gt.f32.partialorder %v12727_v27, 0.0 }
 0x2ee   : > { %v3179_v14 = vmul.f32 1.442695, %v3120_v36  ;;  %v8091_v50 = vadd.f32 -1.0, %v10153_v62  ;;  %vm3088_vm7 = vcmp.gt.f32.partialorder %v12737_v55, 0.0  ;;  %vm1850_vm8 = vcmp.gt.f32.partialorder %v12740_v29, 0.0 }
 0x2ef   : > { %10160 = vpow2.f32 %v2766_v25  ;;  %v10155_v18 = vpop.eup %10154  ;;  %v1942_v40 = vmul.f32 1.442695, %v1882_v49  ;;  %v2355_v58 = vmul.f32 1.442695, %v2295_v31  ;;  %vm2263_vm9 = vcmp.gt.f32.partialorder %v12743_v5, 0.0 }
 0x2f0   : > { %v2638_v47 = vpop.f32.mrf.mxu2  ;;  %v10157_v43 = vpop.eup %10156  ;;  %v7964_v38 = vadd.f32 -1.0, %v10155_v18  ;;  %10162 = vpow2.f32 %v3179_v14  ;;  %v2834_v16 = vsel %vm2674_vm2, %v12690_v28, %v8091_v50 }
 0x2f1   : > { %v3051_v63 = vpop.f32.mrf.mxu3  ;;  %v12753_v3 = vadd.f32 %v12623_v0, %v2638_v47  ;;  %v8028_v26 = vadd.f32 -1.0, %v10157_v43  ;;  %v10159_v1 = vpop.eup %10158  ;;  %10164 = vpow2.f32 %v1942_v40 }
 0x2f2   : > { %v12756_v20 = vadd.f32 %v12632_v7, %v3051_v63  ;;  %v1814_v34 = vpop.f32.mrf.mxu0  ;;  %v2227_v22 = vpop.f32.mrf.mxu1  ;;  %v2009_v24 = vsel %vm1849_vm3, %v12705_v11, %v7964_v38  ;;  %10166 = vpow2.f32 %v2355_v58  ;;  %v8155_v45 = vadd.f32 -1.0, %v10159_v1 }
 0x2f3   : > { %v12759_v52 = vadd.f32 %v12607_v61, %v1814_v34  ;;  %v2708_v9 = vmin.f32 %v12753_v3, 0.0  ;;  %v9408_v17 = vpack.c.bf16 %v2009_v24, %v2008_v59  ;;  %v2422_v53 = vsel %vm2262_vm4, %v12714_v13, %v8028_v26 }
 0x2f4   : > { %v9488_v12 = vpack.c.bf16 %v2422_v53, %v2421_v51  ;;  %v3121_v42 = vmin.f32 %v12756_v20, 0.0  ;;  %v12776_v15 = vadd.f32 %v12612_v46, %v2227_v22  ;;  %v3247_v25 = vsel %vm3087_vm5, %v12702_v39, %v8155_v45 }
 0x2f5   : > { %v10161_v4 = vpop.eup %10160  ;;  %v2768_v41 = vmul.f32 1.442695, %v2708_v9  ;;  %9690 = vst [vmem:[#allocation4 + $0x68] sm:$0xff] %v9408_v17   ;;  %v1883_v2 = vmin.f32 %v12759_v52, 0.0  ;;  %vm2676_vm10 = vcmp.gt.f32.partialorder %v12753_v3, 0.0  ;;  %vm1851_vm11 = vcmp.gt.f32.partialorder %v12759_v52, 0.0 }
 0x2f6   : > { %v8092_v11 = vadd.f32 -1.0, %v10161_v4  ;;  %9706 = vst [vmem:[#allocation4 + $0x1a0] sm:$0xff] %v9488_v12   ;;  %v3181_v13 = vmul.f32 1.442695, %v3121_v42  ;;  %v10163_v10 = vpop.eup %10162  ;;  %v2296_v44 = vmin.f32 %v12776_v15, 0.0  ;;  %vm2264_vm12 = vcmp.gt.f32.partialorder %v12776_v15, 0.0 }
 0x2f7   : > { %v1944_v35 = vmul.f32 1.442695, %v1883_v2  ;;  %v8156_v60 = vadd.f32 -1.0, %v10163_v10  ;;  %10168 = vpow2.f32 %v2768_v41  ;;  %v10165_v54 = vpop.eup %10164  ;;  %vm3089_vm14 = vcmp.gt.f32.partialorder %v12756_v20, 0.0  ;;  %v8495_v17 = vld [vmem:[#allocation15 + $0x68] sm:$0xf] }
 0x2f8   : > { %v2835_v30 = vsel %vm2675_vm6, %v12727_v27, %v8092_v11  ;;  %v2640_v23 = vpop.f32.mrf.mxu2  ;;  %v2357_v56 = vmul.f32 1.442695, %v2296_v44  ;;  %v9055_v27 = vld [vmem:[#allocation4 + $0x1f8] sm:$0xff]  ;;  %v10167_v36 = vpop.eup %10166  ;;  %v7965_v39 = vadd.f32 -1.0, %v10165_v54  ;;  %v9131_v41 = vld [vmem:[#allocation15 + $0x74] sm:$0xf0] }
 0x2f9   : > { %v3053_v8 = vpop.f32.mrf.mxu3  ;;  %v9568_v48 = vpack.c.bf16 %v2835_v30, %v2834_v16  ;;  %v12786_v57 = vadd.f32 %v12623_v0, %v2640_v23  ;;  %10170 = vpow2.f32 %v1944_v35  ;;  %v3248_v6 = vsel %vm3088_vm7, %v12737_v55, %v8156_v60  ;;  %v8527_v42 = vld [vmem:[#allocation15 + $0x6c] sm:$0xf] }
 0x2fa   : > { %v1817_v33 = vpop.f32.mrf.mxu0  ;;  %v2230_v37 = vpop.f32.mrf.mxu1  ;;  %v12790_v28 = vadd.f32 %v12632_v7, %v3053_v8  ;;  %10172 = vpow2.f32 %v3181_v13  ;;  %v9648_v49 = vpack.c.bf16 %v3248_v6, %v3247_v25  ;;  %v8029_v19 = vadd.f32 -1.0, %v10167_v36  ;;  %v9139_v13 = vld [vmem:[#allocation15 + $0x78] sm:$0xf0] }
 0x2fb   : > { %9722 = vst [vmem:[#allocation4 + $0x1d0] sm:$0xff] %v9568_v48   ;;  %v2709_v21 = vmin.f32 %v12786_v57, 0.0  ;;  %10174 = vpow2.f32 %v2357_v56  ;;  %v12799_v31 = vadd.f32 %v12607_v61, %v1817_v33  ;;  %v12804_v55 = vadd.f32 %v12612_v46, %v2230_v37 }
 0x2fc   : > { %3556 = vmatmul.bf16.gmra.mxu0 %v9055_v27  ;;  %v3122_v32 = vmin.f32 %v12790_v28, 0.0  ;;  %3777 = vmatmul.bf16.gmra.mxu1 %v9055_v27  ;;  %9738 = vst [vmem:[#allocation4 + $0xb8] sm:$0xff] %v9648_v49   ;;  %vm2677_vm13 = vcmp.gt.f32.partialorder %v12786_v57, 0.0  ;;  %v2010_v1 = vsel %vm1850_vm8, %v12740_v29, %v7965_v39  ;;  %vm3090_vm15 = vcmp.gt.f32.partialorder %v12790_v28, 0.0 }
 0x2fd   : > { %v2770_v62 = vmul.f32 1.442695, %v2709_v21  ;;  %3998 = vmatmul.bf16.gmra.mxu2 %v9055_v27  ;;  %4219 = vmatmul.bf16.gmra.mxu3 %v9055_v27  ;;  %v10169_v18 = vpop.eup %10168  ;;  %v1884_v47 = vmin.f32 %v12799_v31, 0.0  ;;  %v2297_v43 = vmin.f32 %v12804_v55, 0.0  ;;  %v2423_v53 = vsel %vm2263_vm9, %v12743_v5, %v8029_v19  ;;  %v12858_v21 = vld [vmem:[#allocation16] ss:$0 sm:$0xff] }
 0x2fe   : > { %v3183_v14 = vmul.f32 1.442695, %v3122_v32  ;;  %v8093_v4 = vadd.f32 -1.0, %v10169_v18  ;;  %v8496_v33 = vor.u32 %v9131_v41, %v8495_v17  ;;  %v8528_v37 = vor.u32 %v9139_v13, %v8527_v42  ;;  %v8431_v18 = vld [vmem:[#allocation15 + $0x60] sm:$0xf] }
 0x2ff   : > { %10176 = vpow2.f32 %v2770_v62  ;;  %v10171_v63 = vpop.eup %10170  ;;  %v1946_v26 = vmul.f32 1.442695, %v1884_v47  ;;  %v2359_v45 = vmul.f32 1.442695, %v2297_v43  ;;  %v9056_v62 = vld [vmem:[#allocation4 + $0x20] sm:$0xff]  ;;  %vm1852_vm0 = vcmp.gt.f32.partialorder %v12799_v31, 0.0 }
 0x300   : > { %v2643_v38 = vpop.f32.mrf.mxu2  ;;  %v10173_v34 = vpop.eup %10172  ;;  %v7966_v22 = vadd.f32 -1.0, %v10171_v63  ;;  %10178 = vpow2.f32 %v3183_v14  ;;  %4971 = vmatpush.bf16.msra.mxu2 %v8496_v33  ;;  %5192 = vmatpush.bf16.msra.mxu3 %v8528_v37  ;;  %v9115_v19 = vld [vmem:[#allocation15 + $0x6c] sm:$0xf0]  ;;  %v8463_v14 = vld [vmem:[#allocation15 + $0x64] sm:$0xf]  ;;  %vm2265_vm1 = vcmp.gt.f32.partialorder %v12804_v55, 0.0 }
 0x301   : > { %v3056_v40 = vpop.f32.mrf.mxu3  ;;  %v12814_v58 = vadd.f32 %v12623_v0, %v2643_v38  ;;  %v10175_v9 = vpop.eup %10174  ;;  %v8157_v11 = vadd.f32 -1.0, %v10173_v34  ;;  %10180 = vpow2.f32 %v1946_v26  ;;  %v9123_v38 = vld [vmem:[#allocation15 + $0x70] sm:$0xf0]  ;;  %v12881_v34 = vld [vmem:[#allocation16 + $0x2] ss:$0 sm:$0xff] }
 0x302   : > { %v1819_v59 = vpop.f32.mrf.mxu0  ;;  %v2232_v24 = vpop.f32.mrf.mxu1  ;;  %v12821_v51 = vadd.f32 %v12632_v7, %v3056_v40  ;;  %v2011_v12 = vsel %vm1851_vm11, %v12759_v52, %v7966_v22  ;;  %v8030_v29 = vadd.f32 -1.0, %v10175_v9  ;;  %10182 = vpow2.f32 %v2359_v45  ;;  %v9130_v33 = vld [vmem:[#allocation15 + $0x54] sm:$0xf0]  ;;  %v8523_v37 = vld [vmem:[#allocation15 + $0x4c] sm:$0xf] }
 0x303   : > { %v12824_v50 = vadd.f32 %v12607_v61, %v1819_v59  ;;  %v9413_v2 = vpack.c.bf16 %v2011_v12, %v2010_v1  ;;  %v2710_v61 = vmin.f32 %v12814_v58, 0.0  ;;  %v12840_v23 = vadd.f32 %v12612_v46, %v2232_v24  ;;  %v12883_v24 = vld [vmem:[#allocation16 + $0x3] ss:$0 sm:$0xff] }
 0x304   : > { %v2424_v5 = vsel %vm2264_vm12, %v12776_v15, %v8030_v29  ;;  %v3123_v16 = vmin.f32 %v12821_v51, 0.0  ;;  %v2836_v15 = vsel %vm2676_vm10, %v12753_v3, %v8093_v4  ;;  %v3249_v32 = vsel %vm3089_vm14, %v12756_v20, %v8157_v11 }
 0x305   : > { %v10177_v10 = vpop.eup %10176  ;;  %v1885_v30 = vmin.f32 %v12824_v50, 0.0  ;;  %9691 = vst [vmem:[#allocation4 + $0x58] sm:$0xff] %v9413_v2   ;;  %v9493_v52 = vpack.c.bf16 %v2424_v5, %v2423_v53  ;;  %v2772_v44 = vmul.f32 1.442695, %v2710_v61  ;;  %v2298_v6 = vmin.f32 %v12840_v23, 0.0 }
 0x306   : > { %v8094_v35 = vadd.f32 -1.0, %v10177_v10  ;;  %v10179_v8 = vpop.eup %10178  ;;  %v3185_v48 = vmul.f32 1.442695, %v3123_v16  ;;  %v8432_v9 = vor.u32 %v9115_v19, %v8431_v18  ;;  %v8464_v1 = vor.u32 %v9123_v38, %v8463_v14 }
 0x307   : > { %v1948_v60 = vmul.f32 1.442695, %v1885_v30  ;;  %9707 = vst [vmem:[#allocation4 + $0x168] sm:$0xff] %v9493_v52   ;;  %v8158_v27 = vadd.f32 -1.0, %v10179_v8  ;;  %10184 = vpow2.f32 %v2772_v44  ;;  %v10181_v47 = vpop.eup %10180  ;;  %v2361_v43 = vmul.f32 1.442695, %v2298_v6 }
 0x308   : > { %v2837_v56 = vsel %vm2677_vm13, %v12786_v57, %v8094_v35  ;;  %v2645_v54 = vpop.f32.mrf.mxu2  ;;  %v12860_v57 = vld [vmem:[#allocation16 + $0x1] ss:$0 sm:$0xff]  ;;  %v10183_v22 = vpop.eup %10182  ;;  %v7967_v53 = vadd.f32 -1.0, %v10181_v47  ;;  %vm2678_vm2 = vcmp.gt.f32.partialorder %v12814_v58, 0.0  ;;  %vm3091_vm3 = vcmp.gt.f32.partialorder %v12821_v51, 0.0  ;;  %4529 = vmatpush.bf16.msra.mxu0 %v8432_v9  ;;  %4750 = vmatpush.bf16.msra.mxu1 %v8464_v1 }
 0x309   : > { %v3058_v25 = vpop.f32.mrf.mxu3  ;;  %v9573_v46 = vpack.c.bf16 %v2837_v56, %v2836_v15  ;;  %v12856_v3 = vadd.f32 %v12623_v0, %v2645_v54  ;;  %v3250_v39 = vsel %vm3090_vm15, %v12790_v28, %v8158_v27  ;;  %10186 = vpow2.f32 %v1948_v60  ;;  %v9138_v54 = vld [vmem:[#allocation15 + $0x58] sm:$0xf0]  ;;  %v8459_v9 = vld [vmem:[#allocation15 + $0x44] sm:$0xf]  ;;  %v9122_v1 = vld [vmem:[#allocation15 + $0x50] sm:$0xf0] }
 0x30a   : > { %v3522_v36 = vpop.f32.mrf.mxu0  ;;  %v3743_v49 = vpop.f32.mrf.mxu1  ;;  %v12869_v0 = vadd.f32 %v12632_v7, %v3058_v25  ;;  %v9653_v63 = vpack.c.bf16 %v3250_v39, %v3249_v32  ;;  %10188 = vpow2.f32 %v3185_v48  ;;  %vm1853_vm4 = vcmp.gt.f32.partialorder %v12824_v50, 0.0 }
 0x30b   : > { %9723 = vst [vmem:[#allocation4 + $0x1b8] sm:$0xff] %v9573_v46   ;;  %v2711_v20 = vmin.f32 %v12856_v3, 0.0  ;;  %10190 = vpow2.f32 %v2361_v43  ;;  %v3523_v7 = vadd.f32 %v12858_v21, %v3522_v36  ;;  %v3744_v28 = vadd.f32 %v12860_v57, %v3743_v49 }
 0x30c   : > { %v3124_v40 = vmin.f32 %v12869_v0, 0.0  ;;  %3561 = vmatmul.bf16.gmra.mxu0 %v9056_v62  ;;  %9739 = vst [vmem:[#allocation4 + $0xd8] sm:$0xff] %v9653_v63   ;;  %3782 = vmatmul.bf16.gmra.mxu1 %v9056_v62  ;;  %vm2266_vm5 = vcmp.gt.f32.partialorder %v12840_v23, 0.0  ;;  %v8031_v61 = vadd.f32 -1.0, %v10183_v22  ;;  %v2012_v16 = vsel %vm1852_vm0, %v12799_v31, %v7967_v53  ;;  %v8491_v31 = vld [vmem:[#allocation15 + $0x48] sm:$0xf] }
 0x30d   : > { %v2774_v26 = vmul.f32 1.442695, %v2711_v20  ;;  %4003 = vmatmul.bf16.gmra.mxu2 %v9056_v62  ;;  %4224 = vmatmul.bf16.gmra.mxu3 %v9056_v62  ;;  %v10185_v17 = vpop.eup %10184  ;;  %10192 = vtanh.f32 %v3523_v7  ;;  %v8492_v27 = vor.u32 %v9130_v33, %v8491_v31  ;;  %v8524_v36 = vor.u32 %v9138_v54, %v8523_v37  ;;  %v9058_v33 = vld [vmem:[#allocation4 + $0x28] sm:$0xff] }
 0x30e   : > { %v3187_v59 = vmul.f32 1.442695, %v3124_v40  ;;  %v8095_v35 = vadd.f32 -1.0, %v10185_v17  ;;  %vm2679_vm6 = vcmp.gt.f32.partialorder %v12856_v3, 0.0  ;;  %vm3092_vm7 = vcmp.gt.f32.partialorder %v12869_v0, 0.0  ;;  %v9057_v40 = vld [vmem:[#allocation4 + $0xa0] sm:$0xff] }
 0x30f   : > { %v10187_v4 = vpop.eup %10186  ;;  %10194 = vpow2.f32 %v2774_v26  ;;  %4972 = vmatpush.bf16.msra.mxu2 %v8492_v27  ;;  %5193 = vmatpush.bf16.msra.mxu3 %v8524_v36  ;;  %v9114_v26 = vld [vmem:[#allocation15 + $0x4c] sm:$0xf0]  ;;  %v8460_v17 = vor.u32 %v9122_v1, %v8459_v9 }
 0x310   : > { %v3964_v12 = vpop.f32.mrf.mxu2  ;;  %v10189_v41 = vpop.eup %10188  ;;  %v7968_v42 = vadd.f32 -1.0, %v10187_v4  ;;  %10196 = vpow2.f32 %v3187_v59  ;;  %v2838_v62 = vsel %vm2678_vm2, %v12814_v58, %v8095_v35  ;;  %v9113_v9 = vld [vmem:[#allocation15 + $0x2c] sm:$0xf0] }
 0x311   : > { %v4185_v29 = vpop.f32.mrf.mxu3  ;;  %v3965_v11 = vadd.f32 %v12881_v34, %v3964_v12  ;;  %10198 = vtanh.f32 %v3744_v28  ;;  %v10191_v5 = vpop.eup %10190  ;;  %v8159_v44 = vadd.f32 -1.0, %v10189_v41  ;;  %4751 = vmatpush.bf16.msra.mxu1 %v8460_v17  ;;  %v8455_v17 = vld [vmem:[#allocation15 + $0x24] sm:$0xf] }
 0x312   : > { %v3524_v2 = vpop.f32.mrf.mxu0  ;;  %v3745_v45 = vpop.f32.mrf.mxu1  ;;  %v4186_v13 = vadd.f32 %v12883_v24, %v4185_v29  ;;  %v2013_v30 = vsel %vm1853_vm4, %v12824_v50, %v7968_v42  ;;  %v8032_v48 = vadd.f32 -1.0, %v10191_v5  ;;  %v2425_v50 = vsel %vm2265_vm1, %v12804_v55, %v8031_v61 }
 0x313   : > { %v3525_v10 = vadd.f32 %v12858_v21, %v3524_v2  ;;  %10200 = vtanh.f32 %v3965_v11  ;;  %v3746_v52 = vadd.f32 %v12860_v57, %v3745_v45  ;;  %v9418_v8 = vpack.c.bf16 %v2013_v30, %v2012_v16  ;;  %v10193_v60 = vpop.eup %10192 }
 0x314   : > { %10202 = vtanh.f32 %v4186_v13  ;;  %v2426_v56 = vsel %vm2266_vm5, %v12840_v23, %v8032_v48  ;;  %3634 = vst [vmem:[%s12905_s29] sm:$0xff] %v10193_v60  ;;  %v3251_v55 = vsel %vm3091_vm3, %v12821_v51, %v8159_v44 }
 0x315   : > { %v10195_v15 = vpop.eup %10194  ;;  %9692 = vst [vmem:[#allocation4 + $0xc0] sm:$0xff] %v9418_v8   ;;  %10204 = vtanh.f32 %v3525_v10  ;;  %v9498_v46 = vpack.c.bf16 %v2426_v56, %v2425_v50 }
 0x316   : > { %v10197_v25 = vpop.eup %10196  ;;  %v8096_v6 = vadd.f32 -1.0, %v10195_v15  ;;  %10206 = vtanh.f32 %v3746_v52 }
 0x317   : > { %v10199_v49 = vpop.eup %10198  ;;  %v8160_v23 = vadd.f32 -1.0, %v10197_v25  ;;  %9708 = vst [vmem:[#allocation4 + $0x78] sm:$0xff] %v9498_v46  }
 0x318   : > { %v3966_v32 = vpop.f32.mrf.mxu2  ;;  %v2839_v19 = vsel %vm2679_vm6, %v12856_v3, %v8096_v6  ;;  %3855 = vst [vmem:[%s12905_s29 + $0x400] sm:$0xff] %v10199_v49 }
 0x319   : > { %v4187_v39 = vpop.f32.mrf.mxu3  ;;  %v10201_v18 = vpop.eup %10200  ;;  %v3967_v58 = vadd.f32 %v12881_v34, %v3966_v32  ;;  %v9578_v63 = vpack.c.bf16 %v2839_v19, %v2838_v62  ;;  %v3252_v43 = vsel %vm3092_vm7, %v12869_v0, %v8160_v23  ;;  %v8427_v0 = vld [vmem:[#allocation15 + $0x40] sm:$0xf]  ;;  %v8487_v32 = vld [vmem:[#allocation15 + $0x28] sm:$0xf]  ;;  %v8519_v19 = vld [vmem:[#allocation15 + $0x2c] sm:$0xf] }
 0x31a   : > { %v4188_v14 = vadd.f32 %v12883_v24, %v4187_v39  ;;  %v3527_v47 = vpop.f32.mrf.mxu0  ;;  %v3748_v51 = vpop.f32.mrf.mxu1  ;;  %v9658_v7 = vpack.c.bf16 %v3252_v43, %v3251_v55  ;;  %4076 = vst [vmem:[%s12905_s29 + $0x800] sm:$0xff] %v10201_v18  ;;  %v8428_v59 = vor.u32 %v9114_v26, %v8427_v0  ;;  %v9129_v39 = vld [vmem:[#allocation15 + $0x34] sm:$0xf0] }
 0x31b   : > { %v3528_v38 = vadd.f32 %v12858_v21, %v3527_v47  ;;  %v3749_v20 = vadd.f32 %v12860_v57, %v3748_v51  ;;  %v10203_v3 = vpop.eup %10202  ;;  %10208 = vtanh.f32 %v3967_v58  ;;  %9724 = vst [vmem:[#allocation4 + $0x1d8] sm:$0xff] %v9578_v63   ;;  %v8488_v18 = vor.u32 %v9129_v39, %v8487_v32  ;;  %v9137_v58 = vld [vmem:[#allocation15 + $0x38] sm:$0xf0] }
 0x31c   : > { %v10205_v28 = vpop.eup %10204  ;;  %10210 = vtanh.f32 %v4188_v14  ;;  %3566 = vmatmul.bf16.gmra.mxu0 %v9057_v40  ;;  %9740 = vst [vmem:[#allocation4 + $0xc8] sm:$0xff] %v9658_v7   ;;  %3787 = vmatmul.bf16.gmra.mxu1 %v9057_v40  ;;  %v8520_v14 = vor.u32 %v9137_v58, %v8519_v19  ;;  %v9128_v19 = vld [vmem:[#allocation15 + $0x14] sm:$0xf0] }
 0x31d   : > { %v10207_v22 = vpop.eup %10206  ;;  %10212 = vtanh.f32 %v3528_v38  ;;  %4297 = vst [vmem:[%s12905_s29 + $0xc00] sm:$0xff] %v10203_v3  ;;  %4008 = vmatmul.bf16.gmra.mxu2 %v9057_v40  ;;  %4229 = vmatmul.bf16.gmra.mxu3 %v9057_v40 }
 0x31e   : > { %10214 = vtanh.f32 %v3749_v20  ;;  %3635 = vst [vmem:[%s12905_s29 + $0x8] sm:$0xff] %v10205_v28  ;;  %4530 = vmatpush.bf16.msra.mxu0 %v8428_v59  ;;  %4973 = vmatpush.bf16.msra.mxu2 %v8488_v18  ;;  %v9059_v28 = vld [vmem:[#allocation4 + $0x128] sm:$0xff]  ;;  %v8483_v18 = vld [vmem:[#allocation15 + $0x8] sm:$0xf] }
 0x31f   : > { %3856 = vst [vmem:[%s12905_s29 + $0x408] sm:$0xff] %v10207_v22  ;;  %5194 = vmatpush.bf16.msra.mxu3 %v8520_v14  ;;  %v8423_v59 = vld [vmem:[#allocation15 + $0x20] sm:$0xf]  ;;  %v8484_v58 = vor.u32 %v9128_v19, %v8483_v18  ;;  %v8515_v14 = vld [vmem:[#allocation15 + $0xc] sm:$0xf] }
 0x320   : > { %v3969_v53 = vpop.f32.mrf.mxu2  ;;  %v8424_v1 = vor.u32 %v9113_v9, %v8423_v59 }
 0x321   : > { %v4190_v4 = vpop.f32.mrf.mxu3  ;;  %v10209_v12 = vpop.eup %10208  ;;  %v3970_v29 = vadd.f32 %v12881_v34, %v3969_v53  ;;  %v9121_v53 = vld [vmem:[#allocation15 + $0x30] sm:$0xf0] }
 0x322   : > { %v4191_v41 = vadd.f32 %v12883_v24, %v4190_v4  ;;  %v3529_v42 = vpop.f32.mrf.mxu0  ;;  %v3750_v11 = vpop.f32.mrf.mxu1  ;;  %4077 = vst [vmem:[%s12905_s29 + $0x808] sm:$0xff] %v10209_v12  ;;  %v8456_v4 = vor.u32 %v9121_v53, %v8455_v17  ;;  %4531 = vmatpush.bf16.msra.mxu0 %v8424_v1  ;;  %4974 = vmatpush.bf16.msra.mxu2 %v8484_v58  ;;  %v8419_v1 = vld [vmem:[#allocation15] sm:$0xf]  ;;  %v9112_v17 = vld [vmem:[#allocation15 + $0xc] sm:$0xf0] }
 0x323   : > { %v10211_v2 = vpop.eup %10210  ;;  %v3530_v45 = vadd.f32 %v12858_v21, %v3529_v42  ;;  %v3751_v61 = vadd.f32 %v12860_v57, %v3750_v11  ;;  %10216 = vtanh.f32 %v3970_v29  ;;  %v8420_v53 = vor.u32 %v9112_v17, %v8419_v1  ;;  %v8703_v58 = vld [vmem:[#allocation15 + $0xe8] sm:$0xf] }
 0x324   : > { %v10213_v13 = vpop.eup %10212  ;;  %4298 = vst [vmem:[%s12905_s29 + $0xc08] sm:$0xff] %v10211_v2  ;;  %10218 = vtanh.f32 %v4191_v41  ;;  %4752 = vmatpush.bf16.msra.mxu1 %v8456_v4  ;;  %v8451_v4 = vld [vmem:[#allocation15 + $0x4] sm:$0xf] }
 0x325   : > { %v10215_v10 = vpop.eup %10214  ;;  %3636 = vst [vmem:[%s12905_s29 + $0x10] sm:$0xff] %v10213_v13  ;;  %10220 = vtanh.f32 %v3530_v45 }
 0x326   : > { %3857 = vst [vmem:[%s12905_s29 + $0x410] sm:$0xff] %v10215_v10  ;;  %10222 = vtanh.f32 %v3751_v61  ;;  %4532 = vmatpush.bf16.msra.mxu0 %v8420_v53  ;;  %v8639_v53 = vld [vmem:[#allocation15 + $0xe0] sm:$0xf] }
 0x328   : > { %v3971_v5 = vpop.f32.mrf.mxu2 }
 0x329   : > { %v4192_v16 = vpop.f32.mrf.mxu3  ;;  %v10217_v30 = vpop.eup %10216  ;;  %v3972_v52 = vadd.f32 %v12881_v34, %v3971_v5 }
 0x32a   : > { %v4193_v35 = vadd.f32 %v12883_v24, %v4192_v16  ;;  %v3532_v44 = vpop.f32.mrf.mxu0  ;;  %v3753_v8 = vpop.f32.mrf.mxu1  ;;  %4078 = vst [vmem:[%s12905_s29 + $0x810] sm:$0xff] %v10217_v30 }
 0x32b   : > { %v10219_v48 = vpop.eup %10218  ;;  %v3533_v60 = vadd.f32 %v12858_v21, %v3532_v44  ;;  %v3754_v31 = vadd.f32 %v12860_v57, %v3753_v8  ;;  %10224 = vtanh.f32 %v3972_v52 }
 0x32c   : > { %v10221_v37 = vpop.eup %10220  ;;  %4299 = vst [vmem:[%s12905_s29 + $0xc10] sm:$0xff] %v10219_v48  ;;  %10226 = vtanh.f32 %v4193_v35  ;;  %3571 = vmatmul.bf16.gmra.mxu0 %v9058_v33  ;;  %3792 = vmatmul.bf16.gmra.mxu1 %v9058_v33 }
 0x32d   : > { %v10223_v15 = vpop.eup %10222  ;;  %3637 = vst [vmem:[%s12905_s29 + $0x18] sm:$0xff] %v10221_v37  ;;  %10228 = vtanh.f32 %v3533_v60  ;;  %4013 = vmatmul.bf16.gmra.mxu2 %v9058_v33  ;;  %4234 = vmatmul.bf16.gmra.mxu3 %v9058_v33  ;;  %v9060_v37 = vld [vmem:[#allocation4 + $0x1e8] sm:$0xff] }
 0x32e   : > { %3858 = vst [vmem:[%s12905_s29 + $0x418] sm:$0xff] %v10223_v15  ;;  %10230 = vtanh.f32 %v3754_v31 }
 0x330   : > { %v3974_v50 = vpop.f32.mrf.mxu2 }
 0x331   : > { %v4195_v56 = vpop.f32.mrf.mxu3  ;;  %v10225_v27 = vpop.eup %10224  ;;  %v3975_v54 = vadd.f32 %v12881_v34, %v3974_v50 }
 0x332   : > { %v4196_v25 = vadd.f32 %v12883_v24, %v4195_v56  ;;  %v3534_v46 = vpop.f32.mrf.mxu0  ;;  %v3755_v6 = vpop.f32.mrf.mxu1  ;;  %4079 = vst [vmem:[%s12905_s29 + $0x818] sm:$0xff] %v10225_v27 }
 0x333   : > { %v10227_v36 = vpop.eup %10226  ;;  %v3535_v49 = vadd.f32 %v12858_v21, %v3534_v46  ;;  %v3756_v62 = vadd.f32 %v12860_v57, %v3755_v6  ;;  %10232 = vtanh.f32 %v3975_v54 }
 0x334   : > { %v10229_v55 = vpop.eup %10228  ;;  %4300 = vst [vmem:[%s12905_s29 + $0xc18] sm:$0xff] %v10227_v36  ;;  %10234 = vtanh.f32 %v4196_v25 }
 0x335   : > { %v10231_v23 = vpop.eup %10230  ;;  %3638 = vst [vmem:[%s12905_s29 + $0x20] sm:$0xff] %v10229_v55  ;;  %10236 = vtanh.f32 %v3535_v49 }
 0x336   : > { %3859 = vst [vmem:[%s12905_s29 + $0x420] sm:$0xff] %v10231_v23  ;;  %10238 = vtanh.f32 %v3756_v62 }
 0x338   : > { %v3976_v47 = vpop.f32.mrf.mxu2 }
 0x339   : > { %v4197_v51 = vpop.f32.mrf.mxu3  ;;  %v10233_v63 = vpop.eup %10232  ;;  %v3977_v43 = vadd.f32 %v12881_v34, %v3976_v47  ;;  %v9136_v47 = vld [vmem:[#allocation15 + $0x18] sm:$0xf0] }
 0x33a   : > { %v4198_v38 = vadd.f32 %v12883_v24, %v4197_v51  ;;  %v3537_v20 = vpop.f32.mrf.mxu0  ;;  %v10235_v40 = vpop.eup %10234  ;;  %4080 = vst [vmem:[%s12905_s29 + $0x820] sm:$0xff] %v10233_v63  ;;  %v8516_v51 = vor.u32 %v9136_v47, %v8515_v14  ;;  %v9183_v14 = vld [vmem:[#allocation15 + $0xf4] sm:$0xf0] }
 0x33b   : > { %v3538_v3 = vadd.f32 %v12858_v21, %v3537_v20  ;;  %v3758_v7 = vpop.f32.mrf.mxu1  ;;  %v10237_v22 = vpop.eup %10236  ;;  %4301 = vst [vmem:[%s12905_s29 + $0xc20] sm:$0xff] %v10235_v40  ;;  %10240 = vtanh.f32 %v3977_v43  ;;  %v8704_v47 = vor.u32 %v9183_v14, %v8703_v58 }
 0x33c   : > { %v3759_v0 = vadd.f32 %v12860_v57, %v3758_v7  ;;  %v10239_v26 = vpop.eup %10238  ;;  %3639 = vst [vmem:[%s12905_s29 + $0x28] sm:$0xff] %v10237_v22  ;;  %10242 = vtanh.f32 %v4198_v38  ;;  %3576 = vmatmul.bf16.gmra.mxu0 %v9059_v28  ;;  %3797 = vmatmul.bf16.gmra.mxu1 %v9059_v28 }
 0x33d   : > { %3860 = vst [vmem:[%s12905_s29 + $0x428] sm:$0xff] %v10239_v26  ;;  %10244 = vtanh.f32 %v3538_v3  ;;  %4018 = vmatmul.bf16.gmra.mxu2 %v9059_v28  ;;  %4239 = vmatmul.bf16.gmra.mxu3 %v9059_v28 }
 0x33e   : > { %10246 = vtanh.f32 %v3759_v0  ;;  %5195 = vmatpush.bf16.msra.mxu3 %v8516_v51  ;;  %v9061_v0 = vld [vmem:[#allocation4 + $0x68] sm:$0xff]  ;;  %v8735_v51 = vld [vmem:[#allocation15 + $0xec] sm:$0xf]  ;;  %5979 = vmatpush.bf16.msrb.mxu2 %v8704_v47  ;;  %v8699_v47 = vld [vmem:[#allocation15 + $0xc8] sm:$0xf] }
 0x340   : > { %v3979_v12 = vpop.f32.mrf.mxu2 }
 0x341   : > { %v10241_v29 = vpop.eup %10240  ;;  %v3980_v41 = vadd.f32 %v12881_v34, %v3979_v12  ;;  %v4200_v42 = vpop.f32.mrf.mxu3  ;;  %v9120_v12 = vld [vmem:[#allocation15 + $0x10] sm:$0xf0] }
 0x342   : > { %v3539_v11 = vpop.f32.mrf.mxu0  ;;  %v10243_v2 = vpop.eup %10242  ;;  %4081 = vst [vmem:[%s12905_s29 + $0x828] sm:$0xff] %v10241_v29  ;;  %v4201_v45 = vadd.f32 %v12883_v24, %v4200_v42  ;;  %v8452_v29 = vor.u32 %v9120_v12, %v8451_v4  ;;  %v9167_v4 = vld [vmem:[#allocation15 + $0xec] sm:$0xf0]  ;;  %v8671_v12 = vld [vmem:[#allocation15 + $0xe4] sm:$0xf] }
 0x343   : > { %v3540_v61 = vadd.f32 %v12858_v21, %v3539_v11  ;;  %v3760_v13 = vpop.f32.mrf.mxu1  ;;  %v10245_v10 = vpop.eup %10244  ;;  %4302 = vst [vmem:[%s12905_s29 + $0xc28] sm:$0xff] %v10243_v2  ;;  %10248 = vtanh.f32 %v3980_v41 }
 0x344   : > { %v3761_v5 = vadd.f32 %v12860_v57, %v3760_v13  ;;  %v10247_v16 = vpop.eup %10246  ;;  %3640 = vst [vmem:[%s12905_s29 + $0x30] sm:$0xff] %v10245_v10  ;;  %10250 = vtanh.f32 %v4201_v45  ;;  %4753 = vmatpush.bf16.msra.mxu1 %v8452_v29  ;;  %v8640_v29 = vor.u32 %v9167_v4, %v8639_v53 }
 0x345   : > { %3861 = vst [vmem:[%s12905_s29 + $0x430] sm:$0xff] %v10247_v16  ;;  %10252 = vtanh.f32 %v3540_v61 }
 0x346   : > { %10254 = vtanh.f32 %v3761_v5  ;;  %5537 = vmatpush.bf16.msrb.mxu0 %v8640_v29  ;;  %v8667_v29 = vld [vmem:[#allocation15 + $0xc4] sm:$0xf] }
 0x348   : > { %v3981_v30 = vpop.f32.mrf.mxu2 }
 0x349   : > { %v10249_v52 = vpop.eup %10248  ;;  %v3982_v35 = vadd.f32 %v12881_v34, %v3981_v30  ;;  %v4202_v44 = vpop.f32.mrf.mxu3 }
 0x34a   : > { %v3542_v8 = vpop.f32.mrf.mxu0  ;;  %v10251_v48 = vpop.eup %10250  ;;  %4082 = vst [vmem:[%s12905_s29 + $0x830] sm:$0xff] %v10249_v52  ;;  %v4203_v60 = vadd.f32 %v12883_v24, %v4202_v44 }
 0x34b   : > { %v3543_v31 = vadd.f32 %v12858_v21, %v3542_v8  ;;  %v3763_v33 = vpop.f32.mrf.mxu1  ;;  %v10253_v15 = vpop.eup %10252  ;;  %4303 = vst [vmem:[%s12905_s29 + $0xc30] sm:$0xff] %v10251_v48  ;;  %10256 = vtanh.f32 %v3982_v35 }
 0x34c   : > { %v3764_v50 = vadd.f32 %v12860_v57, %v3763_v33  ;;  %v10255_v56 = vpop.eup %10254  ;;  %3641 = vst [vmem:[%s12905_s29 + $0x38] sm:$0xff] %v10253_v15  ;;  %10258 = vtanh.f32 %v4203_v60  ;;  %3581 = vmatmul.bf16.gmra.mxu0 %v9060_v37  ;;  %3802 = vmatmul.bf16.gmra.mxu1 %v9060_v37 }
 0x34d   : > { %3862 = vst [vmem:[%s12905_s29 + $0x438] sm:$0xff] %v10255_v56  ;;  %10260 = vtanh.f32 %v3543_v31  ;;  %4023 = vmatmul.bf16.gmra.mxu2 %v9060_v37  ;;  %4244 = vmatmul.bf16.gmra.mxu3 %v9060_v37 }
 0x34e   : > { %10262 = vtanh.f32 %v3764_v50  ;;  %v9062_v50 = vld [vmem:[#allocation4 + $0x58] sm:$0xff] }
 0x350   : > { %v3984_v27 = vpop.f32.mrf.mxu2 }
 0x351   : > { %v10257_v54 = vpop.eup %10256  ;;  %v3985_v25 = vadd.f32 %v12881_v34, %v3984_v27  ;;  %v4205_v46 = vpop.f32.mrf.mxu3 }
 0x352   : > { %v3544_v6 = vpop.f32.mrf.mxu0  ;;  %v10259_v36 = vpop.eup %10258  ;;  %4083 = vst [vmem:[%s12905_s29 + $0x838] sm:$0xff] %v10257_v54  ;;  %v4206_v49 = vadd.f32 %v12883_v24, %v4205_v46 }
 0x353   : > { %v3545_v62 = vadd.f32 %v12858_v21, %v3544_v6  ;;  %v3765_v55 = vpop.f32.mrf.mxu1  ;;  %v10261_v23 = vpop.eup %10260  ;;  %4304 = vst [vmem:[%s12905_s29 + $0xc38] sm:$0xff] %v10259_v36  ;;  %10264 = vtanh.f32 %v3985_v25 }
 0x354   : > { %v3766_v32 = vadd.f32 %v12860_v57, %v3765_v55  ;;  %v10263_v39 = vpop.eup %10262  ;;  %3642 = vst [vmem:[%s12905_s29 + $0x40] sm:$0xff] %v10261_v23  ;;  %10266 = vtanh.f32 %v4206_v49 }
 0x355   : > { %3863 = vst [vmem:[%s12905_s29 + $0x440] sm:$0xff] %v10263_v39  ;;  %10268 = vtanh.f32 %v3545_v62 }
 0x356   : > { %10270 = vtanh.f32 %v3766_v32 }
 0x358   : > { %v3986_v63 = vpop.f32.mrf.mxu2 }
 0x359   : > { %v10265_v43 = vpop.eup %10264  ;;  %v3987_v38 = vadd.f32 %v12881_v34, %v3986_v63  ;;  %v4207_v20 = vpop.f32.mrf.mxu3  ;;  %v9191_v63 = vld [vmem:[#allocation15 + $0xf8] sm:$0xf0] }
 0x35a   : > { %v3547_v40 = vpop.f32.mrf.mxu0  ;;  %v10267_v3 = vpop.eup %10266  ;;  %4084 = vst [vmem:[%s12905_s29 + $0x840] sm:$0xff] %v10265_v43  ;;  %v4208_v7 = vadd.f32 %v12883_v24, %v4207_v20  ;;  %v8736_v43 = vor.u32 %v9191_v63, %v8735_v51  ;;  %v9182_v51 = vld [vmem:[#allocation15 + $0xd4] sm:$0xf0]  ;;  %v8731_v63 = vld [vmem:[#allocation15 + $0xcc] sm:$0xf] }
 0x35b   : > { %v3548_v28 = vadd.f32 %v12858_v21, %v3547_v40  ;;  %v3768_v22 = vpop.f32.mrf.mxu1  ;;  %v10269_v26 = vpop.eup %10268  ;;  %4305 = vst [vmem:[%s12905_s29 + $0xc40] sm:$0xff] %v10267_v3  ;;  %10272 = vtanh.f32 %v3987_v38 }
 0x35c   : > { %v3769_v59 = vadd.f32 %v12860_v57, %v3768_v22  ;;  %v10271_v9 = vpop.eup %10270  ;;  %3643 = vst [vmem:[%s12905_s29 + $0x48] sm:$0xff] %v10269_v26  ;;  %10274 = vtanh.f32 %v4208_v7  ;;  %3586 = vmatmul.bf16.gmra.mxu0 %v9061_v0  ;;  %3807 = vmatmul.bf16.gmra.mxu1 %v9061_v0 }
 0x35d   : > { %3864 = vst [vmem:[%s12905_s29 + $0x448] sm:$0xff] %v10271_v9  ;;  %10276 = vtanh.f32 %v3548_v28  ;;  %4028 = vmatmul.bf16.gmra.mxu2 %v9061_v0  ;;  %4249 = vmatmul.bf16.gmra.mxu3 %v9061_v0 }
 0x35e   : > { %10278 = vtanh.f32 %v3769_v59  ;;  %6200 = vmatpush.bf16.msrb.mxu3 %v8736_v43  ;;  %v9063_v59 = vld [vmem:[#allocation4 + $0xc0] sm:$0xff]  ;;  %v8700_v43 = vor.u32 %v9182_v51, %v8699_v47 }
 0x360   : > { %v3989_v41 = vpop.f32.mrf.mxu2  ;;  %5980 = vmatpush.bf16.msrb.mxu2 %v8700_v43  ;;  %v9181_v43 = vld [vmem:[#allocation15 + $0xb4] sm:$0xf0] }
 0x361   : > { %v10273_v42 = vpop.eup %10272  ;;  %v3990_v11 = vadd.f32 %v12881_v34, %v3989_v41  ;;  %v4210_v2 = vpop.f32.mrf.mxu3  ;;  %v9175_v41 = vld [vmem:[#allocation15 + $0xf0] sm:$0xf0] }
 0x362   : > { %v3549_v45 = vpop.f32.mrf.mxu0  ;;  %v10275_v61 = vpop.eup %10274  ;;  %4085 = vst [vmem:[%s12905_s29 + $0x848] sm:$0xff] %v10273_v42  ;;  %v4211_v13 = vadd.f32 %v12883_v24, %v4210_v2 }
 0x363   : > { %v3550_v10 = vadd.f32 %v12858_v21, %v3549_v45  ;;  %v3770_v5 = vpop.f32.mrf.mxu1  ;;  %v10277_v16 = vpop.eup %10276  ;;  %4306 = vst [vmem:[%s12905_s29 + $0xc48] sm:$0xff] %v10275_v61  ;;  %10280 = vtanh.f32 %v3990_v11  ;;  %v8672_v11 = vor.u32 %v9175_v41, %v8671_v12  ;;  %v9174_v41 = vld [vmem:[#allocation15 + $0xd0] sm:$0xf0] }
 0x364   : > { %v3771_v30 = vadd.f32 %v12860_v57, %v3770_v5  ;;  %v10279_v52 = vpop.eup %10278  ;;  %3644 = vst [vmem:[%s12905_s29 + $0x50] sm:$0xff] %v10277_v16  ;;  %10282 = vtanh.f32 %v4211_v13 }
 0x365   : > { %3865 = vst [vmem:[%s12905_s29 + $0x450] sm:$0xff] %v10279_v52  ;;  %10284 = vtanh.f32 %v3550_v10  ;;  %5758 = vmatpush.bf16.msrb.mxu1 %v8672_v11 }
 0x366   : > { %10286 = vtanh.f32 %v3771_v30 }
 0x368   : > { %v3991_v35 = vpop.f32.mrf.mxu2 }
 0x369   : > { %v10281_v44 = vpop.eup %10280  ;;  %v3992_v8 = vadd.f32 %v12881_v34, %v3991_v35  ;;  %v4212_v48 = vpop.f32.mrf.mxu3 }
 0x36a   : > { %v3552_v60 = vpop.f32.mrf.mxu0  ;;  %v10283_v31 = vpop.eup %10282  ;;  %4086 = vst [vmem:[%s12905_s29 + $0x850] sm:$0xff] %v10281_v44  ;;  %v4213_v33 = vadd.f32 %v12883_v24, %v4212_v48 }
 0x36b   : > { %v3553_v37 = vadd.f32 %v12858_v21, %v3552_v60  ;;  %v3773_v15 = vpop.f32.mrf.mxu1  ;;  %v10285_v56 = vpop.eup %10284  ;;  %4307 = vst [vmem:[%s12905_s29 + $0xc50] sm:$0xff] %v10283_v31  ;;  %10288 = vtanh.f32 %v3992_v8 }
 0x36c   : > { %v3774_v27 = vadd.f32 %v12860_v57, %v3773_v15  ;;  %v10287_v54 = vpop.eup %10286  ;;  %3645 = vst [vmem:[%s12905_s29 + $0x58] sm:$0xff] %v10285_v56  ;;  %10290 = vtanh.f32 %v4213_v33  ;;  %3591 = vmatmul.bf16.gmra.mxu0 %v9062_v50  ;;  %3812 = vmatmul.bf16.gmra.mxu1 %v9062_v50 }
 0x36d   : > { %3866 = vst [vmem:[%s12905_s29 + $0x458] sm:$0xff] %v10287_v54  ;;  %10292 = vtanh.f32 %v3553_v37  ;;  %4033 = vmatmul.bf16.gmra.mxu2 %v9062_v50  ;;  %4254 = vmatmul.bf16.gmra.mxu3 %v9062_v50 }
 0x36e   : > { %10294 = vtanh.f32 %v3774_v27  ;;  %v9096_v27 = vld [vmem:[#allocation4 + $0x148] sm:$0xff] }
 0x370   : > { %v3994_v25 = vpop.f32.mrf.mxu2 }
 0x371   : > { %v10289_v46 = vpop.eup %10288  ;;  %v3995_v6 = vadd.f32 %v12881_v34, %v3994_v25  ;;  %v4215_v36 = vpop.f32.mrf.mxu3 }
 0x372   : > { %v3554_v49 = vpop.f32.mrf.mxu0  ;;  %v10291_v62 = vpop.eup %10290  ;;  %4087 = vst [vmem:[%s12905_s29 + $0x858] sm:$0xff] %v10289_v46  ;;  %v4216_v55 = vadd.f32 %v12883_v24, %v4215_v36 }
 0x373   : > { %v3555_v23 = vadd.f32 %v12858_v21, %v3554_v49  ;;  %v3775_v32 = vpop.f32.mrf.mxu1  ;;  %v10293_v39 = vpop.eup %10292  ;;  %4308 = vst [vmem:[%s12905_s29 + $0xc58] sm:$0xff] %v10291_v62  ;;  %10296 = vtanh.f32 %v3995_v6 }
 0x374   : > { %v3776_v18 = vadd.f32 %v12860_v57, %v3775_v32  ;;  %v10295_v19 = vpop.eup %10294  ;;  %3646 = vst [vmem:[%s12905_s29 + $0x60] sm:$0xff] %v10293_v39  ;;  %10298 = vtanh.f32 %v4216_v55  ;;  %v13049_v39 = vld [vmem:[#allocation16] ss:$0 sm:$0xff] }
 0x375   : > { %3867 = vst [vmem:[%s12905_s29 + $0x460] sm:$0xff] %v10295_v19  ;;  %10300 = vtanh.f32 %v3555_v23  ;;  %v13052_v19 = vld [vmem:[#allocation16 + $0x1] ss:$0 sm:$0xff] }
 0x376   : > { %10302 = vtanh.f32 %v3776_v18 }
 0x378   : > { %v3996_v38 = vpop.f32.mrf.mxu2 }
 0x379   : > { %v10297_v20 = vpop.eup %10296  ;;  %v3997_v40 = vadd.f32 %v12881_v34, %v3996_v38  ;;  %v4217_v3 = vpop.f32.mrf.mxu3  ;;  %v9190_v38 = vld [vmem:[#allocation15 + $0xd8] sm:$0xf0] }
 0x37a   : > { %v3557_v7 = vpop.f32.mrf.mxu0  ;;  %v10299_v28 = vpop.eup %10298  ;;  %4088 = vst [vmem:[%s12905_s29 + $0x860] sm:$0xff] %v10297_v20  ;;  %v4218_v22 = vadd.f32 %v12883_v24, %v4217_v3  ;;  %v8732_v20 = vor.u32 %v9190_v38, %v8731_v63  ;;  %v8695_v63 = vld [vmem:[#allocation15 + $0xa8] sm:$0xf] }
 0x37b   : > { %v3558_v0 = vadd.f32 %v12858_v21, %v3557_v7  ;;  %v3778_v26 = vpop.f32.mrf.mxu1  ;;  %v10301_v9 = vpop.eup %10300  ;;  %4309 = vst [vmem:[%s12905_s29 + $0xc60] sm:$0xff] %v10299_v28  ;;  %10304 = vtanh.f32 %v3997_v40  ;;  %v8696_v38 = vor.u32 %v9181_v43, %v8695_v63 }
 0x37c   : > { %v3779_v1 = vadd.f32 %v12860_v57, %v3778_v26  ;;  %v10303_v17 = vpop.eup %10302  ;;  %3647 = vst [vmem:[%s12905_s29 + $0x68] sm:$0xff] %v10301_v9  ;;  %10306 = vtanh.f32 %v4218_v22  ;;  %3596 = vmatmul.bf16.gmra.mxu0 %v9063_v59  ;;  %3817 = vmatmul.bf16.gmra.mxu1 %v9063_v59 }
 0x37d   : > { %3868 = vst [vmem:[%s12905_s29 + $0x468] sm:$0xff] %v10303_v17  ;;  %10308 = vtanh.f32 %v3558_v0  ;;  %4038 = vmatmul.bf16.gmra.mxu2 %v9063_v59  ;;  %4259 = vmatmul.bf16.gmra.mxu3 %v9063_v59  ;;  %v9097_v59 = vld [vmem:[#allocation4 + $0x1c0] sm:$0xff] }
 0x37e   : > { %10310 = vtanh.f32 %v3779_v1  ;;  %6201 = vmatpush.bf16.msrb.mxu3 %v8732_v20  ;;  %v8727_v20 = vld [vmem:[#allocation15 + $0xac] sm:$0xf]  ;;  %5981 = vmatpush.bf16.msrb.mxu2 %v8696_v38  ;;  %v8691_v38 = vld [vmem:[#allocation15 + $0x88] sm:$0xf] }
 0x380   : > { %v3999_v42 = vpop.f32.mrf.mxu2 }
 0x381   : > { %v10305_v2 = vpop.eup %10304  ;;  %v4000_v45 = vadd.f32 %v12881_v34, %v3999_v42  ;;  %v4220_v61 = vpop.f32.mrf.mxu3  ;;  %v8668_v42 = vor.u32 %v9174_v41, %v8667_v29  ;;  %v9165_v29 = vld [vmem:[#allocation15 + $0xac] sm:$0xf0] }
 0x382   : > { %v3559_v13 = vpop.f32.mrf.mxu0  ;;  %v10307_v10 = vpop.eup %10306  ;;  %4089 = vst [vmem:[%s12905_s29 + $0x868] sm:$0xff] %v10305_v2  ;;  %v4221_v5 = vadd.f32 %v12883_v24, %v4220_v61  ;;  %v13065_v61 = vld [vmem:[#allocation16 + $0x2] ss:$0 sm:$0xff] }
 0x383   : > { %v3560_v16 = vadd.f32 %v12858_v21, %v3559_v13  ;;  %v3780_v30 = vpop.f32.mrf.mxu1  ;;  %v10309_v52 = vpop.eup %10308  ;;  %4310 = vst [vmem:[%s12905_s29 + $0xc68] sm:$0xff] %v10307_v10  ;;  %10312 = vtanh.f32 %v4000_v45  ;;  %v13068_v10 = vld [vmem:[#allocation16 + $0x3] ss:$0 sm:$0xff]  ;;  %5759 = vmatpush.bf16.msrb.mxu1 %v8668_v42  ;;  %v8663_v42 = vld [vmem:[#allocation15 + $0xa4] sm:$0xf] }
 0x384   : > { %v3781_v35 = vadd.f32 %v12860_v57, %v3780_v30  ;;  %v10311_v44 = vpop.eup %10310  ;;  %3648 = vst [vmem:[%s12905_s29 + $0x70] sm:$0xff] %v10309_v52  ;;  %10314 = vtanh.f32 %v4221_v5 }
 0x385   : > { %3869 = vst [vmem:[%s12905_s29 + $0x470] sm:$0xff] %v10311_v44  ;;  %10316 = vtanh.f32 %v3560_v16 }
 0x386   : > { %10318 = vtanh.f32 %v3781_v35 }
 0x388   : > { %v4001_v8 = vpop.f32.mrf.mxu2 }
 0x389   : > { %v10313_v48 = vpop.eup %10312  ;;  %v4002_v60 = vadd.f32 %v12881_v34, %v4001_v8  ;;  %v4222_v31 = vpop.f32.mrf.mxu3 }
 0x38a   : > { %v3562_v33 = vpop.f32.mrf.mxu0  ;;  %v10315_v37 = vpop.eup %10314  ;;  %4090 = vst [vmem:[%s12905_s29 + $0x870] sm:$0xff] %v10313_v48  ;;  %v4223_v15 = vadd.f32 %v12883_v24, %v4222_v31 }
 0x38b   : > { %v3563_v50 = vadd.f32 %v12858_v21, %v3562_v33  ;;  %v3783_v56 = vpop.f32.mrf.mxu1  ;;  %v10317_v54 = vpop.eup %10316  ;;  %4311 = vst [vmem:[%s12905_s29 + $0xc70] sm:$0xff] %v10315_v37  ;;  %10320 = vtanh.f32 %v4002_v60 }
 0x38c   : > { %v3784_v25 = vadd.f32 %v12860_v57, %v3783_v56  ;;  %v10319_v46 = vpop.eup %10318  ;;  %3649 = vst [vmem:[%s12905_s29 + $0x78] sm:$0xff] %v10317_v54  ;;  %10322 = vtanh.f32 %v4223_v15  ;;  %4533 = vmatmul.bf16.vlgmr.msra.gmra.mxu0 %v9096_v27  ;;  %4754 = vmatmul.bf16.vlgmr.msra.gmra.mxu1 %v9096_v27 }
 0x38d   : > { %3870 = vst [vmem:[%s12905_s29 + $0x478] sm:$0xff] %v10319_v46  ;;  %10324 = vtanh.f32 %v3563_v50  ;;  %4975 = vmatmul.bf16.vlgmr.msra.gmra.mxu2 %v9096_v27  ;;  %5196 = vmatmul.bf16.vlgmr.msra.gmra.mxu3 %v9096_v27  ;;  %v9098_v27 = vld [vmem:[#allocation4] sm:$0xff] }
 0x38e   : > { %10326 = vtanh.f32 %v3784_v25 }
 0x390   : > { %v4004_v6 = vpop.f32.mrf.mxu2 }
 0x391   : > { %v10321_v21 = vpop.eup %10320  ;;  %v4225_v36 = vpop.f32.mrf.mxu3  ;;  %v4005_v57 = vadd.f32 %v12881_v34, %v4004_v6 }
 0x392   : > { %v10323_v49 = vpop.eup %10322  ;;  %4091 = vst [vmem:[%s12905_s29 + $0x878] sm:$0xff] %v10321_v21  ;;  %v4226_v62 = vadd.f32 %v12883_v24, %v4225_v36  ;;  %v3564_v55 = vpop.f32.mrf.mxu0 }
 0x393   : > { %v3785_v23 = vpop.f32.mrf.mxu1  ;;  %v10325_v32 = vpop.eup %10324  ;;  %4312 = vst [vmem:[%s12905_s29 + $0xc78] sm:$0xff] %v10323_v49  ;;  %v3565_v18 = vadd.f32 %v13049_v39, %v3564_v55  ;;  %10328 = vtanh.f32 %v4005_v57 }
 0x394   : > { %v3786_v58 = vadd.f32 %v13052_v19, %v3785_v23  ;;  %v10327_v14 = vpop.eup %10326  ;;  %3650 = vst [vmem:[%s12905_s29 + $0x80] sm:$0xff] %v10325_v32  ;;  %10330 = vtanh.f32 %v4226_v62 }
 0x395   : > { %3871 = vst [vmem:[%s12905_s29 + $0x480] sm:$0xff] %v10327_v14  ;;  %10332 = vtanh.f32 %v3565_v18 }
 0x396   : > { %10334 = vtanh.f32 %v3786_v58 }
 0x398   : > { %v4006_v40 = vpop.f32.mrf.mxu2 }
 0x399   : > { %v4227_v3 = vpop.f32.mrf.mxu3  ;;  %v10329_v7 = vpop.eup %10328  ;;  %v4007_v28 = vadd.f32 %v12881_v34, %v4006_v40  ;;  %v8635_v34 = vld [vmem:[#allocation15 + $0xc0] sm:$0xf]  ;;  %v9189_v40 = vld [vmem:[#allocation15 + $0xb8] sm:$0xf0] }
 0x39a   : > { %v4228_v22 = vadd.f32 %v12883_v24, %v4227_v3  ;;  %v3567_v0 = vpop.f32.mrf.mxu0  ;;  %v10331_v9 = vpop.eup %10330  ;;  %4092 = vst [vmem:[%s12905_s29 + $0x880] sm:$0xff] %v10329_v7  ;;  %v9166_v24 = vld [vmem:[#allocation15 + $0xcc] sm:$0xf0]  ;;  %v8728_v3 = vor.u32 %v9189_v40, %v8727_v20  ;;  %v9180_v20 = vld [vmem:[#allocation15 + $0x94] sm:$0xf0] }
 0x39b   : > { %v3788_v26 = vpop.f32.mrf.mxu1  ;;  %v3568_v1 = vadd.f32 %v13049_v39, %v3567_v0  ;;  %v10333_v53 = vpop.eup %10332  ;;  %4313 = vst [vmem:[%s12905_s29 + $0xc80] sm:$0xff] %v10331_v9  ;;  %10336 = vtanh.f32 %v4007_v28  ;;  %v8636_v12 = vor.u32 %v9166_v24, %v8635_v34  ;;  %v8692_v40 = vor.u32 %v9180_v20, %v8691_v38 }
 0x39c   : > { %v3789_v17 = vadd.f32 %v13052_v19, %v3788_v26  ;;  %4538 = vmatmul.bf16.gmra.mxu0 %v9097_v59  ;;  %v10335_v4 = vpop.eup %10334  ;;  %3651 = vst [vmem:[%s12905_s29 + $0x88] sm:$0xff] %v10333_v53  ;;  %10338 = vtanh.f32 %v4228_v22  ;;  %4759 = vmatmul.bf16.gmra.mxu1 %v9097_v59 }
 0x39d   : > { %3872 = vst [vmem:[%s12905_s29 + $0x488] sm:$0xff] %v10335_v4  ;;  %10340 = vtanh.f32 %v3568_v1  ;;  %4980 = vmatmul.bf16.gmra.mxu2 %v9097_v59  ;;  %5201 = vmatmul.bf16.gmra.mxu3 %v9097_v59  ;;  %v9099_v1 = vld [vmem:[#allocation4 + $0x38] sm:$0xff] }
 0x39e   : > { %10342 = vtanh.f32 %v3789_v17  ;;  %5538 = vmatpush.bf16.msrb.mxu0 %v8636_v12  ;;  %6202 = vmatpush.bf16.msrb.mxu3 %v8728_v3  ;;  %v8631_v12 = vld [vmem:[#allocation15 + $0xa0] sm:$0xf]  ;;  %v8723_v3 = vld [vmem:[#allocation15 + $0x8c] sm:$0xf] }
 0x39f   : > { %v8632_v41 = vor.u32 %v9165_v29, %v8631_v12  ;;  %5982 = vmatpush.bf16.msrb.mxu2 %v8692_v40  ;;  %v8687_v40 = vld [vmem:[#allocation15 + $0x68] sm:$0xf] }
 0x3a0   : > { %v4009_v11 = vpop.f32.mrf.mxu2 }
 0x3a1   : > { %v4230_v2 = vpop.f32.mrf.mxu3  ;;  %v10337_v45 = vpop.eup %10336  ;;  %v4010_v13 = vadd.f32 %v13065_v61, %v4009_v11  ;;  %v9173_v11 = vld [vmem:[#allocation15 + $0xb0] sm:$0xf0] }
 0x3a2   : > { %v4231_v5 = vadd.f32 %v13068_v10, %v4230_v2  ;;  %v3569_v16 = vpop.f32.mrf.mxu0  ;;  %v10339_v52 = vpop.eup %10338  ;;  %4093 = vst [vmem:[%s12905_s29 + $0x888] sm:$0xff] %v10337_v45  ;;  %v8664_v2 = vor.u32 %v9173_v11, %v8663_v42  ;;  %5539 = vmatpush.bf16.msrb.mxu0 %v8632_v41  ;;  %v8627_v41 = vld [vmem:[#allocation15 + $0x80] sm:$0xf]  ;;  %v9164_v42 = vld [vmem:[#allocation15 + $0x8c] sm:$0xf0] }
 0x3a3   : > { %v3790_v30 = vpop.f32.mrf.mxu1  ;;  %v3570_v35 = vadd.f32 %v13049_v39, %v3569_v16  ;;  %v10341_v8 = vpop.eup %10340  ;;  %4314 = vst [vmem:[%s12905_s29 + $0xc88] sm:$0xff] %v10339_v52  ;;  %10344 = vtanh.f32 %v4010_v13  ;;  %v8628_v11 = vor.u32 %v9164_v42, %v8627_v41 }
 0x3a4   : > { %v3791_v44 = vadd.f32 %v13052_v19, %v3790_v30  ;;  %v10343_v48 = vpop.eup %10342  ;;  %3652 = vst [vmem:[%s12905_s29 + $0x90] sm:$0xff] %v10341_v8  ;;  %10346 = vtanh.f32 %v4231_v5  ;;  %5760 = vmatpush.bf16.msrb.mxu1 %v8664_v2  ;;  %v8659_v2 = vld [vmem:[#allocation15 + $0x84] sm:$0xf] }
 0x3a5   : > { %3873 = vst [vmem:[%s12905_s29 + $0x490] sm:$0xff] %v10343_v48  ;;  %10348 = vtanh.f32 %v3570_v35 }
 0x3a6   : > { %10350 = vtanh.f32 %v3791_v44  ;;  %5540 = vmatpush.bf16.msrb.mxu0 %v8628_v11  ;;  %v8623_v11 = vld [vmem:[#allocation15 + $0x60] sm:$0xf] }
 0x3a8   : > { %v4011_v60 = vpop.f32.mrf.mxu2 }
 0x3a9   : > { %v4232_v31 = vpop.f32.mrf.mxu3  ;;  %v10345_v33 = vpop.eup %10344  ;;  %v4012_v37 = vadd.f32 %v13065_v61, %v4011_v60 }
 0x3aa   : > { %v4233_v15 = vadd.f32 %v13068_v10, %v4232_v31  ;;  %v3572_v50 = vpop.f32.mrf.mxu0  ;;  %v10347_v54 = vpop.eup %10346  ;;  %4094 = vst [vmem:[%s12905_s29 + $0x890] sm:$0xff] %v10345_v33 }
 0x3ab   : > { %v3793_v56 = vpop.f32.mrf.mxu1  ;;  %v3573_v25 = vadd.f32 %v13049_v39, %v3572_v50  ;;  %v10349_v21 = vpop.eup %10348  ;;  %4315 = vst [vmem:[%s12905_s29 + $0xc90] sm:$0xff] %v10347_v54  ;;  %10352 = vtanh.f32 %v4012_v37 }
 0x3ac   : > { %v3794_v46 = vadd.f32 %v13052_v19, %v3793_v56  ;;  %4543 = vmatmul.bf16.gmra.mxu0 %v9098_v27  ;;  %v10351_v6 = vpop.eup %10350  ;;  %3653 = vst [vmem:[%s12905_s29 + $0x98] sm:$0xff] %v10349_v21  ;;  %10354 = vtanh.f32 %v4233_v15  ;;  %4764 = vmatmul.bf16.gmra.mxu1 %v9098_v27 }
 0x3ad   : > { %3874 = vst [vmem:[%s12905_s29 + $0x498] sm:$0xff] %v10351_v6  ;;  %10356 = vtanh.f32 %v3573_v25  ;;  %4985 = vmatmul.bf16.gmra.mxu2 %v9098_v27  ;;  %5206 = vmatmul.bf16.gmra.mxu3 %v9098_v27  ;;  %v9100_v25 = vld [vmem:[#allocation4 + $0x170] sm:$0xff] }
 0x3ae   : > { %10358 = vtanh.f32 %v3794_v46 }
 0x3b0   : > { %v4014_v36 = vpop.f32.mrf.mxu2 }
 0x3b1   : > { %v4235_v49 = vpop.f32.mrf.mxu3  ;;  %v10353_v57 = vpop.eup %10352  ;;  %v4015_v62 = vadd.f32 %v13065_v61, %v4014_v36 }
 0x3b2   : > { %v4236_v55 = vadd.f32 %v13068_v10, %v4235_v49  ;;  %v3574_v23 = vpop.f32.mrf.mxu0  ;;  %v10355_v18 = vpop.eup %10354  ;;  %4095 = vst [vmem:[%s12905_s29 + $0x898] sm:$0xff] %v10353_v57 }
 0x3b3   : > { %v3795_v32 = vpop.f32.mrf.mxu1  ;;  %v3575_v58 = vadd.f32 %v13049_v39, %v3574_v23  ;;  %v10357_v47 = vpop.eup %10356  ;;  %4316 = vst [vmem:[%s12905_s29 + $0xc98] sm:$0xff] %v10355_v18  ;;  %10360 = vtanh.f32 %v4015_v62 }
 0x3b4   : > { %v3796_v14 = vadd.f32 %v13052_v19, %v3795_v32  ;;  %v10359_v51 = vpop.eup %10358  ;;  %3654 = vst [vmem:[%s12905_s29 + $0xa0] sm:$0xff] %v10357_v47  ;;  %10362 = vtanh.f32 %v4236_v55 }
 0x3b5   : > { %3875 = vst [vmem:[%s12905_s29 + $0x4a0] sm:$0xff] %v10359_v51  ;;  %10364 = vtanh.f32 %v3575_v58 }
 0x3b6   : > { %10366 = vtanh.f32 %v3796_v14 }
 0x3b8   : > { %v4016_v7 = vpop.f32.mrf.mxu2 }
 0x3b9   : > { %v4237_v28 = vpop.f32.mrf.mxu3  ;;  %v10361_v22 = vpop.eup %10360  ;;  %v4017_v0 = vadd.f32 %v13065_v61, %v4016_v7  ;;  %v9188_v7 = vld [vmem:[#allocation15 + $0x98] sm:$0xf0] }
 0x3ba   : > { %v4238_v26 = vadd.f32 %v13068_v10, %v4237_v28  ;;  %v3577_v59 = vpop.f32.mrf.mxu0  ;;  %v10363_v17 = vpop.eup %10362  ;;  %4096 = vst [vmem:[%s12905_s29 + $0x8a0] sm:$0xff] %v10361_v22  ;;  %v8724_v28 = vor.u32 %v9188_v7, %v8723_v3  ;;  %v9179_v3 = vld [vmem:[#allocation15 + $0x74] sm:$0xf0] }
 0x3bb   : > { %v3798_v9 = vpop.f32.mrf.mxu1  ;;  %v3578_v53 = vadd.f32 %v13049_v39, %v3577_v59  ;;  %v10365_v34 = vpop.eup %10364  ;;  %4317 = vst [vmem:[%s12905_s29 + $0xca0] sm:$0xff] %v10363_v17  ;;  %10368 = vtanh.f32 %v4017_v0  ;;  %v8688_v7 = vor.u32 %v9179_v3, %v8687_v40 }
 0x3bc   : > { %v3799_v4 = vadd.f32 %v13052_v19, %v3798_v9  ;;  %4548 = vmatmul.bf16.gmra.mxu0 %v9099_v1  ;;  %v10367_v24 = vpop.eup %10366  ;;  %3655 = vst [vmem:[%s12905_s29 + $0xa8] sm:$0xff] %v10365_v34  ;;  %10370 = vtanh.f32 %v4238_v26  ;;  %4769 = vmatmul.bf16.gmra.mxu1 %v9099_v1 }
 0x3bd   : > { %3876 = vst [vmem:[%s12905_s29 + $0x4a8] sm:$0xff] %v10367_v24  ;;  %10372 = vtanh.f32 %v3578_v53  ;;  %4990 = vmatmul.bf16.gmra.mxu2 %v9099_v1  ;;  %5211 = vmatmul.bf16.gmra.mxu3 %v9099_v1  ;;  %v9101_v53 = vld [vmem:[#allocation4 + $0x70] sm:$0xff] }
 0x3be   : > { %10374 = vtanh.f32 %v3799_v4  ;;  %6203 = vmatpush.bf16.msrb.mxu3 %v8724_v28  ;;  %v8719_v28 = vld [vmem:[#allocation15 + $0x6c] sm:$0xf]  ;;  %5983 = vmatpush.bf16.msrb.mxu2 %v8688_v7  ;;  %v8683_v7 = vld [vmem:[#allocation15 + $0x48] sm:$0xf] }
 0x3c0   : > { %v4019_v45 = vpop.f32.mrf.mxu2 }
 0x3c1   : > { %v4240_v13 = vpop.f32.mrf.mxu3  ;;  %v10369_v5 = vpop.eup %10368  ;;  %v4020_v16 = vadd.f32 %v13065_v61, %v4019_v45  ;;  %v9172_v45 = vld [vmem:[#allocation15 + $0x90] sm:$0xf0] }
 0x3c2   : > { %v4241_v30 = vadd.f32 %v13068_v10, %v4240_v13  ;;  %v3579_v52 = vpop.f32.mrf.mxu0  ;;  %v10371_v44 = vpop.eup %10370  ;;  %4097 = vst [vmem:[%s12905_s29 + $0x8a8] sm:$0xff] %v10369_v5  ;;  %v8660_v13 = vor.u32 %v9172_v45, %v8659_v2  ;;  %v9163_v2 = vld [vmem:[#allocation15 + $0x6c] sm:$0xf0] }
 0x3c3   : > { %v3800_v35 = vpop.f32.mrf.mxu1  ;;  %v3580_v8 = vadd.f32 %v13049_v39, %v3579_v52  ;;  %v10373_v60 = vpop.eup %10372  ;;  %4318 = vst [vmem:[%s12905_s29 + $0xca8] sm:$0xff] %v10371_v44  ;;  %10376 = vtanh.f32 %v4020_v16  ;;  %v8624_v45 = vor.u32 %v9163_v2, %v8623_v11 }
 0x3c4   : > { %v3801_v48 = vadd.f32 %v13052_v19, %v3800_v35  ;;  %v10375_v31 = vpop.eup %10374  ;;  %3656 = vst [vmem:[%s12905_s29 + $0xb0] sm:$0xff] %v10373_v60  ;;  %10378 = vtanh.f32 %v4241_v30  ;;  %5761 = vmatpush.bf16.msrb.mxu1 %v8660_v13  ;;  %v8655_v13 = vld [vmem:[#allocation15 + $0x64] sm:$0xf] }
 0x3c5   : > { %3877 = vst [vmem:[%s12905_s29 + $0x4b0] sm:$0xff] %v10375_v31  ;;  %10380 = vtanh.f32 %v3580_v8  ;;  %5541 = vmatpush.bf16.msrb.mxu0 %v8624_v45  ;;  %v8619_v45 = vld [vmem:[#allocation15 + $0x40] sm:$0xf] }
 0x3c6   : > { %10382 = vtanh.f32 %v3801_v48 }
 0x3c8   : > { %v4021_v33 = vpop.f32.mrf.mxu2 }
 0x3c9   : > { %v4242_v37 = vpop.f32.mrf.mxu3  ;;  %v10377_v15 = vpop.eup %10376  ;;  %v4022_v50 = vadd.f32 %v13065_v61, %v4021_v33 }
 0x3ca   : > { %v4243_v56 = vadd.f32 %v13068_v10, %v4242_v37  ;;  %v3582_v27 = vpop.f32.mrf.mxu0  ;;  %v10379_v46 = vpop.eup %10378  ;;  %4098 = vst [vmem:[%s12905_s29 + $0x8b0] sm:$0xff] %v10377_v15 }
 0x3cb   : > { %v3803_v54 = vpop.f32.mrf.mxu1  ;;  %v3583_v21 = vadd.f32 %v13049_v39, %v3582_v27  ;;  %v10381_v36 = vpop.eup %10380  ;;  %4319 = vst [vmem:[%s12905_s29 + $0xcb0] sm:$0xff] %v10379_v46  ;;  %10384 = vtanh.f32 %v4022_v50 }
 0x3cc   : > { %v3804_v6 = vadd.f32 %v13052_v19, %v3803_v54  ;;  %4553 = vmatmul.bf16.gmra.mxu0 %v9100_v25  ;;  %v10383_v49 = vpop.eup %10382  ;;  %3657 = vst [vmem:[%s12905_s29 + $0xb8] sm:$0xff] %v10381_v36  ;;  %10386 = vtanh.f32 %v4243_v56  ;;  %4774 = vmatmul.bf16.gmra.mxu1 %v9100_v25 }
 0x3cd   : > { %3878 = vst [vmem:[%s12905_s29 + $0x4b8] sm:$0xff] %v10383_v49  ;;  %10388 = vtanh.f32 %v3583_v21  ;;  %4995 = vmatmul.bf16.gmra.mxu2 %v9100_v25  ;;  %5216 = vmatmul.bf16.gmra.mxu3 %v9100_v25  ;;  %v9102_v21 = vld [vmem:[#allocation4 + $0x8] sm:$0xff] }
 0x3ce   : > { %10390 = vtanh.f32 %v3804_v6 }
 0x3d0   : > { %v4024_v57 = vpop.f32.mrf.mxu2 }
 0x3d1   : > { %v4245_v62 = vpop.f32.mrf.mxu3  ;;  %v10385_v55 = vpop.eup %10384  ;;  %v4025_v23 = vadd.f32 %v13065_v61, %v4024_v57 }
 0x3d2   : > { %v4246_v32 = vadd.f32 %v13068_v10, %v4245_v62  ;;  %v3584_v18 = vpop.f32.mrf.mxu0  ;;  %v10387_v14 = vpop.eup %10386  ;;  %4099 = vst [vmem:[%s12905_s29 + $0x8b8] sm:$0xff] %v10385_v55 }
 0x3d3   : > { %v3805_v58 = vpop.f32.mrf.mxu1  ;;  %v3585_v47 = vadd.f32 %v13049_v39, %v3584_v18  ;;  %v10389_v63 = vpop.eup %10388  ;;  %4320 = vst [vmem:[%s12905_s29 + $0xcb8] sm:$0xff] %v10387_v14  ;;  %10392 = vtanh.f32 %v4025_v23 }
 0x3d4   : > { %v3806_v51 = vadd.f32 %v13052_v19, %v3805_v58  ;;  %v10391_v43 = vpop.eup %10390  ;;  %3658 = vst [vmem:[%s12905_s29 + $0xc0] sm:$0xff] %v10389_v63  ;;  %10394 = vtanh.f32 %v4246_v32 }
 0x3d5   : > { %3879 = vst [vmem:[%s12905_s29 + $0x4c0] sm:$0xff] %v10391_v43  ;;  %10396 = vtanh.f32 %v3585_v47 }
 0x3d6   : > { %10398 = vtanh.f32 %v3806_v51 }
 0x3d8   : > { %v4026_v22 = vpop.f32.mrf.mxu2 }
 0x3d9   : > { %v4247_v0 = vpop.f32.mrf.mxu3  ;;  %v10393_v26 = vpop.eup %10392  ;;  %v4027_v59 = vadd.f32 %v13065_v61, %v4026_v22  ;;  %v9187_v22 = vld [vmem:[#allocation15 + $0x78] sm:$0xf0] }
 0x3da   : > { %v4248_v9 = vadd.f32 %v13068_v10, %v4247_v0  ;;  %v3587_v1 = vpop.f32.mrf.mxu0  ;;  %v10395_v4 = vpop.eup %10394  ;;  %4100 = vst [vmem:[%s12905_s29 + $0x8c0] sm:$0xff] %v10393_v26  ;;  %v8720_v0 = vor.u32 %v9187_v22, %v8719_v28  ;;  %v9178_v28 = vld [vmem:[#allocation15 + $0x54] sm:$0xf0] }
 0x3db   : > { %v3808_v17 = vpop.f32.mrf.mxu1  ;;  %v3588_v34 = vadd.f32 %v13049_v39, %v3587_v1  ;;  %v10397_v12 = vpop.eup %10396  ;;  %4321 = vst [vmem:[%s12905_s29 + $0xcc0] sm:$0xff] %v10395_v4  ;;  %10400 = vtanh.f32 %v4027_v59  ;;  %v8684_v22 = vor.u32 %v9178_v28, %v8683_v7 }
 0x3dc   : > { %v3809_v24 = vadd.f32 %v13052_v19, %v3808_v17  ;;  %4558 = vmatmul.bf16.gmra.mxu0 %v9101_v53  ;;  %v10399_v29 = vpop.eup %10398  ;;  %3659 = vst [vmem:[%s12905_s29 + $0xc8] sm:$0xff] %v10397_v12  ;;  %10402 = vtanh.f32 %v4248_v9  ;;  %4779 = vmatmul.bf16.gmra.mxu1 %v9101_v53 }
 0x3dd   : > { %3880 = vst [vmem:[%s12905_s29 + $0x4c8] sm:$0xff] %v10399_v29  ;;  %10404 = vtanh.f32 %v3588_v34  ;;  %5000 = vmatmul.bf16.gmra.mxu2 %v9101_v53  ;;  %5221 = vmatmul.bf16.gmra.mxu3 %v9101_v53  ;;  %v9103_v34 = vld [vmem:[#allocation4 + $0x160] sm:$0xff] }
 0x3de   : > { %10406 = vtanh.f32 %v3809_v24  ;;  %6204 = vmatpush.bf16.msrb.mxu3 %v8720_v0  ;;  %v8715_v0 = vld [vmem:[#allocation15 + $0x4c] sm:$0xf]  ;;  %5984 = vmatpush.bf16.msrb.mxu2 %v8684_v22  ;;  %v8679_v22 = vld [vmem:[#allocation15 + $0x28] sm:$0xf] }
 0x3e0   : > { %v4029_v5 = vpop.f32.mrf.mxu2 }
 0x3e1   : > { %v4250_v16 = vpop.f32.mrf.mxu3  ;;  %v10401_v30 = vpop.eup %10400  ;;  %v4030_v52 = vadd.f32 %v13065_v61, %v4029_v5  ;;  %v9171_v5 = vld [vmem:[#allocation15 + $0x70] sm:$0xf0] }
 0x3e2   : > { %v4251_v35 = vadd.f32 %v13068_v10, %v4250_v16  ;;  %v3589_v44 = vpop.f32.mrf.mxu0  ;;  %v10403_v48 = vpop.eup %10402  ;;  %4101 = vst [vmem:[%s12905_s29 + $0x8c8] sm:$0xff] %v10401_v30  ;;  %v8656_v16 = vor.u32 %v9171_v5, %v8655_v13  ;;  %v9162_v13 = vld [vmem:[#allocation15 + $0x4c] sm:$0xf0] }
 0x3e3   : > { %v3810_v8 = vpop.f32.mrf.mxu1  ;;  %v3590_v60 = vadd.f32 %v13049_v39, %v3589_v44  ;;  %v10405_v33 = vpop.eup %10404  ;;  %4322 = vst [vmem:[%s12905_s29 + $0xcc8] sm:$0xff] %v10403_v48  ;;  %10408 = vtanh.f32 %v4030_v52  ;;  %v8620_v5 = vor.u32 %v9162_v13, %v8619_v45 }
 0x3e4   : > { %v3811_v31 = vadd.f32 %v13052_v19, %v3810_v8  ;;  %v10407_v37 = vpop.eup %10406  ;;  %3660 = vst [vmem:[%s12905_s29 + $0xd0] sm:$0xff] %v10405_v33  ;;  %10410 = vtanh.f32 %v4251_v35  ;;  %5762 = vmatpush.bf16.msrb.mxu1 %v8656_v16  ;;  %v8651_v16 = vld [vmem:[#allocation15 + $0x44] sm:$0xf] }
 0x3e5   : > { %3881 = vst [vmem:[%s12905_s29 + $0x4d0] sm:$0xff] %v10407_v37  ;;  %10412 = vtanh.f32 %v3590_v60  ;;  %5542 = vmatpush.bf16.msrb.mxu0 %v8620_v5  ;;  %v8615_v5 = vld [vmem:[#allocation15 + $0x20] sm:$0xf] }
 0x3e6   : > { %10414 = vtanh.f32 %v3811_v31 }
 0x3e8   : > { %v4031_v15 = vpop.f32.mrf.mxu2 }
 0x3e9   : > { %v4252_v50 = vpop.f32.mrf.mxu3  ;;  %v10409_v56 = vpop.eup %10408  ;;  %v4032_v27 = vadd.f32 %v13065_v61, %v4031_v15 }
 0x3ea   : > { %v4253_v54 = vadd.f32 %v13068_v10, %v4252_v50  ;;  %v3592_v25 = vpop.f32.mrf.mxu0  ;;  %v10411_v6 = vpop.eup %10410  ;;  %4102 = vst [vmem:[%s12905_s29 + $0x8d0] sm:$0xff] %v10409_v56  ;;  %v13173_v56 = vld [vmem:[#allocation16] ss:$0 sm:$0xff] }
 0x3eb   : > { %v3813_v46 = vpop.f32.mrf.mxu1  ;;  %v3593_v36 = vadd.f32 %v13049_v39, %v3592_v25  ;;  %v10413_v57 = vpop.eup %10412  ;;  %4323 = vst [vmem:[%s12905_s29 + $0xcd0] sm:$0xff] %v10411_v6  ;;  %10416 = vtanh.f32 %v4032_v27  ;;  %v13175_v27 = vld [vmem:[#allocation16 + $0x1] ss:$0 sm:$0xff] }
 0x3ec   : > { %v3814_v49 = vadd.f32 %v13052_v19, %v3813_v46  ;;  %4563 = vmatmul.bf16.gmra.mxu0 %v9102_v21  ;;  %v10415_v62 = vpop.eup %10414  ;;  %3661 = vst [vmem:[%s12905_s29 + $0xd8] sm:$0xff] %v10413_v57  ;;  %10418 = vtanh.f32 %v4253_v54  ;;  %4784 = vmatmul.bf16.gmra.mxu1 %v9102_v21 }
 0x3ed   : > { %3882 = vst [vmem:[%s12905_s29 + $0x4d8] sm:$0xff] %v10415_v62  ;;  %10420 = vtanh.f32 %v3593_v36  ;;  %5005 = vmatmul.bf16.gmra.mxu2 %v9102_v21  ;;  %5226 = vmatmul.bf16.gmra.mxu3 %v9102_v21  ;;  %v9104_v36 = vld [vmem:[#allocation4 + $0x30] sm:$0xff] }
 0x3ee   : > { %10422 = vtanh.f32 %v3814_v49 }
 0x3f0   : > { %v4034_v55 = vpop.f32.mrf.mxu2 }
 0x3f1   : > { %v4255_v23 = vpop.f32.mrf.mxu3  ;;  %v10417_v32 = vpop.eup %10416  ;;  %v4035_v18 = vadd.f32 %v13065_v61, %v4034_v55 }
 0x3f2   : > { %v4256_v58 = vadd.f32 %v13068_v10, %v4255_v23  ;;  %v3594_v14 = vpop.f32.mrf.mxu0  ;;  %v10419_v51 = vpop.eup %10418  ;;  %4103 = vst [vmem:[%s12905_s29 + $0x8d8] sm:$0xff] %v10417_v32 }
 0x3f3   : > { %v3815_v47 = vpop.f32.mrf.mxu1  ;;  %v3595_v63 = vadd.f32 %v13049_v39, %v3594_v14  ;;  %v10421_v38 = vpop.eup %10420  ;;  %4324 = vst [vmem:[%s12905_s29 + $0xcd8] sm:$0xff] %v10419_v51  ;;  %10424 = vtanh.f32 %v4035_v18 }
 0x3f4   : > { %v3816_v43 = vadd.f32 %v13052_v19, %v3815_v47  ;;  %v10423_v20 = vpop.eup %10422  ;;  %3662 = vst [vmem:[%s12905_s29 + $0xe0] sm:$0xff] %v10421_v38  ;;  %10426 = vtanh.f32 %v4256_v58 }
 0x3f5   : > { %3883 = vst [vmem:[%s12905_s29 + $0x4e0] sm:$0xff] %v10423_v20  ;;  %10428 = vtanh.f32 %v3595_v63 }
 0x3f6   : > { %10430 = vtanh.f32 %v3816_v43 }
 0x3f8   : > { %v4036_v26 = vpop.f32.mrf.mxu2 }
 0x3f9   : > { %v4257_v59 = vpop.f32.mrf.mxu3  ;;  %v10425_v9 = vpop.eup %10424  ;;  %v4037_v1 = vadd.f32 %v13065_v61, %v4036_v26  ;;  %v9186_v26 = vld [vmem:[#allocation15 + $0x58] sm:$0xf0] }
 0x3fa   : > { %v4258_v17 = vadd.f32 %v13068_v10, %v4257_v59  ;;  %v3597_v53 = vpop.f32.mrf.mxu0  ;;  %v10427_v24 = vpop.eup %10426  ;;  %4104 = vst [vmem:[%s12905_s29 + $0x8e0] sm:$0xff] %v10425_v9  ;;  %v8716_v59 = vor.u32 %v9186_v26, %v8715_v0  ;;  %v9177_v0 = vld [vmem:[#allocation15 + $0x34] sm:$0xf0] }
 0x3fb   : > { %v3818_v4 = vpop.f32.mrf.mxu1  ;;  %v3598_v12 = vadd.f32 %v13049_v39, %v3597_v53  ;;  %v10429_v41 = vpop.eup %10428  ;;  %4325 = vst [vmem:[%s12905_s29 + $0xce0] sm:$0xff] %v10427_v24  ;;  %10432 = vtanh.f32 %v4037_v1  ;;  %v8680_v26 = vor.u32 %v9177_v0, %v8679_v22 }
 0x3fc   : > { %v3819_v29 = vadd.f32 %v13052_v19, %v3818_v4  ;;  %4568 = vmatmul.bf16.gmra.mxu0 %v9103_v34  ;;  %v10431_v42 = vpop.eup %10430  ;;  %3663 = vst [vmem:[%s12905_s29 + $0xe8] sm:$0xff] %v10429_v41  ;;  %10434 = vtanh.f32 %v4258_v17  ;;  %4789 = vmatmul.bf16.gmra.mxu1 %v9103_v34 }
 0x3fd   : > { %3884 = vst [vmem:[%s12905_s29 + $0x4e8] sm:$0xff] %v10431_v42  ;;  %10436 = vtanh.f32 %v3598_v12  ;;  %5010 = vmatmul.bf16.gmra.mxu2 %v9103_v34  ;;  %5231 = vmatmul.bf16.gmra.mxu3 %v9103_v34  ;;  %v9105_v12 = vld [vmem:[#allocation4 + $0x18] sm:$0xff] }
 0x3fe   : > { %10438 = vtanh.f32 %v3819_v29  ;;  %6205 = vmatpush.bf16.msrb.mxu3 %v8716_v59  ;;  %v8711_v59 = vld [vmem:[#allocation15 + $0x2c] sm:$0xf]  ;;  %5985 = vmatpush.bf16.msrb.mxu2 %v8680_v26  ;;  %v8675_v26 = vld [vmem:[#allocation15 + $0x8] sm:$0xf] }
 0x400   : > { %v4039_v30 = vpop.f32.mrf.mxu2 }
 0x401   : > { %v4260_v52 = vpop.f32.mrf.mxu3  ;;  %v10433_v35 = vpop.eup %10432  ;;  %v4040_v44 = vadd.f32 %v13065_v61, %v4039_v30  ;;  %v9170_v30 = vld [vmem:[#allocation15 + $0x50] sm:$0xf0] }
 0x402   : > { %v4261_v8 = vadd.f32 %v13068_v10, %v4260_v52  ;;  %v3599_v48 = vpop.f32.mrf.mxu0  ;;  %v10435_v31 = vpop.eup %10434  ;;  %4105 = vst [vmem:[%s12905_s29 + $0x8e8] sm:$0xff] %v10433_v35  ;;  %v8652_v52 = vor.u32 %v9170_v30, %v8651_v16  ;;  %v9161_v16 = vld [vmem:[#allocation15 + $0x2c] sm:$0xf0] }
 0x403   : > { %v3820_v60 = vpop.f32.mrf.mxu1  ;;  %v3600_v33 = vadd.f32 %v13049_v39, %v3599_v48  ;;  %v10437_v15 = vpop.eup %10436  ;;  %4326 = vst [vmem:[%s12905_s29 + $0xce8] sm:$0xff] %v10435_v31  ;;  %10440 = vtanh.f32 %v4040_v44  ;;  %v8616_v30 = vor.u32 %v9161_v16, %v8615_v5 }
 0x404   : > { %v3821_v37 = vadd.f32 %v13052_v19, %v3820_v60  ;;  %v10439_v50 = vpop.eup %10438  ;;  %3664 = vst [vmem:[%s12905_s29 + $0xf0] sm:$0xff] %v10437_v15  ;;  %10442 = vtanh.f32 %v4261_v8  ;;  %5763 = vmatpush.bf16.msrb.mxu1 %v8652_v52  ;;  %v8647_v52 = vld [vmem:[#allocation15 + $0x24] sm:$0xf] }
 0x405   : > { %3885 = vst [vmem:[%s12905_s29 + $0x4f0] sm:$0xff] %v10439_v50  ;;  %10444 = vtanh.f32 %v3600_v33  ;;  %5543 = vmatpush.bf16.msrb.mxu0 %v8616_v30  ;;  %v8611_v30 = vld [vmem:[#allocation15] sm:$0xf] }
 0x406   : > { %10446 = vtanh.f32 %v3821_v37 }
 0x408   : > { %v4041_v54 = vpop.f32.mrf.mxu2 }
 0x409   : > { %v4262_v25 = vpop.f32.mrf.mxu3  ;;  %v10441_v39 = vpop.eup %10440  ;;  %v4042_v19 = vadd.f32 %v13065_v61, %v4041_v54  ;;  %v13185_v61 = vld [vmem:[#allocation16 + $0x2] ss:$0 sm:$0xff] }
 0x40a   : > { %v4263_v46 = vadd.f32 %v13068_v10, %v4262_v25  ;;  %v4534_v21 = vpop.f32.mrf.mxu0  ;;  %v10443_v49 = vpop.eup %10442  ;;  %4106 = vst [vmem:[%s12905_s29 + $0x8f0] sm:$0xff] %v10441_v39  ;;  %v13187_v10 = vld [vmem:[#allocation16 + $0x3] ss:$0 sm:$0xff] }
 0x40b   : > { %v4755_v6 = vpop.f32.mrf.mxu1  ;;  %v4535_v57 = vadd.f32 %v13173_v56, %v4534_v21  ;;  %v10445_v55 = vpop.eup %10444  ;;  %4327 = vst [vmem:[%s12905_s29 + $0xcf0] sm:$0xff] %v10443_v49  ;;  %10448 = vtanh.f32 %v4042_v19 }
 0x40c   : > { %v4756_v62 = vadd.f32 %v13175_v27, %v4755_v6  ;;  %4573 = vmatmul.bf16.gmra.mxu0 %v9104_v36  ;;  %v10447_v23 = vpop.eup %10446  ;;  %3665 = vst [vmem:[%s12905_s29 + $0xf8] sm:$0xff] %v10445_v55  ;;  %10450 = vtanh.f32 %v4263_v46  ;;  %4794 = vmatmul.bf16.gmra.mxu1 %v9104_v36 }
 0x40d   : > { %3886 = vst [vmem:[%s12905_s29 + $0x4f8] sm:$0xff] %v10447_v23  ;;  %10452 = vtanh.f32 %v4535_v57  ;;  %5015 = vmatmul.bf16.gmra.mxu2 %v9104_v36  ;;  %5236 = vmatmul.bf16.gmra.mxu3 %v9104_v36  ;;  %v9106_v57 = vld [vmem:[#allocation4 + $0x80] sm:$0xff] }
 0x40e   : > { %10454 = vtanh.f32 %v4756_v62 }
 0x410   : > { %v4976_v32 = vpop.f32.mrf.mxu2 }
 0x411   : > { %v5197_v18 = vpop.f32.mrf.mxu3  ;;  %v10449_v58 = vpop.eup %10448  ;;  %v4977_v14 = vadd.f32 %v13185_v61, %v4976_v32 }
 0x412   : > { %v5198_v47 = vadd.f32 %v13187_v10, %v5197_v18  ;;  %v4536_v51 = vpop.f32.mrf.mxu0  ;;  %v10451_v43 = vpop.eup %10450  ;;  %4107 = vst [vmem:[%s12905_s29 + $0x8f8] sm:$0xff] %v10449_v58 }
 0x413   : > { %v4757_v63 = vpop.f32.mrf.mxu1  ;;  %v4537_v38 = vadd.f32 %v13173_v56, %v4536_v51  ;;  %v10453_v40 = vpop.eup %10452  ;;  %4328 = vst [vmem:[%s12905_s29 + $0xcf8] sm:$0xff] %v10451_v43  ;;  %10456 = vtanh.f32 %v4977_v14 }
 0x414   : > { %v4758_v20 = vadd.f32 %v13175_v27, %v4757_v63  ;;  %v10455_v3 = vpop.eup %10454  ;;  %4646 = vst [vmem:[%s12905_s29 + $0x100] sm:$0xff] %v10453_v40  ;;  %10458 = vtanh.f32 %v5198_v47 }
 0x415   : > { %4867 = vst [vmem:[%s12905_s29 + $0x500] sm:$0xff] %v10455_v3  ;;  %10460 = vtanh.f32 %v4537_v38 }
 0x416   : > { %10462 = vtanh.f32 %v4758_v20 }
 0x418   : > { %v4978_v9 = vpop.f32.mrf.mxu2 }
 0x419   : > { %v5199_v1 = vpop.f32.mrf.mxu3  ;;  %v10457_v17 = vpop.eup %10456  ;;  %v4979_v53 = vadd.f32 %v13185_v61, %v4978_v9  ;;  %v9185_v9 = vld [vmem:[#allocation15 + $0x38] sm:$0xf0] }
 0x41a   : > { %v5200_v4 = vadd.f32 %v13187_v10, %v5199_v1  ;;  %v4539_v34 = vpop.f32.mrf.mxu0  ;;  %v10459_v29 = vpop.eup %10458  ;;  %5088 = vst [vmem:[%s12905_s29 + $0x900] sm:$0xff] %v10457_v17  ;;  %v8712_v1 = vor.u32 %v9185_v9, %v8711_v59  ;;  %v9176_v59 = vld [vmem:[#allocation15 + $0x14] sm:$0xf0] }
 0x41b   : > { %v4760_v24 = vpop.f32.mrf.mxu1  ;;  %v4540_v41 = vadd.f32 %v13173_v56, %v4539_v34  ;;  %v10461_v11 = vpop.eup %10460  ;;  %5309 = vst [vmem:[%s12905_s29 + $0xd00] sm:$0xff] %v10459_v29  ;;  %10464 = vtanh.f32 %v4979_v53  ;;  %v8676_v9 = vor.u32 %v9176_v59, %v8675_v26 }
 0x41c   : > { %v4761_v42 = vadd.f32 %v13175_v27, %v4760_v24  ;;  %4578 = vmatmul.bf16.gmra.mxu0 %v9105_v12  ;;  %v10463_v2 = vpop.eup %10462  ;;  %4647 = vst [vmem:[%s12905_s29 + $0x108] sm:$0xff] %v10461_v11  ;;  %10466 = vtanh.f32 %v5200_v4  ;;  %4799 = vmatmul.bf16.gmra.mxu1 %v9105_v12 }
 0x41d   : > { %4868 = vst [vmem:[%s12905_s29 + $0x508] sm:$0xff] %v10463_v2  ;;  %10468 = vtanh.f32 %v4540_v41  ;;  %5020 = vmatmul.bf16.gmra.mxu2 %v9105_v12  ;;  %5241 = vmatmul.bf16.gmra.mxu3 %v9105_v12  ;;  %v9107_v41 = vld [vmem:[#allocation4 + $0x158] sm:$0xff] }
 0x41e   : > { %10470 = vtanh.f32 %v4761_v42  ;;  %6206 = vmatpush.bf16.msrb.mxu3 %v8712_v1  ;;  %v8707_v1 = vld [vmem:[#allocation15 + $0xc] sm:$0xf]  ;;  %5986 = vmatpush.bf16.msrb.mxu2 %v8676_v9  ;;  %v8895_v9 = vld [vmem:[#allocation15 + $0xe8] sm:$0xf] }
 0x420   : > { %v4981_v35 = vpop.f32.mrf.mxu2 }
 0x421   : > { %v5202_v44 = vpop.f32.mrf.mxu3  ;;  %v10465_v8 = vpop.eup %10464  ;;  %v4982_v48 = vadd.f32 %v13185_v61, %v4981_v35  ;;  %v9169_v35 = vld [vmem:[#allocation15 + $0x30] sm:$0xf0] }
 0x422   : > { %v5203_v60 = vadd.f32 %v13187_v10, %v5202_v44  ;;  %v4541_v31 = vpop.f32.mrf.mxu0  ;;  %v10467_v37 = vpop.eup %10466  ;;  %5089 = vst [vmem:[%s12905_s29 + $0x908] sm:$0xff] %v10465_v8  ;;  %v8648_v44 = vor.u32 %v9169_v35, %v8647_v52  ;;  %v9160_v52 = vld [vmem:[#allocation15 + $0xc] sm:$0xf0] }
 0x423   : > { %v4762_v33 = vpop.f32.mrf.mxu1  ;;  %v4542_v15 = vadd.f32 %v13173_v56, %v4541_v31  ;;  %v10469_v54 = vpop.eup %10468  ;;  %5310 = vst [vmem:[%s12905_s29 + $0xd08] sm:$0xff] %v10467_v37  ;;  %10472 = vtanh.f32 %v4982_v48  ;;  %v8612_v35 = vor.u32 %v9160_v52, %v8611_v30 }
 0x424   : > { %v4763_v50 = vadd.f32 %v13175_v27, %v4762_v33  ;;  %v10471_v25 = vpop.eup %10470  ;;  %4648 = vst [vmem:[%s12905_s29 + $0x110] sm:$0xff] %v10469_v54  ;;  %10474 = vtanh.f32 %v5203_v60  ;;  %5764 = vmatpush.bf16.msrb.mxu1 %v8648_v44  ;;  %v8643_v44 = vld [vmem:[#allocation15 + $0x4] sm:$0xf] }
 0x425   : > { %4869 = vst [vmem:[%s12905_s29 + $0x510] sm:$0xff] %v10471_v25  ;;  %10476 = vtanh.f32 %v4542_v15  ;;  %5544 = vmatpush.bf16.msrb.mxu0 %v8612_v35  ;;  %v8831_v35 = vld [vmem:[#allocation15 + $0xe0] sm:$0xf] }
 0x426   : > { %10478 = vtanh.f32 %v4763_v50 }
 0x428   : > { %v4983_v39 = vpop.f32.mrf.mxu2 }
 0x429   : > { %v5204_v19 = vpop.f32.mrf.mxu3  ;;  %v10473_v46 = vpop.eup %10472  ;;  %v4984_v21 = vadd.f32 %v13185_v61, %v4983_v39 }
 0x42a   : > { %v5205_v6 = vadd.f32 %v13187_v10, %v5204_v19  ;;  %v4544_v36 = vpop.f32.mrf.mxu0  ;;  %v10475_v62 = vpop.eup %10474  ;;  %5090 = vst [vmem:[%s12905_s29 + $0x910] sm:$0xff] %v10473_v46 }
 0x42b   : > { %v4765_v49 = vpop.f32.mrf.mxu1  ;;  %v4545_v55 = vadd.f32 %v13173_v56, %v4544_v36  ;;  %v10477_v32 = vpop.eup %10476  ;;  %5311 = vst [vmem:[%s12905_s29 + $0xd10] sm:$0xff] %v10475_v62  ;;  %10480 = vtanh.f32 %v4984_v21 }
 0x42c   : > { %v4766_v23 = vadd.f32 %v13175_v27, %v4765_v49  ;;  %4583 = vmatmul.bf16.gmra.mxu0 %v9106_v57  ;;  %v10479_v18 = vpop.eup %10478  ;;  %4649 = vst [vmem:[%s12905_s29 + $0x118] sm:$0xff] %v10477_v32  ;;  %10482 = vtanh.f32 %v5205_v6  ;;  %4804 = vmatmul.bf16.gmra.mxu1 %v9106_v57 }
 0x42d   : > { %4870 = vst [vmem:[%s12905_s29 + $0x518] sm:$0xff] %v10479_v18  ;;  %10484 = vtanh.f32 %v4545_v55  ;;  %5025 = vmatmul.bf16.gmra.mxu2 %v9106_v57  ;;  %5246 = vmatmul.bf16.gmra.mxu3 %v9106_v57  ;;  %v9108_v55 = vld [vmem:[#allocation4 + $0x190] sm:$0xff] }
 0x42e   : > { %10486 = vtanh.f32 %v4766_v23 }
 0x430   : > { %v4986_v58 = vpop.f32.mrf.mxu2 }
 0x431   : > { %v5207_v14 = vpop.f32.mrf.mxu3  ;;  %v10481_v47 = vpop.eup %10480  ;;  %v4987_v51 = vadd.f32 %v13185_v61, %v4986_v58 }
 0x432   : > { %v5208_v63 = vadd.f32 %v13187_v10, %v5207_v14  ;;  %v4546_v43 = vpop.f32.mrf.mxu0  ;;  %v10483_v20 = vpop.eup %10482  ;;  %5091 = vst [vmem:[%s12905_s29 + $0x918] sm:$0xff] %v10481_v47 }
 0x433   : > { %v4767_v38 = vpop.f32.mrf.mxu1  ;;  %v4547_v40 = vadd.f32 %v13173_v56, %v4546_v43  ;;  %v10485_v7 = vpop.eup %10484  ;;  %5312 = vst [vmem:[%s12905_s29 + $0xd18] sm:$0xff] %v10483_v20  ;;  %10488 = vtanh.f32 %v4987_v51 }
 0x434   : > { %v4768_v3 = vadd.f32 %v13175_v27, %v4767_v38  ;;  %v10487_v28 = vpop.eup %10486  ;;  %4650 = vst [vmem:[%s12905_s29 + $0x120] sm:$0xff] %v10485_v7  ;;  %10490 = vtanh.f32 %v5208_v63 }
 0x435   : > { %4871 = vst [vmem:[%s12905_s29 + $0x520] sm:$0xff] %v10487_v28  ;;  %10492 = vtanh.f32 %v4547_v40 }
 0x436   : > { %10494 = vtanh.f32 %v4768_v3 }
 0x438   : > { %v4988_v17 = vpop.f32.mrf.mxu2 }
 0x439   : > { %v5209_v53 = vpop.f32.mrf.mxu3  ;;  %v10489_v4 = vpop.eup %10488  ;;  %v4989_v34 = vadd.f32 %v13185_v61, %v4988_v17  ;;  %v9184_v17 = vld [vmem:[#allocation15 + $0x18] sm:$0xf0] }
 0x43a   : > { %v5210_v24 = vadd.f32 %v13187_v10, %v5209_v53  ;;  %v4549_v12 = vpop.f32.mrf.mxu0  ;;  %v10491_v42 = vpop.eup %10490  ;;  %5092 = vst [vmem:[%s12905_s29 + $0x920] sm:$0xff] %v10489_v4  ;;  %v8708_v53 = vor.u32 %v9184_v17, %v8707_v1  ;;  %v9231_v1 = vld [vmem:[#allocation15 + $0xf4] sm:$0xf0] }
 0x43b   : > { %v4770_v29 = vpop.f32.mrf.mxu1  ;;  %v4550_v11 = vadd.f32 %v13173_v56, %v4549_v12  ;;  %v10493_v45 = vpop.eup %10492  ;;  %5313 = vst [vmem:[%s12905_s29 + $0xd20] sm:$0xff] %v10491_v42  ;;  %10496 = vtanh.f32 %v4989_v34  ;;  %v8896_v17 = vor.u32 %v9231_v1, %v8895_v9 }
 0x43c   : > { %v4771_v2 = vadd.f32 %v13175_v27, %v4770_v29  ;;  %4588 = vmatmul.bf16.gmra.mxu0 %v9107_v41  ;;  %v10495_v13 = vpop.eup %10494  ;;  %4651 = vst [vmem:[%s12905_s29 + $0x128] sm:$0xff] %v10493_v45  ;;  %10498 = vtanh.f32 %v5210_v24  ;;  %4809 = vmatmul.bf16.gmra.mxu1 %v9107_v41 }
 0x43d   : > { %4872 = vst [vmem:[%s12905_s29 + $0x528] sm:$0xff] %v10495_v13  ;;  %10500 = vtanh.f32 %v4550_v11  ;;  %5030 = vmatmul.bf16.gmra.mxu2 %v9107_v41  ;;  %5251 = vmatmul.bf16.gmra.mxu3 %v9107_v41  ;;  %v9109_v11 = vld [vmem:[#allocation4 + $0x1a0] sm:$0xff] }
 0x43e   : > { %10502 = vtanh.f32 %v4771_v2  ;;  %6207 = vmatpush.bf16.msrb.mxu3 %v8708_v53  ;;  %v8927_v53 = vld [vmem:[#allocation15 + $0xec] sm:$0xf]  ;;  %6991 = vmatpush.bf16.msra.mxu2 %v8896_v17  ;;  %v8891_v17 = vld [vmem:[#allocation15 + $0xc8] sm:$0xf] }
 0x440   : > { %v4991_v8 = vpop.f32.mrf.mxu2 }
 0x441   : > { %v5212_v48 = vpop.f32.mrf.mxu3  ;;  %v10497_v60 = vpop.eup %10496  ;;  %v4992_v31 = vadd.f32 %v13185_v61, %v4991_v8  ;;  %v9168_v8 = vld [vmem:[#allocation15 + $0x10] sm:$0xf0] }
 0x442   : > { %v5213_v33 = vadd.f32 %v13187_v10, %v5212_v48  ;;  %v4551_v37 = vpop.f32.mrf.mxu0  ;;  %v10499_v50 = vpop.eup %10498  ;;  %5093 = vst [vmem:[%s12905_s29 + $0x928] sm:$0xff] %v10497_v60  ;;  %v8644_v48 = vor.u32 %v9168_v8, %v8643_v44  ;;  %v9215_v44 = vld [vmem:[#allocation15 + $0xec] sm:$0xf0] }
 0x443   : > { %v4772_v15 = vpop.f32.mrf.mxu1  ;;  %v4552_v54 = vadd.f32 %v13173_v56, %v4551_v37  ;;  %v10501_v39 = vpop.eup %10500  ;;  %5314 = vst [vmem:[%s12905_s29 + $0xd28] sm:$0xff] %v10499_v50  ;;  %10504 = vtanh.f32 %v4992_v31  ;;  %v8832_v8 = vor.u32 %v9215_v44, %v8831_v35 }
 0x444   : > { %v4773_v25 = vadd.f32 %v13175_v27, %v4772_v15  ;;  %v10503_v19 = vpop.eup %10502  ;;  %4652 = vst [vmem:[%s12905_s29 + $0x130] sm:$0xff] %v10501_v39  ;;  %10506 = vtanh.f32 %v5213_v33  ;;  %5765 = vmatpush.bf16.msrb.mxu1 %v8644_v48  ;;  %v8863_v48 = vld [vmem:[#allocation15 + $0xe4] sm:$0xf] }
 0x445   : > { %4873 = vst [vmem:[%s12905_s29 + $0x530] sm:$0xff] %v10503_v19  ;;  %10508 = vtanh.f32 %v4552_v54  ;;  %6549 = vmatpush.bf16.msra.mxu0 %v8832_v8  ;;  %v8827_v8 = vld [vmem:[#allocation15 + $0xc0] sm:$0xf] }
 0x446   : > { %10510 = vtanh.f32 %v4773_v25 }
 0x448   : > { %v4993_v46 = vpop.f32.mrf.mxu2 }
 0x449   : > { %v5214_v21 = vpop.f32.mrf.mxu3  ;;  %v10505_v6 = vpop.eup %10504  ;;  %v4994_v36 = vadd.f32 %v13185_v61, %v4993_v46 }
 0x44a   : > { %v5215_v49 = vadd.f32 %v13187_v10, %v5214_v21  ;;  %v4554_v57 = vpop.f32.mrf.mxu0  ;;  %v10507_v23 = vpop.eup %10506  ;;  %5094 = vst [vmem:[%s12905_s29 + $0x930] sm:$0xff] %v10505_v6 }
 0x44b   : > { %v4775_v62 = vpop.f32.mrf.mxu1  ;;  %v4555_v32 = vadd.f32 %v13173_v56, %v4554_v57  ;;  %v10509_v58 = vpop.eup %10508  ;;  %5315 = vst [vmem:[%s12905_s29 + $0xd30] sm:$0xff] %v10507_v23  ;;  %10512 = vtanh.f32 %v4994_v36 }
 0x44c   : > { %v4776_v18 = vadd.f32 %v13175_v27, %v4775_v62  ;;  %4593 = vmatmul.bf16.gmra.mxu0 %v9108_v55  ;;  %v10511_v14 = vpop.eup %10510  ;;  %4653 = vst [vmem:[%s12905_s29 + $0x138] sm:$0xff] %v10509_v58  ;;  %10514 = vtanh.f32 %v5215_v49  ;;  %4814 = vmatmul.bf16.gmra.mxu1 %v9108_v55 }
 0x44d   : > { %4874 = vst [vmem:[%s12905_s29 + $0x538] sm:$0xff] %v10511_v14  ;;  %10516 = vtanh.f32 %v4555_v32  ;;  %5035 = vmatmul.bf16.gmra.mxu2 %v9108_v55  ;;  %5256 = vmatmul.bf16.gmra.mxu3 %v9108_v55  ;;  %v9110_v32 = vld [vmem:[#allocation4 + $0x168] sm:$0xff] }
 0x44e   : > { %10518 = vtanh.f32 %v4776_v18 }
 0x450   : > { %v4996_v47 = vpop.f32.mrf.mxu2 }
 0x451   : > { %v5217_v51 = vpop.f32.mrf.mxu3  ;;  %v10513_v63 = vpop.eup %10512  ;;  %v4997_v43 = vadd.f32 %v13185_v61, %v4996_v47 }
 0x452   : > { %v5218_v38 = vadd.f32 %v13187_v10, %v5217_v51  ;;  %v4556_v20 = vpop.f32.mrf.mxu0  ;;  %v10515_v3 = vpop.eup %10514  ;;  %5095 = vst [vmem:[%s12905_s29 + $0x938] sm:$0xff] %v10513_v63 }
 0x453   : > { %v4777_v40 = vpop.f32.mrf.mxu1  ;;  %v4557_v7 = vadd.f32 %v13173_v56, %v4556_v20  ;;  %v10517_v22 = vpop.eup %10516  ;;  %5316 = vst [vmem:[%s12905_s29 + $0xd38] sm:$0xff] %v10515_v3  ;;  %10520 = vtanh.f32 %v4997_v43 }
 0x454   : > { %v4778_v28 = vadd.f32 %v13175_v27, %v4777_v40  ;;  %v10519_v0 = vpop.eup %10518  ;;  %4654 = vst [vmem:[%s12905_s29 + $0x140] sm:$0xff] %v10517_v22  ;;  %10522 = vtanh.f32 %v5218_v38 }
 0x455   : > { %4875 = vst [vmem:[%s12905_s29 + $0x540] sm:$0xff] %v10519_v0  ;;  %10524 = vtanh.f32 %v4557_v7 }
 0x456   : > { %10526 = vtanh.f32 %v4778_v28 }
 0x458   : > { %v4998_v4 = vpop.f32.mrf.mxu2 }
 0x459   : > { %v5219_v34 = vpop.f32.mrf.mxu3  ;;  %v10521_v24 = vpop.eup %10520  ;;  %v4999_v12 = vadd.f32 %v13185_v61, %v4998_v4  ;;  %v9239_v4 = vld [vmem:[#allocation15 + $0xf8] sm:$0xf0] }
 0x45a   : > { %v5220_v29 = vadd.f32 %v13187_v10, %v5219_v34  ;;  %v4559_v41 = vpop.f32.mrf.mxu0  ;;  %v10523_v2 = vpop.eup %10522  ;;  %5096 = vst [vmem:[%s12905_s29 + $0x940] sm:$0xff] %v10521_v24  ;;  %v8928_v34 = vor.u32 %v9239_v4, %v8927_v53  ;;  %v9230_v53 = vld [vmem:[#allocation15 + $0xd4] sm:$0xf0] }
 0x45b   : > { %v4780_v42 = vpop.f32.mrf.mxu1  ;;  %v4560_v45 = vadd.f32 %v13173_v56, %v4559_v41  ;;  %v10525_v5 = vpop.eup %10524  ;;  %5317 = vst [vmem:[%s12905_s29 + $0xd40] sm:$0xff] %v10523_v2  ;;  %10528 = vtanh.f32 %v4999_v12  ;;  %v8892_v4 = vor.u32 %v9230_v53, %v8891_v17 }
 0x45c   : > { %v4781_v13 = vadd.f32 %v13175_v27, %v4780_v42  ;;  %4598 = vmatmul.bf16.gmra.mxu0 %v9109_v11  ;;  %v10527_v16 = vpop.eup %10526  ;;  %4655 = vst [vmem:[%s12905_s29 + $0x148] sm:$0xff] %v10525_v5  ;;  %10530 = vtanh.f32 %v5220_v29  ;;  %4819 = vmatmul.bf16.gmra.mxu1 %v9109_v11 }
 0x45d   : > { %4876 = vst [vmem:[%s12905_s29 + $0x548] sm:$0xff] %v10527_v16  ;;  %10532 = vtanh.f32 %v4560_v45  ;;  %5040 = vmatmul.bf16.gmra.mxu2 %v9109_v11  ;;  %5261 = vmatmul.bf16.gmra.mxu3 %v9109_v11  ;;  %v9111_v45 = vld [vmem:[#allocation4 + $0x78] sm:$0xff] }
 0x45e   : > { %10534 = vtanh.f32 %v4781_v13  ;;  %7212 = vmatpush.bf16.msra.mxu3 %v8928_v34  ;;  %v8923_v34 = vld [vmem:[#allocation15 + $0xcc] sm:$0xf]  ;;  %6992 = vmatpush.bf16.msra.mxu2 %v8892_v4  ;;  %v8887_v4 = vld [vmem:[#allocation15 + $0xa8] sm:$0xf] }
 0x460   : > { %v5001_v60 = vpop.f32.mrf.mxu2 }
 0x461   : > { %v5222_v31 = vpop.f32.mrf.mxu3  ;;  %v10529_v33 = vpop.eup %10528  ;;  %v5002_v37 = vadd.f32 %v13185_v61, %v5001_v60  ;;  %v9223_v60 = vld [vmem:[#allocation15 + $0xf0] sm:$0xf0] }
 0x462   : > { %v5223_v15 = vadd.f32 %v13187_v10, %v5222_v31  ;;  %v4561_v50 = vpop.f32.mrf.mxu0  ;;  %v10531_v25 = vpop.eup %10530  ;;  %5097 = vst [vmem:[%s12905_s29 + $0x948] sm:$0xff] %v10529_v33  ;;  %v8864_v31 = vor.u32 %v9223_v60, %v8863_v48  ;;  %v9214_v48 = vld [vmem:[#allocation15 + $0xcc] sm:$0xf0] }
 0x463   : > { %v4782_v54 = vpop.f32.mrf.mxu1  ;;  %v4562_v39 = vadd.f32 %v13173_v56, %v4561_v50  ;;  %v10533_v46 = vpop.eup %10532  ;;  %5318 = vst [vmem:[%s12905_s29 + $0xd48] sm:$0xff] %v10531_v25  ;;  %10536 = vtanh.f32 %v5002_v37  ;;  %v8828_v60 = vor.u32 %v9214_v48, %v8827_v8 }
 0x464   : > { %v4783_v19 = vadd.f32 %v13175_v27, %v4782_v54  ;;  %v10535_v21 = vpop.eup %10534  ;;  %4656 = vst [vmem:[%s12905_s29 + $0x150] sm:$0xff] %v10533_v46  ;;  %10538 = vtanh.f32 %v5223_v15  ;;  %6770 = vmatpush.bf16.msra.mxu1 %v8864_v31  ;;  %v9222_v31 = vld [vmem:[#allocation15 + $0xd0] sm:$0xf0] }
 0x465   : > { %4877 = vst [vmem:[%s12905_s29 + $0x550] sm:$0xff] %v10535_v21  ;;  %10540 = vtanh.f32 %v4562_v39  ;;  %6550 = vmatpush.bf16.msra.mxu0 %v8828_v60  ;;  %v8823_v60 = vld [vmem:[#allocation15 + $0xa0] sm:$0xf] }
 0x466   : > { %10542 = vtanh.f32 %v4783_v19 }
 0x468   : > { %v5003_v6 = vpop.f32.mrf.mxu2 }
 0x469   : > { %v5224_v36 = vpop.f32.mrf.mxu3  ;;  %v10537_v49 = vpop.eup %10536  ;;  %v5004_v57 = vadd.f32 %v13185_v61, %v5003_v6 }
 0x46a   : > { %v5225_v62 = vadd.f32 %v13187_v10, %v5224_v36  ;;  %v4564_v55 = vpop.f32.mrf.mxu0  ;;  %v10539_v18 = vpop.eup %10538  ;;  %5098 = vst [vmem:[%s12905_s29 + $0x950] sm:$0xff] %v10537_v49 }
 0x46b   : > { %v4785_v23 = vpop.f32.mrf.mxu1  ;;  %v4565_v58 = vadd.f32 %v13173_v56, %v4564_v55  ;;  %v10541_v47 = vpop.eup %10540  ;;  %5319 = vst [vmem:[%s12905_s29 + $0xd50] sm:$0xff] %v10539_v18  ;;  %10544 = vtanh.f32 %v5004_v57 }
 0x46c   : > { %v4786_v14 = vadd.f32 %v13175_v27, %v4785_v23  ;;  %4603 = vmatmul.bf16.gmra.mxu0 %v9110_v32  ;;  %v10543_v51 = vpop.eup %10542  ;;  %4657 = vst [vmem:[%s12905_s29 + $0x158] sm:$0xff] %v10541_v47  ;;  %10546 = vtanh.f32 %v5225_v62  ;;  %4824 = vmatmul.bf16.gmra.mxu1 %v9110_v32 }
 0x46d   : > { %4878 = vst [vmem:[%s12905_s29 + $0x558] sm:$0xff] %v10543_v51  ;;  %10548 = vtanh.f32 %v4565_v58  ;;  %5045 = vmatmul.bf16.gmra.mxu2 %v9110_v32  ;;  %5266 = vmatmul.bf16.gmra.mxu3 %v9110_v32  ;;  %v9144_v58 = vld [vmem:[#allocation4 + $0xf8] sm:$0xff] }
 0x46e   : > { %10550 = vtanh.f32 %v4786_v14 }
 0x470   : > { %v5006_v63 = vpop.f32.mrf.mxu2 }
 0x471   : > { %v5227_v43 = vpop.f32.mrf.mxu3  ;;  %v10545_v38 = vpop.eup %10544  ;;  %v5007_v20 = vadd.f32 %v13185_v61, %v5006_v63 }
 0x472   : > { %v5228_v40 = vadd.f32 %v13187_v10, %v5227_v43  ;;  %v4566_v3 = vpop.f32.mrf.mxu0  ;;  %v10547_v28 = vpop.eup %10546  ;;  %5099 = vst [vmem:[%s12905_s29 + $0x958] sm:$0xff] %v10545_v38 }
 0x473   : > { %v4787_v7 = vpop.f32.mrf.mxu1  ;;  %v4567_v22 = vadd.f32 %v13173_v56, %v4566_v3  ;;  %v10549_v26 = vpop.eup %10548  ;;  %5320 = vst [vmem:[%s12905_s29 + $0xd58] sm:$0xff] %v10547_v28  ;;  %10552 = vtanh.f32 %v5007_v20 }
 0x474   : > { %v4788_v0 = vadd.f32 %v13175_v27, %v4787_v7  ;;  %v10551_v59 = vpop.eup %10550  ;;  %4658 = vst [vmem:[%s12905_s29 + $0x160] sm:$0xff] %v10549_v26  ;;  %10554 = vtanh.f32 %v5228_v40 }
 0x475   : > { %4879 = vst [vmem:[%s12905_s29 + $0x560] sm:$0xff] %v10551_v59  ;;  %10556 = vtanh.f32 %v4567_v22 }
 0x476   : > { %10558 = vtanh.f32 %v4788_v0 }
 0x478   : > { %v5008_v24 = vpop.f32.mrf.mxu2 }
 0x479   : > { %v5229_v12 = vpop.f32.mrf.mxu3  ;;  %v10553_v29 = vpop.eup %10552  ;;  %v5009_v41 = vadd.f32 %v13185_v61, %v5008_v24  ;;  %v9238_v24 = vld [vmem:[#allocation15 + $0xd8] sm:$0xf0] }
 0x47a   : > { %v5230_v42 = vadd.f32 %v13187_v10, %v5229_v12  ;;  %v4569_v11 = vpop.f32.mrf.mxu0  ;;  %v10555_v13 = vpop.eup %10554  ;;  %5100 = vst [vmem:[%s12905_s29 + $0x960] sm:$0xff] %v10553_v29  ;;  %v8924_v12 = vor.u32 %v9238_v24, %v8923_v34  ;;  %v9229_v34 = vld [vmem:[#allocation15 + $0xb4] sm:$0xf0] }
 0x47b   : > { %v4790_v2 = vpop.f32.mrf.mxu1  ;;  %v4570_v5 = vadd.f32 %v13173_v56, %v4569_v11  ;;  %v10557_v30 = vpop.eup %10556  ;;  %5321 = vst [vmem:[%s12905_s29 + $0xd60] sm:$0xff] %v10555_v13  ;;  %10560 = vtanh.f32 %v5009_v41  ;;  %v8888_v24 = vor.u32 %v9229_v34, %v8887_v4 }
 0x47c   : > { %v4791_v16 = vadd.f32 %v13175_v27, %v4790_v2  ;;  %4608 = vmatmul.bf16.gmra.mxu0 %v9111_v45  ;;  %v10559_v52 = vpop.eup %10558  ;;  %4659 = vst [vmem:[%s12905_s29 + $0x168] sm:$0xff] %v10557_v30  ;;  %10562 = vtanh.f32 %v5230_v42  ;;  %4829 = vmatmul.bf16.gmra.mxu1 %v9111_v45 }
 0x47d   : > { %4880 = vst [vmem:[%s12905_s29 + $0x568] sm:$0xff] %v10559_v52  ;;  %10564 = vtanh.f32 %v4570_v5  ;;  %5050 = vmatmul.bf16.gmra.mxu2 %v9111_v45  ;;  %5271 = vmatmul.bf16.gmra.mxu3 %v9111_v45  ;;  %v9145_v5 = vld [vmem:[#allocation4 + $0x10] sm:$0xff] }
 0x47e   : > { %10566 = vtanh.f32 %v4791_v16  ;;  %7213 = vmatpush.bf16.msra.mxu3 %v8924_v12  ;;  %v8919_v12 = vld [vmem:[#allocation15 + $0xac] sm:$0xf]  ;;  %6993 = vmatpush.bf16.msra.mxu2 %v8888_v24  ;;  %v8883_v24 = vld [vmem:[#allocation15 + $0x88] sm:$0xf] }
 0x480   : > { %v5011_v33 = vpop.f32.mrf.mxu2 }
 0x481   : > { %v5232_v37 = vpop.f32.mrf.mxu3  ;;  %v10561_v15 = vpop.eup %10560  ;;  %v5012_v50 = vadd.f32 %v13185_v61, %v5011_v33 }
 0x482   : > { %v5233_v54 = vadd.f32 %v13187_v10, %v5232_v37  ;;  %v4571_v25 = vpop.f32.mrf.mxu0  ;;  %v10563_v19 = vpop.eup %10562  ;;  %5101 = vst [vmem:[%s12905_s29 + $0x968] sm:$0xff] %v10561_v15 }
 0x483   : > { %v4792_v39 = vpop.f32.mrf.mxu1  ;;  %v4572_v46 = vadd.f32 %v13173_v56, %v4571_v25  ;;  %v10565_v6 = vpop.eup %10564  ;;  %5322 = vst [vmem:[%s12905_s29 + $0xd68] sm:$0xff] %v10563_v19  ;;  %10568 = vtanh.f32 %v5012_v50 }
 0x484   : > { %v4793_v21 = vadd.f32 %v13175_v27, %v4792_v39  ;;  %v10567_v36 = vpop.eup %10566  ;;  %4660 = vst [vmem:[%s12905_s29 + $0x170] sm:$0xff] %v10565_v6  ;;  %10570 = vtanh.f32 %v5233_v54  ;;  %v13339_v6 = vld [vmem:[#allocation16 + $0x1] ss:$0 sm:$0xff] }
 0x485   : > { %4881 = vst [vmem:[%s12905_s29 + $0x570] sm:$0xff] %v10567_v36  ;;  %10572 = vtanh.f32 %v4572_v46  ;;  %v13336_v46 = vld [vmem:[#allocation16] ss:$0 sm:$0xff] }
 0x486   : > { %10574 = vtanh.f32 %v4793_v21 }
 0x488   : > { %v5013_v49 = vpop.f32.mrf.mxu2 }
 0x489   : > { %v5234_v57 = vpop.f32.mrf.mxu3  ;;  %v10569_v62 = vpop.eup %10568  ;;  %v5014_v55 = vadd.f32 %v13185_v61, %v5013_v49 }
 0x48a   : > { %v5235_v23 = vadd.f32 %v13187_v10, %v5234_v57  ;;  %v4574_v32 = vpop.f32.mrf.mxu0  ;;  %v10571_v14 = vpop.eup %10570  ;;  %5102 = vst [vmem:[%s12905_s29 + $0x970] sm:$0xff] %v10569_v62 }
 0x48b   : > { %v4795_v18 = vpop.f32.mrf.mxu1  ;;  %v4575_v47 = vadd.f32 %v13173_v56, %v4574_v32  ;;  %v10573_v63 = vpop.eup %10572  ;;  %5323 = vst [vmem:[%s12905_s29 + $0xd70] sm:$0xff] %v10571_v14  ;;  %10576 = vtanh.f32 %v5014_v55 }
 0x48c   : > { %v4796_v51 = vadd.f32 %v13175_v27, %v4795_v18  ;;  %5545 = vmatmul.bf16.vlgmr.msrb.gmra.mxu0 %v9144_v58  ;;  %v10575_v43 = vpop.eup %10574  ;;  %4661 = vst [vmem:[%s12905_s29 + $0x178] sm:$0xff] %v10573_v63  ;;  %10578 = vtanh.f32 %v5235_v23  ;;  %5766 = vmatmul.bf16.vlgmr.msrb.gmra.mxu1 %v9144_v58 }
 0x48d   : > { %4882 = vst [vmem:[%s12905_s29 + $0x578] sm:$0xff] %v10575_v43  ;;  %10580 = vtanh.f32 %v4575_v47  ;;  %5987 = vmatmul.bf16.vlgmr.msrb.gmra.mxu2 %v9144_v58  ;;  %6208 = vmatmul.bf16.vlgmr.msrb.gmra.mxu3 %v9144_v58  ;;  %v9146_v47 = vld [vmem:[#allocation4 + $0x178] sm:$0xff] }
 0x48e   : > { %10582 = vtanh.f32 %v4796_v51 }
 0x490   : > { %v5016_v38 = vpop.f32.mrf.mxu2 }
 0x491   : > { %v5237_v20 = vpop.f32.mrf.mxu3  ;;  %v10577_v40 = vpop.eup %10576  ;;  %v5017_v3 = vadd.f32 %v13185_v61, %v5016_v38 }
 0x492   : > { %v5238_v7 = vadd.f32 %v13187_v10, %v5237_v20  ;;  %v4576_v28 = vpop.f32.mrf.mxu0  ;;  %v10579_v0 = vpop.eup %10578  ;;  %5103 = vst [vmem:[%s12905_s29 + $0x978] sm:$0xff] %v10577_v40 }
 0x493   : > { %v4797_v22 = vpop.f32.mrf.mxu1  ;;  %v4577_v26 = vadd.f32 %v13173_v56, %v4576_v28  ;;  %v10581_v9 = vpop.eup %10580  ;;  %5324 = vst [vmem:[%s12905_s29 + $0xd78] sm:$0xff] %v10579_v0  ;;  %10584 = vtanh.f32 %v5017_v3  ;;  %v13353_v3 = vld [vmem:[#allocation16 + $0x2] ss:$0 sm:$0xff]  ;;  %v13356_v28 = vld [vmem:[#allocation16 + $0x3] ss:$0 sm:$0xff] }
 0x494   : > { %v4798_v59 = vadd.f32 %v13175_v27, %v4797_v22  ;;  %v10583_v1 = vpop.eup %10582  ;;  %4662 = vst [vmem:[%s12905_s29 + $0x180] sm:$0xff] %v10581_v9  ;;  %10586 = vtanh.f32 %v5238_v7 }
 0x495   : > { %4883 = vst [vmem:[%s12905_s29 + $0x580] sm:$0xff] %v10583_v1  ;;  %10588 = vtanh.f32 %v4577_v26 }
 0x496   : > { %10590 = vtanh.f32 %v4798_v59 }
 0x498   : > { %v5018_v29 = vpop.f32.mrf.mxu2 }
 0x499   : > { %v5239_v41 = vpop.f32.mrf.mxu3  ;;  %v10585_v42 = vpop.eup %10584  ;;  %v5019_v11 = vadd.f32 %v13185_v61, %v5018_v29  ;;  %v9237_v29 = vld [vmem:[#allocation15 + $0xb8] sm:$0xf0] }
 0x49a   : > { %v5240_v2 = vadd.f32 %v13187_v10, %v5239_v41  ;;  %v4579_v45 = vpop.f32.mrf.mxu0  ;;  %v10587_v16 = vpop.eup %10586  ;;  %5104 = vst [vmem:[%s12905_s29 + $0x980] sm:$0xff] %v10585_v42  ;;  %v8920_v41 = vor.u32 %v9237_v29, %v8919_v12  ;;  %v9228_v12 = vld [vmem:[#allocation15 + $0x94] sm:$0xf0] }
 0x49b   : > { %v4800_v13 = vpop.f32.mrf.mxu1  ;;  %v4580_v30 = vadd.f32 %v13173_v56, %v4579_v45  ;;  %v10589_v35 = vpop.eup %10588  ;;  %5325 = vst [vmem:[%s12905_s29 + $0xd80] sm:$0xff] %v10587_v16  ;;  %10592 = vtanh.f32 %v5019_v11  ;;  %v8859_v56 = vld [vmem:[#allocation15 + $0xc4] sm:$0xf]  ;;  %v8884_v29 = vor.u32 %v9228_v12, %v8883_v24 }
 0x49c   : > { %v4801_v52 = vadd.f32 %v13175_v27, %v4800_v13  ;;  %5550 = vmatmul.bf16.gmra.mxu0 %v9145_v5  ;;  %v10591_v44 = vpop.eup %10590  ;;  %4663 = vst [vmem:[%s12905_s29 + $0x188] sm:$0xff] %v10589_v35  ;;  %10594 = vtanh.f32 %v5240_v2  ;;  %5771 = vmatmul.bf16.gmra.mxu1 %v9145_v5  ;;  %v8860_v27 = vor.u32 %v9222_v31, %v8859_v56  ;;  %v9213_v56 = vld [vmem:[#allocation15 + $0xac] sm:$0xf0] }
 0x49d   : > { %4884 = vst [vmem:[%s12905_s29 + $0x588] sm:$0xff] %v10591_v44  ;;  %10596 = vtanh.f32 %v4580_v30  ;;  %5992 = vmatmul.bf16.gmra.mxu2 %v9145_v5  ;;  %6213 = vmatmul.bf16.gmra.mxu3 %v9145_v5  ;;  %v9147_v30 = vld [vmem:[#allocation4 + $0x1f0] sm:$0xff]  ;;  %v8824_v31 = vor.u32 %v9213_v56, %v8823_v60 }
 0x49e   : > { %10598 = vtanh.f32 %v4801_v52  ;;  %6771 = vmatpush.bf16.msra.mxu1 %v8860_v27  ;;  %7214 = vmatpush.bf16.msra.mxu3 %v8920_v41  ;;  %v8855_v27 = vld [vmem:[#allocation15 + $0xa4] sm:$0xf]  ;;  %v8915_v41 = vld [vmem:[#allocation15 + $0x8c] sm:$0xf] }
 0x49f   : > { %6551 = vmatpush.bf16.msra.mxu0 %v8824_v31  ;;  %6994 = vmatpush.bf16.msra.mxu2 %v8884_v29  ;;  %v8819_v31 = vld [vmem:[#allocation15 + $0x80] sm:$0xf]  ;;  %v8879_v29 = vld [vmem:[#allocation15 + $0x68] sm:$0xf] }
 0x4a0   : > { %v5021_v33 = vpop.f32.mrf.mxu2 }
 0x4a1   : > { %v5242_v37 = vpop.f32.mrf.mxu3  ;;  %v10593_v15 = vpop.eup %10592  ;;  %v5022_v50 = vadd.f32 %v13185_v61, %v5021_v33  ;;  %v9221_v33 = vld [vmem:[#allocation15 + $0xb0] sm:$0xf0] }
 0x4a2   : > { %v5243_v54 = vadd.f32 %v13187_v10, %v5242_v37  ;;  %v4581_v25 = vpop.f32.mrf.mxu0  ;;  %v10595_v19 = vpop.eup %10594  ;;  %5105 = vst [vmem:[%s12905_s29 + $0x988] sm:$0xff] %v10593_v15  ;;  %v8856_v37 = vor.u32 %v9221_v33, %v8855_v27  ;;  %v9212_v27 = vld [vmem:[#allocation15 + $0x8c] sm:$0xf0] }
 0x4a3   : > { %v4802_v39 = vpop.f32.mrf.mxu1  ;;  %v4582_v21 = vadd.f32 %v13336_v46, %v4581_v25  ;;  %v10597_v49 = vpop.eup %10596  ;;  %5326 = vst [vmem:[%s12905_s29 + $0xd88] sm:$0xff] %v10595_v19  ;;  %10600 = vtanh.f32 %v5022_v50  ;;  %v8820_v33 = vor.u32 %v9212_v27, %v8819_v31 }
 0x4a4   : > { %v4803_v36 = vadd.f32 %v13339_v6, %v4802_v39  ;;  %v10599_v57 = vpop.eup %10598  ;;  %4664 = vst [vmem:[%s12905_s29 + $0x190] sm:$0xff] %v10597_v49  ;;  %10602 = vtanh.f32 %v5243_v54  ;;  %6772 = vmatpush.bf16.msra.mxu1 %v8856_v37  ;;  %v8851_v37 = vld [vmem:[#allocation15 + $0x84] sm:$0xf] }
 0x4a5   : > { %4885 = vst [vmem:[%s12905_s29 + $0x590] sm:$0xff] %v10599_v57  ;;  %10604 = vtanh.f32 %v4582_v21  ;;  %6552 = vmatpush.bf16.msra.mxu0 %v8820_v33  ;;  %v8815_v33 = vld [vmem:[#allocation15 + $0x60] sm:$0xf] }
 0x4a6   : > { %10606 = vtanh.f32 %v4803_v36 }
 0x4a8   : > { %v5023_v62 = vpop.f32.mrf.mxu2 }
 0x4a9   : > { %v5244_v55 = vpop.f32.mrf.mxu3  ;;  %v10601_v23 = vpop.eup %10600  ;;  %v5024_v32 = vadd.f32 %v13185_v61, %v5023_v62 }
 0x4aa   : > { %v5245_v18 = vadd.f32 %v13187_v10, %v5244_v55  ;;  %v4584_v58 = vpop.f32.mrf.mxu0  ;;  %v10603_v51 = vpop.eup %10602  ;;  %5106 = vst [vmem:[%s12905_s29 + $0x990] sm:$0xff] %v10601_v23 }
 0x4ab   : > { %v4805_v14 = vpop.f32.mrf.mxu1  ;;  %v4585_v63 = vadd.f32 %v13336_v46, %v4584_v58  ;;  %v10605_v38 = vpop.eup %10604  ;;  %5327 = vst [vmem:[%s12905_s29 + $0xd90] sm:$0xff] %v10603_v51  ;;  %10608 = vtanh.f32 %v5024_v32 }
 0x4ac   : > { %v4806_v43 = vadd.f32 %v13339_v6, %v4805_v14  ;;  %5555 = vmatmul.bf16.gmra.mxu0 %v9146_v47  ;;  %v10607_v20 = vpop.eup %10606  ;;  %4665 = vst [vmem:[%s12905_s29 + $0x198] sm:$0xff] %v10605_v38  ;;  %10610 = vtanh.f32 %v5245_v18  ;;  %5776 = vmatmul.bf16.gmra.mxu1 %v9146_v47 }
 0x4ad   : > { %4886 = vst [vmem:[%s12905_s29 + $0x598] sm:$0xff] %v10607_v20  ;;  %10612 = vtanh.f32 %v4585_v63  ;;  %5997 = vmatmul.bf16.gmra.mxu2 %v9146_v47  ;;  %6218 = vmatmul.bf16.gmra.mxu3 %v9146_v47  ;;  %v9148_v63 = vld [vmem:[#allocation4 + $0x138] sm:$0xff] }
 0x4ae   : > { %10614 = vtanh.f32 %v4806_v43 }
 0x4b0   : > { %v5026_v61 = vpop.f32.mrf.mxu2 }
 0x4b1   : > { %v5247_v10 = vpop.f32.mrf.mxu3  ;;  %v10609_v40 = vpop.eup %10608  ;;  %v5027_v7 = vadd.f32 %v13353_v3, %v5026_v61 }
 0x4b2   : > { %v5248_v22 = vadd.f32 %v13356_v28, %v5247_v10  ;;  %v4586_v0 = vpop.f32.mrf.mxu0  ;;  %v10611_v59 = vpop.eup %10610  ;;  %5107 = vst [vmem:[%s12905_s29 + $0x998] sm:$0xff] %v10609_v40 }
 0x4b3   : > { %v4807_v26 = vpop.f32.mrf.mxu1  ;;  %v4587_v9 = vadd.f32 %v13336_v46, %v4586_v0  ;;  %v10613_v17 = vpop.eup %10612  ;;  %5328 = vst [vmem:[%s12905_s29 + $0xd98] sm:$0xff] %v10611_v59  ;;  %10616 = vtanh.f32 %v5027_v7 }
 0x4b4   : > { %v4808_v1 = vadd.f32 %v13339_v6, %v4807_v26  ;;  %v10615_v53 = vpop.eup %10614  ;;  %4666 = vst [vmem:[%s12905_s29 + $0x1a0] sm:$0xff] %v10613_v17  ;;  %10618 = vtanh.f32 %v5248_v22 }
 0x4b5   : > { %4887 = vst [vmem:[%s12905_s29 + $0x5a0] sm:$0xff] %v10615_v53  ;;  %10620 = vtanh.f32 %v4587_v9 }
 0x4b6   : > { %10622 = vtanh.f32 %v4808_v1 }
 0x4b8   : > { %v5028_v42 = vpop.f32.mrf.mxu2 }
 0x4b9   : > { %v5249_v11 = vpop.f32.mrf.mxu3  ;;  %v10617_v2 = vpop.eup %10616  ;;  %v5029_v45 = vadd.f32 %v13353_v3, %v5028_v42  ;;  %v9236_v42 = vld [vmem:[#allocation15 + $0x98] sm:$0xf0] }
 0x4ba   : > { %v5250_v13 = vadd.f32 %v13356_v28, %v5249_v11  ;;  %v4589_v5 = vpop.f32.mrf.mxu0  ;;  %v10619_v52 = vpop.eup %10618  ;;  %5108 = vst [vmem:[%s12905_s29 + $0x9a0] sm:$0xff] %v10617_v2  ;;  %v8916_v11 = vor.u32 %v9236_v42, %v8915_v41  ;;  %v9227_v41 = vld [vmem:[#allocation15 + $0x74] sm:$0xf0] }
 0x4bb   : > { %v4810_v16 = vpop.f32.mrf.mxu1  ;;  %v4590_v35 = vadd.f32 %v13336_v46, %v4589_v5  ;;  %v10621_v8 = vpop.eup %10620  ;;  %5329 = vst [vmem:[%s12905_s29 + $0xda0] sm:$0xff] %v10619_v52  ;;  %10624 = vtanh.f32 %v5029_v45  ;;  %v8880_v42 = vor.u32 %v9227_v41, %v8879_v29 }
 0x4bc   : > { %v4811_v44 = vadd.f32 %v13339_v6, %v4810_v16  ;;  %5560 = vmatmul.bf16.gmra.mxu0 %v9147_v30  ;;  %v10623_v48 = vpop.eup %10622  ;;  %4667 = vst [vmem:[%s12905_s29 + $0x1a8] sm:$0xff] %v10621_v8  ;;  %10626 = vtanh.f32 %v5250_v13  ;;  %5781 = vmatmul.bf16.gmra.mxu1 %v9147_v30 }
 0x4bd   : > { %4888 = vst [vmem:[%s12905_s29 + $0x5a8] sm:$0xff] %v10623_v48  ;;  %10628 = vtanh.f32 %v4590_v35  ;;  %6002 = vmatmul.bf16.gmra.mxu2 %v9147_v30  ;;  %6223 = vmatmul.bf16.gmra.mxu3 %v9147_v30  ;;  %v9149_v35 = vld [vmem:[#allocation4 + $0x1b0] sm:$0xff] }
 0x4be   : > { %10630 = vtanh.f32 %v4811_v44  ;;  %7215 = vmatpush.bf16.msra.mxu3 %v8916_v11  ;;  %v8911_v11 = vld [vmem:[#allocation15 + $0x6c] sm:$0xf]  ;;  %6995 = vmatpush.bf16.msra.mxu2 %v8880_v42  ;;  %v8875_v42 = vld [vmem:[#allocation15 + $0x48] sm:$0xf] }
 0x4c0   : > { %v5031_v15 = vpop.f32.mrf.mxu2 }
 0x4c1   : > { %v5252_v50 = vpop.f32.mrf.mxu3  ;;  %v10625_v54 = vpop.eup %10624  ;;  %v5032_v25 = vadd.f32 %v13353_v3, %v5031_v15  ;;  %v9220_v15 = vld [vmem:[#allocation15 + $0x90] sm:$0xf0] }
 0x4c2   : > { %v5253_v39 = vadd.f32 %v13356_v28, %v5252_v50  ;;  %v4591_v19 = vpop.f32.mrf.mxu0  ;;  %v10627_v36 = vpop.eup %10626  ;;  %5109 = vst [vmem:[%s12905_s29 + $0x9a8] sm:$0xff] %v10625_v54  ;;  %v8852_v50 = vor.u32 %v9220_v15, %v8851_v37  ;;  %v9211_v37 = vld [vmem:[#allocation15 + $0x6c] sm:$0xf0] }
 0x4c3   : > { %v4812_v21 = vpop.f32.mrf.mxu1  ;;  %v4592_v49 = vadd.f32 %v13336_v46, %v4591_v19  ;;  %v10629_v62 = vpop.eup %10628  ;;  %5330 = vst [vmem:[%s12905_s29 + $0xda8] sm:$0xff] %v10627_v36  ;;  %10632 = vtanh.f32 %v5032_v25  ;;  %v8816_v15 = vor.u32 %v9211_v37, %v8815_v33 }
 0x4c4   : > { %v4813_v57 = vadd.f32 %v13339_v6, %v4812_v21  ;;  %v10631_v55 = vpop.eup %10630  ;;  %4668 = vst [vmem:[%s12905_s29 + $0x1b0] sm:$0xff] %v10629_v62  ;;  %10634 = vtanh.f32 %v5253_v39  ;;  %6773 = vmatpush.bf16.msra.mxu1 %v8852_v50  ;;  %v8847_v50 = vld [vmem:[#allocation15 + $0x64] sm:$0xf] }
 0x4c5   : > { %4889 = vst [vmem:[%s12905_s29 + $0x5b0] sm:$0xff] %v10631_v55  ;;  %10636 = vtanh.f32 %v4592_v49  ;;  %6553 = vmatpush.bf16.msra.mxu0 %v8816_v15  ;;  %v8811_v15 = vld [vmem:[#allocation15 + $0x40] sm:$0xf] }
 0x4c6   : > { %10638 = vtanh.f32 %v4813_v57 }
 0x4c8   : > { %v5033_v23 = vpop.f32.mrf.mxu2 }
 0x4c9   : > { %v5254_v32 = vpop.f32.mrf.mxu3  ;;  %v10633_v18 = vpop.eup %10632  ;;  %v5034_v58 = vadd.f32 %v13353_v3, %v5033_v23 }
 0x4ca   : > { %v5255_v14 = vadd.f32 %v13356_v28, %v5254_v32  ;;  %v4594_v47 = vpop.f32.mrf.mxu0  ;;  %v10635_v43 = vpop.eup %10634  ;;  %5110 = vst [vmem:[%s12905_s29 + $0x9b0] sm:$0xff] %v10633_v18 }
 0x4cb   : > { %v4815_v51 = vpop.f32.mrf.mxu1  ;;  %v4595_v38 = vadd.f32 %v13336_v46, %v4594_v47  ;;  %v10637_v61 = vpop.eup %10636  ;;  %5331 = vst [vmem:[%s12905_s29 + $0xdb0] sm:$0xff] %v10635_v43  ;;  %10640 = vtanh.f32 %v5034_v58 }
 0x4cc   : > { %v4816_v20 = vadd.f32 %v13339_v6, %v4815_v51  ;;  %5565 = vmatmul.bf16.gmra.mxu0 %v9148_v63  ;;  %v10639_v10 = vpop.eup %10638  ;;  %4669 = vst [vmem:[%s12905_s29 + $0x1b8] sm:$0xff] %v10637_v61  ;;  %10642 = vtanh.f32 %v5255_v14  ;;  %5786 = vmatmul.bf16.gmra.mxu1 %v9148_v63 }
 0x4cd   : > { %4890 = vst [vmem:[%s12905_s29 + $0x5b8] sm:$0xff] %v10639_v10  ;;  %10644 = vtanh.f32 %v4595_v38  ;;  %6007 = vmatmul.bf16.gmra.mxu2 %v9148_v63  ;;  %6228 = vmatmul.bf16.gmra.mxu3 %v9148_v63  ;;  %v9150_v38 = vld [vmem:[#allocation4 + $0xf0] sm:$0xff] }
 0x4ce   : > { %10646 = vtanh.f32 %v4816_v20 }
 0x4d0   : > { %v5036_v40 = vpop.f32.mrf.mxu2 }
 0x4d1   : > { %v5257_v7 = vpop.f32.mrf.mxu3  ;;  %v10641_v22 = vpop.eup %10640  ;;  %v5037_v0 = vadd.f32 %v13353_v3, %v5036_v40 }
 0x4d2   : > { %v5258_v26 = vadd.f32 %v13356_v28, %v5257_v7  ;;  %v4596_v59 = vpop.f32.mrf.mxu0  ;;  %v10643_v1 = vpop.eup %10642  ;;  %5111 = vst [vmem:[%s12905_s29 + $0x9b8] sm:$0xff] %v10641_v22 }
 0x4d3   : > { %v4817_v9 = vpop.f32.mrf.mxu1  ;;  %v4597_v17 = vadd.f32 %v13336_v46, %v4596_v59  ;;  %v10645_v4 = vpop.eup %10644  ;;  %5332 = vst [vmem:[%s12905_s29 + $0xdb8] sm:$0xff] %v10643_v1  ;;  %10648 = vtanh.f32 %v5037_v0 }
 0x4d4   : > { %v4818_v53 = vadd.f32 %v13339_v6, %v4817_v9  ;;  %v10647_v34 = vpop.eup %10646  ;;  %4670 = vst [vmem:[%s12905_s29 + $0x1c0] sm:$0xff] %v10645_v4  ;;  %10650 = vtanh.f32 %v5258_v26 }
 0x4d5   : > { %4891 = vst [vmem:[%s12905_s29 + $0x5c0] sm:$0xff] %v10647_v34  ;;  %10652 = vtanh.f32 %v4597_v17 }
 0x4d6   : > { %10654 = vtanh.f32 %v4818_v53 }
 0x4d8   : > { %v5038_v2 = vpop.f32.mrf.mxu2 }
 0x4d9   : > { %v5259_v45 = vpop.f32.mrf.mxu3  ;;  %v10649_v13 = vpop.eup %10648  ;;  %v5039_v5 = vadd.f32 %v13353_v3, %v5038_v2  ;;  %v9235_v2 = vld [vmem:[#allocation15 + $0x78] sm:$0xf0] }
 0x4da   : > { %v5260_v16 = vadd.f32 %v13356_v28, %v5259_v45  ;;  %v4599_v30 = vpop.f32.mrf.mxu0  ;;  %v10651_v44 = vpop.eup %10650  ;;  %5112 = vst [vmem:[%s12905_s29 + $0x9c0] sm:$0xff] %v10649_v13  ;;  %v8912_v45 = vor.u32 %v9235_v2, %v8911_v11  ;;  %v9226_v11 = vld [vmem:[#allocation15 + $0x54] sm:$0xf0] }
 0x4db   : > { %v4820_v52 = vpop.f32.mrf.mxu1  ;;  %v4600_v8 = vadd.f32 %v13336_v46, %v4599_v30  ;;  %v10653_v60 = vpop.eup %10652  ;;  %5333 = vst [vmem:[%s12905_s29 + $0xdc0] sm:$0xff] %v10651_v44  ;;  %10656 = vtanh.f32 %v5039_v5  ;;  %v8876_v2 = vor.u32 %v9226_v11, %v8875_v42 }
 0x4dc   : > { %v4821_v48 = vadd.f32 %v13339_v6, %v4820_v52  ;;  %5570 = vmatmul.bf16.gmra.mxu0 %v9149_v35  ;;  %v10655_v56 = vpop.eup %10654  ;;  %4671 = vst [vmem:[%s12905_s29 + $0x1c8] sm:$0xff] %v10653_v60  ;;  %10658 = vtanh.f32 %v5260_v16  ;;  %5791 = vmatmul.bf16.gmra.mxu1 %v9149_v35 }
 0x4dd   : > { %4892 = vst [vmem:[%s12905_s29 + $0x5c8] sm:$0xff] %v10655_v56  ;;  %10660 = vtanh.f32 %v4600_v8  ;;  %6012 = vmatmul.bf16.gmra.mxu2 %v9149_v35  ;;  %6233 = vmatmul.bf16.gmra.mxu3 %v9149_v35  ;;  %v9151_v8 = vld [vmem:[#allocation4 + $0xe8] sm:$0xff] }
 0x4de   : > { %10662 = vtanh.f32 %v4821_v48  ;;  %7216 = vmatpush.bf16.msra.mxu3 %v8912_v45  ;;  %v8907_v45 = vld [vmem:[#allocation15 + $0x4c] sm:$0xf]  ;;  %6996 = vmatpush.bf16.msra.mxu2 %v8876_v2  ;;  %v8871_v2 = vld [vmem:[#allocation15 + $0x28] sm:$0xf] }
 0x4e0   : > { %v5041_v54 = vpop.f32.mrf.mxu2 }
 0x4e1   : > { %v5262_v25 = vpop.f32.mrf.mxu3  ;;  %v10657_v39 = vpop.eup %10656  ;;  %v5042_v19 = vadd.f32 %v13353_v3, %v5041_v54  ;;  %v9219_v54 = vld [vmem:[#allocation15 + $0x70] sm:$0xf0] }
 0x4e2   : > { %v5263_v21 = vadd.f32 %v13356_v28, %v5262_v25  ;;  %v4601_v36 = vpop.f32.mrf.mxu0  ;;  %v10659_v57 = vpop.eup %10658  ;;  %5113 = vst [vmem:[%s12905_s29 + $0x9c8] sm:$0xff] %v10657_v39  ;;  %v8848_v25 = vor.u32 %v9219_v54, %v8847_v50  ;;  %v9210_v50 = vld [vmem:[#allocation15 + $0x4c] sm:$0xf0] }
 0x4e3   : > { %v4822_v49 = vpop.f32.mrf.mxu1  ;;  %v4602_v62 = vadd.f32 %v13336_v46, %v4601_v36  ;;  %v10661_v23 = vpop.eup %10660  ;;  %5334 = vst [vmem:[%s12905_s29 + $0xdc8] sm:$0xff] %v10659_v57  ;;  %10664 = vtanh.f32 %v5042_v19  ;;  %v8812_v54 = vor.u32 %v9210_v50, %v8811_v15 }
 0x4e4   : > { %v4823_v55 = vadd.f32 %v13339_v6, %v4822_v49  ;;  %v10663_v32 = vpop.eup %10662  ;;  %4672 = vst [vmem:[%s12905_s29 + $0x1d0] sm:$0xff] %v10661_v23  ;;  %10666 = vtanh.f32 %v5263_v21  ;;  %6774 = vmatpush.bf16.msra.mxu1 %v8848_v25  ;;  %v8843_v25 = vld [vmem:[#allocation15 + $0x44] sm:$0xf] }
 0x4e5   : > { %4893 = vst [vmem:[%s12905_s29 + $0x5d0] sm:$0xff] %v10663_v32  ;;  %10668 = vtanh.f32 %v4602_v62  ;;  %6554 = vmatpush.bf16.msra.mxu0 %v8812_v54  ;;  %v8807_v54 = vld [vmem:[#allocation15 + $0x20] sm:$0xf] }
 0x4e6   : > { %10670 = vtanh.f32 %v4823_v55 }
 0x4e8   : > { %v5043_v18 = vpop.f32.mrf.mxu2 }
 0x4e9   : > { %v5264_v58 = vpop.f32.mrf.mxu3  ;;  %v10665_v14 = vpop.eup %10664  ;;  %v5044_v47 = vadd.f32 %v13353_v3, %v5043_v18 }
 0x4ea   : > { %v5265_v51 = vadd.f32 %v13356_v28, %v5264_v58  ;;  %v4604_v63 = vpop.f32.mrf.mxu0  ;;  %v10667_v20 = vpop.eup %10666  ;;  %5114 = vst [vmem:[%s12905_s29 + $0x9d0] sm:$0xff] %v10665_v14  ;;  %v13445_v14 = vld [vmem:[#allocation16] ss:$0 sm:$0xff] }
 0x4eb   : > { %v4825_v43 = vpop.f32.mrf.mxu1  ;;  %v4605_v61 = vadd.f32 %v13336_v46, %v4604_v63  ;;  %v10669_v40 = vpop.eup %10668  ;;  %5335 = vst [vmem:[%s12905_s29 + $0xdd0] sm:$0xff] %v10667_v20  ;;  %10672 = vtanh.f32 %v5044_v47  ;;  %v13447_v47 = vld [vmem:[#allocation16 + $0x1] ss:$0 sm:$0xff] }
 0x4ec   : > { %v4826_v10 = vadd.f32 %v13339_v6, %v4825_v43  ;;  %5575 = vmatmul.bf16.gmra.mxu0 %v9150_v38  ;;  %v10671_v7 = vpop.eup %10670  ;;  %4673 = vst [vmem:[%s12905_s29 + $0x1d8] sm:$0xff] %v10669_v40  ;;  %10674 = vtanh.f32 %v5265_v51  ;;  %5796 = vmatmul.bf16.gmra.mxu1 %v9150_v38 }
 0x4ed   : > { %4894 = vst [vmem:[%s12905_s29 + $0x5d8] sm:$0xff] %v10671_v7  ;;  %10676 = vtanh.f32 %v4605_v61  ;;  %6017 = vmatmul.bf16.gmra.mxu2 %v9150_v38  ;;  %6238 = vmatmul.bf16.gmra.mxu3 %v9150_v38  ;;  %v9152_v61 = vld [vmem:[#allocation4 + $0x198] sm:$0xff] }
 0x4ee   : > { %10678 = vtanh.f32 %v4826_v10 }
 0x4f0   : > { %v5046_v22 = vpop.f32.mrf.mxu2 }
 0x4f1   : > { %v5267_v0 = vpop.f32.mrf.mxu3  ;;  %v10673_v26 = vpop.eup %10672  ;;  %v5047_v59 = vadd.f32 %v13353_v3, %v5046_v22 }
 0x4f2   : > { %v5268_v9 = vadd.f32 %v13356_v28, %v5267_v0  ;;  %v4606_v1 = vpop.f32.mrf.mxu0  ;;  %v10675_v53 = vpop.eup %10674  ;;  %5115 = vst [vmem:[%s12905_s29 + $0x9d8] sm:$0xff] %v10673_v26 }
 0x4f3   : > { %v4827_v17 = vpop.f32.mrf.mxu1  ;;  %v4607_v4 = vadd.f32 %v13336_v46, %v4606_v1  ;;  %v10677_v24 = vpop.eup %10676  ;;  %5336 = vst [vmem:[%s12905_s29 + $0xdd8] sm:$0xff] %v10675_v53  ;;  %10680 = vtanh.f32 %v5047_v59 }
 0x4f4   : > { %v4828_v34 = vadd.f32 %v13339_v6, %v4827_v17  ;;  %v10679_v12 = vpop.eup %10678  ;;  %4674 = vst [vmem:[%s12905_s29 + $0x1e0] sm:$0xff] %v10677_v24  ;;  %10682 = vtanh.f32 %v5268_v9 }
 0x4f5   : > { %4895 = vst [vmem:[%s12905_s29 + $0x5e0] sm:$0xff] %v10679_v12  ;;  %10684 = vtanh.f32 %v4607_v4 }
 0x4f6   : > { %10686 = vtanh.f32 %v4828_v34 }
 0x4f8   : > { %v5048_v13 = vpop.f32.mrf.mxu2 }
 0x4f9   : > { %v5269_v5 = vpop.f32.mrf.mxu3  ;;  %v10681_v16 = vpop.eup %10680  ;;  %v5049_v30 = vadd.f32 %v13353_v3, %v5048_v13  ;;  %v9234_v13 = vld [vmem:[#allocation15 + $0x58] sm:$0xf0] }
 0x4fa   : > { %v5270_v52 = vadd.f32 %v13356_v28, %v5269_v5  ;;  %v4609_v35 = vpop.f32.mrf.mxu0  ;;  %v10683_v48 = vpop.eup %10682  ;;  %5116 = vst [vmem:[%s12905_s29 + $0x9e0] sm:$0xff] %v10681_v16  ;;  %v8908_v5 = vor.u32 %v9234_v13, %v8907_v45  ;;  %v9225_v45 = vld [vmem:[#allocation15 + $0x34] sm:$0xf0] }
 0x4fb   : > { %v4830_v44 = vpop.f32.mrf.mxu1  ;;  %v4610_v60 = vadd.f32 %v13336_v46, %v4609_v35  ;;  %v10685_v31 = vpop.eup %10684  ;;  %5337 = vst [vmem:[%s12905_s29 + $0xde0] sm:$0xff] %v10683_v48  ;;  %10688 = vtanh.f32 %v5049_v30  ;;  %v8872_v13 = vor.u32 %v9225_v45, %v8871_v2 }
 0x4fc   : > { %v4831_v56 = vadd.f32 %v13339_v6, %v4830_v44  ;;  %5580 = vmatmul.bf16.gmra.mxu0 %v9151_v8  ;;  %v10687_v27 = vpop.eup %10686  ;;  %4675 = vst [vmem:[%s12905_s29 + $0x1e8] sm:$0xff] %v10685_v31  ;;  %10690 = vtanh.f32 %v5270_v52  ;;  %5801 = vmatmul.bf16.gmra.mxu1 %v9151_v8 }
 0x4fd   : > { %4896 = vst [vmem:[%s12905_s29 + $0x5e8] sm:$0xff] %v10687_v27  ;;  %10692 = vtanh.f32 %v4610_v60  ;;  %6022 = vmatmul.bf16.gmra.mxu2 %v9151_v8  ;;  %6243 = vmatmul.bf16.gmra.mxu3 %v9151_v8  ;;  %v9153_v60 = vld [vmem:[#allocation4 + $0xb0] sm:$0xff] }
 0x4fe   : > { %10694 = vtanh.f32 %v4831_v56  ;;  %7217 = vmatpush.bf16.msra.mxu3 %v8908_v5  ;;  %v8903_v5 = vld [vmem:[#allocation15 + $0x2c] sm:$0xf]  ;;  %6997 = vmatpush.bf16.msra.mxu2 %v8872_v13  ;;  %v8867_v13 = vld [vmem:[#allocation15 + $0x8] sm:$0xf] }
 0x500   : > { %v5051_v39 = vpop.f32.mrf.mxu2 }
 0x501   : > { %v5272_v19 = vpop.f32.mrf.mxu3  ;;  %v10689_v21 = vpop.eup %10688  ;;  %v5052_v36 = vadd.f32 %v13353_v3, %v5051_v39  ;;  %v9218_v39 = vld [vmem:[#allocation15 + $0x50] sm:$0xf0] }
 0x502   : > { %v5273_v49 = vadd.f32 %v13356_v28, %v5272_v19  ;;  %v4611_v57 = vpop.f32.mrf.mxu0  ;;  %v10691_v55 = vpop.eup %10690  ;;  %5117 = vst [vmem:[%s12905_s29 + $0x9e8] sm:$0xff] %v10689_v21  ;;  %v8844_v19 = vor.u32 %v9218_v39, %v8843_v25  ;;  %v9209_v25 = vld [vmem:[#allocation15 + $0x2c] sm:$0xf0] }
 0x503   : > { %v4832_v62 = vpop.f32.mrf.mxu1  ;;  %v4612_v23 = vadd.f32 %v13336_v46, %v4611_v57  ;;  %v10693_v18 = vpop.eup %10692  ;;  %5338 = vst [vmem:[%s12905_s29 + $0xde8] sm:$0xff] %v10691_v55  ;;  %10696 = vtanh.f32 %v5052_v36  ;;  %v8808_v39 = vor.u32 %v9209_v25, %v8807_v54 }
 0x504   : > { %v4833_v32 = vadd.f32 %v13339_v6, %v4832_v62  ;;  %v10695_v58 = vpop.eup %10694  ;;  %4676 = vst [vmem:[%s12905_s29 + $0x1f0] sm:$0xff] %v10693_v18  ;;  %10698 = vtanh.f32 %v5273_v49  ;;  %6775 = vmatpush.bf16.msra.mxu1 %v8844_v19  ;;  %v8839_v19 = vld [vmem:[#allocation15 + $0x24] sm:$0xf] }
 0x505   : > { %4897 = vst [vmem:[%s12905_s29 + $0x5f0] sm:$0xff] %v10695_v58  ;;  %10700 = vtanh.f32 %v4612_v23  ;;  %6555 = vmatpush.bf16.msra.mxu0 %v8808_v39  ;;  %v8803_v39 = vld [vmem:[#allocation15] sm:$0xf] }
 0x506   : > { %10702 = vtanh.f32 %v4833_v32 }
 0x508   : > { %v5053_v51 = vpop.f32.mrf.mxu2 }
 0x509   : > { %v5274_v63 = vpop.f32.mrf.mxu3  ;;  %v10697_v46 = vpop.eup %10696  ;;  %v5054_v6 = vadd.f32 %v13353_v3, %v5053_v51  ;;  %v13457_v3 = vld [vmem:[#allocation16 + $0x2] ss:$0 sm:$0xff] }
 0x50a   : > { %v5275_v43 = vadd.f32 %v13356_v28, %v5274_v63  ;;  %v5546_v38 = vpop.f32.mrf.mxu0  ;;  %v10699_v10 = vpop.eup %10698  ;;  %5118 = vst [vmem:[%s12905_s29 + $0x9f0] sm:$0xff] %v10697_v46  ;;  %v13459_v28 = vld [vmem:[#allocation16 + $0x3] ss:$0 sm:$0xff] }
 0x50b   : > { %v5767_v20 = vpop.f32.mrf.mxu1  ;;  %v5547_v40 = vadd.f32 %v13445_v14, %v5546_v38  ;;  %v10701_v22 = vpop.eup %10700  ;;  %5339 = vst [vmem:[%s12905_s29 + $0xdf0] sm:$0xff] %v10699_v10  ;;  %10704 = vtanh.f32 %v5054_v6 }
 0x50c   : > { %v5768_v7 = vadd.f32 %v13447_v47, %v5767_v20  ;;  %5585 = vmatmul.bf16.gmra.mxu0 %v9152_v61  ;;  %v10703_v0 = vpop.eup %10702  ;;  %4677 = vst [vmem:[%s12905_s29 + $0x1f8] sm:$0xff] %v10701_v22  ;;  %10706 = vtanh.f32 %v5275_v43  ;;  %5806 = vmatmul.bf16.gmra.mxu1 %v9152_v61 }
 0x50d   : > { %4898 = vst [vmem:[%s12905_s29 + $0x5f8] sm:$0xff] %v10703_v0  ;;  %10708 = vtanh.f32 %v5547_v40  ;;  %6027 = vmatmul.bf16.gmra.mxu2 %v9152_v61  ;;  %6248 = vmatmul.bf16.gmra.mxu3 %v9152_v61  ;;  %v9154_v40 = vld [vmem:[#allocation4 + $0x100] sm:$0xff] }
 0x50e   : > { %10710 = vtanh.f32 %v5768_v7 }
 0x510   : > { %v5988_v26 = vpop.f32.mrf.mxu2 }
 0x511   : > { %v6209_v59 = vpop.f32.mrf.mxu3  ;;  %v10705_v9 = vpop.eup %10704  ;;  %v5989_v1 = vadd.f32 %v13457_v3, %v5988_v26 }
 0x512   : > { %v6210_v17 = vadd.f32 %v13459_v28, %v6209_v59  ;;  %v5548_v53 = vpop.f32.mrf.mxu0  ;;  %v10707_v34 = vpop.eup %10706  ;;  %5119 = vst [vmem:[%s12905_s29 + $0x9f8] sm:$0xff] %v10705_v9 }
 0x513   : > { %v5769_v4 = vpop.f32.mrf.mxu1  ;;  %v5549_v24 = vadd.f32 %v13445_v14, %v5548_v53  ;;  %v10709_v29 = vpop.eup %10708  ;;  %5340 = vst [vmem:[%s12905_s29 + $0xdf8] sm:$0xff] %v10707_v34  ;;  %10712 = vtanh.f32 %v5989_v1 }
 0x514   : > { %v5770_v12 = vadd.f32 %v13447_v47, %v5769_v4  ;;  %v10711_v41 = vpop.eup %10710  ;;  %5658 = vst [vmem:[%s12905_s29 + $0x200] sm:$0xff] %v10709_v29  ;;  %10714 = vtanh.f32 %v6210_v17 }
 0x515   : > { %5879 = vst [vmem:[%s12905_s29 + $0x600] sm:$0xff] %v10711_v41  ;;  %10716 = vtanh.f32 %v5549_v24 }
 0x516   : > { %10718 = vtanh.f32 %v5770_v12 }
 0x518   : > { %v5990_v16 = vpop.f32.mrf.mxu2 }
 0x519   : > { %v6211_v30 = vpop.f32.mrf.mxu3  ;;  %v10713_v52 = vpop.eup %10712  ;;  %v5991_v35 = vadd.f32 %v13457_v3, %v5990_v16  ;;  %v9233_v16 = vld [vmem:[#allocation15 + $0x38] sm:$0xf0] }
 0x51a   : > { %v6212_v44 = vadd.f32 %v13459_v28, %v6211_v30  ;;  %v5551_v8 = vpop.f32.mrf.mxu0  ;;  %v10715_v56 = vpop.eup %10714  ;;  %6100 = vst [vmem:[%s12905_s29 + $0xa00] sm:$0xff] %v10713_v52  ;;  %v8904_v30 = vor.u32 %v9233_v16, %v8903_v5  ;;  %v9224_v5 = vld [vmem:[#allocation15 + $0x14] sm:$0xf0] }
 0x51b   : > { %v5772_v48 = vpop.f32.mrf.mxu1  ;;  %v5552_v31 = vadd.f32 %v13445_v14, %v5551_v8  ;;  %v10717_v33 = vpop.eup %10716  ;;  %6321 = vst [vmem:[%s12905_s29 + $0xe00] sm:$0xff] %v10715_v56  ;;  %10720 = vtanh.f32 %v5991_v35  ;;  %v8868_v16 = vor.u32 %v9224_v5, %v8867_v13 }
 0x51c   : > { %v5773_v27 = vadd.f32 %v13447_v47, %v5772_v48  ;;  %5590 = vmatmul.bf16.gmra.mxu0 %v9153_v60  ;;  %v10719_v37 = vpop.eup %10718  ;;  %5659 = vst [vmem:[%s12905_s29 + $0x208] sm:$0xff] %v10717_v33  ;;  %10722 = vtanh.f32 %v6212_v44  ;;  %5811 = vmatmul.bf16.gmra.mxu1 %v9153_v60 }
 0x51d   : > { %5880 = vst [vmem:[%s12905_s29 + $0x608] sm:$0xff] %v10719_v37  ;;  %10724 = vtanh.f32 %v5552_v31  ;;  %6032 = vmatmul.bf16.gmra.mxu2 %v9153_v60  ;;  %6253 = vmatmul.bf16.gmra.mxu3 %v9153_v60  ;;  %v9155_v31 = vld [vmem:[#allocation4 + $0xe0] sm:$0xff] }
 0x51e   : > { %10726 = vtanh.f32 %v5773_v27  ;;  %7218 = vmatpush.bf16.msra.mxu3 %v8904_v30  ;;  %v8899_v30 = vld [vmem:[#allocation15 + $0xc] sm:$0xf]  ;;  %6998 = vmatpush.bf16.msra.mxu2 %v8868_v16 }
 0x520   : > { %v5993_v21 = vpop.f32.mrf.mxu2 }
 0x521   : > { %v6214_v36 = vpop.f32.mrf.mxu3  ;;  %v10721_v49 = vpop.eup %10720  ;;  %v5994_v57 = vadd.f32 %v13457_v3, %v5993_v21  ;;  %v9217_v21 = vld [vmem:[#allocation15 + $0x30] sm:$0xf0] }
 0x522   : > { %v6215_v62 = vadd.f32 %v13459_v28, %v6214_v36  ;;  %v5553_v55 = vpop.f32.mrf.mxu0  ;;  %v10723_v32 = vpop.eup %10722  ;;  %6101 = vst [vmem:[%s12905_s29 + $0xa08] sm:$0xff] %v10721_v49  ;;  %v8840_v36 = vor.u32 %v9217_v21, %v8839_v19  ;;  %v9208_v19 = vld [vmem:[#allocation15 + $0xc] sm:$0xf0] }
 0x523   : > { %v5774_v23 = vpop.f32.mrf.mxu1  ;;  %v5554_v18 = vadd.f32 %v13445_v14, %v5553_v55  ;;  %v10725_v51 = vpop.eup %10724  ;;  %6322 = vst [vmem:[%s12905_s29 + $0xe08] sm:$0xff] %v10723_v32  ;;  %10728 = vtanh.f32 %v5994_v57  ;;  %v8804_v21 = vor.u32 %v9208_v19, %v8803_v39 }
 0x524   : > { %v5775_v58 = vadd.f32 %v13447_v47, %v5774_v23  ;;  %v10727_v63 = vpop.eup %10726  ;;  %5660 = vst [vmem:[%s12905_s29 + $0x210] sm:$0xff] %v10725_v51  ;;  %10730 = vtanh.f32 %v6215_v62  ;;  %6776 = vmatpush.bf16.msra.mxu1 %v8840_v36  ;;  %v8835_v36 = vld [vmem:[#allocation15 + $0x4] sm:$0xf] }
 0x525   : > { %5881 = vst [vmem:[%s12905_s29 + $0x610] sm:$0xff] %v10727_v63  ;;  %10732 = vtanh.f32 %v5554_v18  ;;  %6556 = vmatpush.bf16.msra.mxu0 %v8804_v21 }
 0x526   : > { %10734 = vtanh.f32 %v5775_v58 }
 0x528   : > { %v5995_v46 = vpop.f32.mrf.mxu2 }
 0x529   : > { %v6216_v6 = vpop.f32.mrf.mxu3  ;;  %v10729_v43 = vpop.eup %10728  ;;  %v5996_v38 = vadd.f32 %v13457_v3, %v5995_v46 }
 0x52a   : > { %v6217_v20 = vadd.f32 %v13459_v28, %v6216_v6  ;;  %v5556_v61 = vpop.f32.mrf.mxu0  ;;  %v10731_v7 = vpop.eup %10730  ;;  %6102 = vst [vmem:[%s12905_s29 + $0xa10] sm:$0xff] %v10729_v43 }
 0x52b   : > { %v5777_v10 = vpop.f32.mrf.mxu1  ;;  %v5557_v22 = vadd.f32 %v13445_v14, %v5556_v61  ;;  %v10733_v26 = vpop.eup %10732  ;;  %6323 = vst [vmem:[%s12905_s29 + $0xe10] sm:$0xff] %v10731_v7  ;;  %10736 = vtanh.f32 %v5996_v38 }
 0x52c   : > { %v5778_v0 = vadd.f32 %v13447_v47, %v5777_v10  ;;  %5595 = vmatmul.bf16.gmra.mxu0 %v9154_v40  ;;  %v10735_v59 = vpop.eup %10734  ;;  %5661 = vst [vmem:[%s12905_s29 + $0x218] sm:$0xff] %v10733_v26  ;;  %10738 = vtanh.f32 %v6217_v20  ;;  %5816 = vmatmul.bf16.gmra.mxu1 %v9154_v40 }
 0x52d   : > { %5882 = vst [vmem:[%s12905_s29 + $0x618] sm:$0xff] %v10735_v59  ;;  %10740 = vtanh.f32 %v5557_v22  ;;  %6037 = vmatmul.bf16.gmra.mxu2 %v9154_v40  ;;  %6258 = vmatmul.bf16.gmra.mxu3 %v9154_v40  ;;  %v9156_v22 = vld [vmem:[#allocation4 + $0x1e0] sm:$0xff] }
 0x52e   : > { %10742 = vtanh.f32 %v5778_v0 }
 0x530   : > { %v5998_v9 = vpop.f32.mrf.mxu2 }
 0x531   : > { %v6219_v1 = vpop.f32.mrf.mxu3  ;;  %v10737_v17 = vpop.eup %10736  ;;  %v5999_v53 = vadd.f32 %v13457_v3, %v5998_v9 }
 0x532   : > { %v6220_v4 = vadd.f32 %v13459_v28, %v6219_v1  ;;  %v5558_v34 = vpop.f32.mrf.mxu0  ;;  %v10739_v12 = vpop.eup %10738  ;;  %6103 = vst [vmem:[%s12905_s29 + $0xa18] sm:$0xff] %v10737_v17 }
 0x533   : > { %v5779_v24 = vpop.f32.mrf.mxu1  ;;  %v5559_v29 = vadd.f32 %v13445_v14, %v5558_v34  ;;  %v10741_v42 = vpop.eup %10740  ;;  %6324 = vst [vmem:[%s12905_s29 + $0xe18] sm:$0xff] %v10739_v12  ;;  %10744 = vtanh.f32 %v5999_v53 }
 0x534   : > { %v5780_v41 = vadd.f32 %v13447_v47, %v5779_v24  ;;  %v10743_v11 = vpop.eup %10742  ;;  %5662 = vst [vmem:[%s12905_s29 + $0x220] sm:$0xff] %v10741_v42  ;;  %10746 = vtanh.f32 %v6220_v4 }
 0x535   : > { %5883 = vst [vmem:[%s12905_s29 + $0x620] sm:$0xff] %v10743_v11  ;;  %10748 = vtanh.f32 %v5559_v29 }
 0x536   : > { %10750 = vtanh.f32 %v5780_v41 }
 0x538   : > { %v6000_v52 = vpop.f32.mrf.mxu2 }
 0x539   : > { %v6221_v35 = vpop.f32.mrf.mxu3  ;;  %v10745_v44 = vpop.eup %10744  ;;  %v6001_v8 = vadd.f32 %v13457_v3, %v6000_v52  ;;  %v9232_v52 = vld [vmem:[#allocation15 + $0x18] sm:$0xf0] }
 0x53a   : > { %v6222_v48 = vadd.f32 %v13459_v28, %v6221_v35  ;;  %v5561_v60 = vpop.f32.mrf.mxu0  ;;  %v10747_v27 = vpop.eup %10746  ;;  %6104 = vst [vmem:[%s12905_s29 + $0xa20] sm:$0xff] %v10745_v44  ;;  %v8900_v35 = vor.u32 %v9232_v52, %v8899_v30 }
 0x53b   : > { %v5782_v56 = vpop.f32.mrf.mxu1  ;;  %v5562_v33 = vadd.f32 %v13445_v14, %v5561_v60  ;;  %v10749_v15 = vpop.eup %10748  ;;  %6325 = vst [vmem:[%s12905_s29 + $0xe20] sm:$0xff] %v10747_v27  ;;  %10752 = vtanh.f32 %v6001_v8 }
 0x53c   : > { %v5783_v37 = vadd.f32 %v13447_v47, %v5782_v56  ;;  %5600 = vmatmul.bf16.gmra.mxu0 %v9155_v31  ;;  %v10751_v50 = vpop.eup %10750  ;;  %5663 = vst [vmem:[%s12905_s29 + $0x228] sm:$0xff] %v10749_v15  ;;  %10754 = vtanh.f32 %v6222_v48  ;;  %5821 = vmatmul.bf16.gmra.mxu1 %v9155_v31 }
 0x53d   : > { %5884 = vst [vmem:[%s12905_s29 + $0x628] sm:$0xff] %v10751_v50  ;;  %10756 = vtanh.f32 %v5562_v33  ;;  %6042 = vmatmul.bf16.gmra.mxu2 %v9155_v31  ;;  %6263 = vmatmul.bf16.gmra.mxu3 %v9155_v31  ;;  %v9157_v33 = vld [vmem:[#allocation4 + $0x1d0] sm:$0xff] }
 0x53e   : > { %10758 = vtanh.f32 %v5783_v37  ;;  %7219 = vmatpush.bf16.msra.mxu3 %v8900_v35 }
 0x540   : > { %v6003_v49 = vpop.f32.mrf.mxu2 }
 0x541   : > { %v6224_v57 = vpop.f32.mrf.mxu3  ;;  %v10753_v62 = vpop.eup %10752  ;;  %v6004_v55 = vadd.f32 %v13457_v3, %v6003_v49  ;;  %v9216_v49 = vld [vmem:[#allocation15 + $0x10] sm:$0xf0] }
 0x542   : > { %v6225_v23 = vadd.f32 %v13459_v28, %v6224_v57  ;;  %v5563_v32 = vpop.f32.mrf.mxu0  ;;  %v10755_v58 = vpop.eup %10754  ;;  %6105 = vst [vmem:[%s12905_s29 + $0xa28] sm:$0xff] %v10753_v62  ;;  %v8836_v57 = vor.u32 %v9216_v49, %v8835_v36 }
 0x543   : > { %v5784_v18 = vpop.f32.mrf.mxu1  ;;  %v5564_v51 = vadd.f32 %v13445_v14, %v5563_v32  ;;  %v10757_v46 = vpop.eup %10756  ;;  %6326 = vst [vmem:[%s12905_s29 + $0xe28] sm:$0xff] %v10755_v58  ;;  %10760 = vtanh.f32 %v6004_v55 }
 0x544   : > { %v5785_v63 = vadd.f32 %v13447_v47, %v5784_v18  ;;  %v10759_v6 = vpop.eup %10758  ;;  %5664 = vst [vmem:[%s12905_s29 + $0x230] sm:$0xff] %v10757_v46  ;;  %10762 = vtanh.f32 %v6225_v23  ;;  %6777 = vmatpush.bf16.msra.mxu1 %v8836_v57 }
 0x545   : > { %5885 = vst [vmem:[%s12905_s29 + $0x630] sm:$0xff] %v10759_v6  ;;  %10764 = vtanh.f32 %v5564_v51 }
 0x546   : > { %10766 = vtanh.f32 %v5785_v63 }
 0x548   : > { %v6005_v43 = vpop.f32.mrf.mxu2 }
 0x549   : > { %v6226_v38 = vpop.f32.mrf.mxu3  ;;  %v10761_v20 = vpop.eup %10760  ;;  %v6006_v61 = vadd.f32 %v13457_v3, %v6005_v43 }
 0x54a   : > { %v6227_v10 = vadd.f32 %v13459_v28, %v6226_v38  ;;  %v5566_v40 = vpop.f32.mrf.mxu0  ;;  %v10763_v0 = vpop.eup %10762  ;;  %6106 = vst [vmem:[%s12905_s29 + $0xa30] sm:$0xff] %v10761_v20 }
 0x54b   : > { %v5787_v7 = vpop.f32.mrf.mxu1  ;;  %v5567_v26 = vadd.f32 %v13445_v14, %v5566_v40  ;;  %v10765_v9 = vpop.eup %10764  ;;  %6327 = vst [vmem:[%s12905_s29 + $0xe30] sm:$0xff] %v10763_v0  ;;  %10768 = vtanh.f32 %v6006_v61 }
 0x54c   : > { %v5788_v59 = vadd.f32 %v13447_v47, %v5787_v7  ;;  %5605 = vmatmul.bf16.gmra.mxu0 %v9156_v22  ;;  %v10767_v1 = vpop.eup %10766  ;;  %5665 = vst [vmem:[%s12905_s29 + $0x238] sm:$0xff] %v10765_v9  ;;  %10770 = vtanh.f32 %v6227_v10  ;;  %5826 = vmatmul.bf16.gmra.mxu1 %v9156_v22 }
 0x54d   : > { %5886 = vst [vmem:[%s12905_s29 + $0x638] sm:$0xff] %v10767_v1  ;;  %10772 = vtanh.f32 %v5567_v26  ;;  %6047 = vmatmul.bf16.gmra.mxu2 %v9156_v22  ;;  %6268 = vmatmul.bf16.gmra.mxu3 %v9156_v22  ;;  %v9158_v26 = vld [vmem:[#allocation4 + $0x1b8] sm:$0xff] }
 0x54e   : > { %10774 = vtanh.f32 %v5788_v59 }
 0x550   : > { %v6008_v17 = vpop.f32.mrf.mxu2 }
 0x551   : > { %v6229_v53 = vpop.f32.mrf.mxu3  ;;  %v10769_v4 = vpop.eup %10768  ;;  %v6009_v34 = vadd.f32 %v13457_v3, %v6008_v17 }
 0x552   : > { %v6230_v24 = vadd.f32 %v13459_v28, %v6229_v53  ;;  %v5568_v12 = vpop.f32.mrf.mxu0  ;;  %v10771_v41 = vpop.eup %10770  ;;  %6107 = vst [vmem:[%s12905_s29 + $0xa38] sm:$0xff] %v10769_v4 }
 0x553   : > { %v5789_v29 = vpop.f32.mrf.mxu1  ;;  %v5569_v42 = vadd.f32 %v13445_v14, %v5568_v12  ;;  %v10773_v2 = vpop.eup %10772  ;;  %6328 = vst [vmem:[%s12905_s29 + $0xe38] sm:$0xff] %v10771_v41  ;;  %10776 = vtanh.f32 %v6009_v34 }
 0x554   : > { %v5790_v11 = vadd.f32 %v13447_v47, %v5789_v29  ;;  %v10775_v45 = vpop.eup %10774  ;;  %5666 = vst [vmem:[%s12905_s29 + $0x240] sm:$0xff] %v10773_v2  ;;  %10778 = vtanh.f32 %v6230_v24 }
 0x555   : > { %5887 = vst [vmem:[%s12905_s29 + $0x640] sm:$0xff] %v10775_v45  ;;  %10780 = vtanh.f32 %v5569_v42 }
 0x556   : > { %10782 = vtanh.f32 %v5790_v11 }
 0x558   : > { %v6010_v44 = vpop.f32.mrf.mxu2 }
 0x559   : > { %v6231_v8 = vpop.f32.mrf.mxu3  ;;  %v10777_v48 = vpop.eup %10776  ;;  %v6011_v60 = vadd.f32 %v13457_v3, %v6010_v44 }
 0x55a   : > { %v6232_v56 = vadd.f32 %v13459_v28, %v6231_v8  ;;  %v5571_v31 = vpop.f32.mrf.mxu0  ;;  %v10779_v37 = vpop.eup %10778  ;;  %6108 = vst [vmem:[%s12905_s29 + $0xa40] sm:$0xff] %v10777_v48 }
 0x55b   : > { %v5792_v27 = vpop.f32.mrf.mxu1  ;;  %v5572_v15 = vadd.f32 %v13445_v14, %v5571_v31  ;;  %v10781_v54 = vpop.eup %10780  ;;  %6329 = vst [vmem:[%s12905_s29 + $0xe40] sm:$0xff] %v10779_v37  ;;  %10784 = vtanh.f32 %v6011_v60  ;;  %v9159_v60 = vld [vmem:[#allocation4 + $0x1d8] sm:$0xff] }
 0x55c   : > { %v5793_v50 = vadd.f32 %v13447_v47, %v5792_v27  ;;  %5610 = vmatmul.bf16.gmra.mxu0 %v9157_v33  ;;  %v10783_v25 = vpop.eup %10782  ;;  %5667 = vst [vmem:[%s12905_s29 + $0x248] sm:$0xff] %v10781_v54  ;;  %10786 = vtanh.f32 %v6232_v56  ;;  %5831 = vmatmul.bf16.gmra.mxu1 %v9157_v33 }
 0x55d   : > { %5888 = vst [vmem:[%s12905_s29 + $0x648] sm:$0xff] %v10783_v25  ;;  %10788 = vtanh.f32 %v5572_v15  ;;  %6052 = vmatmul.bf16.gmra.mxu2 %v9157_v33  ;;  %6273 = vmatmul.bf16.gmra.mxu3 %v9157_v33 }
 0x55e   : > { %10790 = vtanh.f32 %v5793_v50 }
 0x560   : > { %v6013_v62 = vpop.f32.mrf.mxu2 }
 0x561   : > { %v6234_v55 = vpop.f32.mrf.mxu3  ;;  %v10785_v23 = vpop.eup %10784  ;;  %v6014_v32 = vadd.f32 %v13457_v3, %v6013_v62 }
 0x562   : > { %v6235_v18 = vadd.f32 %v13459_v28, %v6234_v55  ;;  %v5573_v58 = vpop.f32.mrf.mxu0  ;;  %v10787_v63 = vpop.eup %10786  ;;  %6109 = vst [vmem:[%s12905_s29 + $0xa48] sm:$0xff] %v10785_v23 }
 0x563   : > { %v5794_v51 = vpop.f32.mrf.mxu1  ;;  %v5574_v46 = vadd.f32 %v13445_v14, %v5573_v58  ;;  %v10789_v43 = vpop.eup %10788  ;;  %6330 = vst [vmem:[%s12905_s29 + $0xe48] sm:$0xff] %v10787_v63  ;;  %10792 = vtanh.f32 %v6014_v32 }
 0x564   : > { %v5795_v6 = vadd.f32 %v13447_v47, %v5794_v51  ;;  %v10791_v38 = vpop.eup %10790  ;;  %5668 = vst [vmem:[%s12905_s29 + $0x250] sm:$0xff] %v10789_v43  ;;  %10794 = vtanh.f32 %v6235_v18 }
 0x565   : > { %5889 = vst [vmem:[%s12905_s29 + $0x650] sm:$0xff] %v10791_v38  ;;  %10796 = vtanh.f32 %v5574_v46 }
 0x566   : > { %10798 = vtanh.f32 %v5795_v6  ;;  %v9192_v6 = vld [vmem:[#allocation4 + $0x1c8] sm:$0xff] }
 0x568   : > { %v6015_v20 = vpop.f32.mrf.mxu2 }
 0x569   : > { %v6236_v61 = vpop.f32.mrf.mxu3  ;;  %v10793_v10 = vpop.eup %10792  ;;  %v6016_v40 = vadd.f32 %v13457_v3, %v6015_v20 }
 0x56a   : > { %v6237_v7 = vadd.f32 %v13459_v28, %v6236_v61  ;;  %v5576_v22 = vpop.f32.mrf.mxu0  ;;  %v10795_v59 = vpop.eup %10794  ;;  %6110 = vst [vmem:[%s12905_s29 + $0xa50] sm:$0xff] %v10793_v10 }
 0x56b   : > { %v5797_v0 = vpop.f32.mrf.mxu1  ;;  %v5577_v9 = vadd.f32 %v13445_v14, %v5576_v22  ;;  %v10797_v17 = vpop.eup %10796  ;;  %6331 = vst [vmem:[%s12905_s29 + $0xe50] sm:$0xff] %v10795_v59  ;;  %10800 = vtanh.f32 %v6016_v40 }
 0x56c   : > { %v5798_v1 = vadd.f32 %v13447_v47, %v5797_v0  ;;  %5615 = vmatmul.bf16.gmra.mxu0 %v9158_v26  ;;  %v10799_v53 = vpop.eup %10798  ;;  %5669 = vst [vmem:[%s12905_s29 + $0x258] sm:$0xff] %v10797_v17  ;;  %10802 = vtanh.f32 %v6237_v7  ;;  %5836 = vmatmul.bf16.gmra.mxu1 %v9158_v26 }
 0x56d   : > { %5890 = vst [vmem:[%s12905_s29 + $0x658] sm:$0xff] %v10799_v53  ;;  %10804 = vtanh.f32 %v5577_v9  ;;  %6057 = vmatmul.bf16.gmra.mxu2 %v9158_v26  ;;  %6278 = vmatmul.bf16.gmra.mxu3 %v9158_v26 }
 0x56e   : > { %10806 = vtanh.f32 %v5798_v1 }
 0x570   : > { %v6018_v4 = vpop.f32.mrf.mxu2 }
 0x571   : > { %v6239_v34 = vpop.f32.mrf.mxu3  ;;  %v10801_v24 = vpop.eup %10800  ;;  %v6019_v12 = vadd.f32 %v13457_v3, %v6018_v4 }
 0x572   : > { %v6240_v29 = vadd.f32 %v13459_v28, %v6239_v34  ;;  %v5578_v41 = vpop.f32.mrf.mxu0  ;;  %v10803_v11 = vpop.eup %10802  ;;  %6111 = vst [vmem:[%s12905_s29 + $0xa58] sm:$0xff] %v10801_v24 }
 0x573   : > { %v5799_v42 = vpop.f32.mrf.mxu1  ;;  %v5579_v2 = vadd.f32 %v13445_v14, %v5578_v41  ;;  %v10805_v13 = vpop.eup %10804  ;;  %6332 = vst [vmem:[%s12905_s29 + $0xe58] sm:$0xff] %v10803_v11  ;;  %10808 = vtanh.f32 %v6019_v12 }
 0x574   : > { %v5800_v45 = vadd.f32 %v13447_v47, %v5799_v42  ;;  %v10807_v5 = vpop.eup %10806  ;;  %5670 = vst [vmem:[%s12905_s29 + $0x260] sm:$0xff] %v10805_v13  ;;  %10810 = vtanh.f32 %v6240_v29 }
 0x575   : > { %5891 = vst [vmem:[%s12905_s29 + $0x660] sm:$0xff] %v10807_v5  ;;  %10812 = vtanh.f32 %v5579_v2 }
 0x576   : > { %10814 = vtanh.f32 %v5800_v45  ;;  %v9193_v45 = vld [vmem:[#allocation4 + $0x40] sm:$0xff] }
 0x578   : > { %v6020_v16 = vpop.f32.mrf.mxu2 }
 0x579   : > { %v6241_v30 = vpop.f32.mrf.mxu3  ;;  %v10809_v52 = vpop.eup %10808  ;;  %v6021_v35 = vadd.f32 %v13457_v3, %v6020_v16 }
 0x57a   : > { %v6242_v44 = vadd.f32 %v13459_v28, %v6241_v30  ;;  %v5581_v8 = vpop.f32.mrf.mxu0  ;;  %v10811_v56 = vpop.eup %10810  ;;  %6112 = vst [vmem:[%s12905_s29 + $0xa60] sm:$0xff] %v10809_v52 }
 0x57b   : > { %v5802_v48 = vpop.f32.mrf.mxu1  ;;  %v5582_v31 = vadd.f32 %v13445_v14, %v5581_v8  ;;  %v10813_v33 = vpop.eup %10812  ;;  %6333 = vst [vmem:[%s12905_s29 + $0xe60] sm:$0xff] %v10811_v56  ;;  %10816 = vtanh.f32 %v6021_v35 }
 0x57c   : > { %v5803_v27 = vadd.f32 %v13447_v47, %v5802_v48  ;;  %5620 = vmatmul.bf16.gmra.mxu0 %v9159_v60  ;;  %v10815_v37 = vpop.eup %10814  ;;  %5671 = vst [vmem:[%s12905_s29 + $0x268] sm:$0xff] %v10813_v33  ;;  %10818 = vtanh.f32 %v6242_v44  ;;  %5841 = vmatmul.bf16.gmra.mxu1 %v9159_v60 }
 0x57d   : > { %5892 = vst [vmem:[%s12905_s29 + $0x668] sm:$0xff] %v10815_v37  ;;  %10820 = vtanh.f32 %v5582_v31  ;;  %6062 = vmatmul.bf16.gmra.mxu2 %v9159_v60  ;;  %6283 = vmatmul.bf16.gmra.mxu3 %v9159_v60 }
 0x57e   : > { %10822 = vtanh.f32 %v5803_v27 }
 0x580   : > { %v6023_v15 = vpop.f32.mrf.mxu2 }
 0x581   : > { %v6244_v50 = vpop.f32.mrf.mxu3  ;;  %v10817_v54 = vpop.eup %10816  ;;  %v6024_v25 = vadd.f32 %v13457_v3, %v6023_v15 }
 0x582   : > { %v6245_v39 = vadd.f32 %v13459_v28, %v6244_v50  ;;  %v5583_v19 = vpop.f32.mrf.mxu0  ;;  %v10819_v36 = vpop.eup %10818  ;;  %6113 = vst [vmem:[%s12905_s29 + $0xa68] sm:$0xff] %v10817_v54 }
 0x583   : > { %v5804_v21 = vpop.f32.mrf.mxu1  ;;  %v5584_v49 = vadd.f32 %v13445_v14, %v5583_v19  ;;  %v10821_v62 = vpop.eup %10820  ;;  %6334 = vst [vmem:[%s12905_s29 + $0xe68] sm:$0xff] %v10819_v36  ;;  %10824 = vtanh.f32 %v6024_v25  ;;  %v9194_v36 = vld [vmem:[#allocation4 + $0x88] sm:$0xff] }
 0x584   : > { %v5805_v57 = vadd.f32 %v13447_v47, %v5804_v21  ;;  %v10823_v55 = vpop.eup %10822  ;;  %5672 = vst [vmem:[%s12905_s29 + $0x270] sm:$0xff] %v10821_v62  ;;  %10826 = vtanh.f32 %v6245_v39 }
 0x585   : > { %5893 = vst [vmem:[%s12905_s29 + $0x670] sm:$0xff] %v10823_v55  ;;  %10828 = vtanh.f32 %v5584_v49  ;;  %v13619_v55 = vld [vmem:[#allocation16 + $0x1] ss:$0 sm:$0xff] }
 0x586   : > { %10830 = vtanh.f32 %v5805_v57  ;;  %v13616_v57 = vld [vmem:[#allocation16] ss:$0 sm:$0xff] }
 0x588   : > { %v6025_v23 = vpop.f32.mrf.mxu2 }
 0x589   : > { %v6246_v32 = vpop.f32.mrf.mxu3  ;;  %v10825_v18 = vpop.eup %10824  ;;  %v6026_v58 = vadd.f32 %v13457_v3, %v6025_v23 }
 0x58a   : > { %v6247_v51 = vadd.f32 %v13459_v28, %v6246_v32  ;;  %v5586_v63 = vpop.f32.mrf.mxu0  ;;  %v10827_v43 = vpop.eup %10826  ;;  %6114 = vst [vmem:[%s12905_s29 + $0xa70] sm:$0xff] %v10825_v18 }
 0x58b   : > { %v5807_v46 = vpop.f32.mrf.mxu1  ;;  %v5587_v38 = vadd.f32 %v13445_v14, %v5586_v63  ;;  %v10829_v61 = vpop.eup %10828  ;;  %6335 = vst [vmem:[%s12905_s29 + $0xe70] sm:$0xff] %v10827_v43  ;;  %10832 = vtanh.f32 %v6026_v58 }
 0x58c   : > { %v5808_v20 = vadd.f32 %v13447_v47, %v5807_v46  ;;  %6557 = vmatmul.bf16.vlgmr.msra.gmra.mxu0 %v9192_v6  ;;  %v10831_v10 = vpop.eup %10830  ;;  %5673 = vst [vmem:[%s12905_s29 + $0x278] sm:$0xff] %v10829_v61  ;;  %10834 = vtanh.f32 %v6247_v51  ;;  %6778 = vmatmul.bf16.vlgmr.msra.gmra.mxu1 %v9192_v6 }
 0x58d   : > { %5894 = vst [vmem:[%s12905_s29 + $0x678] sm:$0xff] %v10831_v10  ;;  %10836 = vtanh.f32 %v5587_v38  ;;  %6999 = vmatmul.bf16.vlgmr.msra.gmra.mxu2 %v9192_v6  ;;  %7220 = vmatmul.bf16.vlgmr.msra.gmra.mxu3 %v9192_v6 }
 0x58e   : > { %10838 = vtanh.f32 %v5808_v20 }
 0x590   : > { %v6028_v40 = vpop.f32.mrf.mxu2 }
 0x591   : > { %v6249_v7 = vpop.f32.mrf.mxu3  ;;  %v10833_v22 = vpop.eup %10832  ;;  %v6029_v0 = vadd.f32 %v13457_v3, %v6028_v40 }
 0x592   : > { %v6250_v26 = vadd.f32 %v13459_v28, %v6249_v7  ;;  %v5588_v59 = vpop.f32.mrf.mxu0  ;;  %v10835_v1 = vpop.eup %10834  ;;  %6115 = vst [vmem:[%s12905_s29 + $0xa78] sm:$0xff] %v10833_v22 }
 0x593   : > { %v5809_v9 = vpop.f32.mrf.mxu1  ;;  %v5589_v17 = vadd.f32 %v13445_v14, %v5588_v59  ;;  %v10837_v4 = vpop.eup %10836  ;;  %6336 = vst [vmem:[%s12905_s29 + $0xe78] sm:$0xff] %v10835_v1  ;;  %10840 = vtanh.f32 %v6029_v0  ;;  %v13633_v0 = vld [vmem:[#allocation16 + $0x2] ss:$0 sm:$0xff]  ;;  %v13636_v59 = vld [vmem:[#allocation16 + $0x3] ss:$0 sm:$0xff] }
 0x594   : > { %v5810_v53 = vadd.f32 %v13447_v47, %v5809_v9  ;;  %v10839_v34 = vpop.eup %10838  ;;  %5674 = vst [vmem:[%s12905_s29 + $0x280] sm:$0xff] %v10837_v4  ;;  %10842 = vtanh.f32 %v6250_v26 }
 0x595   : > { %5895 = vst [vmem:[%s12905_s29 + $0x680] sm:$0xff] %v10839_v34  ;;  %10844 = vtanh.f32 %v5589_v17 }
 0x596   : > { %10846 = vtanh.f32 %v5810_v53  ;;  %v9195_v53 = vld [vmem:[#allocation4 + $0x180] sm:$0xff] }
 0x598   : > { %v6030_v24 = vpop.f32.mrf.mxu2 }
 0x599   : > { %v6251_v12 = vpop.f32.mrf.mxu3  ;;  %v10841_v29 = vpop.eup %10840  ;;  %v6031_v41 = vadd.f32 %v13457_v3, %v6030_v24 }
 0x59a   : > { %v6252_v42 = vadd.f32 %v13459_v28, %v6251_v12  ;;  %v5591_v11 = vpop.f32.mrf.mxu0  ;;  %v10843_v13 = vpop.eup %10842  ;;  %6116 = vst [vmem:[%s12905_s29 + $0xa80] sm:$0xff] %v10841_v29 }
 0x59b   : > { %v5812_v2 = vpop.f32.mrf.mxu1  ;;  %v5592_v5 = vadd.f32 %v13445_v14, %v5591_v11  ;;  %v10845_v30 = vpop.eup %10844  ;;  %6337 = vst [vmem:[%s12905_s29 + $0xe80] sm:$0xff] %v10843_v13  ;;  %10848 = vtanh.f32 %v6031_v41 }
 0x59c   : > { %v5813_v16 = vadd.f32 %v13447_v47, %v5812_v2  ;;  %6562 = vmatmul.bf16.gmra.mxu0 %v9193_v45  ;;  %v10847_v52 = vpop.eup %10846  ;;  %5675 = vst [vmem:[%s12905_s29 + $0x288] sm:$0xff] %v10845_v30  ;;  %10850 = vtanh.f32 %v6252_v42  ;;  %6783 = vmatmul.bf16.gmra.mxu1 %v9193_v45 }
 0x59d   : > { %5896 = vst [vmem:[%s12905_s29 + $0x688] sm:$0xff] %v10847_v52  ;;  %10852 = vtanh.f32 %v5592_v5  ;;  %7004 = vmatmul.bf16.gmra.mxu2 %v9193_v45  ;;  %7225 = vmatmul.bf16.gmra.mxu3 %v9193_v45 }
 0x59e   : > { %10854 = vtanh.f32 %v5813_v16 }
 0x5a0   : > { %v6033_v35 = vpop.f32.mrf.mxu2 }
 0x5a1   : > { %v6254_v44 = vpop.f32.mrf.mxu3  ;;  %v10849_v8 = vpop.eup %10848  ;;  %v6034_v48 = vadd.f32 %v13457_v3, %v6033_v35 }
 0x5a2   : > { %v6255_v60 = vadd.f32 %v13459_v28, %v6254_v44  ;;  %v5593_v56 = vpop.f32.mrf.mxu0  ;;  %v10851_v27 = vpop.eup %10850  ;;  %6117 = vst [vmem:[%s12905_s29 + $0xa88] sm:$0xff] %v10849_v8 }
 0x5a3   : > { %v5814_v31 = vpop.f32.mrf.mxu1  ;;  %v5594_v33 = vadd.f32 %v13445_v14, %v5593_v56  ;;  %v10853_v15 = vpop.eup %10852  ;;  %6338 = vst [vmem:[%s12905_s29 + $0xe88] sm:$0xff] %v10851_v27  ;;  %10856 = vtanh.f32 %v6034_v48 }
 0x5a4   : > { %v5815_v37 = vadd.f32 %v13447_v47, %v5814_v31  ;;  %v10855_v50 = vpop.eup %10854  ;;  %5676 = vst [vmem:[%s12905_s29 + $0x290] sm:$0xff] %v10853_v15  ;;  %10858 = vtanh.f32 %v6255_v60 }
 0x5a5   : > { %5897 = vst [vmem:[%s12905_s29 + $0x690] sm:$0xff] %v10855_v50  ;;  %10860 = vtanh.f32 %v5594_v33 }
 0x5a6   : > { %10862 = vtanh.f32 %v5815_v37  ;;  %v9196_v37 = vld [vmem:[#allocation4 + $0x140] sm:$0xff] }
 0x5a8   : > { %v6035_v54 = vpop.f32.mrf.mxu2 }
 0x5a9   : > { %v6256_v25 = vpop.f32.mrf.mxu3  ;;  %v10857_v39 = vpop.eup %10856  ;;  %v6036_v19 = vadd.f32 %v13457_v3, %v6035_v54 }
 0x5aa   : > { %v6257_v14 = vadd.f32 %v13459_v28, %v6256_v25  ;;  %v5596_v47 = vpop.f32.mrf.mxu0  ;;  %v10859_v49 = vpop.eup %10858  ;;  %6118 = vst [vmem:[%s12905_s29 + $0xa90] sm:$0xff] %v10857_v39 }
 0x5ab   : > { %v5817_v21 = vpop.f32.mrf.mxu1  ;;  %v5597_v62 = vadd.f32 %v13616_v57, %v5596_v47  ;;  %v10861_v32 = vpop.eup %10860  ;;  %6339 = vst [vmem:[%s12905_s29 + $0xe90] sm:$0xff] %v10859_v49  ;;  %10864 = vtanh.f32 %v6036_v19 }
 0x5ac   : > { %v5818_v23 = vadd.f32 %v13619_v55, %v5817_v21  ;;  %6567 = vmatmul.bf16.gmra.mxu0 %v9194_v36  ;;  %v10863_v18 = vpop.eup %10862  ;;  %5677 = vst [vmem:[%s12905_s29 + $0x298] sm:$0xff] %v10861_v32  ;;  %10866 = vtanh.f32 %v6257_v14  ;;  %6788 = vmatmul.bf16.gmra.mxu1 %v9194_v36 }
 0x5ad   : > { %5898 = vst [vmem:[%s12905_s29 + $0x698] sm:$0xff] %v10863_v18  ;;  %10868 = vtanh.f32 %v5597_v62  ;;  %7009 = vmatmul.bf16.gmra.mxu2 %v9194_v36  ;;  %7230 = vmatmul.bf16.gmra.mxu3 %v9194_v36 }
 0x5ae   : > { %10870 = vtanh.f32 %v5818_v23 }
 0x5b0   : > { %v6038_v58 = vpop.f32.mrf.mxu2 }
 0x5b1   : > { %v6259_v51 = vpop.f32.mrf.mxu3  ;;  %v10865_v63 = vpop.eup %10864  ;;  %v6039_v46 = vadd.f32 %v13457_v3, %v6038_v58 }
 0x5b2   : > { %v6260_v6 = vadd.f32 %v13459_v28, %v6259_v51  ;;  %v5598_v43 = vpop.f32.mrf.mxu0  ;;  %v10867_v20 = vpop.eup %10866  ;;  %6119 = vst [vmem:[%s12905_s29 + $0xa98] sm:$0xff] %v10865_v63 }
 0x5b3   : > { %v5819_v38 = vpop.f32.mrf.mxu1  ;;  %v5599_v61 = vadd.f32 %v13616_v57, %v5598_v43  ;;  %v10869_v40 = vpop.eup %10868  ;;  %6340 = vst [vmem:[%s12905_s29 + $0xe98] sm:$0xff] %v10867_v20  ;;  %10872 = vtanh.f32 %v6039_v46 }
 0x5b4   : > { %v5820_v10 = vadd.f32 %v13619_v55, %v5819_v38  ;;  %v10871_v7 = vpop.eup %10870  ;;  %5678 = vst [vmem:[%s12905_s29 + $0x2a0] sm:$0xff] %v10869_v40  ;;  %10874 = vtanh.f32 %v6260_v6 }
 0x5b5   : > { %5899 = vst [vmem:[%s12905_s29 + $0x6a0] sm:$0xff] %v10871_v7  ;;  %10876 = vtanh.f32 %v5599_v61 }
 0x5b6   : > { %10878 = vtanh.f32 %v5820_v10  ;;  %v9197_v10 = vld [vmem:[#allocation4 + $0xa8] sm:$0xff] }
 0x5b8   : > { %v6040_v3 = vpop.f32.mrf.mxu2 }
 0x5b9   : > { %v6261_v28 = vpop.f32.mrf.mxu3  ;;  %v10873_v22 = vpop.eup %10872  ;;  %v6041_v26 = vadd.f32 %v13633_v0, %v6040_v3 }
 0x5ba   : > { %v6262_v9 = vadd.f32 %v13636_v59, %v6261_v28  ;;  %v5601_v1 = vpop.f32.mrf.mxu0  ;;  %v10875_v4 = vpop.eup %10874  ;;  %6120 = vst [vmem:[%s12905_s29 + $0xaa0] sm:$0xff] %v10873_v22 }
 0x5bb   : > { %v5822_v17 = vpop.f32.mrf.mxu1  ;;  %v5602_v34 = vadd.f32 %v13616_v57, %v5601_v1  ;;  %v10877_v12 = vpop.eup %10876  ;;  %6341 = vst [vmem:[%s12905_s29 + $0xea0] sm:$0xff] %v10875_v4  ;;  %10880 = vtanh.f32 %v6041_v26 }
 0x5bc   : > { %v5823_v24 = vadd.f32 %v13619_v55, %v5822_v17  ;;  %6572 = vmatmul.bf16.gmra.mxu0 %v9195_v53  ;;  %v10879_v29 = vpop.eup %10878  ;;  %5679 = vst [vmem:[%s12905_s29 + $0x2a8] sm:$0xff] %v10877_v12  ;;  %10882 = vtanh.f32 %v6262_v9  ;;  %6793 = vmatmul.bf16.gmra.mxu1 %v9195_v53 }
 0x5bd   : > { %5900 = vst [vmem:[%s12905_s29 + $0x6a8] sm:$0xff] %v10879_v29  ;;  %10884 = vtanh.f32 %v5602_v34  ;;  %7014 = vmatmul.bf16.gmra.mxu2 %v9195_v53  ;;  %7235 = vmatmul.bf16.gmra.mxu3 %v9195_v53 }
 0x5be   : > { %10886 = vtanh.f32 %v5823_v24 }
 0x5c0   : > { %v6043_v41 = vpop.f32.mrf.mxu2 }
 0x5c1   : > { %v6264_v42 = vpop.f32.mrf.mxu3  ;;  %v10881_v11 = vpop.eup %10880  ;;  %v6044_v2 = vadd.f32 %v13633_v0, %v6043_v41 }
 0x5c2   : > { %v6265_v45 = vadd.f32 %v13636_v59, %v6264_v42  ;;  %v5603_v13 = vpop.f32.mrf.mxu0  ;;  %v10883_v16 = vpop.eup %10882  ;;  %6121 = vst [vmem:[%s12905_s29 + $0xaa8] sm:$0xff] %v10881_v11 }
 0x5c3   : > { %v5824_v5 = vpop.f32.mrf.mxu1  ;;  %v5604_v30 = vadd.f32 %v13616_v57, %v5603_v13  ;;  %v10885_v35 = vpop.eup %10884  ;;  %6342 = vst [vmem:[%s12905_s29 + $0xea8] sm:$0xff] %v10883_v16  ;;  %10888 = vtanh.f32 %v6044_v2 }
 0x5c4   : > { %v5825_v52 = vadd.f32 %v13619_v55, %v5824_v5  ;;  %v10887_v44 = vpop.eup %10886  ;;  %5680 = vst [vmem:[%s12905_s29 + $0x2b0] sm:$0xff] %v10885_v35  ;;  %10890 = vtanh.f32 %v6265_v45 }
 0x5c5   : > { %5901 = vst [vmem:[%s12905_s29 + $0x6b0] sm:$0xff] %v10887_v44  ;;  %10892 = vtanh.f32 %v5604_v30 }
 0x5c6   : > { %10894 = vtanh.f32 %v5825_v52  ;;  %v9198_v52 = vld [vmem:[#allocation4 + $0x90] sm:$0xff] }
 0x5c8   : > { %v6045_v8 = vpop.f32.mrf.mxu2 }
 0x5c9   : > { %v6266_v48 = vpop.f32.mrf.mxu3  ;;  %v10889_v60 = vpop.eup %10888  ;;  %v6046_v56 = vadd.f32 %v13633_v0, %v6045_v8 }
 0x5ca   : > { %v6267_v31 = vadd.f32 %v13636_v59, %v6266_v48  ;;  %v5606_v27 = vpop.f32.mrf.mxu0  ;;  %v10891_v15 = vpop.eup %10890  ;;  %6122 = vst [vmem:[%s12905_s29 + $0xab0] sm:$0xff] %v10889_v60 }
 0x5cb   : > { %v5827_v33 = vpop.f32.mrf.mxu1  ;;  %v5607_v50 = vadd.f32 %v13616_v57, %v5606_v27  ;;  %v10893_v25 = vpop.eup %10892  ;;  %6343 = vst [vmem:[%s12905_s29 + $0xeb0] sm:$0xff] %v10891_v15  ;;  %10896 = vtanh.f32 %v6046_v56 }
 0x5cc   : > { %v5828_v54 = vadd.f32 %v13619_v55, %v5827_v33  ;;  %6577 = vmatmul.bf16.gmra.mxu0 %v9196_v37  ;;  %v10895_v39 = vpop.eup %10894  ;;  %5681 = vst [vmem:[%s12905_s29 + $0x2b8] sm:$0xff] %v10893_v25  ;;  %10898 = vtanh.f32 %v6267_v31  ;;  %6798 = vmatmul.bf16.gmra.mxu1 %v9196_v37 }
 0x5cd   : > { %5902 = vst [vmem:[%s12905_s29 + $0x6b8] sm:$0xff] %v10895_v39  ;;  %10900 = vtanh.f32 %v5607_v50  ;;  %7019 = vmatmul.bf16.gmra.mxu2 %v9196_v37  ;;  %7240 = vmatmul.bf16.gmra.mxu3 %v9196_v37 }
 0x5ce   : > { %10902 = vtanh.f32 %v5828_v54 }
 0x5d0   : > { %v6048_v19 = vpop.f32.mrf.mxu2 }
 0x5d1   : > { %v6269_v14 = vpop.f32.mrf.mxu3  ;;  %v10897_v47 = vpop.eup %10896  ;;  %v6049_v21 = vadd.f32 %v13633_v0, %v6048_v19 }
 0x5d2   : > { %v6270_v36 = vadd.f32 %v13636_v59, %v6269_v14  ;;  %v5608_v49 = vpop.f32.mrf.mxu0  ;;  %v10899_v23 = vpop.eup %10898  ;;  %6123 = vst [vmem:[%s12905_s29 + $0xab8] sm:$0xff] %v10897_v47 }
 0x5d3   : > { %v5829_v62 = vpop.f32.mrf.mxu1  ;;  %v5609_v32 = vadd.f32 %v13616_v57, %v5608_v49  ;;  %v10901_v58 = vpop.eup %10900  ;;  %6344 = vst [vmem:[%s12905_s29 + $0xeb8] sm:$0xff] %v10899_v23  ;;  %10904 = vtanh.f32 %v6049_v21 }
 0x5d4   : > { %v5830_v18 = vadd.f32 %v13619_v55, %v5829_v62  ;;  %v10903_v51 = vpop.eup %10902  ;;  %5682 = vst [vmem:[%s12905_s29 + $0x2c0] sm:$0xff] %v10901_v58  ;;  %10906 = vtanh.f32 %v6270_v36 }
 0x5d5   : > { %5903 = vst [vmem:[%s12905_s29 + $0x6c0] sm:$0xff] %v10903_v51  ;;  %10908 = vtanh.f32 %v5609_v32 }
 0x5d6   : > { %10910 = vtanh.f32 %v5830_v18  ;;  %v9199_v18 = vld [vmem:[#allocation4 + $0x108] sm:$0xff] }
 0x5d8   : > { %v6050_v63 = vpop.f32.mrf.mxu2 }
 0x5d9   : > { %v6271_v46 = vpop.f32.mrf.mxu3  ;;  %v10905_v6 = vpop.eup %10904  ;;  %v6051_v43 = vadd.f32 %v13633_v0, %v6050_v63 }
 0x5da   : > { %v6272_v38 = vadd.f32 %v13636_v59, %v6271_v46  ;;  %v5611_v20 = vpop.f32.mrf.mxu0  ;;  %v10907_v40 = vpop.eup %10906  ;;  %6124 = vst [vmem:[%s12905_s29 + $0xac0] sm:$0xff] %v10905_v6 }
 0x5db   : > { %v5832_v61 = vpop.f32.mrf.mxu1  ;;  %v5612_v7 = vadd.f32 %v13616_v57, %v5611_v20  ;;  %v10909_v28 = vpop.eup %10908  ;;  %6345 = vst [vmem:[%s12905_s29 + $0xec0] sm:$0xff] %v10907_v40  ;;  %10912 = vtanh.f32 %v6051_v43 }
 0x5dc   : > { %v5833_v3 = vadd.f32 %v13619_v55, %v5832_v61  ;;  %6582 = vmatmul.bf16.gmra.mxu0 %v9197_v10  ;;  %v10911_v22 = vpop.eup %10910  ;;  %5683 = vst [vmem:[%s12905_s29 + $0x2c8] sm:$0xff] %v10909_v28  ;;  %10914 = vtanh.f32 %v6272_v38  ;;  %6803 = vmatmul.bf16.gmra.mxu1 %v9197_v10 }
 0x5dd   : > { %5904 = vst [vmem:[%s12905_s29 + $0x6c8] sm:$0xff] %v10911_v22  ;;  %10916 = vtanh.f32 %v5612_v7  ;;  %7024 = vmatmul.bf16.gmra.mxu2 %v9197_v10  ;;  %7245 = vmatmul.bf16.gmra.mxu3 %v9197_v10 }
 0x5de   : > { %10918 = vtanh.f32 %v5833_v3 }
 0x5e0   : > { %v6053_v26 = vpop.f32.mrf.mxu2 }
 0x5e1   : > { %v6274_v9 = vpop.f32.mrf.mxu3  ;;  %v10913_v1 = vpop.eup %10912  ;;  %v6054_v17 = vadd.f32 %v13633_v0, %v6053_v26 }
 0x5e2   : > { %v6275_v53 = vadd.f32 %v13636_v59, %v6274_v9  ;;  %v5613_v4 = vpop.f32.mrf.mxu0  ;;  %v10915_v24 = vpop.eup %10914  ;;  %6125 = vst [vmem:[%s12905_s29 + $0xac8] sm:$0xff] %v10913_v1  ;;  %v13717_v1 = vld [vmem:[#allocation16] ss:$0 sm:$0xff] }
 0x5e3   : > { %v5834_v34 = vpop.f32.mrf.mxu1  ;;  %v5614_v12 = vadd.f32 %v13616_v57, %v5613_v4  ;;  %v10917_v41 = vpop.eup %10916  ;;  %6346 = vst [vmem:[%s12905_s29 + $0xec8] sm:$0xff] %v10915_v24  ;;  %10920 = vtanh.f32 %v6054_v17  ;;  %v13719_v17 = vld [vmem:[#allocation16 + $0x1] ss:$0 sm:$0xff] }
 0x5e4   : > { %v5835_v29 = vadd.f32 %v13619_v55, %v5834_v34  ;;  %v10919_v42 = vpop.eup %10918  ;;  %5684 = vst [vmem:[%s12905_s29 + $0x2d0] sm:$0xff] %v10917_v41  ;;  %10922 = vtanh.f32 %v6275_v53 }
 0x5e5   : > { %5905 = vst [vmem:[%s12905_s29 + $0x6d0] sm:$0xff] %v10919_v42  ;;  %10924 = vtanh.f32 %v5614_v12 }
 0x5e6   : > { %10926 = vtanh.f32 %v5835_v29  ;;  %v9200_v29 = vld [vmem:[#allocation4 + $0x1a8] sm:$0xff] }
 0x5e8   : > { %v6055_v11 = vpop.f32.mrf.mxu2 }
 0x5e9   : > { %v6276_v2 = vpop.f32.mrf.mxu3  ;;  %v10921_v45 = vpop.eup %10920  ;;  %v6056_v13 = vadd.f32 %v13633_v0, %v6055_v11 }
 0x5ea   : > { %v6277_v5 = vadd.f32 %v13636_v59, %v6276_v2  ;;  %v5616_v16 = vpop.f32.mrf.mxu0  ;;  %v10923_v35 = vpop.eup %10922  ;;  %6126 = vst [vmem:[%s12905_s29 + $0xad0] sm:$0xff] %v10921_v45 }
 0x5eb   : > { %v5837_v30 = vpop.f32.mrf.mxu1  ;;  %v5617_v44 = vadd.f32 %v13616_v57, %v5616_v16  ;;  %v10925_v48 = vpop.eup %10924  ;;  %6347 = vst [vmem:[%s12905_s29 + $0xed0] sm:$0xff] %v10923_v35  ;;  %10928 = vtanh.f32 %v6056_v13 }
 0x5ec   : > { %v5838_v8 = vadd.f32 %v13619_v55, %v5837_v30  ;;  %6587 = vmatmul.bf16.gmra.mxu0 %v9198_v52  ;;  %v10927_v60 = vpop.eup %10926  ;;  %5685 = vst [vmem:[%s12905_s29 + $0x2d8] sm:$0xff] %v10925_v48  ;;  %10930 = vtanh.f32 %v6277_v5  ;;  %6808 = vmatmul.bf16.gmra.mxu1 %v9198_v52 }
 0x5ed   : > { %5906 = vst [vmem:[%s12905_s29 + $0x6d8] sm:$0xff] %v10927_v60  ;;  %10932 = vtanh.f32 %v5617_v44  ;;  %7029 = vmatmul.bf16.gmra.mxu2 %v9198_v52  ;;  %7250 = vmatmul.bf16.gmra.mxu3 %v9198_v52 }
 0x5ee   : > { %10934 = vtanh.f32 %v5838_v8 }
 0x5f0   : > { %v6058_v56 = vpop.f32.mrf.mxu2 }
 0x5f1   : > { %v6279_v31 = vpop.f32.mrf.mxu3  ;;  %v10929_v27 = vpop.eup %10928  ;;  %v6059_v33 = vadd.f32 %v13633_v0, %v6058_v56 }
 0x5f2   : > { %v6280_v37 = vadd.f32 %v13636_v59, %v6279_v31  ;;  %v5618_v15 = vpop.f32.mrf.mxu0  ;;  %v10931_v54 = vpop.eup %10930  ;;  %6127 = vst [vmem:[%s12905_s29 + $0xad8] sm:$0xff] %v10929_v27 }
 0x5f3   : > { %v5839_v50 = vpop.f32.mrf.mxu1  ;;  %v5619_v25 = vadd.f32 %v13616_v57, %v5618_v15  ;;  %v10933_v19 = vpop.eup %10932  ;;  %6348 = vst [vmem:[%s12905_s29 + $0xed8] sm:$0xff] %v10931_v54  ;;  %10936 = vtanh.f32 %v6059_v33 }
 0x5f4   : > { %v5840_v39 = vadd.f32 %v13619_v55, %v5839_v50  ;;  %v10935_v14 = vpop.eup %10934  ;;  %5686 = vst [vmem:[%s12905_s29 + $0x2e0] sm:$0xff] %v10933_v19  ;;  %10938 = vtanh.f32 %v6280_v37 }
 0x5f5   : > { %5907 = vst [vmem:[%s12905_s29 + $0x6e0] sm:$0xff] %v10935_v14  ;;  %10940 = vtanh.f32 %v5619_v25 }
 0x5f6   : > { %10942 = vtanh.f32 %v5840_v39  ;;  %v9201_v39 = vld [vmem:[#allocation4 + $0x130] sm:$0xff] }
 0x5f8   : > { %v6060_v47 = vpop.f32.mrf.mxu2 }
 0x5f9   : > { %v6281_v21 = vpop.f32.mrf.mxu3  ;;  %v10937_v36 = vpop.eup %10936  ;;  %v6061_v49 = vadd.f32 %v13633_v0, %v6060_v47 }
 0x5fa   : > { %v6282_v62 = vadd.f32 %v13636_v59, %v6281_v21  ;;  %v5621_v23 = vpop.f32.mrf.mxu0  ;;  %v10939_v58 = vpop.eup %10938  ;;  %6128 = vst [vmem:[%s12905_s29 + $0xae0] sm:$0xff] %v10937_v36 }
 0x5fb   : > { %v5842_v32 = vpop.f32.mrf.mxu1  ;;  %v5622_v51 = vadd.f32 %v13616_v57, %v5621_v23  ;;  %v10941_v46 = vpop.eup %10940  ;;  %6349 = vst [vmem:[%s12905_s29 + $0xee0] sm:$0xff] %v10939_v58  ;;  %10944 = vtanh.f32 %v6061_v49 }
 0x5fc   : > { %v5843_v63 = vadd.f32 %v13619_v55, %v5842_v32  ;;  %6592 = vmatmul.bf16.gmra.mxu0 %v9199_v18  ;;  %v10943_v6 = vpop.eup %10942  ;;  %5687 = vst [vmem:[%s12905_s29 + $0x2e8] sm:$0xff] %v10941_v46  ;;  %10946 = vtanh.f32 %v6282_v62  ;;  %6813 = vmatmul.bf16.gmra.mxu1 %v9199_v18 }
 0x5fd   : > { %5908 = vst [vmem:[%s12905_s29 + $0x6e8] sm:$0xff] %v10943_v6  ;;  %10948 = vtanh.f32 %v5622_v51  ;;  %7034 = vmatmul.bf16.gmra.mxu2 %v9199_v18  ;;  %7255 = vmatmul.bf16.gmra.mxu3 %v9199_v18 }
 0x5fe   : > { %10950 = vtanh.f32 %v5843_v63 }
 0x600   : > { %v6063_v43 = vpop.f32.mrf.mxu2 }
 0x601   : > { %v6284_v38 = vpop.f32.mrf.mxu3  ;;  %v10945_v20 = vpop.eup %10944  ;;  %v6064_v61 = vadd.f32 %v13633_v0, %v6063_v43 }
 0x602   : > { %v6285_v10 = vadd.f32 %v13636_v59, %v6284_v38  ;;  %v5623_v40 = vpop.f32.mrf.mxu0  ;;  %v10947_v3 = vpop.eup %10946  ;;  %6129 = vst [vmem:[%s12905_s29 + $0xae8] sm:$0xff] %v10945_v20 }
 0x603   : > { %v5844_v7 = vpop.f32.mrf.mxu1  ;;  %v5624_v28 = vadd.f32 %v13616_v57, %v5623_v40  ;;  %v10949_v26 = vpop.eup %10948  ;;  %6350 = vst [vmem:[%s12905_s29 + $0xee8] sm:$0xff] %v10947_v3  ;;  %10952 = vtanh.f32 %v6064_v61 }
 0x604   : > { %v5845_v22 = vadd.f32 %v13619_v55, %v5844_v7  ;;  %v10951_v9 = vpop.eup %10950  ;;  %5688 = vst [vmem:[%s12905_s29 + $0x2f0] sm:$0xff] %v10949_v26  ;;  %10954 = vtanh.f32 %v6285_v10 }
 0x605   : > { %5909 = vst [vmem:[%s12905_s29 + $0x6f0] sm:$0xff] %v10951_v9  ;;  %10956 = vtanh.f32 %v5624_v28 }
 0x606   : > { %10958 = vtanh.f32 %v5845_v22  ;;  %v9202_v22 = vld [vmem:[#allocation4 + $0x98] sm:$0xff] }
 0x608   : > { %v6065_v53 = vpop.f32.mrf.mxu2 }
 0x609   : > { %v6286_v4 = vpop.f32.mrf.mxu3  ;;  %v10953_v57 = vpop.eup %10952  ;;  %v6066_v55 = vadd.f32 %v13633_v0, %v6065_v53  ;;  %v13729_v0 = vld [vmem:[#allocation16 + $0x2] ss:$0 sm:$0xff] }
 0x60a   : > { %v6287_v34 = vadd.f32 %v13636_v59, %v6286_v4  ;;  %v6558_v24 = vpop.f32.mrf.mxu0  ;;  %v10955_v41 = vpop.eup %10954  ;;  %6130 = vst [vmem:[%s12905_s29 + $0xaf0] sm:$0xff] %v10953_v57  ;;  %v13731_v59 = vld [vmem:[#allocation16 + $0x3] ss:$0 sm:$0xff] }
 0x60b   : > { %v6779_v12 = vpop.f32.mrf.mxu1  ;;  %v6559_v42 = vadd.f32 %v13717_v1, %v6558_v24  ;;  %v10957_v2 = vpop.eup %10956  ;;  %6351 = vst [vmem:[%s12905_s29 + $0xef0] sm:$0xff] %v10955_v41  ;;  %10960 = vtanh.f32 %v6066_v55 }
 0x60c   : > { %v6780_v11 = vadd.f32 %v13719_v17, %v6779_v12  ;;  %6597 = vmatmul.bf16.gmra.mxu0 %v9200_v29  ;;  %v10959_v45 = vpop.eup %10958  ;;  %5689 = vst [vmem:[%s12905_s29 + $0x2f8] sm:$0xff] %v10957_v2  ;;  %10962 = vtanh.f32 %v6287_v34  ;;  %6818 = vmatmul.bf16.gmra.mxu1 %v9200_v29 }
 0x60d   : > { %5910 = vst [vmem:[%s12905_s29 + $0x6f8] sm:$0xff] %v10959_v45  ;;  %10964 = vtanh.f32 %v6559_v42  ;;  %7039 = vmatmul.bf16.gmra.mxu2 %v9200_v29  ;;  %7260 = vmatmul.bf16.gmra.mxu3 %v9200_v29 }
 0x60e   : > { %10966 = vtanh.f32 %v6780_v11 }
 0x610   : > { %v7000_v13 = vpop.f32.mrf.mxu2 }
 0x611   : > { %v7221_v5 = vpop.f32.mrf.mxu3  ;;  %v10961_v16 = vpop.eup %10960  ;;  %v7001_v30 = vadd.f32 %v13729_v0, %v7000_v13 }
 0x612   : > { %v7222_v52 = vadd.f32 %v13731_v59, %v7221_v5  ;;  %v6560_v35 = vpop.f32.mrf.mxu0  ;;  %v10963_v8 = vpop.eup %10962  ;;  %6131 = vst [vmem:[%s12905_s29 + $0xaf8] sm:$0xff] %v10961_v16 }
 0x613   : > { %v6781_v44 = vpop.f32.mrf.mxu1  ;;  %v6561_v48 = vadd.f32 %v13717_v1, %v6560_v35  ;;  %v10965_v56 = vpop.eup %10964  ;;  %6352 = vst [vmem:[%s12905_s29 + $0xef8] sm:$0xff] %v10963_v8  ;;  %10968 = vtanh.f32 %v7001_v30 }
 0x614   : > { %v6782_v60 = vadd.f32 %v13719_v17, %v6781_v44  ;;  %v10967_v31 = vpop.eup %10966  ;;  %6670 = vst [vmem:[%s12905_s29 + $0x300] sm:$0xff] %v10965_v56  ;;  %10970 = vtanh.f32 %v7222_v52 }
 0x615   : > { %6891 = vst [vmem:[%s12905_s29 + $0x700] sm:$0xff] %v10967_v31  ;;  %10972 = vtanh.f32 %v6561_v48 }
 0x616   : > { %10974 = vtanh.f32 %v6782_v60  ;;  %v9203_v60 = vld [vmem:[#allocation4 + $0x118] sm:$0xff] }
 0x618   : > { %v7002_v27 = vpop.f32.mrf.mxu2 }
 0x619   : > { %v7223_v33 = vpop.f32.mrf.mxu3  ;;  %v10969_v37 = vpop.eup %10968  ;;  %v7003_v15 = vadd.f32 %v13729_v0, %v7002_v27 }
 0x61a   : > { %v7224_v50 = vadd.f32 %v13731_v59, %v7223_v33  ;;  %v6563_v54 = vpop.f32.mrf.mxu0  ;;  %v10971_v19 = vpop.eup %10970  ;;  %7112 = vst [vmem:[%s12905_s29 + $0xb00] sm:$0xff] %v10969_v37 }
 0x61b   : > { %v6784_v25 = vpop.f32.mrf.mxu1  ;;  %v6564_v14 = vadd.f32 %v13717_v1, %v6563_v54  ;;  %v10973_v21 = vpop.eup %10972  ;;  %7333 = vst [vmem:[%s12905_s29 + $0xf00] sm:$0xff] %v10971_v19  ;;  %10976 = vtanh.f32 %v7003_v15 }
 0x61c   : > { %v6785_v47 = vadd.f32 %v13719_v17, %v6784_v25  ;;  %6602 = vmatmul.bf16.gmra.mxu0 %v9201_v39  ;;  %v10975_v36 = vpop.eup %10974  ;;  %6671 = vst [vmem:[%s12905_s29 + $0x308] sm:$0xff] %v10973_v21  ;;  %10978 = vtanh.f32 %v7224_v50  ;;  %6823 = vmatmul.bf16.gmra.mxu1 %v9201_v39 }
 0x61d   : > { %6892 = vst [vmem:[%s12905_s29 + $0x708] sm:$0xff] %v10975_v36  ;;  %10980 = vtanh.f32 %v6564_v14  ;;  %7044 = vmatmul.bf16.gmra.mxu2 %v9201_v39  ;;  %7265 = vmatmul.bf16.gmra.mxu3 %v9201_v39 }
 0x61e   : > { %10982 = vtanh.f32 %v6785_v47 }
 0x620   : > { %v7005_v49 = vpop.f32.mrf.mxu2 }
 0x621   : > { %v7226_v62 = vpop.f32.mrf.mxu3  ;;  %v10977_v23 = vpop.eup %10976  ;;  %v7006_v32 = vadd.f32 %v13729_v0, %v7005_v49 }
 0x622   : > { %v7227_v18 = vadd.f32 %v13731_v59, %v7226_v62  ;;  %v6565_v58 = vpop.f32.mrf.mxu0  ;;  %v10979_v63 = vpop.eup %10978  ;;  %7113 = vst [vmem:[%s12905_s29 + $0xb08] sm:$0xff] %v10977_v23 }
 0x623   : > { %v6786_v51 = vpop.f32.mrf.mxu1  ;;  %v6566_v46 = vadd.f32 %v13717_v1, %v6565_v58  ;;  %v10981_v43 = vpop.eup %10980  ;;  %7334 = vst [vmem:[%s12905_s29 + $0xf08] sm:$0xff] %v10979_v63  ;;  %10984 = vtanh.f32 %v7006_v32 }
 0x624   : > { %v6787_v6 = vadd.f32 %v13719_v17, %v6786_v51  ;;  %v10983_v38 = vpop.eup %10982  ;;  %6672 = vst [vmem:[%s12905_s29 + $0x310] sm:$0xff] %v10981_v43  ;;  %10986 = vtanh.f32 %v7227_v18 }
 0x625   : > { %6893 = vst [vmem:[%s12905_s29 + $0x710] sm:$0xff] %v10983_v38  ;;  %10988 = vtanh.f32 %v6566_v46 }
 0x626   : > { %10990 = vtanh.f32 %v6787_v6  ;;  %v9204_v6 = vld [vmem:[#allocation4 + $0x50] sm:$0xff] }
 0x628   : > { %v7007_v20 = vpop.f32.mrf.mxu2 }
 0x629   : > { %v7228_v61 = vpop.f32.mrf.mxu3  ;;  %v10985_v10 = vpop.eup %10984  ;;  %v7008_v40 = vadd.f32 %v13729_v0, %v7007_v20 }
 0x62a   : > { %v7229_v7 = vadd.f32 %v13731_v59, %v7228_v61  ;;  %v6568_v3 = vpop.f32.mrf.mxu0  ;;  %v10987_v26 = vpop.eup %10986  ;;  %7114 = vst [vmem:[%s12905_s29 + $0xb10] sm:$0xff] %v10985_v10 }
 0x62b   : > { %v6789_v28 = vpop.f32.mrf.mxu1  ;;  %v6569_v9 = vadd.f32 %v13717_v1, %v6568_v3  ;;  %v10989_v4 = vpop.eup %10988  ;;  %7335 = vst [vmem:[%s12905_s29 + $0xf10] sm:$0xff] %v10987_v26  ;;  %10992 = vtanh.f32 %v7008_v40 }
 0x62c   : > { %v6790_v53 = vadd.f32 %v13719_v17, %v6789_v28  ;;  %6607 = vmatmul.bf16.gmra.mxu0 %v9202_v22  ;;  %v10991_v57 = vpop.eup %10990  ;;  %6673 = vst [vmem:[%s12905_s29 + $0x318] sm:$0xff] %v10989_v4  ;;  %10994 = vtanh.f32 %v7229_v7  ;;  %6828 = vmatmul.bf16.gmra.mxu1 %v9202_v22 }
 0x62d   : > { %6894 = vst [vmem:[%s12905_s29 + $0x718] sm:$0xff] %v10991_v57  ;;  %10996 = vtanh.f32 %v6569_v9  ;;  %7049 = vmatmul.bf16.gmra.mxu2 %v9202_v22  ;;  %7270 = vmatmul.bf16.gmra.mxu3 %v9202_v22 }
 0x62e   : > { %10998 = vtanh.f32 %v6790_v53 }
 0x630   : > { %v7010_v55 = vpop.f32.mrf.mxu2 }
 0x631   : > { %v7231_v34 = vpop.f32.mrf.mxu3  ;;  %v10993_v24 = vpop.eup %10992  ;;  %v7011_v12 = vadd.f32 %v13729_v0, %v7010_v55 }
 0x632   : > { %v7232_v29 = vadd.f32 %v13731_v59, %v7231_v34  ;;  %v6570_v41 = vpop.f32.mrf.mxu0  ;;  %v10995_v11 = vpop.eup %10994  ;;  %7115 = vst [vmem:[%s12905_s29 + $0xb18] sm:$0xff] %v10993_v24 }
 0x633   : > { %v6791_v42 = vpop.f32.mrf.mxu1  ;;  %v6571_v2 = vadd.f32 %v13717_v1, %v6570_v41  ;;  %v10997_v13 = vpop.eup %10996  ;;  %7336 = vst [vmem:[%s12905_s29 + $0xf18] sm:$0xff] %v10995_v11  ;;  %11000 = vtanh.f32 %v7011_v12 }
 0x634   : > { %v6792_v45 = vadd.f32 %v13719_v17, %v6791_v42  ;;  %v10999_v5 = vpop.eup %10998  ;;  %6674 = vst [vmem:[%s12905_s29 + $0x320] sm:$0xff] %v10997_v13  ;;  %11002 = vtanh.f32 %v7232_v29 }
 0x635   : > { %6895 = vst [vmem:[%s12905_s29 + $0x720] sm:$0xff] %v10999_v5  ;;  %11004 = vtanh.f32 %v6571_v2 }
 0x636   : > { %11006 = vtanh.f32 %v6792_v45  ;;  %v9205_v45 = vld [vmem:[#allocation4 + $0xb8] sm:$0xff] }
 0x638   : > { %v7012_v16 = vpop.f32.mrf.mxu2 }
 0x639   : > { %v7233_v30 = vpop.f32.mrf.mxu3  ;;  %v11001_v52 = vpop.eup %11000  ;;  %v7013_v35 = vadd.f32 %v13729_v0, %v7012_v16 }
 0x63a   : > { %v7234_v44 = vadd.f32 %v13731_v59, %v7233_v30  ;;  %v6573_v8 = vpop.f32.mrf.mxu0  ;;  %v11003_v56 = vpop.eup %11002  ;;  %7116 = vst [vmem:[%s12905_s29 + $0xb20] sm:$0xff] %v11001_v52 }
 0x63b   : > { %v6794_v48 = vpop.f32.mrf.mxu1  ;;  %v6574_v31 = vadd.f32 %v13717_v1, %v6573_v8  ;;  %v11005_v33 = vpop.eup %11004  ;;  %7337 = vst [vmem:[%s12905_s29 + $0xf20] sm:$0xff] %v11003_v56  ;;  %11008 = vtanh.f32 %v7013_v35 }
 0x63c   : > { %v6795_v27 = vadd.f32 %v13719_v17, %v6794_v48  ;;  %6612 = vmatmul.bf16.gmra.mxu0 %v9203_v60  ;;  %v11007_v37 = vpop.eup %11006  ;;  %6675 = vst [vmem:[%s12905_s29 + $0x328] sm:$0xff] %v11005_v33  ;;  %11010 = vtanh.f32 %v7234_v44  ;;  %6833 = vmatmul.bf16.gmra.mxu1 %v9203_v60 }
 0x63d   : > { %6896 = vst [vmem:[%s12905_s29 + $0x728] sm:$0xff] %v11007_v37  ;;  %11012 = vtanh.f32 %v6574_v31  ;;  %7054 = vmatmul.bf16.gmra.mxu2 %v9203_v60  ;;  %7275 = vmatmul.bf16.gmra.mxu3 %v9203_v60 }
 0x63e   : > { %11014 = vtanh.f32 %v6795_v27 }
 0x640   : > { %v7015_v15 = vpop.f32.mrf.mxu2 }
 0x641   : > { %v7236_v50 = vpop.f32.mrf.mxu3  ;;  %v11009_v54 = vpop.eup %11008  ;;  %v7016_v25 = vadd.f32 %v13729_v0, %v7015_v15 }
 0x642   : > { %v7237_v39 = vadd.f32 %v13731_v59, %v7236_v50  ;;  %v6575_v19 = vpop.f32.mrf.mxu0  ;;  %v11011_v47 = vpop.eup %11010  ;;  %7117 = vst [vmem:[%s12905_s29 + $0xb28] sm:$0xff] %v11009_v54 }
 0x643   : > { %v6796_v14 = vpop.f32.mrf.mxu1  ;;  %v6576_v21 = vadd.f32 %v13717_v1, %v6575_v19  ;;  %v11013_v49 = vpop.eup %11012  ;;  %7338 = vst [vmem:[%s12905_s29 + $0xf28] sm:$0xff] %v11011_v47  ;;  %11016 = vtanh.f32 %v7016_v25 }
 0x644   : > { %v6797_v36 = vadd.f32 %v13719_v17, %v6796_v14  ;;  %v11015_v62 = vpop.eup %11014  ;;  %6676 = vst [vmem:[%s12905_s29 + $0x330] sm:$0xff] %v11013_v49  ;;  %11018 = vtanh.f32 %v7237_v39 }
 0x645   : > { %6897 = vst [vmem:[%s12905_s29 + $0x730] sm:$0xff] %v11015_v62  ;;  %11020 = vtanh.f32 %v6576_v21 }
 0x646   : > { %11022 = vtanh.f32 %v6797_v36  ;;  %v9206_v36 = vld [vmem:[#allocation4 + $0xd8] sm:$0xff] }
 0x648   : > { %v7017_v23 = vpop.f32.mrf.mxu2 }
 0x649   : > { %v7238_v32 = vpop.f32.mrf.mxu3  ;;  %v11017_v18 = vpop.eup %11016  ;;  %v7018_v58 = vadd.f32 %v13729_v0, %v7017_v23 }
 0x64a   : > { %v7239_v51 = vadd.f32 %v13731_v59, %v7238_v32  ;;  %v6578_v63 = vpop.f32.mrf.mxu0  ;;  %v11019_v43 = vpop.eup %11018  ;;  %7118 = vst [vmem:[%s12905_s29 + $0xb30] sm:$0xff] %v11017_v18 }
 0x64b   : > { %v6799_v46 = vpop.f32.mrf.mxu1  ;;  %v6579_v38 = vadd.f32 %v13717_v1, %v6578_v63  ;;  %v11021_v61 = vpop.eup %11020  ;;  %7339 = vst [vmem:[%s12905_s29 + $0xf30] sm:$0xff] %v11019_v43  ;;  %11024 = vtanh.f32 %v7018_v58 }
 0x64c   : > { %v6800_v20 = vadd.f32 %v13719_v17, %v6799_v46  ;;  %6617 = vmatmul.bf16.gmra.mxu0 %v9204_v6  ;;  %v11023_v10 = vpop.eup %11022  ;;  %6677 = vst [vmem:[%s12905_s29 + $0x338] sm:$0xff] %v11021_v61  ;;  %11026 = vtanh.f32 %v7239_v51  ;;  %6838 = vmatmul.bf16.gmra.mxu1 %v9204_v6 }
 0x64d   : > { %6898 = vst [vmem:[%s12905_s29 + $0x738] sm:$0xff] %v11023_v10  ;;  %11028 = vtanh.f32 %v6579_v38  ;;  %7059 = vmatmul.bf16.gmra.mxu2 %v9204_v6  ;;  %7280 = vmatmul.bf16.gmra.mxu3 %v9204_v6 }
 0x64e   : > { %11030 = vtanh.f32 %v6800_v20 }
 0x650   : > { %v7020_v40 = vpop.f32.mrf.mxu2 }
 0x651   : > { %v7241_v7 = vpop.f32.mrf.mxu3  ;;  %v11025_v3 = vpop.eup %11024  ;;  %v7021_v28 = vadd.f32 %v13729_v0, %v7020_v40 }
 0x652   : > { %v7242_v22 = vadd.f32 %v13731_v59, %v7241_v7  ;;  %v6580_v26 = vpop.f32.mrf.mxu0  ;;  %v11027_v53 = vpop.eup %11026  ;;  %7119 = vst [vmem:[%s12905_s29 + $0xb38] sm:$0xff] %v11025_v3 }
 0x653   : > { %v6801_v9 = vpop.f32.mrf.mxu1  ;;  %v6581_v4 = vadd.f32 %v13717_v1, %v6580_v26  ;;  %v11029_v55 = vpop.eup %11028  ;;  %7340 = vst [vmem:[%s12905_s29 + $0xf38] sm:$0xff] %v11027_v53  ;;  %11032 = vtanh.f32 %v7021_v28 }
 0x654   : > { %v6802_v57 = vadd.f32 %v13719_v17, %v6801_v9  ;;  %v11031_v34 = vpop.eup %11030  ;;  %6678 = vst [vmem:[%s12905_s29 + $0x340] sm:$0xff] %v11029_v55  ;;  %11034 = vtanh.f32 %v7242_v22 }
 0x655   : > { %6899 = vst [vmem:[%s12905_s29 + $0x740] sm:$0xff] %v11031_v34  ;;  %11036 = vtanh.f32 %v6581_v4 }
 0x656   : > { %11038 = vtanh.f32 %v6802_v57  ;;  %v9207_v57 = vld [vmem:[#allocation4 + $0xc8] sm:$0xff] }
 0x658   : > { %v7022_v24 = vpop.f32.mrf.mxu2 }
 0x659   : > { %v7243_v12 = vpop.f32.mrf.mxu3  ;;  %v11033_v29 = vpop.eup %11032  ;;  %v7023_v41 = vadd.f32 %v13729_v0, %v7022_v24 }
 0x65a   : > { %v7244_v42 = vadd.f32 %v13731_v59, %v7243_v12  ;;  %v6583_v11 = vpop.f32.mrf.mxu0  ;;  %v11035_v13 = vpop.eup %11034  ;;  %7120 = vst [vmem:[%s12905_s29 + $0xb40] sm:$0xff] %v11033_v29 }
 0x65b   : > { %v6804_v2 = vpop.f32.mrf.mxu1  ;;  %v6584_v5 = vadd.f32 %v13717_v1, %v6583_v11  ;;  %v11037_v30 = vpop.eup %11036  ;;  %7341 = vst [vmem:[%s12905_s29 + $0xf40] sm:$0xff] %v11035_v13  ;;  %11040 = vtanh.f32 %v7023_v41 }
 0x65c   : > { %v6805_v16 = vadd.f32 %v13719_v17, %v6804_v2  ;;  %6622 = vmatmul.bf16.gmra.mxu0 %v9205_v45  ;;  %v11039_v52 = vpop.eup %11038  ;;  %6679 = vst [vmem:[%s12905_s29 + $0x348] sm:$0xff] %v11037_v30  ;;  %11042 = vtanh.f32 %v7244_v42  ;;  %6843 = vmatmul.bf16.gmra.mxu1 %v9205_v45 }
 0x65d   : > { %6900 = vst [vmem:[%s12905_s29 + $0x748] sm:$0xff] %v11039_v52  ;;  %11044 = vtanh.f32 %v6584_v5  ;;  %7064 = vmatmul.bf16.gmra.mxu2 %v9205_v45  ;;  %7285 = vmatmul.bf16.gmra.mxu3 %v9205_v45 }
 0x65e   : > { %11046 = vtanh.f32 %v6805_v16 }
 0x660   : > { %v7025_v35 = vpop.f32.mrf.mxu2 }
 0x661   : > { %v7246_v44 = vpop.f32.mrf.mxu3  ;;  %v11041_v8 = vpop.eup %11040  ;;  %v7026_v48 = vadd.f32 %v13729_v0, %v7025_v35 }
 0x662   : > { %v7247_v60 = vadd.f32 %v13731_v59, %v7246_v44  ;;  %v6585_v56 = vpop.f32.mrf.mxu0  ;;  %v11043_v27 = vpop.eup %11042  ;;  %7121 = vst [vmem:[%s12905_s29 + $0xb48] sm:$0xff] %v11041_v8 }
 0x663   : > { %v6806_v31 = vpop.f32.mrf.mxu1  ;;  %v6586_v33 = vadd.f32 %v13717_v1, %v6585_v56  ;;  %v11045_v15 = vpop.eup %11044  ;;  %7342 = vst [vmem:[%s12905_s29 + $0xf48] sm:$0xff] %v11043_v27  ;;  %11048 = vtanh.f32 %v7026_v48 }
 0x664   : > { %v6807_v37 = vadd.f32 %v13719_v17, %v6806_v31  ;;  %v11047_v50 = vpop.eup %11046  ;;  %6680 = vst [vmem:[%s12905_s29 + $0x350] sm:$0xff] %v11045_v15  ;;  %11050 = vtanh.f32 %v7247_v60 }
 0x665   : > { %6901 = vst [vmem:[%s12905_s29 + $0x750] sm:$0xff] %v11047_v50  ;;  %11052 = vtanh.f32 %v6586_v33 }
 0x666   : > { %11054 = vtanh.f32 %v6807_v37 }
 0x668   : > { %v7027_v54 = vpop.f32.mrf.mxu2 }
 0x669   : > { %v7248_v25 = vpop.f32.mrf.mxu3  ;;  %v11049_v39 = vpop.eup %11048  ;;  %v7028_v19 = vadd.f32 %v13729_v0, %v7027_v54 }
 0x66a   : > { %v7249_v14 = vadd.f32 %v13731_v59, %v7248_v25  ;;  %v6588_v47 = vpop.f32.mrf.mxu0  ;;  %v11051_v49 = vpop.eup %11050  ;;  %7122 = vst [vmem:[%s12905_s29 + $0xb50] sm:$0xff] %v11049_v39 }
 0x66b   : > { %v6809_v21 = vpop.f32.mrf.mxu1  ;;  %v6589_v62 = vadd.f32 %v13717_v1, %v6588_v47  ;;  %v11053_v32 = vpop.eup %11052  ;;  %7343 = vst [vmem:[%s12905_s29 + $0xf50] sm:$0xff] %v11051_v49  ;;  %11056 = vtanh.f32 %v7028_v19 }
 0x66c   : > { %v6810_v23 = vadd.f32 %v13719_v17, %v6809_v21  ;;  %6627 = vmatmul.bf16.gmra.mxu0 %v9206_v36  ;;  %v11055_v18 = vpop.eup %11054  ;;  %6681 = vst [vmem:[%s12905_s29 + $0x358] sm:$0xff] %v11053_v32  ;;  %11058 = vtanh.f32 %v7249_v14  ;;  %6848 = vmatmul.bf16.gmra.mxu1 %v9206_v36 }
 0x66d   : > { %6902 = vst [vmem:[%s12905_s29 + $0x758] sm:$0xff] %v11055_v18  ;;  %11060 = vtanh.f32 %v6589_v62  ;;  %7069 = vmatmul.bf16.gmra.mxu2 %v9206_v36  ;;  %7290 = vmatmul.bf16.gmra.mxu3 %v9206_v36 }
 0x66e   : > { %11062 = vtanh.f32 %v6810_v23 }
 0x670   : > { %v7030_v58 = vpop.f32.mrf.mxu2 }
 0x671   : > { %v7251_v51 = vpop.f32.mrf.mxu3  ;;  %v11057_v63 = vpop.eup %11056  ;;  %v7031_v46 = vadd.f32 %v13729_v0, %v7030_v58 }
 0x672   : > { %v7252_v6 = vadd.f32 %v13731_v59, %v7251_v51  ;;  %v6590_v43 = vpop.f32.mrf.mxu0  ;;  %v11059_v20 = vpop.eup %11058  ;;  %7123 = vst [vmem:[%s12905_s29 + $0xb58] sm:$0xff] %v11057_v63 }
 0x673   : > { %v6811_v38 = vpop.f32.mrf.mxu1  ;;  %v6591_v61 = vadd.f32 %v13717_v1, %v6590_v43  ;;  %v11061_v40 = vpop.eup %11060  ;;  %7344 = vst [vmem:[%s12905_s29 + $0xf58] sm:$0xff] %v11059_v20  ;;  %11064 = vtanh.f32 %v7031_v46 }
 0x674   : > { %v6812_v10 = vadd.f32 %v13719_v17, %v6811_v38  ;;  %v11063_v7 = vpop.eup %11062  ;;  %6682 = vst [vmem:[%s12905_s29 + $0x360] sm:$0xff] %v11061_v40  ;;  %11066 = vtanh.f32 %v7252_v6 }
 0x675   : > { %6903 = vst [vmem:[%s12905_s29 + $0x760] sm:$0xff] %v11063_v7  ;;  %11068 = vtanh.f32 %v6591_v61 }
 0x676   : > { %11070 = vtanh.f32 %v6812_v10 }
 0x678   : > { %v7032_v3 = vpop.f32.mrf.mxu2 }
 0x679   : > { %v7253_v28 = vpop.f32.mrf.mxu3  ;;  %v11065_v22 = vpop.eup %11064  ;;  %v7033_v26 = vadd.f32 %v13729_v0, %v7032_v3 }
 0x67a   : > { %v7254_v9 = vadd.f32 %v13731_v59, %v7253_v28  ;;  %v6593_v53 = vpop.f32.mrf.mxu0  ;;  %v11067_v55 = vpop.eup %11066  ;;  %7124 = vst [vmem:[%s12905_s29 + $0xb60] sm:$0xff] %v11065_v22 }
 0x67b   : > { %v6814_v4 = vpop.f32.mrf.mxu1  ;;  %v6594_v34 = vadd.f32 %v13717_v1, %v6593_v53  ;;  %v11069_v12 = vpop.eup %11068  ;;  %7345 = vst [vmem:[%s12905_s29 + $0xf60] sm:$0xff] %v11067_v55  ;;  %11072 = vtanh.f32 %v7033_v26 }
 0x67c   : > { %v6815_v24 = vadd.f32 %v13719_v17, %v6814_v4  ;;  %6632 = vmatmul.bf16.gmra.mxu0 %v9207_v57  ;;  %v11071_v29 = vpop.eup %11070  ;;  %6683 = vst [vmem:[%s12905_s29 + $0x368] sm:$0xff] %v11069_v12  ;;  %11074 = vtanh.f32 %v7254_v9  ;;  %6853 = vmatmul.bf16.gmra.mxu1 %v9207_v57 }
 0x67d   : > { %6904 = vst [vmem:[%s12905_s29 + $0x768] sm:$0xff] %v11071_v29  ;;  %11076 = vtanh.f32 %v6594_v34  ;;  %7074 = vmatmul.bf16.gmra.mxu2 %v9207_v57  ;;  %7295 = vmatmul.bf16.gmra.mxu3 %v9207_v57 }
 0x67e   : > { %11078 = vtanh.f32 %v6815_v24 }
 0x680   : > { %v7035_v41 = vpop.f32.mrf.mxu2 }
 0x681   : > { %v7256_v42 = vpop.f32.mrf.mxu3  ;;  %v11073_v11 = vpop.eup %11072  ;;  %v7036_v2 = vadd.f32 %v13729_v0, %v7035_v41 }
 0x682   : > { %v7257_v45 = vadd.f32 %v13731_v59, %v7256_v42  ;;  %v6595_v13 = vpop.f32.mrf.mxu0  ;;  %v11075_v16 = vpop.eup %11074  ;;  %7125 = vst [vmem:[%s12905_s29 + $0xb68] sm:$0xff] %v11073_v11 }
 0x683   : > { %v6816_v5 = vpop.f32.mrf.mxu1  ;;  %v6596_v30 = vadd.f32 %v13717_v1, %v6595_v13  ;;  %v11077_v35 = vpop.eup %11076  ;;  %7346 = vst [vmem:[%s12905_s29 + $0xf68] sm:$0xff] %v11075_v16  ;;  %11080 = vtanh.f32 %v7036_v2 }
 0x684   : > { %v6817_v52 = vadd.f32 %v13719_v17, %v6816_v5  ;;  %v11079_v44 = vpop.eup %11078  ;;  %6684 = vst [vmem:[%s12905_s29 + $0x370] sm:$0xff] %v11077_v35  ;;  %11082 = vtanh.f32 %v7257_v45 }
 0x685   : > { %6905 = vst [vmem:[%s12905_s29 + $0x770] sm:$0xff] %v11079_v44  ;;  %11084 = vtanh.f32 %v6596_v30 }
 0x686   : > { %11086 = vtanh.f32 %v6817_v52 }
 0x688   : > { %v7037_v8 = vpop.f32.mrf.mxu2 }
 0x689   : > { %v7258_v48 = vpop.f32.mrf.mxu3  ;;  %v11081_v60 = vpop.eup %11080  ;;  %v7038_v56 = vadd.f32 %v13729_v0, %v7037_v8 }
 0x68a   : > { %v7259_v31 = vadd.f32 %v13731_v59, %v7258_v48  ;;  %v6598_v27 = vpop.f32.mrf.mxu0  ;;  %v11083_v37 = vpop.eup %11082  ;;  %7126 = vst [vmem:[%s12905_s29 + $0xb70] sm:$0xff] %v11081_v60 }
 0x68b   : > { %v6819_v33 = vpop.f32.mrf.mxu1  ;;  %v6599_v15 = vadd.f32 %v13717_v1, %v6598_v27  ;;  %v11085_v54 = vpop.eup %11084  ;;  %7347 = vst [vmem:[%s12905_s29 + $0xf70] sm:$0xff] %v11083_v37  ;;  %11088 = vtanh.f32 %v7038_v56 }
 0x68c   : > { %v6820_v50 = vadd.f32 %v13719_v17, %v6819_v33  ;;  %v11087_v25 = vpop.eup %11086  ;;  %6685 = vst [vmem:[%s12905_s29 + $0x378] sm:$0xff] %v11085_v54  ;;  %11090 = vtanh.f32 %v7259_v31 }
 0x68d   : > { %6906 = vst [vmem:[%s12905_s29 + $0x778] sm:$0xff] %v11087_v25  ;;  %11092 = vtanh.f32 %v6599_v15 }
 0x68e   : > { %11094 = vtanh.f32 %v6820_v50 }
 0x690   : > { %v7040_v39 = vpop.f32.mrf.mxu2 }
 0x691   : > { %v7261_v19 = vpop.f32.mrf.mxu3  ;;  %v11089_v14 = vpop.eup %11088  ;;  %v7041_v47 = vadd.f32 %v13729_v0, %v7040_v39 }
 0x692   : > { %v7262_v21 = vadd.f32 %v13731_v59, %v7261_v19  ;;  %v6600_v36 = vpop.f32.mrf.mxu0  ;;  %v11091_v62 = vpop.eup %11090  ;;  %7127 = vst [vmem:[%s12905_s29 + $0xb78] sm:$0xff] %v11089_v14 }
 0x693   : > { %v6821_v49 = vpop.f32.mrf.mxu1  ;;  %v6601_v23 = vadd.f32 %v13717_v1, %v6600_v36  ;;  %v11093_v18 = vpop.eup %11092  ;;  %7348 = vst [vmem:[%s12905_s29 + $0xf78] sm:$0xff] %v11091_v62  ;;  %11096 = vtanh.f32 %v7041_v47 }
 0x694   : > { %v6822_v32 = vadd.f32 %v13719_v17, %v6821_v49  ;;  %v11095_v58 = vpop.eup %11094  ;;  %6686 = vst [vmem:[%s12905_s29 + $0x380] sm:$0xff] %v11093_v18  ;;  %11098 = vtanh.f32 %v7262_v21 }
 0x695   : > { %6907 = vst [vmem:[%s12905_s29 + $0x780] sm:$0xff] %v11095_v58  ;;  %11100 = vtanh.f32 %v6601_v23 }
 0x696   : > { %11102 = vtanh.f32 %v6822_v32 }
 0x698   : > { %v7042_v51 = vpop.f32.mrf.mxu2 }
 0x699   : > { %v7263_v63 = vpop.f32.mrf.mxu3  ;;  %v11097_v46 = vpop.eup %11096  ;;  %v7043_v6 = vadd.f32 %v13729_v0, %v7042_v51 }
 0x69a   : > { %v7264_v43 = vadd.f32 %v13731_v59, %v7263_v63  ;;  %v6603_v38 = vpop.f32.mrf.mxu0  ;;  %v11099_v61 = vpop.eup %11098  ;;  %7128 = vst [vmem:[%s12905_s29 + $0xb80] sm:$0xff] %v11097_v46 }
 0x69b   : > { %v6824_v20 = vpop.f32.mrf.mxu1  ;;  %v6604_v10 = vadd.f32 %v13717_v1, %v6603_v38  ;;  %v11101_v7 = vpop.eup %11100  ;;  %7349 = vst [vmem:[%s12905_s29 + $0xf80] sm:$0xff] %v11099_v61  ;;  %11104 = vtanh.f32 %v7043_v6 }
 0x69c   : > { %v6825_v40 = vadd.f32 %v13719_v17, %v6824_v20  ;;  %v11103_v3 = vpop.eup %11102  ;;  %6687 = vst [vmem:[%s12905_s29 + $0x388] sm:$0xff] %v11101_v7  ;;  %11106 = vtanh.f32 %v7264_v43  ;;  %v13912_v20 = vld [vmem:[#allocation16] ss:$0 sm:$0xff] }
 0x69d   : > { %6908 = vst [vmem:[%s12905_s29 + $0x788] sm:$0xff] %v11103_v3  ;;  %11108 = vtanh.f32 %v6604_v10  ;;  %v13915_v10 = vld [vmem:[#allocation16 + $0x1] ss:$0 sm:$0xff] }
 0x69e   : > { %11110 = vtanh.f32 %v6825_v40 }
 0x6a0   : > { %v7045_v28 = vpop.f32.mrf.mxu2 }
 0x6a1   : > { %v7266_v22 = vpop.f32.mrf.mxu3  ;;  %v11105_v26 = vpop.eup %11104  ;;  %v7046_v9 = vadd.f32 %v13729_v0, %v7045_v28 }
 0x6a2   : > { %v7267_v53 = vadd.f32 %v13731_v59, %v7266_v22  ;;  %v6605_v4 = vpop.f32.mrf.mxu0  ;;  %v11107_v55 = vpop.eup %11106  ;;  %7129 = vst [vmem:[%s12905_s29 + $0xb88] sm:$0xff] %v11105_v26 }
 0x6a3   : > { %v6826_v57 = vpop.f32.mrf.mxu1  ;;  %v6606_v34 = vadd.f32 %v13717_v1, %v6605_v4  ;;  %v11109_v12 = vpop.eup %11108  ;;  %7350 = vst [vmem:[%s12905_s29 + $0xf88] sm:$0xff] %v11107_v55  ;;  %11112 = vtanh.f32 %v7046_v9 }
 0x6a4   : > { %v6827_v24 = vadd.f32 %v13719_v17, %v6826_v57  ;;  %v11111_v29 = vpop.eup %11110  ;;  %6688 = vst [vmem:[%s12905_s29 + $0x390] sm:$0xff] %v11109_v12  ;;  %11114 = vtanh.f32 %v7267_v53 }
 0x6a5   : > { %6909 = vst [vmem:[%s12905_s29 + $0x790] sm:$0xff] %v11111_v29  ;;  %11116 = vtanh.f32 %v6606_v34 }
 0x6a6   : > { %11118 = vtanh.f32 %v6827_v24 }
 0x6a8   : > { %v7047_v41 = vpop.f32.mrf.mxu2 }
 0x6a9   : > { %v7268_v42 = vpop.f32.mrf.mxu3  ;;  %v11113_v11 = vpop.eup %11112  ;;  %v7048_v2 = vadd.f32 %v13729_v0, %v7047_v41 }
 0x6aa   : > { %v7269_v45 = vadd.f32 %v13731_v59, %v7268_v42  ;;  %v6608_v13 = vpop.f32.mrf.mxu0  ;;  %v11115_v16 = vpop.eup %11114  ;;  %7130 = vst [vmem:[%s12905_s29 + $0xb90] sm:$0xff] %v11113_v11  ;;  %v13929_v42 = vld [vmem:[#allocation16 + $0x2] ss:$0 sm:$0xff] }
 0x6ab   : > { %v6829_v5 = vpop.f32.mrf.mxu1  ;;  %v6609_v30 = vadd.f32 %v13717_v1, %v6608_v13  ;;  %v11117_v35 = vpop.eup %11116  ;;  %7351 = vst [vmem:[%s12905_s29 + $0xf90] sm:$0xff] %v11115_v16  ;;  %11120 = vtanh.f32 %v7048_v2  ;;  %v13932_v2 = vld [vmem:[#allocation16 + $0x3] ss:$0 sm:$0xff] }
 0x6ac   : > { %v6830_v52 = vadd.f32 %v13719_v17, %v6829_v5  ;;  %v11119_v44 = vpop.eup %11118  ;;  %6689 = vst [vmem:[%s12905_s29 + $0x398] sm:$0xff] %v11117_v35  ;;  %11122 = vtanh.f32 %v7269_v45 }
 0x6ad   : > { %6910 = vst [vmem:[%s12905_s29 + $0x798] sm:$0xff] %v11119_v44  ;;  %11124 = vtanh.f32 %v6609_v30 }
 0x6ae   : > { %11126 = vtanh.f32 %v6830_v52 }
 0x6b0   : > { %v7050_v8 = vpop.f32.mrf.mxu2 }
 0x6b1   : > { %v7271_v48 = vpop.f32.mrf.mxu3  ;;  %v11121_v60 = vpop.eup %11120  ;;  %v7051_v56 = vadd.f32 %v13729_v0, %v7050_v8 }
 0x6b2   : > { %v7272_v31 = vadd.f32 %v13731_v59, %v7271_v48  ;;  %v6610_v27 = vpop.f32.mrf.mxu0  ;;  %v11123_v37 = vpop.eup %11122  ;;  %7131 = vst [vmem:[%s12905_s29 + $0xb98] sm:$0xff] %v11121_v60 }
 0x6b3   : > { %v6831_v33 = vpop.f32.mrf.mxu1  ;;  %v6611_v15 = vadd.f32 %v13717_v1, %v6610_v27  ;;  %v11125_v54 = vpop.eup %11124  ;;  %7352 = vst [vmem:[%s12905_s29 + $0xf98] sm:$0xff] %v11123_v37  ;;  %11128 = vtanh.f32 %v7051_v56 }
 0x6b4   : > { %v6832_v50 = vadd.f32 %v13719_v17, %v6831_v33  ;;  %v11127_v25 = vpop.eup %11126  ;;  %6690 = vst [vmem:[%s12905_s29 + $0x3a0] sm:$0xff] %v11125_v54  ;;  %11130 = vtanh.f32 %v7272_v31 }
 0x6b5   : > { %6911 = vst [vmem:[%s12905_s29 + $0x7a0] sm:$0xff] %v11127_v25  ;;  %11132 = vtanh.f32 %v6611_v15 }
 0x6b6   : > { %11134 = vtanh.f32 %v6832_v50 }
 0x6b8   : > { %v7052_v39 = vpop.f32.mrf.mxu2 }
 0x6b9   : > { %v7273_v19 = vpop.f32.mrf.mxu3  ;;  %v11129_v14 = vpop.eup %11128  ;;  %v7053_v47 = vadd.f32 %v13729_v0, %v7052_v39 }
 0x6ba   : > { %v7274_v21 = vadd.f32 %v13731_v59, %v7273_v19  ;;  %v6613_v36 = vpop.f32.mrf.mxu0  ;;  %v11131_v62 = vpop.eup %11130  ;;  %7132 = vst [vmem:[%s12905_s29 + $0xba0] sm:$0xff] %v11129_v14 }
 0x6bb   : > { %v6834_v49 = vpop.f32.mrf.mxu1  ;;  %v6614_v23 = vadd.f32 %v13717_v1, %v6613_v36  ;;  %v11133_v18 = vpop.eup %11132  ;;  %7353 = vst [vmem:[%s12905_s29 + $0xfa0] sm:$0xff] %v11131_v62  ;;  %11136 = vtanh.f32 %v7053_v47 }
 0x6bc   : > { %v6835_v32 = vadd.f32 %v13719_v17, %v6834_v49  ;;  %v11135_v58 = vpop.eup %11134  ;;  %6691 = vst [vmem:[%s12905_s29 + $0x3a8] sm:$0xff] %v11133_v18  ;;  %11138 = vtanh.f32 %v7274_v21 }
 0x6bd   : > { %6912 = vst [vmem:[%s12905_s29 + $0x7a8] sm:$0xff] %v11135_v58  ;;  %11140 = vtanh.f32 %v6614_v23 }
 0x6be   : > { %11142 = vtanh.f32 %v6835_v32 }
 0x6c0   : > { %v7055_v51 = vpop.f32.mrf.mxu2 }
 0x6c1   : > { %v7276_v63 = vpop.f32.mrf.mxu3  ;;  %v11137_v46 = vpop.eup %11136  ;;  %v7056_v6 = vadd.f32 %v13729_v0, %v7055_v51 }
 0x6c2   : > { %v7277_v1 = vadd.f32 %v13731_v59, %v7276_v63  ;;  %v6615_v17 = vpop.f32.mrf.mxu0  ;;  %v11139_v38 = vpop.eup %11138  ;;  %7133 = vst [vmem:[%s12905_s29 + $0xba8] sm:$0xff] %v11137_v46 }
 0x6c3   : > { %v6836_v43 = vpop.f32.mrf.mxu1  ;;  %v6616_v61 = vadd.f32 %v13912_v20, %v6615_v17  ;;  %v11141_v7 = vpop.eup %11140  ;;  %7354 = vst [vmem:[%s12905_s29 + $0xfa8] sm:$0xff] %v11139_v38  ;;  %11144 = vtanh.f32 %v7056_v6 }
 0x6c4   : > { %v6837_v40 = vadd.f32 %v13915_v10, %v6836_v43  ;;  %v11143_v3 = vpop.eup %11142  ;;  %6692 = vst [vmem:[%s12905_s29 + $0x3b0] sm:$0xff] %v11141_v7  ;;  %11146 = vtanh.f32 %v7277_v1 }
 0x6c5   : > { %6913 = vst [vmem:[%s12905_s29 + $0x7b0] sm:$0xff] %v11143_v3  ;;  %11148 = vtanh.f32 %v6616_v61 }
 0x6c6   : > { %11150 = vtanh.f32 %v6837_v40 }
 0x6c8   : > { %v7057_v28 = vpop.f32.mrf.mxu2 }
 0x6c9   : > { %v7278_v22 = vpop.f32.mrf.mxu3  ;;  %v11145_v26 = vpop.eup %11144  ;;  %v7058_v9 = vadd.f32 %v13729_v0, %v7057_v28 }
 0x6ca   : > { %v7279_v53 = vadd.f32 %v13731_v59, %v7278_v22  ;;  %v6618_v4 = vpop.f32.mrf.mxu0  ;;  %v11147_v55 = vpop.eup %11146  ;;  %7134 = vst [vmem:[%s12905_s29 + $0xbb0] sm:$0xff] %v11145_v26 }
 0x6cb   : > { %v6839_v57 = vpop.f32.mrf.mxu1  ;;  %v6619_v34 = vadd.f32 %v13912_v20, %v6618_v4  ;;  %v11149_v12 = vpop.eup %11148  ;;  %7355 = vst [vmem:[%s12905_s29 + $0xfb0] sm:$0xff] %v11147_v55  ;;  %11152 = vtanh.f32 %v7058_v9 }
 0x6cc   : > { %v6840_v24 = vadd.f32 %v13915_v10, %v6839_v57  ;;  %v11151_v29 = vpop.eup %11150  ;;  %6693 = vst [vmem:[%s12905_s29 + $0x3b8] sm:$0xff] %v11149_v12  ;;  %11154 = vtanh.f32 %v7279_v53 }
 0x6cd   : > { %6914 = vst [vmem:[%s12905_s29 + $0x7b8] sm:$0xff] %v11151_v29  ;;  %11156 = vtanh.f32 %v6619_v34 }
 0x6ce   : > { %11158 = vtanh.f32 %v6840_v24 }
 0x6d0   : > { %v7060_v0 = vpop.f32.mrf.mxu2 }
 0x6d1   : > { %v7281_v59 = vpop.f32.mrf.mxu3  ;;  %v11153_v41 = vpop.eup %11152  ;;  %v7061_v11 = vadd.f32 %v13929_v42, %v7060_v0 }
 0x6d2   : > { %v7282_v45 = vadd.f32 %v13932_v2, %v7281_v59  ;;  %v6620_v13 = vpop.f32.mrf.mxu0  ;;  %v11155_v16 = vpop.eup %11154  ;;  %7135 = vst [vmem:[%s12905_s29 + $0xbb8] sm:$0xff] %v11153_v41 }
 0x6d3   : > { %v6841_v5 = vpop.f32.mrf.mxu1  ;;  %v6621_v30 = vadd.f32 %v13912_v20, %v6620_v13  ;;  %v11157_v35 = vpop.eup %11156  ;;  %7356 = vst [vmem:[%s12905_s29 + $0xfb8] sm:$0xff] %v11155_v16  ;;  %11160 = vtanh.f32 %v7061_v11 }
 0x6d4   : > { %v6842_v52 = vadd.f32 %v13915_v10, %v6841_v5  ;;  %v11159_v44 = vpop.eup %11158  ;;  %6694 = vst [vmem:[%s12905_s29 + $0x3c0] sm:$0xff] %v11157_v35  ;;  %11162 = vtanh.f32 %v7282_v45 }
 0x6d5   : > { %6915 = vst [vmem:[%s12905_s29 + $0x7c0] sm:$0xff] %v11159_v44  ;;  %11164 = vtanh.f32 %v6621_v30 }
 0x6d6   : > { %11166 = vtanh.f32 %v6842_v52 }
 0x6d8   : > { %v7062_v8 = vpop.f32.mrf.mxu2 }
 0x6d9   : > { %v7283_v48 = vpop.f32.mrf.mxu3  ;;  %v11161_v60 = vpop.eup %11160  ;;  %v7063_v56 = vadd.f32 %v13929_v42, %v7062_v8 }
 0x6da   : > { %v7284_v31 = vadd.f32 %v13932_v2, %v7283_v48  ;;  %v6623_v27 = vpop.f32.mrf.mxu0  ;;  %v11163_v37 = vpop.eup %11162  ;;  %7136 = vst [vmem:[%s12905_s29 + $0xbc0] sm:$0xff] %v11161_v60 }
 0x6db   : > { %v6844_v33 = vpop.f32.mrf.mxu1  ;;  %v6624_v15 = vadd.f32 %v13912_v20, %v6623_v27  ;;  %v11165_v54 = vpop.eup %11164  ;;  %7357 = vst [vmem:[%s12905_s29 + $0xfc0] sm:$0xff] %v11163_v37  ;;  %11168 = vtanh.f32 %v7063_v56 }
 0x6dc   : > { %v6845_v50 = vadd.f32 %v13915_v10, %v6844_v33  ;;  %v11167_v25 = vpop.eup %11166  ;;  %6695 = vst [vmem:[%s12905_s29 + $0x3c8] sm:$0xff] %v11165_v54  ;;  %11170 = vtanh.f32 %v7284_v31 }
 0x6dd   : > { %6916 = vst [vmem:[%s12905_s29 + $0x7c8] sm:$0xff] %v11167_v25  ;;  %11172 = vtanh.f32 %v6624_v15 }
 0x6de   : > { %11174 = vtanh.f32 %v6845_v50 }
 0x6e0   : > { %v7065_v39 = vpop.f32.mrf.mxu2 }
 0x6e1   : > { %v7286_v19 = vpop.f32.mrf.mxu3  ;;  %v11169_v14 = vpop.eup %11168  ;;  %v7066_v47 = vadd.f32 %v13929_v42, %v7065_v39 }
 0x6e2   : > { %v7287_v21 = vadd.f32 %v13932_v2, %v7286_v19  ;;  %v6625_v36 = vpop.f32.mrf.mxu0  ;;  %v11171_v62 = vpop.eup %11170  ;;  %7137 = vst [vmem:[%s12905_s29 + $0xbc8] sm:$0xff] %v11169_v14 }
 0x6e3   : > { %v6846_v49 = vpop.f32.mrf.mxu1  ;;  %v6626_v23 = vadd.f32 %v13912_v20, %v6625_v36  ;;  %v11173_v18 = vpop.eup %11172  ;;  %7358 = vst [vmem:[%s12905_s29 + $0xfc8] sm:$0xff] %v11171_v62  ;;  %11176 = vtanh.f32 %v7066_v47 }
 0x6e4   : > { %v6847_v32 = vadd.f32 %v13915_v10, %v6846_v49  ;;  %v11175_v58 = vpop.eup %11174  ;;  %6696 = vst [vmem:[%s12905_s29 + $0x3d0] sm:$0xff] %v11173_v18  ;;  %11178 = vtanh.f32 %v7287_v21 }
 0x6e5   : > { %6917 = vst [vmem:[%s12905_s29 + $0x7d0] sm:$0xff] %v11175_v58  ;;  %11180 = vtanh.f32 %v6626_v23 }
 0x6e6   : > { %11182 = vtanh.f32 %v6847_v32 }
 0x6e8   : > { %v7067_v51 = vpop.f32.mrf.mxu2 }
 0x6e9   : > { %v7288_v63 = vpop.f32.mrf.mxu3  ;;  %v11177_v46 = vpop.eup %11176  ;;  %v7068_v6 = vadd.f32 %v13929_v42, %v7067_v51 }
 0x6ea   : > { %v7289_v1 = vadd.f32 %v13932_v2, %v7288_v63  ;;  %v6628_v17 = vpop.f32.mrf.mxu0  ;;  %v11179_v38 = vpop.eup %11178  ;;  %7138 = vst [vmem:[%s12905_s29 + $0xbd0] sm:$0xff] %v11177_v46 }
 0x6eb   : > { %v6849_v43 = vpop.f32.mrf.mxu1  ;;  %v6629_v61 = vadd.f32 %v13912_v20, %v6628_v17  ;;  %v11181_v7 = vpop.eup %11180  ;;  %7359 = vst [vmem:[%s12905_s29 + $0xfd0] sm:$0xff] %v11179_v38  ;;  %11184 = vtanh.f32 %v7068_v6 }
 0x6ec   : > { %v6850_v40 = vadd.f32 %v13915_v10, %v6849_v43  ;;  %v11183_v3 = vpop.eup %11182  ;;  %6697 = vst [vmem:[%s12905_s29 + $0x3d8] sm:$0xff] %v11181_v7  ;;  %11186 = vtanh.f32 %v7289_v1 }
 0x6ed   : > { %6918 = vst [vmem:[%s12905_s29 + $0x7d8] sm:$0xff] %v11183_v3  ;;  %11188 = vtanh.f32 %v6629_v61 }
 0x6ee   : > { %11190 = vtanh.f32 %v6850_v40 }
 0x6f0   : > { %v7070_v28 = vpop.f32.mrf.mxu2 }
 0x6f1   : > { %v7291_v22 = vpop.f32.mrf.mxu3  ;;  %v11185_v26 = vpop.eup %11184  ;;  %v7071_v9 = vadd.f32 %v13929_v42, %v7070_v28 }
 0x6f2   : > { %v7292_v53 = vadd.f32 %v13932_v2, %v7291_v22  ;;  %v6630_v4 = vpop.f32.mrf.mxu0  ;;  %v11187_v55 = vpop.eup %11186  ;;  %7139 = vst [vmem:[%s12905_s29 + $0xbd8] sm:$0xff] %v11185_v26 }
 0x6f3   : > { %v6851_v57 = vpop.f32.mrf.mxu1  ;;  %v6631_v34 = vadd.f32 %v13912_v20, %v6630_v4  ;;  %v11189_v12 = vpop.eup %11188  ;;  %7360 = vst [vmem:[%s12905_s29 + $0xfd8] sm:$0xff] %v11187_v55  ;;  %11192 = vtanh.f32 %v7071_v9 }
 0x6f4   : > { %v6852_v24 = vadd.f32 %v13915_v10, %v6851_v57  ;;  %v11191_v29 = vpop.eup %11190  ;;  %6698 = vst [vmem:[%s12905_s29 + $0x3e0] sm:$0xff] %v11189_v12  ;;  %11194 = vtanh.f32 %v7292_v53 }
 0x6f5   : > { %6919 = vst [vmem:[%s12905_s29 + $0x7e0] sm:$0xff] %v11191_v29  ;;  %11196 = vtanh.f32 %v6631_v34 }
 0x6f6   : > { %11198 = vtanh.f32 %v6852_v24 }
 0x6f8   : > { %v7072_v0 = vpop.f32.mrf.mxu2 }
 0x6f9   : > { %v7293_v59 = vpop.f32.mrf.mxu3  ;;  %v11193_v41 = vpop.eup %11192  ;;  %v7073_v11 = vadd.f32 %v13929_v42, %v7072_v0 }
 0x6fa   : > { %v7294_v45 = vadd.f32 %v13932_v2, %v7293_v59  ;;  %v6633_v13 = vpop.f32.mrf.mxu0  ;;  %v11195_v16 = vpop.eup %11194  ;;  %7140 = vst [vmem:[%s12905_s29 + $0xbe0] sm:$0xff] %v11193_v41 }
 0x6fb   : > { %v6854_v5 = vpop.f32.mrf.mxu1  ;;  %v6634_v30 = vadd.f32 %v13912_v20, %v6633_v13  ;;  %v11197_v35 = vpop.eup %11196  ;;  %7361 = vst [vmem:[%s12905_s29 + $0xfe0] sm:$0xff] %v11195_v16  ;;  %11200 = vtanh.f32 %v7073_v11 }
 0x6fc   : > { %v6855_v52 = vadd.f32 %v13915_v10, %v6854_v5  ;;  %v11199_v44 = vpop.eup %11198  ;;  %6699 = vst [vmem:[%s12905_s29 + $0x3e8] sm:$0xff] %v11197_v35  ;;  %11202 = vtanh.f32 %v7294_v45 }
 0x6fd   : > { %6920 = vst [vmem:[%s12905_s29 + $0x7e8] sm:$0xff] %v11199_v44  ;;  %11204 = vtanh.f32 %v6634_v30 }
 0x6fe   : > { %11206 = vtanh.f32 %v6855_v52 }
 0x700   : > { %v7075_v8 = vpop.f32.mrf.mxu2 }
 0x701   : > { %v7296_v48 = vpop.f32.mrf.mxu3  ;;  %v11201_v60 = vpop.eup %11200  ;;  %v7076_v56 = vadd.f32 %v13929_v42, %v7075_v8 }
 0x702   : > { %v7297_v31 = vadd.f32 %v13932_v2, %v7296_v48  ;;  %v6635_v27 = vpop.f32.mrf.mxu0  ;;  %v11203_v37 = vpop.eup %11202  ;;  %7141 = vst [vmem:[%s12905_s29 + $0xbe8] sm:$0xff] %v11201_v60 }
 0x703   : > { %v6856_v33 = vpop.f32.mrf.mxu1  ;;  %v6636_v15 = vadd.f32 %v13912_v20, %v6635_v27  ;;  %v11205_v54 = vpop.eup %11204  ;;  %7362 = vst [vmem:[%s12905_s29 + $0xfe8] sm:$0xff] %v11203_v37  ;;  %11208 = vtanh.f32 %v7076_v56 }
 0x704   : > { %v6857_v50 = vadd.f32 %v13915_v10, %v6856_v33  ;;  %v11207_v25 = vpop.eup %11206  ;;  %6700 = vst [vmem:[%s12905_s29 + $0x3f0] sm:$0xff] %v11205_v54  ;;  %11210 = vtanh.f32 %v7297_v31 }
 0x705   : > { %6921 = vst [vmem:[%s12905_s29 + $0x7f0] sm:$0xff] %v11207_v25  ;;  %11212 = vtanh.f32 %v6636_v15 }
 0x706   : > { %11214 = vtanh.f32 %v6857_v50 }
 0x708   : > { %v7077_v39 = vpop.f32.mrf.mxu2 }
 0x709   : > { %v7298_v19 = vpop.f32.mrf.mxu3  ;;  %v11209_v20 = vpop.eup %11208  ;;  %v7078_v10 = vadd.f32 %v13929_v42, %v7077_v39 }
 0x70a   : > { %v7299_v14 = vadd.f32 %v13932_v2, %v7298_v19  ;;  %v11211_v47 = vpop.eup %11210  ;;  %7142 = vst [vmem:[%s12905_s29 + $0xbf0] sm:$0xff] %v11209_v20 }
 0x70b   : > { %v11213_v21 = vpop.eup %11212  ;;  %7363 = vst [vmem:[%s12905_s29 + $0xff0] sm:$0xff] %v11211_v47  ;;  %11216 = vtanh.f32 %v7078_v10 }
 0x70c   : > { %v11215_v36 = vpop.eup %11214  ;;  %6701 = vst [vmem:[%s12905_s29 + $0x3f8] sm:$0xff] %v11213_v21  ;;  %11218 = vtanh.f32 %v7299_v14 }
 0x70d   : > { %6922 = vst [vmem:[%s12905_s29 + $0x7f8] sm:$0xff] %v11215_v36 }
 0x711   : > { %v11217_v49 = vpop.eup %11216 }
 0x712   : > { %v11219_v62 = vpop.eup %11218  ;;  %7143 = vst [vmem:[%s12905_s29 + $0xbf8] sm:$0xff] %v11217_v49 }
 0x713   : > { %7364 = vst [vmem:[%s12905_s29 + $0xff8] sm:$0xff] %v11219_v62 }
 0x714 PF: > { %s24_s30 = sadd.s32 1, %s11510_s30  }
 0x715   : > { %p21_p8 = scmp.ge.s32.totalorder %s24_s30, 4  }
 0x717   :  { %23 = sbr.rel (!%p21_p8) target bundleno = 5 (0x5), region = 119 }
 0x71c   :  { %7387 = vsyncpa [#allocation6], 1 }
 0x71d   :  { %7389 = vsyncpa [#allocation6 + $0x1], 1 }
 0x71e   :  { %7390 = vsyncpa [#allocation8], 1 }
 0x71f   :  { %7391 = vsyncpa [#allocation11], 1 }
 0x720   :  { %7392 = vsyncpa [#allocation14], 1 }
 0x721   :  { %7393 = vsyncpa [#allocation17], 1 }

</bundles_post_ra>
